<compile_context>
chip_gen: v6e
topology: v6e:2x2x1
jax: 0.10.0
libtpu: 0.0.40
codegen_flags: <defaults>
</compile_context>

<pallas_src>
import jax
import jax.numpy as jnp
from jax.experimental import pallas as pl
from jax.experimental.pallas import tpu as pltpu

EPS = 1e-5  # BatchNorm2d eps


def bn_relu_conv1x1_kernel(x_ref, gamma_ref, beta_ref, w_ref, o_ref):
    # x_ref:     (Cin, M)  full channel-major activation (constant block index -> fetched once)
    # gamma_ref: (Cin, 1)  BN weight
    # beta_ref:  (Cin, 1)  BN bias
    # w_ref:     (TN, Cin) one row-tile of the (Cout, Cin) 1x1-conv weight
    # o_ref:     (TN, M)   matching output tile
    x = x_ref[...]
    m = x.shape[1]
    inv_m = 1.0 / m

    # Single pass over x for both moments (per-channel, reduction over N*H*W = lane axis).
    s1 = jnp.sum(x, axis=1, keepdims=True)           # (Cin, 1)
    s2 = jnp.sum(x * x, axis=1, keepdims=True)       # (Cin, 1)
    mean = s1 * inv_m
    var = s2 * inv_m - mean * mean                   # biased variance (training-mode BN)

    # Fold BN into a single per-channel scale/shift (no full-size temporaries).
    scale = gamma_ref[...] * jax.lax.rsqrt(var + EPS)    # (Cin, 1)
    shift = beta_ref[...] - mean * scale                  # (Cin, 1)

    # One fused normalize + affine + ReLU pass; cast to bf16 for the MXU.
    xrelu = jnp.maximum(x * scale + shift, 0.0).astype(jnp.bfloat16)

    # 1x1 conv (no bias) == matmul on the MXU, f32 accumulation.
    o_ref[...] = jnp.dot(
        w_ref[...].astype(jnp.bfloat16),
        xrelu,
        preferred_element_type=jnp.float32,
    ).astype(o_ref.dtype)


def _pick_tn(cout):
    # v7x has two TensorCores: split the output rows so each core takes one tile.
    # v5e/v6e are single-core: one grid step computes everything (BN runs exactly once).
    try:
        kind = jax.devices()[0].device_kind.lower()
    except Exception:
        kind = ""
    if "v7" in kind and cout % 2 == 0 and (cout // 2) % 8 == 0:
        return cout // 2
    return cout


def bn_relu_conv1x1(x_nchw, gamma, beta, w_oihw, *, tn=None):
    """BatchNorm2d(training-mode batch stats) -> ReLU -> Conv2d(1x1, bias=False)."""
    N, C, H, W = x_nchw.shape
    Cout = w_oihw.shape[0]
    M = N * H * W
    if tn is None:
        tn = _pick_tn(Cout)
    assert C % 8 == 0 and tn % 8 == 0 and Cout % tn == 0

    # Channel-major activation: zero-copy for N == 1 (plain reshape of contiguous NCHW).
    if N == 1:
        x_cm = x_nchw.reshape(C, M)
    else:
        # TODO(synk): for large N the full (C, M) block should be M-tiled (two-pass stats);
        # fine at this problem size (~0.8 MB), well inside every generation's VMEM.
        x_cm = jnp.transpose(x_nchw, (1, 0, 2, 3)).reshape(C, M)
    w2d = w_oihw.reshape(Cout, C)                         # (Cout, Cin)
    g = gamma.reshape(C, 1).astype(jnp.float32)
    b = beta.reshape(C, 1).astype(jnp.float32)

    out = pl.pallas_call(
        bn_relu_conv1x1_kernel,
        out_shape=jax.ShapeDtypeStruct((Cout, M), x_nchw.dtype),
        grid_spec=pltpu.PrefetchScalarGridSpec(
            num_scalar_prefetch=0,
            grid=(Cout // tn,),
            in_specs=[
                pl.BlockSpec((C, M), lambda j: (0, 0)),    # x: resident across steps
                pl.BlockSpec((C, 1), lambda j: (0, 0)),
                pl.BlockSpec((C, 1), lambda j: (0, 0)),
                pl.BlockSpec((tn, C), lambda j: (j, 0)),   # weight row-tile
            ],
            out_specs=pl.BlockSpec((tn, M), lambda j: (j, 0)),
        ),
        compiler_params=pltpu.CompilerParams(
            # Steps are fully independent (each recomputes its own per-channel stats),
            # so "parallel" is safe on v7x's two cores and a no-op on v5e/v6e.
            dimension_semantics=("parallel",),
        ),
    )(x_cm, g, b, w2d)

    # Back to NCHW; zero-copy reshape when N == 1.
    if N == 1:
        return out.reshape(1, Cout, H, W)
    return out.reshape(Cout, N, H, W).transpose(1, 0, 2, 3)


def _reference(x_nchw, gamma, beta, w_oihw):
    # Pure-JAX f32 reference of the same semantics (training-mode BN, biased variance).
    mean = jnp.mean(x_nchw, axis=(0, 2, 3), keepdims=True)
    var = jnp.var(x_nchw, axis=(0, 2, 3), keepdims=True)
    xhat = (x_nchw - mean) * jax.lax.rsqrt(var + EPS)
    xhat = xhat * gamma.reshape(1, -1, 1, 1) + beta.reshape(1, -1, 1, 1)
    xr = jnp.maximum(xhat, 0.0)
    w2d = w_oihw.reshape(w_oihw.shape[0], w_oihw.shape[1])   # (Cout, Cin)
    return jnp.einsum("nchw,oc->nohw", xr, w2d)


if __name__ == "__main__":
    key = jax.random.PRNGKey(0)
    k_x, k_w, k_g, k_b = jax.random.split(key, 4)

    # Shapes from the module: BN(256) -> ReLU -> Conv2d(256 -> 1024, 1x1), input (1, 256, 28, 28).
    N, C, H, W = 1, 256, 28, 28
    Cout = 1024

    x = jax.random.normal(k_x, (N, C, H, W), dtype=jnp.float32)
    gamma = 1.0 + 0.1 * jax.random.normal(k_g, (C,), dtype=jnp.float32)
    beta = 0.1 * jax.random.normal(k_b, (C,), dtype=jnp.float32)
    w = jax.random.normal(k_w, (Cout, C, 1, 1), dtype=jnp.float32) * 0.05

    out = bn_relu_conv1x1(x, gamma, beta, w)
    out = jax.block_until_ready(out)

    ref = _reference(x, gamma, beta, w)
    assert out.shape == (N, Cout, H, W), out.shape
    max_err = float(jnp.max(jnp.abs(out - ref)))
    # bf16 MXU operands with f32 accumulation: allow bf16-level tolerance vs the f32 reference.
    assert max_err < 3e-2, max_err
    print("KERNEL_OK")
</pallas_src>

<mosaic_0001>
module attributes {stable_mosaic.version = 11 : i64} {
  func.func @bn_relu_conv1x1_kernel(%arg0: i32, %arg1: memref<256x784xf32, #tpu.memory_space<vmem>>, %arg2: memref<256x1xf32, #tpu.memory_space<vmem>>, %arg3: memref<256x1xf32, #tpu.memory_space<vmem>>, %arg4: memref<1024x256xf32, #tpu.memory_space<vmem>>, %arg5: memref<1024x784xf32, #tpu.memory_space<vmem>>) attributes {dimension_semantics = [#tpu.dimension_semantics<parallel>], iteration_bounds = array<i64: 1>, scalar_prefetch = 0 : i64, scratch_operands = 0 : i64, tpu.core_type = #tpu.core_type<tc>, window_params = [{pipeline_mode = #tpu.pipeline_mode<synchronous>, transform_indices = @transform_0, window_bounds = array<i64: 256, 784>}, {pipeline_mode = #tpu.pipeline_mode<synchronous>, transform_indices = @transform_1, window_bounds = array<i64: 256, 1>}, {pipeline_mode = #tpu.pipeline_mode<synchronous>, transform_indices = @transform_2, window_bounds = array<i64: 256, 1>}, {transform_indices = @transform_3, window_bounds = array<i64: 1024, 256>}, {transform_indices = @transform_4, window_bounds = array<i64: 1024, 784>}]} {
    %c0 = arith.constant 0 : index
    %c0_0 = arith.constant 0 : index
    %0 = vector.load %arg1[%c0, %c0_0] : memref<256x784xf32, #tpu.memory_space<vmem>>, vector<256x784xf32>
    %cst = arith.constant dense<0.000000e+00> : vector<256xf32>
    %1 = vector.multi_reduction <add>, %0, %cst [1] : vector<256x784xf32> to vector<256xf32>
    %2 = vector.shape_cast %1 : vector<256xf32> to vector<256x1xf32>
    %3 = arith.mulf %0, %0 : vector<256x784xf32>
    %cst_1 = arith.constant dense<0.000000e+00> : vector<256xf32>
    %4 = vector.multi_reduction <add>, %3, %cst_1 [1] : vector<256x784xf32> to vector<256xf32>
    %5 = vector.shape_cast %4 : vector<256xf32> to vector<256x1xf32>
    %cst_2 = arith.constant 0.00127551018 : f32
    %6 = vector.broadcast %cst_2 : f32 to vector<256x1xf32>
    %7 = arith.mulf %2, %6 : vector<256x1xf32>
    %cst_3 = arith.constant 0.00127551018 : f32
    %8 = vector.broadcast %cst_3 : f32 to vector<256x1xf32>
    %9 = arith.mulf %5, %8 : vector<256x1xf32>
    %10 = arith.mulf %7, %7 : vector<256x1xf32>
    %11 = arith.subf %9, %10 : vector<256x1xf32>
    %c0_4 = arith.constant 0 : index
    %c0_5 = arith.constant 0 : index
    %12 = vector.load %arg2[%c0_4, %c0_5] : memref<256x1xf32, #tpu.memory_space<vmem>>, vector<256x1xf32>
    %cst_6 = arith.constant 9.99999974E-6 : f32
    %13 = vector.broadcast %cst_6 : f32 to vector<256x1xf32>
    %14 = arith.addf %11, %13 : vector<256x1xf32>
    %15 = math.rsqrt %14 : vector<256x1xf32>
    %16 = arith.mulf %12, %15 : vector<256x1xf32>
    %c0_7 = arith.constant 0 : index
    %c0_8 = arith.constant 0 : index
    %17 = vector.load %arg3[%c0_7, %c0_8] : memref<256x1xf32, #tpu.memory_space<vmem>>, vector<256x1xf32>
    %18 = arith.mulf %7, %16 : vector<256x1xf32>
    %19 = arith.subf %17, %18 : vector<256x1xf32>
    %20 = vector.broadcast %16 : vector<256x1xf32> to vector<256x784xf32>
    %21 = arith.mulf %0, %20 : vector<256x784xf32>
    %22 = vector.broadcast %19 : vector<256x1xf32> to vector<256x784xf32>
    %23 = arith.addf %21, %22 : vector<256x784xf32>
    %cst_9 = arith.constant 0.000000e+00 : f32
    %24 = vector.broadcast %cst_9 : f32 to vector<256x784xf32>
    %25 = arith.maximumf %23, %24 : vector<256x784xf32>
    %26 = arith.truncf %25 : vector<256x784xf32> to vector<256x784xbf16>
    %c0_10 = arith.constant 0 : index
    %c0_11 = arith.constant 0 : index
    %27 = vector.load %arg4[%c0_10, %c0_11] : memref<1024x256xf32, #tpu.memory_space<vmem>>, vector<1024x256xf32>
    %28 = arith.truncf %27 : vector<1024x256xf32> to vector<1024x256xbf16>
    %cst_12 = arith.constant dense<0.000000e+00> : vector<1024x784xf32>
    %29 = tpu.matmul %28, %26, %cst_12 {dimension_numbers = #tpu.dot_dimension_numbers<[1], [0], [0], [1], [0, 0, 1, 1], [], []>} : vector<1024x256xbf16>, vector<256x784xbf16>, vector<1024x784xf32> -> vector<1024x784xf32>
    %c0_13 = arith.constant 0 : index
    %c0_14 = arith.constant 0 : index
    %30 = vector.load %arg5[%c0_13, %c0_14] : memref<1024x784xf32, #tpu.memory_space<vmem>>, vector<1024x784xf32>
    tpu.vector_store %arg5[%c0_13, %c0_14], %29 {strides = array<i32>} : memref<1024x784xf32, #tpu.memory_space<vmem>>, vector<1024x784xf32>,
    return
  }
  func.func @transform_0(%arg0: i32) -> (i32, i32) {
    %c0_i32 = arith.constant 0 : i32
    %c0_i32_0 = arith.constant 0 : i32
    %c0_i32_1 = arith.constant 0 : i32
    return %c0_i32, %c0_i32_0 : i32, i32
  }
  func.func @transform_1(%arg0: i32) -> (i32, i32) {
    %c0_i32 = arith.constant 0 : i32
    %c0_i32_0 = arith.constant 0 : i32
    %c0_i32_1 = arith.constant 0 : i32
    return %c0_i32, %c0_i32_0 : i32, i32
  }
  func.func @transform_2(%arg0: i32) -> (i32, i32) {
    %c0_i32 = arith.constant 0 : i32
    %c0_i32_0 = arith.constant 0 : i32
    %c0_i32_1 = arith.constant 0 : i32
    return %c0_i32, %c0_i32_0 : i32, i32
  }
  func.func @transform_3(%arg0: i32) -> (i32, i32) {
    %c0_i32 = arith.constant 0 : i32
    %c0_i32_0 = arith.constant 0 : i32
    return %arg0, %c0_i32 : i32, i32
  }
  func.func @transform_4(%arg0: i32) -> (i32, i32) {
    %c0_i32 = arith.constant 0 : i32
    %c0_i32_0 = arith.constant 0 : i32
    return %arg0, %c0_i32 : i32, i32
  }
}

</mosaic_0001>

<bundles_post_ra>
// kernel: tpu_custom_call.1
= control target key start
LH: loop header
LB: loop body
LE: loop exit
PB: predicated region body
PF: predicated region fallthrough
CT: control target
= control target key end

     0   :  { %9 = vsyncpa [#allocation3], 0  ;;  %s6678_s15 = smov [#allocation2]   ;;  %s13219_s0 = inlined_call_operand.vmem [shape: f32[256,784], index: 0, kind: input, shape index: {}]   ;;  %s13220_s1 = inlined_call_operand.vmem [shape: f32[256,1], index: 1, kind: input, shape index: {}]   ;;  %s13221_s2 = inlined_call_operand.vmem [shape: f32[256,1], index: 2, kind: input, shape index: {}]   ;;  %s13222_s3 = inlined_call_operand.hbm [shape: f32[1024,256], index: 3, kind: input, shape index: {}]   ;;  %s13223_s4 = inlined_call_operand.vmem [shape: f32[1024,784], index: 4, kind: output, shape index: {}]  }
   0x1   :  { %s21_s16 = sshll.u32 %s6678_s15, 4  ;;  %s22_s16 = int_to_ptr.vmem [resolvable:$true] %s21_s16 }
   0x2   :  { %s6664_s17 = scalar_lea.vmem %s22_s16, 32768  ;;  %p6669_p1 = scmp.lt.s32.totalorder %s22_s16, %s22_s16 }
   0x3   :  { %p6665_p0 = scmp.ne.s32.totalorder %s22_s16, %s6664_s17  ;;  %p6670_p2 = scmp.lt.s32.totalorder %s6664_s17, %s6664_s17 }
   0x5   :  { %p6671_p3 = por %p6670_p2, %p6669_p1 }
   0x7   :  { %p6672_p4 = pnand %p6671_p3, %p6665_p0 }
   0x9   :  { %6675 = shalt.err (!%p6672_p4)
}
   0xa   :  { %s6679_s18 = smov 256   ;;  %s6680_s19 = smov 16  }
   0xb   :  { %27 = dma.hbm_to_vmem [thread:$0]  %s13222_s3, 32768, %s22_s16, [#allocation3], %s6679_s18, %s6679_s18, %s6680_s19  }
   0xc   :  { %6676 = dma.done.wait [#allocation3], 32768  }
   0xd   :  { %6677 = vsyncadd [#allocation3], 4294934528  ;;  %v130_v0 = vld [vmem:[%s13219_s0 + $0x310] sm:$0xff]  ;;  %v131_v1 = vld [vmem:[%s13219_s0 + $0x318] sm:$0xff]  ;;  %vm261_vm0 = vcmask 130048  }
   0xe   :  { %v132_v2 = vld [vmem:[%s13219_s0 + $0x320] sm:$0xff]  ;;  %v133_v3 = vld [vmem:[%s13219_s0 + $0x328] sm:$0xff]  ;;  %v383_v4 = vadd.f32 %v131_v1, %v130_v0  ;;  %v643_v5 = vmul.f32 %v130_v0, %v130_v0  ;;  %v644_v6 = vmul.f32 %v131_v1, %v131_v1  ;;  %v123_v8 = vld [vmem:[%s13219_s0 + $0x2d8] sm:$0xff] }
   0xf   :  { %v136_v7 = vld [vmem:[%s13219_s0 + $0x340] sm:$0xff]  ;;  %v645_v10 = vmul.f32 %v132_v2, %v132_v2  ;;  %v134_v11 = vld [vmem:[%s13219_s0 + $0x330] sm:$0xff]  ;;  %v135_v12 = vld [vmem:[%s13219_s0 + $0x338] sm:$0xff]  ;;  %v646_v16 = vmul.f32 %v133_v3, %v133_v3  ;;  %v6760_v29 = vmul.f32 %v123_v8, %v123_v8 }
  0x10   :  { %v124_v9 = vld [vmem:[%s13219_s0 + $0x2e0] sm:$0xff]  ;;  %v384_v13 = vadd.f32 %v383_v4, %v132_v2  ;;  %v125_v14 = vld [vmem:[%s13219_s0 + $0x2e8] sm:$0xff]  ;;  %v649_v17 = vmul.f32 %v136_v7, %v136_v7  ;;  %v388_v18 = vsel %vm261_vm0, %v136_v7, 0.0  ;;  %v6744_v19 = vld [vmem:[%s13219_s0 + $0x2f0] sm:$0xff]  ;;  %v647_v22 = vmul.f32 %v134_v11, %v134_v11 }
  0x11   :  { %v374_v15 = vadd.f32 %v124_v9, %v123_v8  ;;  %v6749_v20 = vld [vmem:[%s13219_s0 + $0x308] sm:$0xff]  ;;  %v648_v23 = vmul.f32 %v135_v12, %v135_v12  ;;  %v895_v24 = vadd.f32 %v644_v6, %v643_v5  ;;  %v138_v27 = vld [vmem:[%s13219_s0 + $0x350] sm:$0xff]  ;;  %v139_v28 = vld [vmem:[%s13219_s0 + $0x358] sm:$0xff]  ;;  %v6762_v30 = vmul.f32 %v124_v9, %v124_v9 }
  0x12   :  { %v137_v21 = vld [vmem:[%s13219_s0 + $0x348] sm:$0xff]  ;;  %v385_v25 = vadd.f32 %v384_v13, %v133_v3  ;;  %v6767_v31 = vld [vmem:[%s13219_s0 + $0x2f8] sm:$0xff]  ;;  %v379_v32 = vsel %vm261_vm0, %v6749_v20, 0.0  ;;  %v140_v33 = vld [vmem:[%s13219_s0 + $0x360] sm:$0xff]  ;;  %v6777_v37 = vmul.f32 %v125_v14, %v125_v14  ;;  %v900_v43 = vsel %vm261_vm0, %v649_v17, 0.0 }
  0x13   :  { %v375_v26 = vadd.f32 %v374_v15, %v125_v14  ;;  %v143_v34 = vld [vmem:[%s13219_s0 + $0x378] sm:$0xff]  ;;  %v392_v35 = vadd.f32 %v138_v27, %v137_v21  ;;  %v896_v36 = vadd.f32 %v895_v24, %v645_v10  ;;  %v6783_v40 = vld [vmem:[%s13219_s0 + $0x268] sm:$0xff]  ;;  %v6788_v41 = vld [vmem:[%s13219_s0 + $0x270] sm:$0xff]  ;;  %v650_v44 = vmul.f32 %v137_v21, %v137_v21 }
  0x14   :  { %v386_v38 = vadd.f32 %v385_v25, %v134_v11  ;;  %v6793_v42 = vld [vmem:[%s13219_s0 + $0x278] sm:$0xff]  ;;  %v6799_v45 = vld [vmem:[%s13219_s0 + $0x300] sm:$0xff]  ;;  %v141_v46 = vld [vmem:[%s13219_s0 + $0x368] sm:$0xff]  ;;  %v356_v48 = vadd.f32 %v6788_v41, %v6783_v40  ;;  %v651_v50 = vmul.f32 %v138_v27, %v138_v27  ;;  %v397_v53 = vsel %vm261_vm0, %v143_v34, 0.0 }
  0x15   :  { %v376_v39 = vadd.f32 %v375_v26, %v6744_v19  ;;  %v393_v47 = vadd.f32 %v392_v35, %v139_v28  ;;  %v897_v49 = vadd.f32 %v896_v36, %v646_v16  ;;  %v6811_v54 = vld [vmem:[%s13219_s0 + $0x280] sm:$0xff]  ;;  %v117_v56 = vld [vmem:[%s13219_s0 + $0x2a8] sm:$0xff]  ;;  %v652_v57 = vmul.f32 %v139_v28, %v139_v28  ;;  %v142_v58 = vld [vmem:[%s13219_s0 + $0x370] sm:$0xff] }
  0x16   :  { %v387_v51 = vadd.f32 %v386_v38, %v135_v12  ;;  %v116_v55 = vld [vmem:[%s13219_s0 + $0x2a0] sm:$0xff]  ;;  %v357_v60 = vadd.f32 %v356_v48, %v6793_v42  ;;  %v118_v61 = vld [vmem:[%s13219_s0 + $0x2b0] sm:$0xff]  ;;  %v653_v63 = vmul.f32 %v140_v33, %v140_v33  ;;  %v6830_v2 = vld [vmem:[%s13219_s0 + $0x288] sm:$0xff]  ;;  %v656_v5 = vmul.f32 %v143_v34, %v143_v34 }
  0x17   :  { %v377_v52 = vadd.f32 %v376_v39, %v6767_v31  ;;  %v394_v59 = vadd.f32 %v393_v47, %v140_v33  ;;  %v365_v62 = vadd.f32 %v117_v56, %v116_v55  ;;  %v119_v3 = vld [vmem:[%s13219_s0 + $0x2b8] sm:$0xff]  ;;  %v898_v4 = vadd.f32 %v897_v49, %v647_v22  ;;  %v6838_v6 = vld [vmem:[%s13219_s0 + $0x230] sm:$0xff]  ;;  %v120_v16 = vld [vmem:[%s13219_s0 + $0x2c0] sm:$0xff] }
  0x18   :  { %v389_v0 = vadd.f32 %v388_v18, %v387_v51  ;;  %v6843_v8 = vld [vmem:[%s13219_s0 + $0x298] sm:$0xff]  ;;  %v358_v9 = vadd.f32 %v357_v60, %v6811_v54  ;;  %v122_v10 = vld [vmem:[%s13219_s0 + $0x2d0] sm:$0xff]  ;;  %v654_v12 = vmul.f32 %v141_v46, %v141_v46  ;;  %v655_v18 = vmul.f32 %v142_v58, %v142_v58  ;;  %v6865_v22 = vld [vmem:[%s13219_s0 + $0x240] sm:$0xff] }
  0x19   :  { %v378_v1 = vadd.f32 %v377_v52, %v6799_v45  ;;  %v395_v7 = vadd.f32 %v394_v59, %v141_v46  ;;  %v366_v11 = vadd.f32 %v365_v62, %v118_v61  ;;  %v6852_v13 = vld [vmem:[%s13219_s0 + $0x238] sm:$0xff]  ;;  %v6857_v15 = vld [vmem:[%s13219_s0 + $0x290] sm:$0xff]  ;;  %v899_v17 = vadd.f32 %v898_v4, %v648_v23  ;;  %v6871_v27 = vld [vmem:[%s13219_s0 + $0x260] sm:$0xff] }
  0x1a   :  { %390 = vadd.xlane.f32.xlu0 %v389_v0  ;;  %v904_v21 = vadd.f32 %v651_v50, %v650_v44  ;;  %v359_v25 = vadd.f32 %v358_v9, %v6830_v2  ;;  %v347_v28 = vadd.f32 %v6852_v13, %v6838_v6  ;;  %v361_v23 = vsel %vm261_vm0, %v6843_v8, 0.0  ;;  %v6885_v36 = vld [vmem:[%s13219_s0 + $0x248] sm:$0xff]  ;;  %v6892_v49 = vld [vmem:[%s13219_s0 + $0x250] sm:$0xff]  ;;  %v107_v59 = vld [vmem:[%s13219_s0 + $0x258] sm:$0xff] }
  0x1b   :  { %v380_v14 = vadd.f32 %v379_v32, %v378_v1  ;;  %v396_v24 = vadd.f32 %v395_v7, %v142_v58  ;;  %v367_v26 = vadd.f32 %v366_v11, %v119_v3  ;;  %v121_v32 = vld [vmem:[%s13219_s0 + $0x2c8] sm:$0xff]  ;;  %v370_v33 = vsel %vm261_vm0, %v122_v10, 0.0 }
  0x1c   :  { %v905_v34 = vadd.f32 %v904_v21, %v652_v57  ;;  %v909_v35 = vsel %vm261_vm0, %v656_v5, 0.0  ;;  %v360_v39 = vadd.f32 %v359_v25, %v6857_v15  ;;  %v348_v46 = vadd.f32 %v347_v28, %v6865_v22  ;;  %v96_v25 = vld [vmem:[%s13219_s0 + $0x200] sm:$0xff] }
  0x1d   :  { %381 = vadd.xlane.f32.xlu1 %v380_v14  ;;  %v398_v38 = vadd.f32 %v397_v53, %v396_v24  ;;  %v368_v44 = vadd.f32 %v367_v26, %v120_v16  ;;  %v901_v47 = vadd.f32 %v900_v43, %v899_v17  ;;  %v352_v50 = vsel %vm261_vm0, %v6871_v27, 0.0 }
  0x1e   :  { %v906_v48 = vadd.f32 %v905_v34, %v653_v63  ;;  %v639_v51 = vmul.f32 %v6744_v19, %v6744_v19  ;;  %v362_v52 = vadd.f32 %v361_v23, %v360_v39  ;;  %v349_v57 = vadd.f32 %v348_v46, %v6885_v36  ;;  %v89_v23 = vld [vmem:[%s13219_s0 + $0x1c8] sm:$0xff] }
  0x1f   :  { %399 = vadd.xlane.f32.xlu0 %v398_v38  ;;  %v369_v53 = vadd.f32 %v368_v44, %v121_v32  ;;  %v886_v43 = vadd.f32 %v6762_v30, %v6760_v29  ;;  %v640_v60 = vmul.f32 %v6767_v31, %v6767_v31  ;;  %v629_v62 = vmul.f32 %v116_v55, %v116_v55  ;;  %v90_v44 = vld [vmem:[%s13219_s0 + $0x1d0] sm:$0xff] }
  0x20   :  { %v907_v58 = vadd.f32 %v906_v48, %v654_v12  ;;  %v630_v63 = vmul.f32 %v117_v56, %v117_v56  ;;  %v350_v0 = vadd.f32 %v349_v57, %v6892_v49  ;;  %v631_v4 = vmul.f32 %v118_v61, %v118_v61  ;;  %v98_v48 = vld [vmem:[%s13219_s0 + $0x210] sm:$0xff] }
  0x21   :  { %363 = vadd.xlane.f32.xlu1 %v362_v52  ;;  %v371_v19 = vadd.f32 %v370_v33, %v369_v53  ;;  %v887_v1 = vadd.f32 %v886_v43, %v6777_v37  ;;  %v641_v29 = vmul.f32 %v6799_v45, %v6799_v45  ;;  %v642_v30 = vmul.f32 %v6749_v20, %v6749_v20  ;;  %v91_v43 = vld [vmem:[%s13219_s0 + $0x1d8] sm:$0xff] }
  0x22   :  { %v908_v5 = vadd.f32 %v907_v58, %v655_v18  ;;  %v632_v7 = vmul.f32 %v119_v3, %v119_v3  ;;  %v351_v9 = vadd.f32 %v350_v0, %v107_v59  ;;  %v633_v55 = vmul.f32 %v120_v16, %v120_v16 }
  0x23   :  { %372 = vadd.xlane.f32.xlu0 %v371_v19  ;;  %v888_v31 = vadd.f32 %v887_v1, %v639_v51  ;;  %v877_v56 = vadd.f32 %v630_v63, %v629_v62  ;;  %v635_v12 = vmul.f32 %v122_v10, %v122_v10  ;;  %v622_v14 = vmul.f32 %v6783_v40, %v6783_v40 }
  0x24   :  { %v910_v11 = vadd.f32 %v909_v35, %v908_v5  ;;  %v623_v37 = vmul.f32 %v6788_v41, %v6788_v41  ;;  %v353_v61 = vadd.f32 %v352_v50, %v351_v9  ;;  %v624_v20 = vmul.f32 %v6793_v42, %v6793_v42  ;;  %v95_v42 = vld [vmem:[%s13219_s0 + $0x1f8] sm:$0xff]  ;;  %v101_v50 = vld [vmem:[%s13219_s0 + $0x228] sm:$0xff] }
  0x25   :  { %902 = vadd.xlane.f32.xlu1 %v901_v47  ;;  %v889_v45 = vadd.f32 %v888_v31, %v640_v60  ;;  %v878_v17 = vadd.f32 %v877_v56, %v631_v4  ;;  %v891_v3 = vsel %vm261_vm0, %v642_v30, 0.0  ;;  %v634_v18 = vmul.f32 %v121_v32, %v121_v32  ;;  %v99_v60 = vld [vmem:[%s13219_s0 + $0x218] sm:$0xff]  ;;  %v94_v30 = vld [vmem:[%s13219_s0 + $0x1f0] sm:$0xff]  ;;  %v93_v56 = vld [vmem:[%s13219_s0 + $0x1e8] sm:$0xff] }
  0x26   :  { %v625_v16 = vmul.f32 %v6811_v54, %v6811_v54  ;;  %v628_v10 = vmul.f32 %v6843_v8, %v6843_v8  ;;  %v868_v41 = vadd.f32 %v623_v37, %v622_v14  ;;  %v615_v24 = vmul.f32 %v6838_v6, %v6838_v6  ;;  %v88_v6 = vld [vmem:[%s13219_s0 + $0x1c0] sm:$0xff] }
  0x27   :  { %354 = vadd.xlane.f32.xlu0 %v353_v61  ;;  %v890_v40 = vadd.f32 %v889_v45, %v641_v29  ;;  %v879_v21 = vadd.f32 %v878_v17, %v632_v7  ;;  %v882_v54 = vsel %vm261_vm0, %v635_v12, 0.0  ;;  %v626_v8 = vmul.f32 %v6830_v2, %v6830_v2  ;;  %v100_v29 = vld [vmem:[%s13219_s0 + $0x220] sm:$0xff] }
  0x28   :  { %v616_v26 = vmul.f32 %v6852_v13, %v6852_v13  ;;  %v617_v28 = vmul.f32 %v6865_v22, %v6865_v22  ;;  %v627_v2 = vmul.f32 %v6857_v15, %v6857_v15  ;;  %v869_v34 = vadd.f32 %v868_v41, %v624_v20  ;;  %v97_v13 = vld [vmem:[%s13219_s0 + $0x208] sm:$0xff] }
  0x29   :  { %911 = vadd.xlane.f32.xlu1 %v910_v11  ;;  %v892_v32 = vadd.f32 %v891_v3, %v890_v40  ;;  %v880_v33 = vadd.f32 %v879_v21, %v633_v55  ;;  %v873_v22 = vsel %vm261_vm0, %v628_v10, 0.0  ;;  %v618_v35 = vmul.f32 %v6885_v36, %v6885_v36 }
  0x2a   :  { %v859_v38 = vadd.f32 %v616_v26, %v615_v24  ;;  %v338_v39 = vadd.f32 %v96_v25, %v95_v42  ;;  %v870_v47 = vadd.f32 %v869_v34, %v625_v16  ;;  %v621_v15 = vmul.f32 %v6871_v27, %v6871_v27  ;;  %v81_v16 = vld [vmem:[%s13219_s0 + $0x188] sm:$0xff]  ;;  %v82_v24 = vld [vmem:[%s13219_s0 + $0x190] sm:$0xff] }
  0x2b   :  { %v881_v46 = vadd.f32 %v880_v33, %v634_v18  ;;  %v329_v36 = vadd.f32 %v89_v23, %v88_v6  ;;  %v619_v51 = vmul.f32 %v6892_v49, %v6892_v49  ;;  %v620_v52 = vmul.f32 %v107_v59, %v107_v59  ;;  %v92_v59 = vld [vmem:[%s13219_s0 + $0x1e0] sm:$0xff]  ;;  %v83_v33 = vld [vmem:[%s13219_s0 + $0x198] sm:$0xff] }
  0x2c   :  { %v860_v53 = vadd.f32 %v859_v38, %v617_v28  ;;  %v339_v57 = vadd.f32 %v338_v39, %v97_v13  ;;  %v871_v58 = vadd.f32 %v870_v47, %v626_v8  ;;  %v608_v63 = vmul.f32 %v95_v42, %v95_v42  ;;  %v74_v42 = vld [vmem:[%s13219_s0 + $0x150] sm:$0xff]  ;;  %v84_v47 = vld [vmem:[%s13219_s0 + $0x1a0] sm:$0xff] }
  0x2d   :  { %893 = vadd.xlane.f32.xlu1 %v892_v32  ;;  %v883_v27 = vadd.f32 %v882_v54, %v881_v46  ;;  %v330_v62 = vadd.f32 %v329_v36, %v90_v44  ;;  %v343_v49 = vsel %vm261_vm0, %v101_v50, 0.0  ;;  %v609_v1 = vmul.f32 %v96_v25, %v96_v25  ;;  %v75_v25 = vld [vmem:[%s13219_s0 + $0x158] sm:$0xff] }
  0x2e   :  { %v861_v19 = vadd.f32 %v860_v53, %v618_v35  ;;  %v340_v0 = vadd.f32 %v339_v57, %v98_v48  ;;  %v872_v4 = vadd.f32 %v871_v58, %v627_v2  ;;  %v864_v5 = vsel %vm261_vm0, %v621_v15, 0.0  ;;  %v76_v2 = vld [vmem:[%s13219_s0 + $0x160] sm:$0xff]  ;;  %v77_v15 = vld [vmem:[%s13219_s0 + $0x168] sm:$0xff] }
  0x2f   :  { %884 = vadd.xlane.f32.xlu0 %v883_v27  ;;  %v331_v7 = vadd.f32 %v330_v62, %v91_v43  ;;  %v610_v9 = vmul.f32 %v97_v13, %v97_v13  ;;  %v611_v11 = vmul.f32 %v98_v48, %v98_v48  ;;  %v614_v12 = vmul.f32 %v101_v50, %v101_v50  ;;  %v80_v48 = vld [vmem:[%s13219_s0 + $0x180] sm:$0xff]  ;;  %v85_v27 = vld [vmem:[%s13219_s0 + $0x1a8] sm:$0xff] }
  0x30   :  { %v862_v31 = vadd.f32 %v861_v19, %v619_v51  ;;  %v341_v55 = vadd.f32 %v340_v0, %v99_v60  ;;  %v874_v14 = vadd.f32 %v873_v22, %v872_v4  ;;  %v850_v61 = vadd.f32 %v609_v1, %v608_v63  ;;  %v87_v22 = vld [vmem:[%s13219_s0 + $0x1b8] sm:$0xff]  ;;  %v86_v4 = vld [vmem:[%s13219_s0 + $0x1b0] sm:$0xff] }
  0x31   :  { %v332_v37 = vadd.f32 %v331_v7, %v92_v59  ;;  %v601_v45 = vmul.f32 %v88_v6, %v88_v6  ;;  %v334_v3 = vsel %vm261_vm0, %v94_v30, 0.0  ;;  %v602_v18 = vmul.f32 %v89_v23, %v89_v23 }
  0x32   :  { %v863_v17 = vadd.f32 %v862_v31, %v620_v52  ;;  %v342_v20 = vadd.f32 %v341_v55, %v100_v29  ;;  %875 = vadd.xlane.f32.xlu1 %v874_v14  ;;  %v612_v40 = vmul.f32 %v99_v60, %v99_v60  ;;  %v851_v21 = vadd.f32 %v850_v61, %v610_v9  ;;  %v78_v60 = vld [vmem:[%s13219_s0 + $0x170] sm:$0xff]  ;;  %v68_v61 = vld [vmem:[%s13219_s0 + $0x120] sm:$0xff] }
  0x33   :  { %v333_v10 = vadd.f32 %v332_v37, %v93_v56  ;;  %v603_v41 = vmul.f32 %v90_v44, %v90_v44  ;;  %v613_v26 = vmul.f32 %v100_v29, %v100_v29  ;;  %v855_v6 = vsel %vm261_vm0, %v614_v12, 0.0  ;;  %v67_v37 = vld [vmem:[%s13219_s0 + $0x118] sm:$0xff] }
  0x34   :  { %v865_v54 = vadd.f32 %v864_v5, %v863_v17  ;;  %v344_v8 = vadd.f32 %v343_v49, %v342_v20  ;;  %v852_v28 = vadd.f32 %v851_v21, %v611_v11  ;;  %v604_v23 = vmul.f32 %v91_v43, %v91_v43  ;;  %v79_v5 = vld [vmem:[%s13219_s0 + $0x178] sm:$0xff] }
  0x35   :  { %v841_v32 = vadd.f32 %v602_v18, %v601_v45  ;;  %v335_v34 = vadd.f32 %v334_v3, %v333_v10  ;;  %v605_v13 = vmul.f32 %v92_v59, %v92_v59  ;;  %v320_v35 = vadd.f32 %v82_v24, %v81_v16  ;;  %v60_v18 = vld [vmem:[%s13219_s0 + $0xe0] sm:$0xff] }
  0x36   :  { %866 = vadd.xlane.f32.xlu0 %v865_v54  ;;  %v311_v38 = vadd.f32 %v75_v25, %v74_v42  ;;  %345 = vadd.xlane.f32.xlu1 %v344_v8  ;;  %v853_v39 = vadd.f32 %v852_v28, %v612_v40  ;;  %v606_v44 = vmul.f32 %v93_v56, %v93_v56  ;;  %v325_v58 = vsel %vm261_vm0, %v87_v22, 0.0 }
  0x37   :  { %v842_v46 = vadd.f32 %v841_v32, %v603_v41  ;;  %v594_v50 = vmul.f32 %v81_v16, %v81_v16  ;;  %v607_v36 = vmul.f32 %v94_v30, %v94_v30  ;;  %v321_v51 = vadd.f32 %v320_v35, %v83_v33  ;;  %v61_v16 = vld [vmem:[%s13219_s0 + $0xe8] sm:$0xff]  ;;  %v70_v32 = vld [vmem:[%s13219_s0 + $0x130] sm:$0xff] }
  0x38   :  { %v312_v52 = vadd.f32 %v311_v38, %v76_v2  ;;  %v595_v53 = vmul.f32 %v82_v24, %v82_v24  ;;  %v854_v57 = vadd.f32 %v853_v39, %v613_v26  ;;  %v596_v62 = vmul.f32 %v83_v33, %v83_v33  ;;  %v69_v24 = vld [vmem:[%s13219_s0 + $0x128] sm:$0xff]  ;;  %v62_v26 = vld [vmem:[%s13219_s0 + $0xf0] sm:$0xff] }
  0x39   :  { %v843_v43 = vadd.f32 %v842_v46, %v604_v23  ;;  %v322_v63 = vadd.f32 %v321_v51, %v84_v47  ;;  %v316_v0 = vsel %vm261_vm0, %v80_v48, 0.0  ;;  %v597_v49 = vmul.f32 %v84_v47, %v84_v47  ;;  %v73_v33 = vld [vmem:[%s13219_s0 + $0x148] sm:$0xff]  ;;  %v71_v47 = vld [vmem:[%s13219_s0 + $0x138] sm:$0xff]  ;;  %v64_v51 = vld [vmem:[%s13219_s0 + $0x100] sm:$0xff] }
  0x3a   :  { %336 = vadd.xlane.f32.xlu0 %v335_v34  ;;  %v313_v19 = vadd.f32 %v312_v52, %v77_v15  ;;  %v856_v59 = vadd.f32 %v855_v6, %v854_v57  ;;  %v832_v29 = vadd.f32 %v595_v53, %v594_v50  ;;  %v587_v30 = vmul.f32 %v74_v42, %v74_v42  ;;  %v66_v52 = vld [vmem:[%s13219_s0 + $0x110] sm:$0xff] }
  0x3b   :  { %v844_v1 = vadd.f32 %v843_v43, %v605_v13  ;;  %v846_v7 = vsel %vm261_vm0, %v607_v36, 0.0  ;;  %v323_v9 = vadd.f32 %v322_v63, %v85_v27  ;;  %v588_v55 = vmul.f32 %v75_v25, %v75_v25  ;;  %v65_v63 = vld [vmem:[%s13219_s0 + $0x108] sm:$0xff] }
  0x3c   :  { %v314_v31 = vadd.f32 %v313_v19, %v78_v60  ;;  %857 = vadd.xlane.f32.xlu1 %v856_v59  ;;  %v598_v11 = vmul.f32 %v85_v27, %v85_v27  ;;  %v833_v12 = vadd.f32 %v832_v29, %v596_v62  ;;  %v589_v14 = vmul.f32 %v76_v2, %v76_v2  ;;  %v72_v27 = vld [vmem:[%s13219_s0 + $0x140] sm:$0xff]  ;;  %v53_v29 = vld [vmem:[%s13219_s0 + $0xa8] sm:$0xff] }
  0x3d   :  { %v845_v56 = vadd.f32 %v844_v1, %v606_v44  ;;  %v324_v45 = vadd.f32 %v323_v9, %v86_v4  ;;  %v599_v20 = vmul.f32 %v86_v4, %v86_v4  ;;  %v600_v3 = vmul.f32 %v87_v22, %v87_v22  ;;  %v63_v22 = vld [vmem:[%s13219_s0 + $0xf8] sm:$0xff] }
  0x3e   :  { %v315_v17 = vadd.f32 %v314_v31, %v79_v5  ;;  %v834_v40 = vadd.f32 %v833_v12, %v597_v49  ;;  %v590_v21 = vmul.f32 %v77_v15, %v77_v15  ;;  %v823_v41 = vadd.f32 %v588_v55, %v587_v30  ;;  %v54_v30 = vld [vmem:[%s13219_s0 + $0xb0] sm:$0xff] }
  0x3f   :  { %v847_v10 = vadd.f32 %v846_v7, %v845_v56  ;;  %v326_v42 = vadd.f32 %v325_v58, %v324_v45  ;;  %v591_v25 = vmul.f32 %v78_v60, %v78_v60  ;;  %v593_v54 = vmul.f32 %v80_v48, %v80_v48  ;;  %v46_v56 = vld [vmem:[%s13219_s0 + $0x70] sm:$0xff]  ;;  %v55_v45 = vld [vmem:[%s13219_s0 + $0xb8] sm:$0xff] }
  0x40   :  { %v302_v8 = vadd.f32 %v68_v61, %v67_v37  ;;  %v317_v28 = vadd.f32 %v316_v0, %v315_v17  ;;  %v835_v6 = vadd.f32 %v834_v40, %v598_v11  ;;  %v824_v23 = vadd.f32 %v823_v41, %v589_v14  ;;  %v47_v11 = vld [vmem:[%s13219_s0 + $0x78] sm:$0xff]  ;;  %v56_v41 = vld [vmem:[%s13219_s0 + $0xc0] sm:$0xff] }
  0x41   :  { %848 = vadd.xlane.f32.xlu0 %v847_v10  ;;  %v293_v2 = vadd.f32 %v61_v16, %v60_v18  ;;  %327 = vadd.xlane.f32.xlu1 %v326_v42  ;;  %v837_v34 = vsel %vm261_vm0, %v600_v3, 0.0  ;;  %v580_v35 = vmul.f32 %v67_v37, %v67_v37  ;;  %v581_v38 = vmul.f32 %v68_v61, %v68_v61 }
  0x42   :  { %v303_v13 = vadd.f32 %v302_v8, %v69_v24  ;;  %v836_v39 = vadd.f32 %v835_v6, %v599_v20  ;;  %v592_v44 = vmul.f32 %v79_v5, %v79_v5  ;;  %v825_v46 = vadd.f32 %v824_v23, %v590_v21  ;;  %v59_v8 = vld [vmem:[%s13219_s0 + $0xd8] sm:$0xff]  ;;  %v57_v23 = vld [vmem:[%s13219_s0 + $0xc8] sm:$0xff] }
  0x43   :  { %v294_v15 = vadd.f32 %v293_v2, %v62_v26  ;;  %v828_v48 = vsel %vm261_vm0, %v593_v54, 0.0  ;;  %v307_v36 = vsel %vm261_vm0, %v73_v33, 0.0  ;;  %v582_v53 = vmul.f32 %v69_v24, %v69_v24 }
  0x44   :  { %v304_v50 = vadd.f32 %v303_v13, %v70_v32  ;;  %v838_v57 = vadd.f32 %v837_v34, %v836_v39  ;;  %v826_v43 = vadd.f32 %v825_v46, %v591_v25  ;;  %v583_v60 = vmul.f32 %v70_v32, %v70_v32 }
  0x45   :  { %318 = vadd.xlane.f32.xlu0 %v317_v28  ;;  %v295_v58 = vadd.f32 %v294_v15, %v63_v22  ;;  %v814_v19 = vadd.f32 %v581_v38, %v580_v35  ;;  %v573_v0 = vmul.f32 %v60_v18, %v60_v18  ;;  %v574_v49 = vmul.f32 %v61_v16, %v61_v16  ;;  %v48_v16 = vld [vmem:[%s13219_s0 + $0x80] sm:$0xff]  ;;  %v49_v28 = vld [vmem:[%s13219_s0 + $0x88] sm:$0xff]  ;;  %v50_v35 = vld [vmem:[%s13219_s0 + $0x90] sm:$0xff] }
  0x46   :  { %v305_v62 = vadd.f32 %v304_v50, %v71_v47  ;;  %839 = vadd.xlane.f32.xlu1 %v838_v57  ;;  %v827_v59 = vadd.f32 %v826_v43, %v592_v44  ;;  %v298_v4 = vsel %vm261_vm0, %v66_v52, 0.0  ;;  %v586_v5 = vmul.f32 %v73_v33, %v73_v33  ;;  %v58_v44 = vld [vmem:[%s13219_s0 + $0xd0] sm:$0xff] }
  0x47   :  { %v296_v1 = vadd.f32 %v295_v58, %v64_v51  ;;  %v584_v9 = vmul.f32 %v71_v47, %v71_v47  ;;  %v815_v31 = vadd.f32 %v814_v19, %v582_v53  ;;  %v575_v55 = vmul.f32 %v62_v26, %v62_v26 }
  0x48   :  { %v306_v7 = vadd.f32 %v305_v62, %v72_v27  ;;  %v829_v12 = vadd.f32 %v828_v48, %v827_v59  ;;  %v585_v37 = vmul.f32 %v72_v27, %v72_v27  ;;  %v576_v61 = vmul.f32 %v63_v22, %v63_v22 }
  0x49   :  { %v297_v14 = vadd.f32 %v296_v1, %v65_v63  ;;  %v816_v20 = vadd.f32 %v815_v31, %v583_v60  ;;  %v805_v3 = vadd.f32 %v574_v49, %v573_v0  ;;  %v284_v18 = vadd.f32 %v54_v30, %v53_v29  ;;  %v39_v0 = vld [vmem:[%s13219_s0 + $0x38] sm:$0xff]  ;;  %v40_v49 = vld [vmem:[%s13219_s0 + $0x40] sm:$0xff] }
  0x4a   :  { %v308_v17 = vadd.f32 %v307_v36, %v306_v7  ;;  %830 = vadd.xlane.f32.xlu0 %v829_v12  ;;  %v819_v40 = vsel %vm261_vm0, %v586_v5, 0.0  ;;  %v579_v21 = vmul.f32 %v66_v52, %v66_v52  ;;  %v275_v24 = vadd.f32 %v47_v11, %v46_v56  ;;  %v52_v52 = vld [vmem:[%s13219_s0 + $0xa0] sm:$0xff] }
  0x4b   :  { %v299_v10 = vadd.f32 %v298_v4, %v297_v14  ;;  %v817_v42 = vadd.f32 %v816_v20, %v584_v9  ;;  %v577_v25 = vmul.f32 %v64_v51, %v64_v51  ;;  %v806_v54 = vadd.f32 %v805_v3, %v575_v55  ;;  %v51_v51 = vld [vmem:[%s13219_s0 + $0x98] sm:$0xff]  ;;  %v42_v3 = vld [vmem:[%s13219_s0 + $0x50] sm:$0xff] }
  0x4c   :  { %309 = vadd.xlane.f32.xlu1 %v308_v17  ;;  %v285_v26 = vadd.f32 %v284_v18, %v55_v45  ;;  %v578_v6 = vmul.f32 %v65_v63, %v65_v63  ;;  %v276_v32 = vadd.f32 %v275_v24, %v48_v16  ;;  %v566_v33 = vmul.f32 %v53_v29, %v53_v29  ;;  %v32_v29 = vld [vmem:[%s13219_s0] sm:$0xff]  ;;  %v45_v18 = vld [vmem:[%s13219_s0 + $0x68] sm:$0xff] }
  0x4d   :  { %v567_v2 = vmul.f32 %v54_v30, %v54_v30  ;;  %v818_v34 = vadd.f32 %v817_v42, %v585_v37  ;;  %v807_v13 = vadd.f32 %v806_v54, %v576_v61  ;;  %v568_v38 = vmul.f32 %v55_v45, %v55_v45  ;;  %v33_v30 = vld [vmem:[%s13219_s0 + $0x8] sm:$0xff]  ;;  %v34_v61 = vld [vmem:[%s13219_s0 + $0x10] sm:$0xff]  ;;  %v43_v54 = vld [vmem:[%s13219_s0 + $0x58] sm:$0xff] }
  0x4e   :  { %v286_v22 = vadd.f32 %v285_v26, %v56_v41  ;;  %300 = vadd.xlane.f32.xlu0 %v299_v10  ;;  %v810_v39 = vsel %vm261_vm0, %v579_v21, 0.0  ;;  %v289_v46 = vsel %vm261_vm0, %v59_v8, 0.0  ;;  %v277_v47 = vadd.f32 %v276_v32, %v49_v28  ;;  %v35_v21 = vld [vmem:[%s13219_s0 + $0x18] sm:$0xff] }
  0x4f   :  { %v569_v15 = vmul.f32 %v56_v41, %v56_v41  ;;  %v820_v48 = vadd.f32 %v819_v40, %v818_v34  ;;  %v808_v50 = vadd.f32 %v807_v13, %v577_v25  ;;  %v796_v53 = vadd.f32 %v567_v2, %v566_v33  ;;  %v36_v33 = vld [vmem:[%s13219_s0 + $0x20] sm:$0xff]  ;;  %v38_v2 = vld [vmem:[%s13219_s0 + $0x30] sm:$0xff] }
  0x50   :  { %v287_v36 = vadd.f32 %v286_v22, %v57_v23  ;;  %v278_v57 = vadd.f32 %v277_v47, %v50_v35  ;;  %v570_v43 = vmul.f32 %v57_v23, %v57_v23  ;;  %v559_v27 = vmul.f32 %v46_v56, %v46_v56  ;;  %v41_v56 = vld [vmem:[%s13219_s0 + $0x48] sm:$0xff]  ;;  %v44_v13 = vld [vmem:[%s13219_s0 + $0x60] sm:$0xff] }
  0x51   :  { %v560_v58 = vmul.f32 %v47_v11, %v47_v11  ;;  %821 = vadd.xlane.f32.xlu1 %v820_v48  ;;  %v809_v60 = vadd.f32 %v808_v50, %v578_v6  ;;  %v572_v63 = vmul.f32 %v59_v8, %v59_v8  ;;  %v797_v19 = vadd.f32 %v796_v53, %v568_v38  ;;  %v250_v53 = vld [vmem:[%s13219_s0 + $0x6d0] sm:$0xff] }
  0x52   :  { %v288_v62 = vadd.f32 %v287_v36, %v58_v44  ;;  %v279_v59 = vadd.f32 %v278_v57, %v51_v51  ;;  %v280_v1 = vsel %vm261_vm0, %v52_v52, 0.0  ;;  %v571_v4 = vmul.f32 %v58_v44, %v58_v44 }
  0x53   :  { %v561_v5 = vmul.f32 %v48_v16, %v48_v16  ;;  %v811_v7 = vadd.f32 %v810_v39, %v809_v60  ;;  %v798_v31 = vadd.f32 %v797_v19, %v569_v15  ;;  %v562_v55 = vmul.f32 %v49_v28, %v49_v28 }
  0x54   :  { %v290_v9 = vadd.f32 %v289_v46, %v288_v62  ;;  %v563_v11 = vmul.f32 %v50_v35, %v50_v35  ;;  %v565_v12 = vmul.f32 %v52_v52, %v52_v52  ;;  %v787_v14 = vadd.f32 %v560_v58, %v559_v27  ;;  %v37_v46 = vld [vmem:[%s13219_s0 + $0x28] sm:$0xff] }
  0x55   :  { %v266_v37 = vadd.f32 %v40_v49, %v39_v0  ;;  %812 = vadd.xlane.f32.xlu0 %v811_v7  ;;  %v281_v45 = vadd.f32 %v280_v1, %v279_v59  ;;  %v799_v17 = vadd.f32 %v798_v31, %v570_v43  ;;  %v801_v20 = vsel %vm261_vm0, %v572_v63, 0.0  ;;  %v249_v52 = vld [vmem:[%s13219_s0 + $0x6c8] sm:$0xff]  ;;  %v243_v59 = vld [vmem:[%s13219_s0 + $0x698] sm:$0xff] }
  0x56   :  { %291 = vadd.xlane.f32.xlu1 %v290_v9  ;;  %v256_v16 = vadd.f32 %v33_v30, %v32_v29  ;;  %v788_v10 = vadd.f32 %v787_v14, %v561_v5  ;;  %v552_v41 = vmul.f32 %v39_v0, %v39_v0  ;;  %v553_v24 = vmul.f32 %v40_v49, %v40_v49  ;;  %v251_v0 = vld [vmem:[%s13219_s0 + $0x6d8] sm:$0xff]  ;;  %v242_v49 = vld [vmem:[%s13219_s0 + $0x690] sm:$0xff] }
  0x57   :  { %v267_v40 = vadd.f32 %v266_v37, %v41_v56  ;;  %v800_v42 = vadd.f32 %v799_v17, %v571_v4  ;;  %v564_v25 = vmul.f32 %v51_v51, %v51_v51  ;;  %v554_v26 = vmul.f32 %v41_v56, %v41_v56  ;;  %v244_v56 = vld [vmem:[%s13219_s0 + $0x6a0] sm:$0xff]  ;;  %v255_v14 = vld [vmem:[%s13219_s0 + $0x6f8] sm:$0xff] }
  0x58   :  { %v257_v8 = vadd.f32 %v256_v16, %v34_v61  ;;  %v789_v28 = vadd.f32 %v788_v10, %v562_v55  ;;  %v792_v6 = vsel %vm261_vm0, %v565_v12, 0.0  ;;  %v271_v32 = vsel %vm261_vm0, %v45_v18, 0.0  ;;  %v252_v55 = vld [vmem:[%s13219_s0 + $0x6e0] sm:$0xff] }
  0x59   :  { %v268_v23 = vadd.f32 %v267_v40, %v42_v3  ;;  %282 = vadd.xlane.f32.xlu0 %v281_v45  ;;  %v802_v34 = vadd.f32 %v801_v20, %v800_v42  ;;  %v555_v35 = vmul.f32 %v42_v3, %v42_v3  ;;  %v778_v38 = vadd.f32 %v553_v24, %v552_v41  ;;  %v253_v20 = vld [vmem:[%s13219_s0 + $0x6e8] sm:$0xff] }
  0x5a   :  { %v258_v22 = vadd.f32 %v257_v8, %v35_v21  ;;  %v790_v39 = vadd.f32 %v789_v28, %v563_v11  ;;  %v545_v47 = vmul.f32 %v32_v29, %v32_v29  ;;  %v546_v15 = vmul.f32 %v33_v30, %v33_v30  ;;  %v245_v3 = vld [vmem:[%s13219_s0 + $0x6a8] sm:$0xff]  ;;  %v246_v8 = vld [vmem:[%s13219_s0 + $0x6b0] sm:$0xff] }
  0x5b   :  { %v269_v44 = vadd.f32 %v268_v23, %v43_v54  ;;  %803 = vadd.xlane.f32.xlu1 %v802_v34  ;;  %v262_v50 = vsel %vm261_vm0, %v38_v2, 0.0  ;;  %v556_v36 = vmul.f32 %v43_v54, %v43_v54  ;;  %v779_v51 = vadd.f32 %v778_v38, %v554_v26  ;;  %v248_v23 = vld [vmem:[%s13219_s0 + $0x6c0] sm:$0xff] }
  0x5c   :  { %v259_v48 = vadd.f32 %v258_v22, %v36_v33  ;;  %v791_v57 = vadd.f32 %v790_v39, %v564_v25  ;;  %v558_v27 = vmul.f32 %v45_v18, %v45_v18  ;;  %v547_v58 = vmul.f32 %v34_v61, %v34_v61  ;;  %v254_v25 = vld [vmem:[%s13219_s0 + $0x6f0] sm:$0xff] }
  0x5d   :  { %v270_v43 = vadd.f32 %v269_v44, %v44_v13  ;;  %v557_v62 = vmul.f32 %v44_v13, %v44_v13  ;;  %v780_v63 = vadd.f32 %v779_v51, %v555_v35  ;;  %v548_v19 = vmul.f32 %v35_v21, %v35_v21 }
  0x5e   :  { %v260_v60 = vadd.f32 %v259_v48, %v37_v46  ;;  %v793_v1 = vadd.f32 %v792_v6, %v791_v57  ;;  %v769_v5 = vadd.f32 %v546_v15, %v545_v47  ;;  %v536_v29 = vadd.f32 %v250_v53, %v249_v52  ;;  %v235_v47 = vld [vmem:[%s13219_s0 + $0x658] sm:$0xff]  ;;  %v236_v15 = vld [vmem:[%s13219_s0 + $0x660] sm:$0xff] }
  0x5f   :  { %v272_v4 = vadd.f32 %v271_v32, %v270_v43  ;;  %v781_v7 = vadd.f32 %v780_v63, %v556_v36  ;;  %v549_v9 = vmul.f32 %v36_v33, %v36_v33  ;;  %v551_v31 = vmul.f32 %v38_v2, %v38_v2  ;;  %v247_v2 = vld [vmem:[%s13219_s0 + $0x6b8] sm:$0xff] }
  0x60   :  { %v263_v30 = vadd.f32 %v262_v50, %v260_v60  ;;  %794 = vadd.xlane.f32.xlu0 %v793_v1  ;;  %v783_v11 = vsel %vm261_vm0, %v558_v27, 0.0  ;;  %v770_v12 = vadd.f32 %v769_v5, %v547_v58  ;;  %v537_v37 = vadd.f32 %v536_v29, %v251_v0  ;;  %v237_v60 = vld [vmem:[%s13219_s0 + $0x668] sm:$0xff]  ;;  %v238_v5 = vld [vmem:[%s13219_s0 + $0x670] sm:$0xff] }
  0x61   :  { %273 = vadd.xlane.f32.xlu1 %v272_v4  ;;  %v527_v61 = vadd.f32 %v243_v59, %v242_v49  ;;  %v782_v45 = vadd.f32 %v781_v7, %v557_v62  ;;  %v550_v17 = vmul.f32 %v37_v46, %v37_v46  ;;  %v762_v18 = vmul.f32 %v249_v52, %v249_v52  ;;  %v228_v52 = vld [vmem:[%s13219_s0 + $0x620] sm:$0xff]  ;;  %v241_v29 = vld [vmem:[%s13219_s0 + $0x688] sm:$0xff] }
  0x62   :  { %v763_v16 = vmul.f32 %v250_v53, %v250_v53  ;;  %v771_v10 = vadd.f32 %v770_v12, %v548_v19  ;;  %v538_v40 = vadd.f32 %v537_v37, %v252_v55  ;;  %v764_v41 = vmul.f32 %v251_v0, %v251_v0  ;;  %v229_v53 = vld [vmem:[%s13219_s0 + $0x628] sm:$0xff] }
  0x63   :  { %v528_v21 = vadd.f32 %v527_v61, %v244_v56  ;;  %v784_v24 = vadd.f32 %v783_v11, %v782_v45  ;;  %v774_v42 = vsel %vm261_vm0, %v551_v31, 0.0  ;;  %v541_v54 = vsel %vm261_vm0, %v255_v14, 0.0  ;;  %v231_v31 = vld [vmem:[%s13219_s0 + $0x638] sm:$0xff] }
  0x64   :  { %v765_v26 = vmul.f32 %v252_v55, %v252_v55  ;;  %264 = vadd.xlane.f32.xlu0 %v263_v30  ;;  %v772_v28 = vadd.f32 %v771_v10, %v549_v9  ;;  %v539_v6 = vadd.f32 %v538_v40, %v253_v20  ;;  %v1048_v33 = vadd.f32 %v763_v16, %v762_v18  ;;  %v232_v18 = vld [vmem:[%s13219_s0 + $0x640] sm:$0xff]  ;;  %v234_v16 = vld [vmem:[%s13219_s0 + $0x650] sm:$0xff] }
  0x65   :  { %v529_v32 = vadd.f32 %v528_v21, %v245_v3  ;;  %785 = vadd.xlane.f32.xlu1 %v784_v24  ;;  %v766_v34 = vmul.f32 %v253_v20, %v253_v20  ;;  %v768_v13 = vmul.f32 %v255_v14, %v255_v14  ;;  %v755_v22 = vmul.f32 %v242_v49, %v242_v49  ;;  %v230_v49 = vld [vmem:[%s13219_s0 + $0x630] sm:$0xff]  ;;  %v239_v14 = vld [vmem:[%s13219_s0 + $0x678] sm:$0xff]  ;;  %v240_v40 = vld [vmem:[%s13219_s0 + $0x680] sm:$0xff] }
  0x66   :  { %v756_v35 = vmul.f32 %v243_v59, %v243_v59  ;;  %v773_v38 = vadd.f32 %v772_v28, %v550_v17  ;;  %v540_v39 = vadd.f32 %v539_v6, %v254_v25  ;;  %v1049_v46 = vadd.f32 %v1048_v33, %v764_v41  ;;  %v221_v33 = vld [vmem:[%s13219_s0 + $0x5e8] sm:$0xff] }
  0x67   :  { %v530_v44 = vadd.f32 %v529_v32, %v246_v8  ;;  %v532_v48 = vsel %vm261_vm0, %v248_v23, 0.0  ;;  %v767_v50 = vmul.f32 %v254_v25, %v254_v25  ;;  %v757_v36 = vmul.f32 %v244_v56, %v244_v56 }
  0x68   :  { %v758_v51 = vmul.f32 %v245_v3, %v245_v3  ;;  %v775_v57 = vadd.f32 %v774_v42, %v773_v38  ;;  %v542_v43 = vadd.f32 %v541_v54, %v540_v39  ;;  %v1050_v58 = vadd.f32 %v1049_v46, %v765_v26  ;;  %v233_v54 = vld [vmem:[%s13219_s0 + $0x648] sm:$0xff] }
  0x69   :  { %v531_v27 = vadd.f32 %v530_v44, %v247_v2  ;;  %v759_v62 = vmul.f32 %v246_v8, %v246_v8  ;;  %v761_v63 = vmul.f32 %v248_v23, %v248_v23  ;;  %v1039_v19 = vadd.f32 %v756_v35, %v755_v22 }
  0x6a   :  { %v518_v0 = vadd.f32 %v236_v15, %v235_v47  ;;  %776 = vadd.xlane.f32.xlu0 %v775_v57  ;;  %543 = vadd.xlane.f32.xlu1 %v542_v43  ;;  %v1051_v1 = vadd.f32 %v1050_v58, %v766_v34  ;;  %v1053_v4 = vsel %vm261_vm0, %v768_v13, 0.0  ;;  %v509_v30 = vadd.f32 %v229_v53, %v228_v52  ;;  %v224_v58 = vld [vmem:[%s13219_s0 + $0x600] sm:$0xff] }
  0x6b   :  { %v533_v59 = vadd.f32 %v532_v48, %v531_v27  ;;  %v1040_v7 = vadd.f32 %v1039_v19, %v757_v36  ;;  %v748_v55 = vmul.f32 %v235_v47, %v235_v47  ;;  %v749_v56 = vmul.f32 %v236_v15, %v236_v15  ;;  %v223_v47 = vld [vmem:[%s13219_s0 + $0x5f8] sm:$0xff]  ;;  %v214_v15 = vld [vmem:[%s13219_s0 + $0x5b0] sm:$0xff] }
  0x6c   :  { %v519_v9 = vadd.f32 %v518_v0, %v237_v60  ;;  %v1052_v11 = vadd.f32 %v1051_v1, %v767_v50  ;;  %v760_v12 = vmul.f32 %v247_v2, %v247_v2  ;;  %v510_v37 = vadd.f32 %v509_v30, %v230_v49  ;;  %v222_v2 = vld [vmem:[%s13219_s0 + $0x5f0] sm:$0xff]  ;;  %v215_v48 = vld [vmem:[%s13219_s0 + $0x5b8] sm:$0xff] }
  0x6d   :  { %v750_v61 = vmul.f32 %v237_v60, %v237_v60  ;;  %v1041_v45 = vadd.f32 %v1040_v7, %v758_v51  ;;  %v1044_v17 = vsel %vm261_vm0, %v761_v63, 0.0  ;;  %v523_v3 = vsel %vm261_vm0, %v241_v29, 0.0  ;;  %v216_v60 = vld [vmem:[%s13219_s0 + $0x5c0] sm:$0xff]  ;;  %v227_v19 = vld [vmem:[%s13219_s0 + $0x618] sm:$0xff] }
  0x6e   :  { %v520_v20 = vadd.f32 %v519_v9, %v238_v5  ;;  %534 = vadd.xlane.f32.xlu0 %v533_v59  ;;  %v1054_v10 = vadd.f32 %v1053_v4, %v1052_v11  ;;  %v511_v21 = vadd.f32 %v510_v37, %v231_v31  ;;  %v751_v41 = vmul.f32 %v238_v5, %v238_v5  ;;  %v225_v4 = vld [vmem:[%s13219_s0 + $0x608] sm:$0xff]  ;;  %v218_v37 = vld [vmem:[%s13219_s0 + $0x5d0] sm:$0xff] }
  0x6f   :  { %v1030_v24 = vadd.f32 %v749_v56, %v748_v55  ;;  %v1042_v42 = vadd.f32 %v1041_v45, %v759_v62  ;;  %v741_v8 = vmul.f32 %v228_v52, %v228_v52  ;;  %v742_v26 = vmul.f32 %v229_v53, %v229_v53  ;;  %v217_v5 = vld [vmem:[%s13219_s0 + $0x5c8] sm:$0xff] }
  0x70   :  { %v521_v25 = vadd.f32 %v520_v20, %v239_v14  ;;  %1055 = vadd.xlane.f32.xlu1 %v1054_v10  ;;  %v512_v28 = vadd.f32 %v511_v21, %v232_v18  ;;  %v514_v6 = vsel %vm261_vm0, %v234_v16, 0.0  ;;  %v752_v23 = vmul.f32 %v239_v14, %v239_v14  ;;  %v220_v20 = vld [vmem:[%s13219_s0 + $0x5e0] sm:$0xff] }
  0x71   :  { %v1031_v32 = vadd.f32 %v1030_v24, %v750_v61  ;;  %v1043_v34 = vadd.f32 %v1042_v42, %v760_v12  ;;  %v754_v22 = vmul.f32 %v241_v29, %v241_v29  ;;  %v743_v35 = vmul.f32 %v230_v49, %v230_v49  ;;  %v226_v12 = vld [vmem:[%s13219_s0 + $0x610] sm:$0xff] }
  0x72   :  { %v522_v13 = vadd.f32 %v521_v25, %v240_v40  ;;  %v513_v38 = vadd.f32 %v512_v28, %v233_v54  ;;  %v753_v39 = vmul.f32 %v240_v40, %v240_v40  ;;  %v744_v46 = vmul.f32 %v231_v31, %v231_v31 }
  0x73   :  { %v1032_v44 = vadd.f32 %v1031_v32, %v751_v41  ;;  %v1045_v50 = vadd.f32 %v1044_v17, %v1043_v34  ;;  %v1021_v51 = vadd.f32 %v742_v26, %v741_v8  ;;  %v500_v52 = vadd.f32 %v222_v2, %v221_v33  ;;  %v207_v8 = vld [vmem:[%s13219_s0 + $0x578] sm:$0xff]  ;;  %v208_v26 = vld [vmem:[%s13219_s0 + $0x580] sm:$0xff] }
  0x74   :  { %v524_v36 = vadd.f32 %v523_v3, %v522_v13  ;;  %v515_v53 = vadd.f32 %v514_v6, %v513_v38  ;;  %v745_v43 = vmul.f32 %v232_v18, %v232_v18  ;;  %v747_v27 = vmul.f32 %v234_v16, %v234_v16  ;;  %v219_v16 = vld [vmem:[%s13219_s0 + $0x5d8] sm:$0xff]  ;;  %v209_v38 = vld [vmem:[%s13219_s0 + $0x588] sm:$0xff] }
  0x75   :  { %v1033_v57 = vadd.f32 %v1032_v44, %v752_v23  ;;  %1046 = vadd.xlane.f32.xlu0 %v1045_v50  ;;  %v1035_v62 = vsel %vm261_vm0, %v754_v22, 0.0  ;;  %v1022_v63 = vadd.f32 %v1021_v51, %v743_v35  ;;  %v501_v0 = vadd.f32 %v500_v52, %v223_v47  ;;  %v210_v51 = vld [vmem:[%s13219_s0 + $0x590] sm:$0xff]  ;;  %v213_v52 = vld [vmem:[%s13219_s0 + $0x5a8] sm:$0xff] }
  0x76   :  { %525 = vadd.xlane.f32.xlu1 %v524_v36  ;;  %v491_v49 = vadd.f32 %v215_v48, %v214_v15  ;;  %v746_v1 = vmul.f32 %v233_v54, %v233_v54  ;;  %v734_v29 = vmul.f32 %v221_v33, %v221_v33  ;;  %v735_v30 = vmul.f32 %v222_v2, %v222_v2  ;;  %v200_v33 = vld [vmem:[%s13219_s0 + $0x540] sm:$0xff]  ;;  %v201_v2 = vld [vmem:[%s13219_s0 + $0x548] sm:$0xff] }
  0x77   :  { %v1034_v59 = vadd.f32 %v1033_v57, %v753_v39  ;;  %v1023_v7 = vadd.f32 %v1022_v63, %v744_v46  ;;  %v502_v9 = vadd.f32 %v501_v0, %v224_v58  ;;  %v736_v55 = vmul.f32 %v223_v47, %v223_v47 }
  0x78   :  { %v492_v31 = vadd.f32 %v491_v49, %v216_v60  ;;  %v1026_v11 = vsel %vm261_vm0, %v747_v27, 0.0  ;;  %v505_v14 = vsel %vm261_vm0, %v227_v19, 0.0  ;;  %v737_v61 = vmul.f32 %v224_v58, %v224_v58  ;;  %v203_v27 = vld [vmem:[%s13219_s0 + $0x558] sm:$0xff] }
  0x79   :  { %v1036_v56 = vadd.f32 %v1035_v62, %v1034_v59  ;;  %516 = vadd.xlane.f32.xlu0 %v515_v53  ;;  %v1024_v45 = vadd.f32 %v1023_v7, %v745_v43  ;;  %v503_v17 = vadd.f32 %v502_v9, %v225_v4  ;;  %v1012_v18 = vadd.f32 %v735_v30, %v734_v29  ;;  %v204_v29 = vld [vmem:[%s13219_s0 + $0x560] sm:$0xff]  ;;  %v206_v30 = vld [vmem:[%s13219_s0 + $0x570] sm:$0xff] }
  0x7a   :  { %v493_v3 = vadd.f32 %v492_v31, %v217_v5  ;;  %v738_v10 = vmul.f32 %v225_v4, %v225_v4  ;;  %v740_v40 = vmul.f32 %v227_v19, %v227_v19  ;;  %v727_v21 = vmul.f32 %v214_v15, %v214_v15  ;;  %v202_v15 = vld [vmem:[%s13219_s0 + $0x550] sm:$0xff]  ;;  %v211_v19 = vld [vmem:[%s13219_s0 + $0x598] sm:$0xff]  ;;  %v212_v9 = vld [vmem:[%s13219_s0 + $0x5a0] sm:$0xff] }
  0x7b   :  { %1037 = vadd.xlane.f32.xlu1 %v1036_v56  ;;  %v728_v41 = vmul.f32 %v215_v48, %v215_v48  ;;  %v1025_v24 = vadd.f32 %v1024_v45, %v746_v1  ;;  %v504_v42 = vadd.f32 %v503_v17, %v226_v12  ;;  %v1013_v54 = vadd.f32 %v1012_v18, %v736_v55  ;;  %v193_v18 = vld [vmem:[%s13219_s0 + $0x508] sm:$0xff] }
  0x7c   :  { %v494_v25 = vadd.f32 %v493_v3, %v218_v37  ;;  %v496_v28 = vsel %vm261_vm0, %v220_v20, 0.0  ;;  %v739_v6 = vmul.f32 %v226_v12, %v226_v12  ;;  %v729_v23 = vmul.f32 %v216_v60, %v216_v60 }
  0x7d   :  { %v730_v32 = vmul.f32 %v217_v5, %v217_v5  ;;  %v1027_v34 = vadd.f32 %v1026_v11, %v1025_v24  ;;  %v506_v13 = vadd.f32 %v505_v14, %v504_v42  ;;  %v1014_v35 = vadd.f32 %v1013_v54, %v737_v61  ;;  %v205_v14 = vld [vmem:[%s13219_s0 + $0x568] sm:$0xff] }
  0x7e   :  { %v495_v22 = vadd.f32 %v494_v25, %v219_v16  ;;  %v731_v39 = vmul.f32 %v218_v37, %v218_v37  ;;  %v733_v44 = vmul.f32 %v220_v20, %v220_v20  ;;  %v1003_v46 = vadd.f32 %v728_v41, %v727_v21 }
  0x7f   :  { %v482_v47 = vadd.f32 %v208_v26, %v207_v8  ;;  %1028 = vadd.xlane.f32.xlu0 %v1027_v34  ;;  %507 = vadd.xlane.f32.xlu1 %v506_v13  ;;  %v1015_v50 = vadd.f32 %v1014_v35, %v738_v10  ;;  %v1017_v36 = vsel %vm261_vm0, %v740_v40, 0.0  ;;  %v473_v53 = vadd.f32 %v201_v2, %v200_v33  ;;  %v196_v35 = vld [vmem:[%s13219_s0 + $0x520] sm:$0xff] }
  0x80   :  { %v497_v48 = vadd.f32 %v496_v28, %v495_v22  ;;  %v1004_v57 = vadd.f32 %v1003_v46, %v729_v23  ;;  %v720_v58 = vmul.f32 %v207_v8, %v207_v8  ;;  %v721_v60 = vmul.f32 %v208_v26, %v208_v26  ;;  %v195_v8 = vld [vmem:[%s13219_s0 + $0x518] sm:$0xff]  ;;  %v186_v26 = vld [vmem:[%s13219_s0 + $0x4d0] sm:$0xff] }
  0x81   :  { %v483_v43 = vadd.f32 %v482_v47, %v209_v38  ;;  %v1016_v62 = vadd.f32 %v1015_v50, %v739_v6  ;;  %v732_v63 = vmul.f32 %v219_v16, %v219_v16  ;;  %v474_v0 = vadd.f32 %v473_v53, %v202_v15  ;;  %v194_v16 = vld [vmem:[%s13219_s0 + $0x510] sm:$0xff]  ;;  %v187_v28 = vld [vmem:[%s13219_s0 + $0x4d8] sm:$0xff] }
  0x82   :  { %v722_v49 = vmul.f32 %v209_v38, %v209_v38  ;;  %v1005_v59 = vadd.f32 %v1004_v57, %v730_v32  ;;  %v1008_v1 = vsel %vm261_vm0, %v733_v44, 0.0  ;;  %v487_v5 = vsel %vm261_vm0, %v213_v52, 0.0  ;;  %v188_v38 = vld [vmem:[%s13219_s0 + $0x4e0] sm:$0xff]  ;;  %v199_v46 = vld [vmem:[%s13219_s0 + $0x538] sm:$0xff] }
  0x83   :  { %v484_v4 = vadd.f32 %v483_v43, %v210_v51  ;;  %498 = vadd.xlane.f32.xlu0 %v497_v48  ;;  %v1018_v7 = vadd.f32 %v1017_v36, %v1016_v62  ;;  %v475_v31 = vadd.f32 %v474_v0, %v203_v27  ;;  %v723_v55 = vmul.f32 %v210_v51, %v210_v51  ;;  %v197_v36 = vld [vmem:[%s13219_s0 + $0x528] sm:$0xff]  ;;  %v190_v0 = vld [vmem:[%s13219_s0 + $0x4f0] sm:$0xff] }
  0x84   :  { %v994_v56 = vadd.f32 %v721_v60, %v720_v58  ;;  %v1006_v11 = vadd.f32 %v1005_v59, %v731_v39  ;;  %v713_v37 = vmul.f32 %v200_v33, %v200_v33  ;;  %v714_v61 = vmul.f32 %v201_v2, %v201_v2  ;;  %v189_v51 = vld [vmem:[%s13219_s0 + $0x4e8] sm:$0xff] }
  0x85   :  { %v485_v12 = vadd.f32 %v484_v4, %v211_v19  ;;  %1019 = vadd.xlane.f32.xlu1 %v1018_v7  ;;  %v476_v45 = vadd.f32 %v475_v31, %v204_v29  ;;  %v478_v17 = vsel %vm261_vm0, %v206_v30, 0.0  ;;  %v724_v20 = vmul.f32 %v211_v19, %v211_v19  ;;  %v192_v4 = vld [vmem:[%s13219_s0 + $0x500] sm:$0xff] }
  0x86   :  { %v995_v3 = vadd.f32 %v994_v56, %v722_v49  ;;  %v1007_v10 = vadd.f32 %v1006_v11, %v732_v63  ;;  %v726_v21 = vmul.f32 %v213_v52, %v213_v52  ;;  %v715_v41 = vmul.f32 %v202_v15, %v202_v15  ;;  %v198_v63 = vld [vmem:[%s13219_s0 + $0x530] sm:$0xff] }
  0x87   :  { %v486_v40 = vadd.f32 %v485_v12, %v212_v9  ;;  %v477_v24 = vadd.f32 %v476_v45, %v205_v14  ;;  %v725_v42 = vmul.f32 %v212_v9, %v212_v9  ;;  %v716_v54 = vmul.f32 %v203_v27, %v203_v27 }
  0x88   :  { %v996_v25 = vadd.f32 %v995_v3, %v723_v55  ;;  %v1009_v6 = vadd.f32 %v1008_v1, %v1007_v10  ;;  %v985_v32 = vadd.f32 %v714_v61, %v713_v37  ;;  %v464_v33 = vadd.f32 %v194_v16, %v193_v18  ;;  %v179_v37 = vld [vmem:[%s13219_s0 + $0x498] sm:$0xff]  ;;  %v180_v61 = vld [vmem:[%s13219_s0 + $0x4a0] sm:$0xff] }
  0x89   :  { %v488_v23 = vadd.f32 %v487_v5, %v486_v40  ;;  %v479_v2 = vadd.f32 %v478_v17, %v477_v24  ;;  %v717_v13 = vmul.f32 %v204_v29, %v204_v29  ;;  %v719_v22 = vmul.f32 %v206_v30, %v206_v30  ;;  %v191_v30 = vld [vmem:[%s13219_s0 + $0x4f8] sm:$0xff]  ;;  %v181_v24 = vld [vmem:[%s13219_s0 + $0x4a8] sm:$0xff] }
  0x8a   :  { %v997_v34 = vadd.f32 %v996_v25, %v724_v20  ;;  %1010 = vadd.xlane.f32.xlu0 %v1009_v6  ;;  %v999_v39 = vsel %vm261_vm0, %v726_v21, 0.0  ;;  %v986_v44 = vadd.f32 %v985_v32, %v715_v41  ;;  %v465_v47 = vadd.f32 %v464_v33, %v195_v8  ;;  %v182_v32 = vld [vmem:[%s13219_s0 + $0x4b0] sm:$0xff]  ;;  %v185_v33 = vld [vmem:[%s13219_s0 + $0x4c8] sm:$0xff] }
  0x8b   :  { %489 = vadd.xlane.f32.xlu1 %v488_v23  ;;  %v455_v15 = vadd.f32 %v187_v28, %v186_v26  ;;  %v718_v50 = vmul.f32 %v205_v14, %v205_v14  ;;  %v706_v52 = vmul.f32 %v193_v18, %v193_v18  ;;  %v707_v53 = vmul.f32 %v194_v16, %v194_v16  ;;  %v172_v18 = vld [vmem:[%s13219_s0 + $0x460] sm:$0xff]  ;;  %v173_v16 = vld [vmem:[%s13219_s0 + $0x468] sm:$0xff] }
  0x8c   :  { %v998_v48 = vadd.f32 %v997_v34, %v725_v42  ;;  %v987_v57 = vadd.f32 %v986_v44, %v716_v54  ;;  %v466_v43 = vadd.f32 %v465_v47, %v196_v35  ;;  %v708_v58 = vmul.f32 %v195_v8, %v195_v8 }
  0x8d   :  { %v456_v27 = vadd.f32 %v455_v15, %v188_v38  ;;  %v990_v62 = vsel %vm261_vm0, %v719_v22, 0.0  ;;  %v469_v19 = vsel %vm261_vm0, %v199_v46, 0.0  ;;  %v709_v49 = vmul.f32 %v196_v35, %v196_v35  ;;  %v175_v22 = vld [vmem:[%s13219_s0 + $0x478] sm:$0xff] }
  0x8e   :  { %v1000_v60 = vadd.f32 %v999_v39, %v998_v48  ;;  %480 = vadd.xlane.f32.xlu0 %v479_v2  ;;  %v988_v59 = vadd.f32 %v987_v57, %v717_v13  ;;  %v467_v1 = vadd.f32 %v466_v43, %v197_v36  ;;  %v976_v29 = vadd.f32 %v707_v53, %v706_v52  ;;  %v176_v52 = vld [vmem:[%s13219_s0 + $0x480] sm:$0xff]  ;;  %v178_v53 = vld [vmem:[%s13219_s0 + $0x490] sm:$0xff] }
  0x8f   :  { %v457_v5 = vadd.f32 %v456_v27, %v189_v51  ;;  %v710_v7 = vmul.f32 %v197_v36, %v197_v36  ;;  %v712_v9 = vmul.f32 %v199_v46, %v199_v46  ;;  %v699_v31 = vmul.f32 %v186_v26, %v186_v26  ;;  %v174_v26 = vld [vmem:[%s13219_s0 + $0x470] sm:$0xff]  ;;  %v183_v46 = vld [vmem:[%s13219_s0 + $0x4b8] sm:$0xff]  ;;  %v184_v43 = vld [vmem:[%s13219_s0 + $0x4c0] sm:$0xff] }
  0x90   :  { %1001 = vadd.xlane.f32.xlu1 %v1000_v60  ;;  %v700_v55 = vmul.f32 %v187_v28, %v187_v28  ;;  %v989_v56 = vadd.f32 %v988_v59, %v718_v50  ;;  %v468_v11 = vadd.f32 %v467_v1, %v198_v63  ;;  %v977_v14 = vadd.f32 %v976_v29, %v708_v58  ;;  %v165_v29 = vld [vmem:[%s13219_s0 + $0x428] sm:$0xff] }
  0x91   :  { %v458_v12 = vadd.f32 %v457_v5, %v190_v0  ;;  %v460_v45 = vsel %vm261_vm0, %v192_v4, 0.0  ;;  %v711_v17 = vmul.f32 %v198_v63, %v198_v63  ;;  %v701_v20 = vmul.f32 %v188_v38, %v188_v38 }
  0x92   :  { %v702_v3 = vmul.f32 %v189_v51, %v189_v51  ;;  %v991_v10 = vadd.f32 %v990_v62, %v989_v56  ;;  %v470_v40 = vadd.f32 %v469_v19, %v468_v11  ;;  %v978_v41 = vadd.f32 %v977_v14, %v709_v49  ;;  %v177_v19 = vld [vmem:[%s13219_s0 + $0x488] sm:$0xff] }
  0x93   :  { %v459_v21 = vadd.f32 %v458_v12, %v191_v30  ;;  %v703_v42 = vmul.f32 %v190_v0, %v190_v0  ;;  %v705_v25 = vmul.f32 %v192_v4, %v192_v4  ;;  %v967_v54 = vadd.f32 %v700_v55, %v699_v31 }
  0x94   :  { %v446_v8 = vadd.f32 %v180_v61, %v179_v37  ;;  %992 = vadd.xlane.f32.xlu0 %v991_v10  ;;  %471 = vadd.xlane.f32.xlu1 %v470_v40  ;;  %v979_v6 = vadd.f32 %v978_v41, %v710_v7  ;;  %v981_v23 = vsel %vm261_vm0, %v712_v9, 0.0  ;;  %v437_v2 = vadd.f32 %v173_v16, %v172_v18  ;;  %v168_v41 = vld [vmem:[%s13219_s0 + $0x440] sm:$0xff] }
  0x95   :  { %v461_v28 = vadd.f32 %v460_v45, %v459_v21  ;;  %v968_v34 = vadd.f32 %v967_v54, %v701_v20  ;;  %v692_v35 = vmul.f32 %v179_v37, %v179_v37  ;;  %v693_v38 = vmul.f32 %v180_v61, %v180_v61  ;;  %v167_v37 = vld [vmem:[%s13219_s0 + $0x438] sm:$0xff]  ;;  %v158_v61 = vld [vmem:[%s13219_s0 + $0x3f0] sm:$0xff] }
  0x96   :  { %v447_v13 = vadd.f32 %v446_v8, %v181_v24  ;;  %v980_v39 = vadd.f32 %v979_v6, %v711_v17  ;;  %v704_v44 = vmul.f32 %v191_v30, %v191_v30  ;;  %v438_v47 = vadd.f32 %v437_v2, %v174_v26  ;;  %v166_v30 = vld [vmem:[%s13219_s0 + $0x430] sm:$0xff]  ;;  %v159_v45 = vld [vmem:[%s13219_s0 + $0x3f8] sm:$0xff] }
  0x97   :  { %v694_v15 = vmul.f32 %v181_v24, %v181_v24  ;;  %v969_v48 = vadd.f32 %v968_v34, %v702_v3  ;;  %v972_v50 = vsel %vm261_vm0, %v705_v25, 0.0  ;;  %v451_v51 = vsel %vm261_vm0, %v185_v33, 0.0  ;;  %v160_v24 = vld [vmem:[%s13219_s0 + $0x400] sm:$0xff]  ;;  %v171_v54 = vld [vmem:[%s13219_s0 + $0x458] sm:$0xff] }
  0x98   :  { %v448_v36 = vadd.f32 %v447_v13, %v182_v32  ;;  %462 = vadd.xlane.f32.xlu0 %v461_v28  ;;  %v982_v57 = vadd.f32 %v981_v23, %v980_v39  ;;  %v439_v27 = vadd.f32 %v438_v47, %v175_v22  ;;  %v695_v58 = vmul.f32 %v182_v32, %v182_v32  ;;  %v169_v23 = vld [vmem:[%s13219_s0 + $0x448] sm:$0xff]  ;;  %v162_v47 = vld [vmem:[%s13219_s0 + $0x410] sm:$0xff] }
  0x99   :  { %v958_v60 = vadd.f32 %v693_v38, %v692_v35  ;;  %v970_v62 = vadd.f32 %v969_v48, %v703_v42  ;;  %v685_v0 = vmul.f32 %v172_v18, %v172_v18  ;;  %v686_v49 = vmul.f32 %v173_v16, %v173_v16  ;;  %v161_v32 = vld [vmem:[%s13219_s0 + $0x408] sm:$0xff] }
  0x9a   :  { %v449_v63 = vadd.f32 %v448_v36, %v183_v46  ;;  %983 = vadd.xlane.f32.xlu1 %v982_v57  ;;  %v440_v59 = vadd.f32 %v439_v27, %v176_v52  ;;  %v442_v1 = vsel %vm261_vm0, %v178_v53, 0.0  ;;  %v696_v4 = vmul.f32 %v183_v46, %v183_v46  ;;  %v163_v57 = vld [vmem:[%s13219_s0 + $0x418] sm:$0xff] }
  0x9b   :  { %v959_v5 = vadd.f32 %v958_v60, %v694_v15  ;;  %v971_v7 = vadd.f32 %v970_v62, %v704_v44  ;;  %v698_v31 = vmul.f32 %v185_v33, %v185_v33  ;;  %v687_v55 = vmul.f32 %v174_v26, %v174_v26  ;;  %v170_v44 = vld [vmem:[%s13219_s0 + $0x450] sm:$0xff] }
  0x9c   :  { %v450_v9 = vadd.f32 %v449_v63, %v184_v43  ;;  %v441_v56 = vadd.f32 %v440_v59, %v177_v19  ;;  %v697_v11 = vmul.f32 %v184_v43, %v184_v43  ;;  %v688_v14 = vmul.f32 %v175_v22, %v175_v22  ;;  %v151_v59 = vld [vmem:[%s13219_s0 + $0x3b8] sm:$0xff] }
  0x9d   :  { %v960_v12 = vadd.f32 %v959_v5, %v695_v58  ;;  %v973_v17 = vadd.f32 %v972_v50, %v971_v7  ;;  %v949_v3 = vadd.f32 %v686_v49, %v685_v0  ;;  %v428_v18 = vadd.f32 %v166_v30, %v165_v29  ;;  %v144_v7 = vld [vmem:[%s13219_s0 + $0x380] sm:$0xff] }
  0x9e   :  { %v452_v20 = vadd.f32 %v451_v51, %v450_v9  ;;  %v443_v16 = vadd.f32 %v442_v1, %v441_v56  ;;  %v689_v40 = vmul.f32 %v176_v52, %v176_v52  ;;  %v691_v21 = vmul.f32 %v178_v53, %v178_v53  ;;  %v164_v51 = vld [vmem:[%s13219_s0 + $0x420] sm:$0xff]  ;;  %v145_v9 = vld [vmem:[%s13219_s0 + $0x388] sm:$0xff] }
  0x9f   :  { %v961_v10 = vadd.f32 %v960_v12, %v696_v4  ;;  %974 = vadd.xlane.f32.xlu0 %v973_v17  ;;  %v963_v42 = vsel %vm261_vm0, %v698_v31, 0.0  ;;  %v950_v25 = vadd.f32 %v949_v3, %v687_v55  ;;  %v429_v8 = vadd.f32 %v428_v18, %v167_v37  ;;  %v152_v1 = vld [vmem:[%s13219_s0 + $0x3c0] sm:$0xff]  ;;  %v153_v12 = vld [vmem:[%s13219_s0 + $0x3c8] sm:$0xff] }
  0xa0   :  { %453 = vadd.xlane.f32.xlu1 %v452_v20  ;;  %v419_v26 = vadd.f32 %v159_v45, %v158_v61  ;;  %v690_v6 = vmul.f32 %v177_v19, %v177_v19  ;;  %v678_v33 = vmul.f32 %v165_v29, %v165_v29  ;;  %v679_v2 = vmul.f32 %v166_v30, %v166_v30  ;;  %v146_v20 = vld [vmem:[%s13219_s0 + $0x390] sm:$0xff] }
  0xa1   :  { %v962_v28 = vadd.f32 %v961_v10, %v697_v11  ;;  %v951_v34 = vadd.f32 %v950_v25, %v688_v14  ;;  %v430_v13 = vadd.f32 %v429_v8, %v168_v41  ;;  %v680_v35 = vmul.f32 %v167_v37, %v167_v37  ;;  %v154_v10 = vld [vmem:[%s13219_s0 + $0x3d0] sm:$0xff]  ;;  %v147_v25 = vld [vmem:[%s13219_s0 + $0x398] sm:$0xff] }
  0xa2   :  { %v420_v22 = vadd.f32 %v419_v26, %v160_v24  ;;  %v954_v39 = vsel %vm261_vm0, %v691_v21, 0.0  ;;  %v433_v46 = vsel %vm261_vm0, %v171_v54, 0.0  ;;  %v681_v15 = vmul.f32 %v168_v41, %v168_v41 }
  0xa3   :  { %v964_v38 = vadd.f32 %v963_v42, %v962_v28  ;;  %v7485_v48 = vpop.xlane.xlu0 %390  ;;  %444 = vadd.xlane.f32.xlu0 %v443_v16  ;;  %v952_v50 = vadd.f32 %v951_v34, %v689_v40  ;;  %v431_v36 = vadd.f32 %v430_v13, %v169_v23  ;;  %v940_v53 = vadd.f32 %v679_v2, %v678_v33  ;;  %v157_v40 = vld [vmem:[%s13219_s0 + $0x3e8] sm:$0xff] }
  0xa4   :  { %v421_v52 = vadd.f32 %v420_v22, %v161_v32  ;;  %v682_v43 = vmul.f32 %v169_v23, %v169_v23  ;;  %v684_v27 = vmul.f32 %v171_v54, %v171_v54  ;;  %v671_v58 = vmul.f32 %v158_v61, %v158_v61 }
  0xa5   :  { %965 = vadd.xlane.f32.xlu1 %v964_v38  ;;  %v672_v60 = vmul.f32 %v159_v45, %v159_v45  ;;  %v953_v63 = vadd.f32 %v952_v50, %v690_v6  ;;  %v432_v19 = vadd.f32 %v431_v36, %v170_v44  ;;  %v941_v49 = vadd.f32 %v940_v53, %v680_v35  ;;  %v155_v6 = vld [vmem:[%s13219_s0 + $0x3d8] sm:$0xff]  ;;  %v148_v35 = vld [vmem:[%s13219_s0 + $0x3a0] sm:$0xff] }
  0xa6   :  { %v7493_v62 = vpop.xlane.xlu1 %381  ;;  %v422_v0 = vadd.f32 %v421_v52, %v162_v47  ;;  %v424_v4 = vsel %vm261_vm0, %v164_v51, 0.0  ;;  %v683_v5 = vmul.f32 %v170_v44, %v170_v44  ;;  %v673_v29 = vmul.f32 %v160_v24, %v160_v24  ;;  %v150_v44 = vld [vmem:[%s13219_s0 + $0x3b0] sm:$0xff]  ;;  %v149_v52 = vld [vmem:[%s13219_s0 + $0x3a8] sm:$0xff] }
  0xa7   :  { %v674_v30 = vmul.f32 %v161_v32, %v161_v32  ;;  %v955_v31 = vadd.f32 %v954_v39, %v953_v63  ;;  %v434_v55 = vadd.f32 %v433_v46, %v432_v19  ;;  %v942_v11 = vadd.f32 %v941_v49, %v681_v15  ;;  %v156_v39 = vld [vmem:[%s13219_s0 + $0x3e0] sm:$0xff] }
  0xa8   :  { %v423_v56 = vadd.f32 %v422_v0, %v163_v57  ;;  %v7511_v14 = vpop.xlane.xlu0 %399  ;;  %v675_v37 = vmul.f32 %v162_v47, %v162_v47  ;;  %v677_v61 = vmul.f32 %v164_v51, %v164_v51  ;;  %v931_v45 = vadd.f32 %v672_v60, %v671_v58 }
  0xa9   :  { %v410_v17 = vadd.f32 %v152_v1, %v151_v59  ;;  %956 = vadd.xlane.f32.xlu0 %v955_v31  ;;  %435 = vadd.xlane.f32.xlu1 %v434_v55  ;;  %v943_v18 = vadd.f32 %v942_v11, %v682_v43  ;;  %v945_v16 = vsel %vm261_vm0, %v684_v27, 0.0  ;;  %v401_v21 = vadd.f32 %v145_v9, %v144_v7 }
  0xaa   :  { %v425_v3 = vadd.f32 %v424_v4, %v423_v56  ;;  %v7523_v41 = vpop.xlane.xlu1 %363  ;;  %v932_v24 = vadd.f32 %v931_v45, %v673_v29  ;;  %v664_v54 = vmul.f32 %v151_v59, %v151_v59  ;;  %v665_v8 = vmul.f32 %v152_v1, %v152_v1 }
  0xab   :  { %v411_v42 = vadd.f32 %v410_v17, %v153_v12  ;;  %v944_v26 = vadd.f32 %v943_v18, %v683_v5  ;;  %v676_v28 = vmul.f32 %v163_v57, %v163_v57  ;;  %v402_v23 = vadd.f32 %v401_v21, %v146_v20 }
  0xac   :  { %v666_v32 = vmul.f32 %v153_v12, %v153_v12  ;;  %v373_v33 = vpop.xlane.xlu0 %372  ;;  %v933_v2 = vadd.f32 %v932_v24, %v674_v30  ;;  %v936_v34 = vsel %vm261_vm0, %v677_v61, 0.0  ;;  %v415_v22 = vsel %vm261_vm0, %v157_v40, 0.0 }
  0xad   :  { %v412_v13 = vadd.f32 %v411_v42, %v154_v10  ;;  %426 = vadd.xlane.f32.xlu0 %v425_v3  ;;  %v946_v38 = vadd.f32 %v945_v16, %v944_v26  ;;  %v403_v46 = vadd.f32 %v402_v23, %v147_v25  ;;  %v667_v47 = vmul.f32 %v154_v10, %v154_v10 }
  0xae   :  { %v922_v15 = vadd.f32 %v665_v8, %v664_v54  ;;  %v903_v50 = vpop.xlane.xlu1 %902  ;;  %v934_v36 = vadd.f32 %v933_v2, %v675_v37  ;;  %v657_v53 = vmul.f32 %v144_v7, %v144_v7  ;;  %v658_v57 = vmul.f32 %v145_v9, %v145_v9 }
  0xaf   :  { %v413_v51 = vadd.f32 %v412_v13, %v155_v6  ;;  %947 = vadd.xlane.f32.xlu1 %v946_v38  ;;  %v404_v43 = vadd.f32 %v403_v46, %v148_v35  ;;  %v668_v27 = vmul.f32 %v155_v6, %v155_v6  ;;  %v670_v58 = vmul.f32 %v157_v40, %v157_v40 }
  0xb0   :  { %v923_v60 = vadd.f32 %v922_v15, %v666_v32  ;;  %v935_v63 = vadd.f32 %v934_v36, %v676_v28  ;;  %v406_v0 = vsel %vm261_vm0, %v150_v44, 0.0  ;;  %v659_v49 = vmul.f32 %v146_v20, %v146_v20  ;;  %v355_v30 = vpop.xlane.xlu0 %354 }
  0xb1   :  { %v414_v19 = vadd.f32 %v413_v51, %v156_v39  ;;  %v405_v59 = vadd.f32 %v404_v43, %v149_v52  ;;  %v669_v1 = vmul.f32 %v156_v39, %v156_v39  ;;  %v660_v5 = vmul.f32 %v147_v25, %v147_v25 }
  0xb2   :  { %v924_v4 = vadd.f32 %v923_v60, %v667_v47  ;;  %v912_v29 = vpop.xlane.xlu1 %911  ;;  %v937_v31 = vadd.f32 %v936_v34, %v935_v63  ;;  %v913_v7 = vadd.f32 %v658_v57, %v657_v53  ;;  %v7547_v9 = vmul.f32 0.0012755102, %v7485_v48 }
  0xb3   :  { %v416_v55 = vadd.f32 %v415_v22, %v414_v19  ;;  %v927_v11 = vsel %vm261_vm0, %v670_v58, 0.0  ;;  %v661_v12 = vmul.f32 %v148_v35, %v148_v35  ;;  %v7551_v37 = vmul.f32 0.0012755102, %v7493_v62 }
  0xb4   :  { %v925_v56 = vadd.f32 %v924_v4, %v668_v27  ;;  %938 = vadd.xlane.f32.xlu0 %v937_v31  ;;  %v407_v61 = vadd.f32 %v406_v0, %v405_v59  ;;  %v663_v45 = vmul.f32 %v150_v44, %v150_v44  ;;  %v914_v17 = vadd.f32 %v913_v7, %v659_v49 }
  0xb5   :  { %417 = vadd.xlane.f32.xlu1 %v416_v55  ;;  %v7554_v20 = vmul.f32 0.0012755102, %v7511_v14  ;;  %v1135_v48 = vmul.f32 %v7547_v9, %v7547_v9  ;;  %v7558_v18 = vmul.f32 0.0012755102, %v373_v33  ;;  %v1103_v16 = vmul.f32 0.0012755102, %v903_v50 }
  0xb6   :  { %v926_v3 = vadd.f32 %v925_v56, %v669_v1  ;;  %v894_v10 = vpop.xlane.xlu1 %893  ;;  %v662_v40 = vmul.f32 %v149_v52, %v149_v52  ;;  %v915_v21 = vadd.f32 %v914_v17, %v660_v5  ;;  %v1104_v24 = vmul.f32 0.0012755102, %v912_v29  ;;  %v1200_v1 = vld [vmem:[%s13220_s1 + $0x78] sm:$0xff] }
  0xb7   :  { %v1136_v62 = vmul.f32 %v7554_v20, %v7554_v20  ;;  %v1134_v25 = vmul.f32 %v7551_v37, %v7551_v37  ;;  %v1133_v14 = vmul.f32 %v7558_v18, %v7558_v18  ;;  %v1167_v54 = vsub.f32 %v1103_v16, %v1135_v48 }
  0xb8   :  { %v928_v42 = vadd.f32 %v927_v11, %v926_v3  ;;  %v885_v8 = vpop.xlane.xlu0 %884  ;;  %408 = vadd.xlane.f32.xlu0 %v407_v61  ;;  %v916_v26 = vadd.f32 %v915_v21, %v661_v12  ;;  %v1102_v6 = vmul.f32 0.0012755102, %v894_v10  ;;  %v918_v32 = vsel %vm261_vm0, %v663_v45, 0.0  ;;  %v1197_v11 = vld [vmem:[%s13220_s1 + $0x60] sm:$0xff]  ;;  %v1199_v3 = vld [vmem:[%s13220_s1 + $0x70] sm:$0xff] }
  0xb9   :  { %v1168_v28 = vsub.f32 %v1104_v24, %v1136_v62  ;;  %v1101_v23 = vmul.f32 0.0012755102, %v885_v8  ;;  %v7568_v33 = vmul.f32 0.0012755102, %v7523_v41  ;;  %v13224_v35 = vmov 0   ;;  %v1198_v24 = vld [vmem:[%s13220_s1 + $0x68] sm:$0xff] }
  0xba   :  { %929 = vadd.xlane.f32.xlu1 %v928_v42  ;;  %v917_v2 = vadd.f32 %v916_v26, %v662_v40  ;;  %v1166_v13 = vsub.f32 %v1102_v6, %v1134_v25  ;;  %6366 = vset.pattern.permute.xlu0 %v13224_v35  ;;  %v7572_v38 = vmul.f32 0.0012755102, %v355_v30  ;;  %v1231_v46 = vadd.f32 1e-05, %v1167_v54  ;;  %v1196_v8 = vld [vmem:[%s13220_s1 + $0x58] sm:$0xff] }
  0xbb   :  { %v1232_v34 = vadd.f32 1e-05, %v1168_v28  ;;  %v1165_v22 = vsub.f32 %v1101_v23, %v1133_v14  ;;  %6367 = vset.pattern.permute.xlu1 %v13224_v35  ;;  %v876_v39 = vpop.xlane.xlu1 %875  ;;  %v1132_v41 = vmul.f32 %v7568_v33, %v7568_v33 }
  0xbc   :  { %v919_v44 = vadd.f32 %v918_v32, %v917_v2  ;;  %v1100_v15 = vmul.f32 0.0012755102, %v876_v39  ;;  %v1230_v50 = vadd.f32 1e-05, %v1166_v13  ;;  %v1131_v51 = vmul.f32 %v7572_v38, %v7572_v38  ;;  %v1195_v32 = vld [vmem:[%s13220_s1 + $0x50] sm:$0xff] }
  0xbd   :  { %6368 = vrsqrt.f32 %v1232_v34  ;;  %v1229_v47 = vadd.f32 1e-05, %v1165_v22 }
  0xbe   :  { %920 = vadd.xlane.f32.xlu0 %v919_v44  ;;  %v1164_v52 = vsub.f32 %v1100_v15, %v1132_v41  ;;  %v1194_v41 = vld [vmem:[%s13220_s1 + $0x48] sm:$0xff] }
  0xbf   :  { %v867_v36 = vpop.xlane.xlu0 %866  ;;  %6370 = vrsqrt.f32 %v1229_v47  ;;  %v346_v57 = vpop.xlane.xlu1 %345 }
  0xc0   :  { %v1099_v53 = vmul.f32 0.0012755102, %v867_v36  ;;  %6372 = vrsqrt.f32 %v1231_v46  ;;  %v7578_v43 = vmul.f32 0.0012755102, %v346_v57  ;;  %v1228_v27 = vadd.f32 1e-05, %v1164_v52 }
  0xc1   :  { %6374 = vrsqrt.f32 %v1230_v50 }
  0xc2   :  { %v1163_v58 = vsub.f32 %v1099_v53, %v1131_v51  ;;  %6376 = vrsqrt.f32 %v1228_v27  ;;  %v1130_v19 = vmul.f32 %v7578_v43, %v7578_v43 }
  0xc3   :  { %v337_v63 = vpop.xlane.xlu0 %336 }
  0xc4   :  { %v1227_v60 = vadd.f32 1e-05, %v1163_v58  ;;  %v7582_v49 = vmul.f32 0.0012755102, %v337_v63  ;;  %v1193_v58 = vld [vmem:[%s13220_s1 + $0x40] sm:$0xff] }
  0xc5   :  { %v858_v0 = vpop.xlane.xlu1 %857 }
  0xc6   :  { %6378 = vrsqrt.f32 %v1227_v60  ;;  %v1098_v59 = vmul.f32 0.0012755102, %v858_v0  ;;  %v1129_v30 = vmul.f32 %v7582_v49, %v7582_v49  ;;  %v1324_v60 = vld [vmem:[%s13221_s2 + $0x58] sm:$0xff] }
  0xc8   :  { %v1162_v4 = vsub.f32 %v1098_v59, %v1130_v19 }
  0xca   :  { %v6369_v5 = vpop.eup %6368  ;;  %v849_v29 = vpop.xlane.xlu0 %848  ;;  %v1226_v31 = vadd.f32 1e-05, %v1162_v4 }
  0xcb   :  { %v1097_v55 = vmul.f32 0.0012755102, %v849_v29  ;;  %v328_v7 = vpop.xlane.xlu1 %327  ;;  %v7589_v56 = vmul.f32 %v6369_v5, %v1200_v1 }
  0xcc   :  { %v7594_v12 = vmul.f32 0.0012755102, %v328_v7  ;;  %v6371_v61 = vpop.eup %6370  ;;  %6380 = vrsqrt.f32 %v1226_v31  ;;  %v1192_v31 = vld [vmem:[%s13220_s1 + $0x38] sm:$0xff] }
  0xcd   :  { %v1161_v45 = vsub.f32 %v1097_v55, %v1129_v30  ;;  %1486 = vperm.xlu1 %6367, %v7589_v56   ;;  %v6373_v17 = vpop.eup %6372  ;;  %v7600_v16 = vmul.f32 %v6371_v61, %v1197_v11  ;;  %v1322_v30 = vld [vmem:[%s13221_s2 + $0x48] sm:$0xff] }
  0xce   :  { %v319_v48 = vpop.xlane.xlu0 %318  ;;  %v1128_v40 = vmul.f32 %v7594_v12, %v7594_v12  ;;  %v6375_v21 = vpop.eup %6374  ;;  %v7607_v42 = vmul.f32 %v6373_v17, %v1199_v3 }
  0xcf   :  { %v1225_v10 = vadd.f32 1e-05, %v1161_v45  ;;  %v840_v62 = vpop.xlane.xlu1 %839  ;;  %v7609_v25 = vmul.f32 0.0012755102, %v319_v48  ;;  %v6377_v54 = vpop.eup %6376  ;;  %v7615_v28 = vmul.f32 %v6375_v21, %v1198_v24  ;;  %v1191_v48 = vld [vmem:[%s13220_s1 + $0x30] sm:$0xff] }
  0xd0   :  { %v1096_v14 = vmul.f32 0.0012755102, %v840_v62  ;;  %v1292_v39 = vmul.f32 %v6377_v54, %v1196_v8  ;;  %v1320_v62 = vld [vmem:[%s13221_s2 + $0x38] sm:$0xff]  ;;  %v1359_v8 = vmul.f32 %v7607_v42, %v7547_v9 }
  0xd1   :  { %6382 = vrsqrt.f32 %v1225_v10  ;;  %1471 = vperm.xlu1 %6367, %v7600_v16   ;;  %v1127_v2 = vmul.f32 %v7609_v25, %v7609_v25 }
  0xd2   :  { %v1160_v26 = vsub.f32 %v1096_v14, %v1128_v40  ;;  %v1356_v57 = vmul.f32 %v1292_v39, %v7568_v33 }
  0xd3   :  { %v6379_v6 = vpop.eup %6378  ;;  %v831_v23 = vpop.xlane.xlu0 %830 }
  0xd4   :  { %1481 = vperm.xlu0 %6366, %v7607_v42   ;;  %v1224_v34 = vadd.f32 1e-05, %v1160_v26  ;;  %v1095_v13 = vmul.f32 0.0012755102, %v831_v23  ;;  %v7626_v47 = vmul.f32 %v6379_v6, %v1195_v32  ;;  %v1388_v4 = vsub.f32 %v1324_v60, %v1356_v57  ;;  %v1328_v42 = vld [vmem:[%s13221_s2 + $0x78] sm:$0xff]  ;;  %v1325_v60 = vld [vmem:[%s13221_s2 + $0x60] sm:$0xff] }
  0xd5   :  { %v310_v22 = vpop.xlane.xlu1 %309  ;;  %1476 = vperm.xlu1 %6367, %v7615_v28   ;;  %v1357_v57 = vmul.f32 %v7600_v16, %v7558_v18  ;;  %v1358_v18 = vmul.f32 %v7615_v28, %v7551_v37 }
  0xd6   :  { %v7624_v44 = vmul.f32 0.0012755102, %v310_v22  ;;  %6384 = vrsqrt.f32 %v1224_v34  ;;  %v1159_v46 = vsub.f32 %v1095_v13, %v1127_v2  ;;  %v1360_v34 = vmul.f32 %v7589_v56, %v7554_v20 }
  0xd7   :  { %v301_v50 = vpop.xlane.xlu0 %300 }
  0xd8   :  { %v1223_v15 = vadd.f32 1e-05, %v1159_v46  ;;  %1466 = vperm.xlu0 %6366, %v1292_v39   ;;  %v1126_v51 = vmul.f32 %v7624_v44, %v7624_v44  ;;  %v7655_v61 = vmul.f32 0.0012755102, %v301_v50  ;;  %v1190_v39 = vld [vmem:[%s13220_s1 + $0x28] sm:$0xff]  ;;  %v1392_v56 = vsub.f32 %v1328_v42, %v1360_v34  ;;  %v1319_v42 = vld [vmem:[%s13221_s2 + $0x30] sm:$0xff] }
  0xd9   :  { %1461 = vperm.xlu1 %6367, %v7626_v47   ;;  %v6381_v36 = vpop.eup %6380 }
  0xda   :  { %6386 = vrsqrt.f32 %v1223_v15  ;;  %v822_v52 = vpop.xlane.xlu1 %821  ;;  %v1290_v53 = vmul.f32 %v6381_v36, %v1194_v41  ;;  %v1125_v24 = vmul.f32 %v7655_v61, %v7655_v61 }
  0xdb   :  { %v1094_v27 = vmul.f32 0.0012755102, %v822_v52 }
  0xdc   :  { %1456 = vperm.xlu0 %6366, %v1290_v53   ;;  %v1354_v5 = vmul.f32 %v1290_v53, %v7578_v43 }
  0xdd   :  { %v1158_v19 = vsub.f32 %v1094_v27, %v1126_v51  ;;  %v1318_v27 = vld [vmem:[%s13221_s2 + $0x28] sm:$0xff] }
  0xde   :  { %v6383_v63 = vpop.eup %6382  ;;  %v813_v0 = vpop.xlane.xlu0 %812  ;;  %v1386_v55 = vsub.f32 %v1322_v30, %v1354_v5  ;;  %v1389_v30 = vsub.f32 %v1325_v60, %v1357_v57  ;;  %v1314_v57 = vld [vmem:[%s13221_s2 + $0x8] sm:$0xff] }
  0xdf   :  { %v292_v59 = vpop.xlane.xlu1 %291  ;;  %v7641_v1 = vmul.f32 %v6383_v63, %v1193_v58  ;;  %v1222_v33 = vadd.f32 1e-05, %v1158_v19  ;;  %v1093_v14 = vmul.f32 0.0012755102, %v813_v0 }
  0xe0   :  { %v7644_v29 = vmul.f32 0.0012755102, %v292_v59  ;;  %1850 = vperm.xlu0 %6366, %v1388_v4  }
  0xe1   :  { %1451 = vperm.xlu1 %6367, %v7641_v1   ;;  %6388 = vrsqrt.f32 %v1222_v33  ;;  %v1157_v13 = vsub.f32 %v1093_v14, %v1125_v24 }
  0xe2   :  { %v1124_v43 = vmul.f32 %v7644_v29, %v7644_v29  ;;  %v283_v11 = vpop.xlane.xlu0 %282 }
  0xe3   :  { %v6385_v7 = vpop.eup %6384  ;;  %v7678_v22 = vmul.f32 0.0012755102, %v283_v11  ;;  %v1221_v51 = vadd.f32 1e-05, %v1157_v13 }
  0xe4   :  { %v804_v45 = vpop.xlane.xlu1 %803  ;;  %1840 = vperm.xlu0 %6366, %v1386_v55   ;;  %v1288_v17 = vmul.f32 %v6385_v7, %v1192_v31  ;;  %v1188_v31 = vld [vmem:[%s13220_s1 + $0x18] sm:$0xff]  ;;  %v1355_v55 = vmul.f32 %v7626_v47, %v7572_v38 }
  0xe5   :  { %v1092_v3 = vmul.f32 0.0012755102, %v804_v45  ;;  %v1123_v52 = vmul.f32 %v7678_v22, %v7678_v22 }
  0xe6   :  { %v1352_v10 = vmul.f32 %v1288_v17, %v7594_v12  ;;  %v1327_v12 = vld [vmem:[%s13221_s2 + $0x70] sm:$0xff] }
  0xe7   :  { %v6387_v40 = vpop.eup %6386  ;;  %v1156_v21 = vsub.f32 %v1092_v3, %v1124_v43  ;;  %v1391_v9 = vsub.f32 %v1327_v12, %v1359_v8  ;;  %v1323_v3 = vld [vmem:[%s13221_s2 + $0x50] sm:$0xff]  ;;  %v1353_v8 = vmul.f32 %v7641_v1, %v7582_v49 }
  0xe8   :  { %v7666_v54 = vmul.f32 %v6387_v40, %v1191_v48  ;;  %1446 = vperm.xlu0 %6366, %v1288_v17   ;;  %v1384_v2 = vsub.f32 %v1320_v62, %v1352_v10  ;;  %v1387_v47 = vsub.f32 %v1323_v3, %v1355_v55 }
  0xe9   :  { %v1220_v26 = vadd.f32 1e-05, %v1156_v21  ;;  %v795_v6 = vpop.xlane.xlu0 %794  ;;  %v1316_v21 = vld [vmem:[%s13221_s2 + $0x18] sm:$0xff] }
  0xea   :  { %v274_v23 = vpop.xlane.xlu1 %273  ;;  %1441 = vperm.xlu1 %6367, %v7666_v54   ;;  %v1091_v53 = vmul.f32 0.0012755102, %v795_v6 }
  0xeb   :  { %v7673_v32 = vmul.f32 0.0012755102, %v274_v23  ;;  %6390 = vrsqrt.f32 %v1220_v26  ;;  %v1321_v26 = vld [vmem:[%s13221_s2 + $0x40] sm:$0xff] }
  0xec   :  { %1830 = vperm.xlu0 %6366, %v1384_v2   ;;  %6392 = vrsqrt.f32 %v1221_v51  ;;  %v1155_v5 = vsub.f32 %v1091_v53, %v1123_v52  ;;  %v1385_v1 = vsub.f32 %v1321_v26, %v1353_v8  ;;  %v1315_v8 = vld [vmem:[%s13221_s2 + $0x10] sm:$0xff] }
  0xed   :  { %v1122_v46 = vmul.f32 %v7673_v32, %v7673_v32  ;;  %v265_v41 = vpop.xlane.xlu0 %264 }
  0xee   :  { %v6389_v15 = vpop.eup %6388  ;;  %v786_v50 = vpop.xlane.xlu1 %785  ;;  %1865 = vperm.xlu1 %6367, %v1391_v9   ;;  %v7699_v19 = vmul.f32 0.0012755102, %v265_v41  ;;  %v1219_v43 = vadd.f32 1e-05, %v1155_v5  ;;  %v1189_v41 = vld [vmem:[%s13220_s1 + $0x20] sm:$0xff] }
  0xef   :  { %v1090_v20 = vmul.f32 0.0012755102, %v786_v50  ;;  %v1286_v36 = vmul.f32 %v6389_v15, %v1190_v39  ;;  %v1186_v39 = vld [vmem:[%s13220_s1 + $0x8] sm:$0xff] }
  0xf0   :  { %v1121_v37 = vmul.f32 %v7699_v19, %v7699_v19 }
  0xf1   :  { %v1154_v58 = vsub.f32 %v1090_v20, %v1122_v46  ;;  %1436 = vperm.xlu0 %6366, %v1286_v36   ;;  %v1350_v63 = vmul.f32 %v1286_v36, %v7624_v44  ;;  %v1326_v44 = vld [vmem:[%s13221_s2 + $0x68] sm:$0xff] }
  0xf2   :  { %1870 = vperm.xlu1 %6367, %v1392_v56   ;;  %v1390_v17 = vsub.f32 %v1326_v44, %v1358_v18 }
  0xf3   :  { %v1218_v0 = vadd.f32 1e-05, %v1154_v58  ;;  %v777_v59 = vpop.xlane.xlu0 %776  ;;  %v544_v4 = vpop.xlane.xlu1 %543  ;;  %v1382_v16 = vsub.f32 %v1318_v27, %v1350_v63 }
  0xf4   :  { %v7703_v33 = vmul.f32 0.0012755102, %v544_v4  ;;  %v1089_v28 = vmul.f32 0.0012755102, %v777_v59 }
  0xf5   :  { %6394 = vrsqrt.f32 %v1218_v0  ;;  %1820 = vperm.xlu0 %6366, %v1382_v16  }
  0xf6   :  { %1855 = vperm.xlu1 %6367, %v1389_v30   ;;  %v1152_v11 = vmul.f32 %v7703_v33, %v7703_v33  ;;  %v1153_v38 = vsub.f32 %v1089_v28, %v1121_v37  ;;  %6396 = vrsqrt.f32 %v1219_v43  ;;  %v1216_v37 = vld [vmem:[%s13220_s1 + $0xf8] sm:$0xff] }
  0xf7   :  { %v535_v45 = vpop.xlane.xlu0 %534 }
  0xf8   :  { %v6391_v7 = vpop.eup %6390  ;;  %v7724_v24 = vmul.f32 0.0012755102, %v535_v45  ;;  %v1217_v34 = vadd.f32 1e-05, %v1153_v38 }
  0xf9   :  { %v1056_v48 = vpop.xlane.xlu1 %1055  ;;  %v1284_v10 = vmul.f32 %v6391_v7, %v1188_v31  ;;  %v6393_v46 = vpop.eup %6392  ;;  %v1187_v31 = vld [vmem:[%s13220_s1 + $0x10] sm:$0xff] }
  0xfa   :  { %v1120_v40 = vmul.f32 0.0012755102, %v1056_v48  ;;  %1860 = vperm.xlu1 %6367, %v1390_v17   ;;  %v1151_v9 = vmul.f32 %v7724_v24, %v7724_v24  ;;  %v1285_v53 = vmul.f32 %v6393_v46, %v1189_v41 }
  0xfb   :  { %1426 = vperm.xlu0 %6366, %v1284_v10   ;;  %v1348_v62 = vmul.f32 %v1284_v10, %v7644_v29  ;;  %v1351_v29 = vmul.f32 %v7666_v54, %v7609_v25  ;;  %v1344_v10 = vld [vmem:[%s13221_s2 + $0xf8] sm:$0xff] }
  0xfc   :  { %v1184_v14 = vsub.f32 %v1120_v40, %v1152_v11  ;;  %v1349_v16 = vmul.f32 %v1285_v53, %v7655_v61 }
  0xfd   :  { %v1380_v6 = vsub.f32 %v1316_v21, %v1348_v62  ;;  %v1383_v20 = vsub.f32 %v1319_v42, %v1351_v29  ;;  %v1185_v62 = vld [vmem:[%s13220_s1] sm:$0xff] }
  0xfe   :  { %v1248_v23 = vadd.f32 1e-05, %v1184_v14  ;;  %v1047_v12 = vpop.xlane.xlu0 %1046  ;;  %1845 = vperm.xlu1 %6367, %v1387_v47  }
  0xff   :  { %v526_v2 = vpop.xlane.xlu1 %525  ;;  %1810 = vperm.xlu0 %6366, %v1380_v6   ;;  %v1119_v49 = vmul.f32 0.0012755102, %v1047_v12 }
 0x100   :  { %v7731_v13 = vmul.f32 0.0012755102, %v526_v2  ;;  %6398 = vrsqrt.f32 %v1248_v23 }
 0x101   :  { %6400 = vrsqrt.f32 %v1217_v34  ;;  %v1183_v36 = vsub.f32 %v1119_v49, %v1151_v9  ;;  %v1214_v9 = vld [vmem:[%s13220_s1 + $0xe8] sm:$0xff] }
 0x102   :  { %v6395_v25 = vpop.eup %6394  ;;  %v1150_v54 = vmul.f32 %v7731_v13, %v7731_v13  ;;  %v517_v15 = vpop.xlane.xlu0 %516  ;;  %1835 = vperm.xlu1 %6367, %v1385_v1  }
 0x103   :  { %v1282_v56 = vmul.f32 %v6395_v25, %v1186_v39  ;;  %v7748_v51 = vmul.f32 0.0012755102, %v517_v15  ;;  %v1247_v63 = vadd.f32 1e-05, %v1183_v36  ;;  %v6397_v5 = vpop.eup %6396  ;;  %v1342_v36 = vld [vmem:[%s13221_s2 + $0xe8] sm:$0xff] }
 0x104   :  { %v1038_v50 = vpop.xlane.xlu1 %1037  ;;  %v1283_v55 = vmul.f32 %v6397_v5, %v1187_v31  ;;  %v1213_v31 = vld [vmem:[%s13220_s1 + $0xe0] sm:$0xff] }
 0x105   :  { %v1118_v52 = vmul.f32 0.0012755102, %v1038_v50  ;;  %1416 = vperm.xlu0 %6366, %v1282_v56   ;;  %v1346_v27 = vmul.f32 %v1282_v56, %v7673_v32  ;;  %v1149_v0 = vmul.f32 %v7748_v51, %v7748_v51  ;;  %v1317_v32 = vld [vmem:[%s13221_s2 + $0x20] sm:$0xff] }
 0x106   :  { %1825 = vperm.xlu1 %6367, %v1383_v20   ;;  %v1381_v28 = vsub.f32 %v1317_v32, %v1349_v16  ;;  %v1347_v47 = vmul.f32 %v1283_v55, %v7678_v22  ;;  %v1313_v50 = vld [vmem:[%s13221_s2] sm:$0xff]  ;;  %v1343_v32 = vld [vmem:[%s13221_s2 + $0xf0] sm:$0xff] }
 0x107   :  { %v1182_v58 = vsub.f32 %v1118_v52, %v1150_v54  ;;  %v1378_v60 = vsub.f32 %v1314_v57, %v1346_v27  ;;  %v1215_v52 = vld [vmem:[%s13220_s1 + $0xf0] sm:$0xff] }
 0x108   :  { %v1029_v4 = vpop.xlane.xlu0 %1028  ;;  %v508_v18 = vpop.xlane.xlu1 %507  ;;  %v1379_v29 = vsub.f32 %v1315_v8, %v1347_v47 }
 0x109   :  { %v1246_v59 = vadd.f32 1e-05, %v1182_v58  ;;  %v1117_v30 = vmul.f32 0.0012755102, %v1029_v4  ;;  %v7757_v44 = vmul.f32 0.0012755102, %v508_v18  ;;  %1800 = vperm.xlu0 %6366, %v1378_v60  }
 0x10a   :  { %1431 = vperm.xlu1 %6367, %v1285_v53  }
 0x10b   :  { %6402 = vrsqrt.f32 %v1246_v59  ;;  %v1181_v61 = vsub.f32 %v1117_v30, %v1149_v0  ;;  %v1148_v43 = vmul.f32 %v7757_v44, %v7757_v44 }
 0x10c   :  { %6404 = vrsqrt.f32 %v1247_v63  ;;  %v499_v11 = vpop.xlane.xlu0 %498 }
 0x10d   :  { %v6399_v7 = vpop.eup %6398  ;;  %v7770_v45 = vmul.f32 0.0012755102, %v499_v11  ;;  %v1245_v21 = vadd.f32 1e-05, %v1181_v61 }
 0x10e   :  { %v1020_v17 = vpop.xlane.xlu1 %1019  ;;  %1815 = vperm.xlu1 %6367, %v1381_v28   ;;  %v1312_v3 = vmul.f32 %v6399_v7, %v1216_v37  ;;  %v6401_v40 = vpop.eup %6400 }
 0x10f   :  { %v1116_v48 = vmul.f32 0.0012755102, %v1020_v17  ;;  %v1147_v26 = vmul.f32 %v7770_v45, %v7770_v45  ;;  %6406 = vrsqrt.f32 %v1245_v21  ;;  %v1340_v17 = vld [vmem:[%s13221_s2 + $0xd8] sm:$0xff] }
 0x110   :  { %1566 = vperm.xlu0 %6366, %v1312_v3   ;;  %v1376_v38 = vmul.f32 %v1312_v3, %v7703_v33  ;;  %v1281_v33 = vmul.f32 %v6401_v40, %v1185_v62 }
 0x111   :  { %v1180_v14 = vsub.f32 %v1116_v48, %v1148_v43 }
 0x112   :  { %1421 = vperm.xlu1 %6367, %v1283_v55   ;;  %v1408_v6 = vsub.f32 %v1344_v10, %v1376_v38  ;;  %v1345_v46 = vmul.f32 %v1281_v33, %v7699_v19 }
 0x113   :  { %v1244_v23 = vadd.f32 1e-05, %v1180_v14  ;;  %v1011_v12 = vpop.xlane.xlu0 %1010 }
 0x114   :  { %v490_v2 = vpop.xlane.xlu1 %489  ;;  %v1115_v22 = vmul.f32 0.0012755102, %v1011_v12  ;;  %1950 = vperm.xlu0 %6366, %v1408_v6   ;;  %v1377_v57 = vsub.f32 %v1313_v50, %v1345_v46  ;;  %v1211_v12 = vld [vmem:[%s13220_s1 + $0xd0] sm:$0xff] }
 0x115   :  { %v7785_v34 = vmul.f32 0.0012755102, %v490_v2  ;;  %6408 = vrsqrt.f32 %v1244_v23  ;;  %v1210_v2 = vld [vmem:[%s13220_s1 + $0xc8] sm:$0xff] }
 0x116   :  { %v1179_v49 = vsub.f32 %v1115_v22, %v1147_v26  ;;  %1805 = vperm.xlu1 %6367, %v1379_v29  }
 0x117   :  { %v1146_v42 = vmul.f32 %v7785_v34, %v7785_v34  ;;  %v481_v39 = vpop.xlane.xlu0 %480 }
 0x118   :  { %v6403_v1 = vpop.eup %6402  ;;  %v1243_v41 = vadd.f32 1e-05, %v1179_v49  ;;  %v7793_v25 = vmul.f32 0.0012755102, %v481_v39 }
 0x119   :  { %v1002_v54 = vpop.xlane.xlu1 %1001  ;;  %v1310_v15 = vmul.f32 %v6403_v1, %v1214_v9  ;;  %v6405_v20 = vpop.eup %6404 }
 0x11a   :  { %v1114_v56 = vmul.f32 0.0012755102, %v1002_v54  ;;  %1411 = vperm.xlu1 %6367, %v1281_v33   ;;  %6410 = vrsqrt.f32 %v1243_v41  ;;  %v1145_v27 = vmul.f32 %v7793_v25, %v7793_v25  ;;  %v1311_v60 = vmul.f32 %v6405_v20, %v1215_v52  ;;  %v1338_v54 = vld [vmem:[%s13221_s2 + $0xc8] sm:$0xff] }
 0x11b   :  { %1556 = vperm.xlu0 %6366, %v1310_v15   ;;  %v1374_v19 = vmul.f32 %v1310_v15, %v7731_v13  ;;  %v1212_v13 = vld [vmem:[%s13220_s1 + $0xd8] sm:$0xff] }
 0x11c   :  { %v1178_v53 = vsub.f32 %v1114_v56, %v1146_v42  ;;  %v1375_v5 = vmul.f32 %v1311_v60, %v7724_v24  ;;  %v6407_v30 = vpop.eup %6406 }
 0x11d   :  { %v1406_v58 = vsub.f32 %v1342_v36, %v1374_v19  ;;  %v993_v0 = vpop.xlane.xlu0 %992  ;;  %v472_v59 = vpop.xlane.xlu1 %471  ;;  %v1309_v48 = vmul.f32 %v6407_v30, %v1213_v31  ;;  %v1339_v19 = vld [vmem:[%s13221_s2 + $0xd0] sm:$0xff] }
 0x11e   :  { %v1242_v63 = vadd.f32 1e-05, %v1178_v53  ;;  %v1113_v4 = vmul.f32 0.0012755102, %v993_v0  ;;  %v7807_v18 = vmul.f32 0.0012755102, %v472_v59  ;;  %1795 = vperm.xlu1 %6367, %v1377_v57   ;;  %v1407_v3 = vsub.f32 %v1343_v32, %v1375_v5 }
 0x11f   :  { %1940 = vperm.xlu0 %6366, %v1406_v58   ;;  %v1373_v8 = vmul.f32 %v1309_v48, %v7748_v51  ;;  %v1209_v53 = vld [vmem:[%s13220_s1 + $0xc0] sm:$0xff]  ;;  %v1208_v59 = vld [vmem:[%s13220_s1 + $0xb8] sm:$0xff] }
 0x120   :  { %6412 = vrsqrt.f32 %v1242_v63  ;;  %v1177_v16 = vsub.f32 %v1113_v4, %v1145_v27  ;;  %v1144_v28 = vmul.f32 %v7807_v18, %v7807_v18 }
 0x121   :  { %v463_v55 = vpop.xlane.xlu0 %462 }
 0x122   :  { %v6409_v37 = vpop.eup %6408  ;;  %v1241_v61 = vadd.f32 1e-05, %v1177_v16  ;;  %1561 = vperm.xlu1 %6367, %v1311_v60   ;;  %v7821_v7 = vmul.f32 0.0012755102, %v463_v55  ;;  %v1337_v55 = vld [vmem:[%s13221_s2 + $0xc0] sm:$0xff] }
 0x123   :  { %v984_v43 = vpop.xlane.xlu1 %983  ;;  %v1308_v24 = vmul.f32 %v6409_v37, %v1212_v13 }
 0x124   :  { %6414 = vrsqrt.f32 %v1241_v61  ;;  %v1112_v11 = vmul.f32 0.0012755102, %v984_v43  ;;  %v1143_v21 = vmul.f32 %v7821_v7, %v7821_v7 }
 0x125   :  { %1546 = vperm.xlu0 %6366, %v1308_v24   ;;  %v1372_v10 = vmul.f32 %v1308_v24, %v7757_v44  ;;  %v1341_v44 = vld [vmem:[%s13221_s2 + $0xe0] sm:$0xff]  ;;  %v1207_v24 = vld [vmem:[%s13220_s1 + $0xb0] sm:$0xff] }
 0x126   :  { %v1176_v40 = vsub.f32 %v1112_v11, %v1144_v28  ;;  %1945 = vperm.xlu1 %6367, %v1407_v3   ;;  %v1405_v9 = vsub.f32 %v1341_v44, %v1373_v8  ;;  %v1336_v28 = vld [vmem:[%s13221_s2 + $0xb8] sm:$0xff] }
 0x127   :  { %v1404_v38 = vsub.f32 %v1340_v17, %v1372_v10  ;;  %v6411_v26 = vpop.eup %6410 }
 0x128   :  { %v1240_v47 = vadd.f32 1e-05, %v1176_v40  ;;  %v975_v62 = vpop.xlane.xlu0 %974  ;;  %v1307_v49 = vmul.f32 %v6411_v26, %v1211_v12  ;;  %v1335_v12 = vld [vmem:[%s13221_s2 + $0xb0] sm:$0xff] }
 0x129   :  { %v454_v14 = vpop.xlane.xlu1 %453  ;;  %v1111_v6 = vmul.f32 0.0012755102, %v975_v62  ;;  %1930 = vperm.xlu0 %6366, %v1404_v38  }
 0x12a   :  { %v7830_v23 = vmul.f32 0.0012755102, %v454_v14  ;;  %6416 = vrsqrt.f32 %v1240_v47  ;;  %1551 = vperm.xlu1 %6367, %v1309_v48   ;;  %v1371_v20 = vmul.f32 %v1307_v49, %v7770_v45 }
 0x12b   :  { %v1175_v51 = vsub.f32 %v1111_v6, %v1143_v21 }
 0x12c   :  { %v1142_v22 = vmul.f32 %v7830_v23, %v7830_v23  ;;  %v445_v29 = vpop.xlane.xlu0 %444  ;;  %v1403_v45 = vsub.f32 %v1339_v19, %v1371_v20 }
 0x12d   :  { %v6413_v33 = vpop.eup %6412  ;;  %v1239_v1 = vadd.f32 1e-05, %v1175_v51  ;;  %v7843_v42 = vmul.f32 0.0012755102, %v445_v29 }
 0x12e   :  { %v966_v39 = vpop.xlane.xlu1 %965  ;;  %v1306_v46 = vmul.f32 %v6413_v33, %v1210_v2  ;;  %1935 = vperm.xlu1 %6367, %v1405_v9  }
 0x12f   :  { %v1110_v41 = vmul.f32 0.0012755102, %v966_v39  ;;  %6418 = vrsqrt.f32 %v1239_v1  ;;  %v1141_v36 = vmul.f32 %v7843_v42, %v7843_v42  ;;  %v1205_v1 = vld [vmem:[%s13220_s1 + $0xa0] sm:$0xff] }
 0x130   :  { %1536 = vperm.xlu0 %6366, %v1306_v46   ;;  %v1370_v15 = vmul.f32 %v1306_v46, %v7785_v34 }
 0x131   :  { %v1174_v50 = vsub.f32 %v1110_v41, %v1142_v22  ;;  %v6415_v56 = vpop.eup %6414 }
 0x132   :  { %v1402_v52 = vsub.f32 %v1338_v54, %v1370_v15  ;;  %v957_v27 = vpop.xlane.xlu0 %956  ;;  %v436_v58 = vpop.xlane.xlu1 %435  ;;  %1541 = vperm.xlu1 %6367, %v1307_v49   ;;  %v1305_v63 = vmul.f32 %v6415_v56, %v1209_v53  ;;  %v1204_v53 = vld [vmem:[%s13220_s1 + $0x98] sm:$0xff] }
 0x133   :  { %v1238_v57 = vadd.f32 1e-05, %v1174_v50  ;;  %v1109_v34 = vmul.f32 0.0012755102, %v957_v27  ;;  %v7858_v60 = vmul.f32 0.0012755102, %v436_v58 }
 0x134   :  { %1920 = vperm.xlu0 %6366, %v1402_v52   ;;  %v1369_v37 = vmul.f32 %v1305_v63, %v7793_v25 }
 0x135   :  { %6420 = vrsqrt.f32 %v1238_v57  ;;  %v1173_v0 = vsub.f32 %v1109_v34, %v1141_v36  ;;  %v1140_v13 = vmul.f32 %v7858_v60, %v7858_v60 }
 0x136   :  { %1925 = vperm.xlu1 %6367, %v1403_v45   ;;  %v427_v5 = vpop.xlane.xlu0 %426  ;;  %v1401_v48 = vsub.f32 %v1337_v55, %v1369_v37  ;;  %v6433_v55 = vld [vmem:[%s13219_s0 + $0x360] sm:$0xff] }
 0x137   :  { %v6417_v4 = vpop.eup %6416  ;;  %v1237_v16 = vadd.f32 1e-05, %v1173_v0  ;;  %v7865_v30 = vmul.f32 0.0012755102, %v427_v5 }
 0x138   :  { %v948_v32 = vpop.xlane.xlu1 %947  ;;  %v1304_v31 = vmul.f32 %v6417_v4, %v1208_v59  ;;  %v1203_v59 = vld [vmem:[%s13220_s1 + $0x90] sm:$0xff] }
 0x139   :  { %6422 = vrsqrt.f32 %v1237_v16  ;;  %v1108_v61 = vmul.f32 0.0012755102, %v948_v32  ;;  %v1139_v17 = vmul.f32 %v7865_v30, %v7865_v30 }
 0x13a   :  { %1526 = vperm.xlu0 %6366, %v1304_v31   ;;  %v1368_v43 = vmul.f32 %v1304_v31, %v7807_v18  ;;  %1531 = vperm.xlu1 %6367, %v1305_v63   ;;  %v1206_v18 = vld [vmem:[%s13220_s1 + $0xa8] sm:$0xff]  ;;  %v1332_v63 = vld [vmem:[%s13221_s2 + $0x98] sm:$0xff]  ;;  %v1331_v31 = vld [vmem:[%s13221_s2 + $0x90] sm:$0xff] }
 0x13b   :  { %v1172_v11 = vsub.f32 %v1108_v61, %v1140_v13  ;;  %v1202_v61 = vld [vmem:[%s13220_s1 + $0x88] sm:$0xff] }
 0x13c   :  { %v6419_v25 = vpop.eup %6418  ;;  %v1400_v3 = vsub.f32 %v1336_v28, %v1368_v43 }
 0x13d   :  { %v1236_v10 = vadd.f32 1e-05, %v1172_v11  ;;  %v939_v40 = vpop.xlane.xlu0 %938  ;;  %v1303_v38 = vmul.f32 %v6419_v25, %v1207_v24  ;;  %v6434_v24 = vld [vmem:[%s13219_s0 + $0x348] sm:$0xff]  ;;  %v6435_v25 = vld [vmem:[%s13219_s0 + $0x358] sm:$0xff] }
 0x13e   :  { %v418_v21 = vpop.xlane.xlu1 %417  ;;  %v1107_v47 = vmul.f32 0.0012755102, %v939_v40  ;;  %1910 = vperm.xlu0 %6366, %v1400_v3   ;;  %1915 = vperm.xlu1 %6367, %v1401_v48   ;;  %v6437_v48 = vld [vmem:[%s13219_s0 + $0x370] sm:$0xff]  ;;  %v6438_v40 = vld [vmem:[%s13219_s0 + $0x368] sm:$0xff] }
 0x13f   :  { %v7880_v62 = vmul.f32 0.0012755102, %v418_v21  ;;  %6424 = vrsqrt.f32 %v1236_v10  ;;  %v1367_v8 = vmul.f32 %v1303_v38, %v7821_v7  ;;  %v1334_v7 = vld [vmem:[%s13221_s2 + $0xa8] sm:$0xff] }
 0x140   :  { %v1171_v14 = vsub.f32 %v1107_v47, %v1139_v17 }
 0x141   :  { %v1138_v6 = vmul.f32 %v7880_v62, %v7880_v62  ;;  %v409_v44 = vpop.xlane.xlu0 %408  ;;  %v1399_v49 = vsub.f32 %v1335_v12, %v1367_v8  ;;  %v6440_v8 = vld [vmem:[%s13219_s0 + $0x2b8] sm:$0xff]  ;;  %v6442_v12 = vld [vmem:[%s13219_s0 + $0x2b0] sm:$0xff] }
 0x142   :  { %v6421_v26 = vpop.eup %6420  ;;  %v1235_v2 = vadd.f32 1e-05, %v1171_v14  ;;  %v7891_v51 = vmul.f32 0.0012755102, %v409_v44  ;;  %1521 = vperm.xlu1 %6367, %v1303_v38   ;;  %v6439_v38 = vld [vmem:[%s13219_s0 + $0x378] sm:$0xff] }
 0x143   :  { %v930_v33 = vpop.xlane.xlu1 %929  ;;  %v1302_v22 = vmul.f32 %v6421_v26, %v1206_v18 }
 0x144   :  { %v1106_v29 = vmul.f32 0.0012755102, %v930_v33  ;;  %6426 = vrsqrt.f32 %v1235_v2  ;;  %v1137_v41 = vmul.f32 %v7891_v51, %v7891_v51 }
 0x145   :  { %1516 = vperm.xlu0 %6366, %v1302_v22   ;;  %v1366_v9 = vmul.f32 %v1302_v22, %v7830_v23  ;;  %v1333_v23 = vld [vmem:[%s13221_s2 + $0xa0] sm:$0xff] }
 0x146   :  { %v1170_v39 = vsub.f32 %v1106_v29, %v1138_v6  ;;  %v6423_v46 = vpop.eup %6422  ;;  %1905 = vperm.xlu1 %6367, %v1399_v49   ;;  %v6441_v6 = vld [vmem:[%s13219_s0 + $0x2a0] sm:$0xff]  ;;  %v6443_v29 = vld [vmem:[%s13219_s0 + $0x2c8] sm:$0xff] }
 0x147   :  { %v1398_v54 = vsub.f32 %v1334_v7, %v1366_v9  ;;  %v921_v50 = vpop.xlane.xlu0 %920  ;;  %v1301_v20 = vmul.f32 %v6423_v46, %v1205_v1  ;;  %v6444_v9 = vld [vmem:[%s13219_s0 + $0x2c0] sm:$0xff]  ;;  %v6445_v1 = vld [vmem:[%s13219_s0 + $0x2d0] sm:$0xff]  ;;  %v1330_v46 = vld [vmem:[%s13221_s2 + $0x88] sm:$0xff] }
 0x148   :  { %v1234_v15 = vadd.f32 1e-05, %v1170_v39  ;;  %v1487_v56 = vpop.permute.xlu1 %1486  ;;  %v1105_v36 = vmul.f32 0.0012755102, %v921_v50 }
 0x149   :  { %1900 = vperm.xlu0 %6366, %v1398_v54   ;;  %v1365_v52 = vmul.f32 %v1301_v20, %v7843_v42  ;;  %v7937_v43 = vmul.f32 %v6433_v55, %v1487_v56  ;;  %v7942_v11 = vmul.f32 %v6434_v24, %v1487_v56  ;;  %v7947_v17 = vmul.f32 %v6435_v25, %v1487_v56  ;;  %v6457_v24 = vld [vmem:[%s13219_s0 + $0x300] sm:$0xff] }
 0x14a   :  { %6428 = vrsqrt.f32 %v1234_v15  ;;  %v1169_v19 = vsub.f32 %v1105_v36, %v1137_v41  ;;  %1511 = vperm.xlu1 %6367, %v1301_v20   ;;  %v7957_v10 = vmul.f32 %v6437_v48, %v1487_v56  ;;  %v7962_v21 = vmul.f32 %v6438_v40, %v1487_v56  ;;  %v6446_v41 = vld [vmem:[%s13219_s0 + $0x318] sm:$0xff]  ;;  %v6447_v15 = vld [vmem:[%s13219_s0 + $0x328] sm:$0xff]  ;;  %v6448_v20 = vld [vmem:[%s13219_s0 + $0x310] sm:$0xff] }
 0x14b   :  { %v1397_v58 = vsub.f32 %v1333_v23, %v1365_v52  ;;  %v7967_v47 = vmul.f32 %v6439_v38, %v1487_v56  ;;  %v6449_v36 = vld [vmem:[%s13219_s0 + $0x320] sm:$0xff] }
 0x14c   :  { %v6425_v57 = vpop.eup %6424  ;;  %v1233_v27 = vadd.f32 1e-05, %v1169_v19  ;;  %v1472_v45 = vpop.permute.xlu1 %1471 }
 0x14d   :  { %v1300_v34 = vmul.f32 %v6425_v57, %v1204_v53  ;;  %v7972_v26 = vmul.f32 %v6440_v8, %v1472_v45  ;;  %v7977_v44 = vmul.f32 %v6441_v6, %v1472_v45  ;;  %v7982_v2 = vmul.f32 %v6442_v12, %v1472_v45  ;;  %v1201_v53 = vld [vmem:[%s13220_s1 + $0x80] sm:$0xff]  ;;  %v6461_v8 = vld [vmem:[%s13219_s0 + $0x270] sm:$0xff]  ;;  %v6462_v12 = vld [vmem:[%s13219_s0 + $0x248] sm:$0xff] }
 0x14e   :  { %6430 = vrsqrt.f32 %v1233_v27  ;;  %1895 = vperm.xlu1 %6367, %v1397_v58   ;;  %v7989_v7 = vmul.f32 %v6443_v29, %v1472_v45  ;;  %v7994_v49 = vmul.f32 %v6444_v9, %v1472_v45  ;;  %v7999_v39 = vmul.f32 %v6445_v1, %v1472_v45  ;;  %v6450_v57 = vld [vmem:[%s13219_s0 + $0x2e0] sm:$0xff]  ;;  %v6451_v58 = vld [vmem:[%s13219_s0 + $0x2f0] sm:$0xff] }
 0x14f   :  { %1506 = vperm.xlu0 %6366, %v1300_v34   ;;  %v1364_v42 = vmul.f32 %v1300_v34, %v7858_v60  ;;  %v7913_v0 = vpop.permute.xlu0 %1481  ;;  %v6432_v60 = vld [vmem:[%s13219_s0 + $0x350] sm:$0xff]  ;;  %v6463_v29 = vld [vmem:[%s13219_s0 + $0x280] sm:$0xff] }
 0x150   :  { %v7918_v5 = vpop.permute.xlu1 %1476  ;;  %v7928_v37 = vmul.f32 %v6432_v60, %v1487_v56  ;;  %13434 = vst [vmem:[#allocation5_spill] sm:$0xff] %v7994_v49  ;;  %13435 = vst [vmem:[#allocation6_spill] sm:$0xff] %v7999_v39  ;;  %v8008_v54 = vmul.f32 %v6446_v41, %v7913_v0  ;;  %v8014_v50 = vmul.f32 %v6447_v15, %v7913_v0  ;;  %v6464_v1 = vld [vmem:[%s13219_s0 + $0x230] sm:$0xff] }
 0x151   :  { %v6427_v4 = vpop.eup %6426  ;;  %v1396_v16 = vsub.f32 %v1332_v63, %v1364_v42  ;;  %v8020_v56 = vmul.f32 %v6448_v20, %v7913_v0  ;;  %v8026_v23 = vmul.f32 %v6449_v36, %v7913_v0  ;;  %v8038_v27 = vmul.f32 %v6450_v57, %v7918_v5  ;;  %v6453_v63 = vld [vmem:[%s13219_s0 + $0x2e8] sm:$0xff]  ;;  %v6465_v41 = vld [vmem:[%s13219_s0 + $0x290] sm:$0xff] }
 0x152   :  { %v1299_v13 = vmul.f32 %v6427_v4, %v1203_v59  ;;  %v8044_v34 = vmul.f32 %v6451_v58, %v7918_v5  ;;  %v8056_v42 = vmul.f32 %v6453_v63, %v7918_v5  ;;  %v6454_v59 = vld [vmem:[%s13219_s0 + $0x338] sm:$0xff]  ;;  %v8080_v25 = vmul.f32 %v6457_v24, %v7918_v5  ;;  %v6466_v20 = vld [vmem:[%s13219_s0 + $0x288] sm:$0xff]  ;;  %v6468_v58 = vld [vmem:[%s13219_s0 + $0x240] sm:$0xff] }
 0x153   :  { %1890 = vperm.xlu0 %6366, %v1396_v16   ;;  %v7920_v32 = vpop.permute.xlu0 %1466  ;;  %v8062_v4 = vmul.f32 %v6454_v59, %v7913_v0  ;;  %v6455_v16 = vld [vmem:[%s13219_s0 + $0x330] sm:$0xff]  ;;  %v6469_v63 = vld [vmem:[%s13219_s0 + $0x278] sm:$0xff]  ;;  %v6471_v24 = vld [vmem:[%s13219_s0 + $0x220] sm:$0xff] }
 0x154   :  { %1501 = vperm.xlu1 %6367, %v1299_v13   ;;  %v1363_v28 = vmul.f32 %v1299_v13, %v7865_v30  ;;  %v6436_v30 = vld [vmem:[%s13219_s0 + $0x2a8] sm:$0xff]  ;;  %v8029_v19 = vpop.permute.xlu1 %1461  ;;  %v8068_v13 = vmul.f32 %v6455_v16, %v7913_v0  ;;  %v1647_v6 = vmul.f32 %v6461_v8, %v7920_v32  ;;  %v1649_v9 = vmul.f32 %v6463_v29, %v7920_v32  ;;  %v6473_v8 = vld [vmem:[%s13219_s0 + $0x210] sm:$0xff] }
 0x155   :  { %v7952_v3 = vmul.f32 %v6436_v30, %v1472_v45  ;;  %v6458_v30 = vld [vmem:[%s13219_s0 + $0x2f8] sm:$0xff]  ;;  %v1651_v15 = vmul.f32 %v6465_v41, %v7920_v32  ;;  %v1650_v36 = vmul.f32 %v6466_v20, %v7920_v32  ;;  %v1648_v59 = vmul.f32 %v6469_v63, %v7920_v32 }
 0x156   :  { %v1395_v14 = vsub.f32 %v1331_v31, %v1363_v28  ;;  %v6456_v31 = vld [vmem:[%s13219_s0 + $0x340] sm:$0xff]  ;;  %v8086_v48 = vmul.f32 %v6458_v30, %v7918_v5  ;;  %v6476_v20 = vld [vmem:[%s13219_s0 + $0x218] sm:$0xff] }
 0x157   :  { %v6429_v18 = vpop.eup %6428  ;;  %v7984_v22 = vpop.permute.xlu0 %1456  ;;  %v8074_v60 = vmul.f32 %v6456_v31, %v7913_v0  ;;  %v6459_v0 = vld [vmem:[%s13219_s0 + $0x308] sm:$0xff] }
 0x158   :  { %v1298_v33 = vmul.f32 %v6429_v18, %v1202_v61  ;;  %1885 = vperm.xlu1 %6367, %v1395_v14   ;;  %13436 = vst [vmem:[#allocation7_spill] sm:$0xff] %v8086_v48  ;;  %v8092_v40 = vmul.f32 %v6459_v0, %v7918_v5  ;;  %v6460_v18 = vld [vmem:[%s13219_s0 + $0x238] sm:$0xff]  ;;  %v1637_v30 = vmul.f32 %v6471_v24, %v7984_v22 }
 0x159   :  { %v8098_v14 = vmul.f32 %v6460_v18, %v8029_v19 }
 0x15a   :  { %1496 = vperm.xlu0 %6366, %v1298_v33   ;;  %v1362_v52 = vmul.f32 %v1298_v33, %v7880_v62  ;;  %v6452_v62 = vld [vmem:[%s13219_s0 + $0x2d8] sm:$0xff]  ;;  %13437 = vst [vmem:[#allocation8_spill] sm:$0xff] %v8092_v40  ;;  %v1329_v33 = vld [vmem:[%s13221_s2 + $0x80] sm:$0xff] }
 0x15b   :  { %v8050_v45 = vmul.f32 %v6452_v62, %v7918_v5  ;;  %v6431_v61 = vpop.eup %6430  ;;  %v1851_v55 = vpop.permute.xlu0 %1850  ;;  %v8108_v5 = vmul.f32 %v6462_v12, %v8029_v19  ;;  %v8140_v62 = vmul.f32 %v6468_v58, %v8029_v19  ;;  %v1635_v12 = vmul.f32 %v6473_v8, %v7984_v22 }
 0x15c   :  { %v1394_v28 = vsub.f32 %v1330_v46, %v1362_v52  ;;  %v1297_v38 = vmul.f32 %v6431_v61, %v1201_v53  ;;  %v8121_v46 = vmul.f32 %v6464_v1, %v8029_v19  ;;  %v6467_v53 = vld [vmem:[%s13219_s0 + $0x268] sm:$0xff]  ;;  %v8146_v16 = vadd.f32 %v1851_v55, %v1651_v15  ;;  %v6470_v61 = vld [vmem:[%s13219_s0 + $0x298] sm:$0xff]  ;;  %v8170_v1 = vpop.permute.xlu1 %1451 }
 0x15d   :  { %v1646_v57 = vmul.f32 %v6467_v53, %v7920_v32  ;;  %v8148_v31 = vadd.f32 %v1851_v55, %v1650_v36  ;;  %v1636_v36 = vmul.f32 %v6476_v20, %v7984_v22  ;;  %v8186_v58 = vadd.f32 %v1851_v55, %v1647_v6 }
 0x15e   :  { %1880 = vperm.xlu0 %6366, %v1394_v28   ;;  %1491 = vperm.xlu1 %6367, %v1297_v38   ;;  %v1361_v52 = vmul.f32 %v1297_v38, %v7891_v51  ;;  %13438 = vst [vmem:[#allocation9_spill] sm:$0xff] %v8146_v16  ;;  %v1652_v28 = vmul.f32 %v6470_v61, %v7920_v32  ;;  %v6472_v38 = vld [vmem:[%s13219_s0 + $0x200] sm:$0xff]  ;;  %v6474_v32 = vld [vmem:[%s13219_s0 + $0x1f8] sm:$0xff] }
 0x15f   :  { %v1841_v51 = vpop.permute.xlu0 %1840  ;;  %13439 = vst [vmem:[#allocation10_spill] sm:$0xff] %v8148_v31  ;;  %v1633_v18 = vmul.f32 %v6472_v38, %v7984_v22  ;;  %v1632_v29 = vmul.f32 %v6474_v32, %v7984_v22  ;;  %v8188_v63 = vadd.f32 %v1851_v55, %v1649_v9  ;;  %v8190_v61 = vadd.f32 %v1851_v55, %v1646_v57  ;;  %v6480_v9 = vld [vmem:[%s13219_s0 + $0x260] sm:$0xff]  ;;  %v6492_v31 = vld [vmem:[%s13219_s0 + $0x168] sm:$0xff] }
 0x160   :  { %v1393_v0 = vsub.f32 %v1329_v33, %v1361_v52  ;;  %v6475_v33 = vld [vmem:[%s13219_s0 + $0x208] sm:$0xff]  ;;  %v8176_v15 = vadd.f32 %v1851_v55, %v1652_v28  ;;  %v6478_v28 = vld [vmem:[%s13219_s0 + $0x258] sm:$0xff]  ;;  %v8200_v8 = vadd.f32 %v1851_v55, %v1648_v59  ;;  %v8212_v57 = vmul.f32 %v6480_v9, %v8029_v19 }
 0x161   :  { %v1634_v41 = vmul.f32 %v6475_v33, %v7984_v22  ;;  %v6477_v52 = vld [vmem:[%s13219_s0 + $0x228] sm:$0xff]  ;;  %v8196_v24 = vmul.f32 %v6478_v28, %v8029_v19  ;;  %v8222_v32 = vadd.f32 %v1841_v51, %v1633_v18  ;;  %v8224_v33 = vadd.f32 %v1841_v51, %v1635_v12  ;;  %v6487_v18 = vld [vmem:[%s13219_s0 + $0x190] sm:$0xff] }
 0x162   :  { %13440 = vst [vmem:[#allocation11_spill] sm:$0xff] %v8176_v15  ;;  %v1638_v53 = vmul.f32 %v6477_v52, %v7984_v22  ;;  %1875 = vperm.xlu1 %6367, %v1393_v0   ;;  %v6479_v22 = vld [vmem:[%s13219_s0 + $0x250] sm:$0xff]  ;;  %13444 = vst [vmem:[#allocation15_spill] sm:$0xff] %v8212_v57  ;;  %v8214_v0 = vadd.f32 %v1841_v51, %v1637_v30  ;;  %v6481_v55 = vld [vmem:[%s13219_s0 + $0x1c8] sm:$0xff]  ;;  %v8226_v20 = vadd.f32 %v1841_v51, %v1632_v29 }
 0x163   :  { %13441 = vst [vmem:[#allocation12_spill] sm:$0xff] %v8196_v24  ;;  %v8198_v38 = vpop.permute.xlu0 %1446  ;;  %v8206_v6 = vmul.f32 %v6479_v22, %v8029_v19  ;;  %v8220_v59 = vmul.f32 %v6481_v55, %v8170_v1  ;;  %v6482_v19 = vld [vmem:[%s13219_s0 + $0x1d8] sm:$0xff]  ;;  %v8236_v28 = vadd.f32 %v1841_v51, %v1634_v41  ;;  %v8238_v22 = vadd.f32 %v1841_v51, %v1636_v36  ;;  %v6483_v55 = vld [vmem:[%s13219_s0 + $0x1c0] sm:$0xff]  ;;  %v6484_v36 = vld [vmem:[%s13219_s0 + $0x1d0] sm:$0xff] }
 0x164   :  { %13442 = vst [vmem:[#allocation13_spill] sm:$0xff] %v8198_v38  ;;  %13445 = vst [vmem:[#allocation16_spill] sm:$0xff] %v8214_v0  ;;  %v8234_v30 = vmul.f32 %v6482_v19, %v8170_v1  ;;  %v8240_v9 = vadd.f32 %v1841_v51, %v1638_v53  ;;  %v8249_v35 = vmul.f32 %v6483_v55, %v8170_v1  ;;  %v2514_v19 = vld [vmem:[#allocation2 + $0x8] sm:$0xff]  ;;  %v2516_v41 = vld [vmem:[#allocation2 + $0x18] sm:$0xff] }
 0x165   :  { %13443 = vst [vmem:[#allocation14_spill] sm:$0xff] %v8206_v6  ;;  %v8228_v52 = vpop.permute.xlu1 %1441  ;;  %v8258_v53 = vmul.f32 %v6484_v36, %v8170_v1  ;;  %v8260_v29 = vpack.c.bf16 %v2516_v41, %v2514_v19  ;;  %v6485_v41 = vld [vmem:[%s13219_s0 + $0x1e8] sm:$0xff]  ;;  %v6486_v6 = vld [vmem:[%s13219_s0 + $0x1e0] sm:$0xff]  ;;  %v1619_v55 = vmul.f32 %v6487_v18, %v8198_v38  ;;  %v6491_v18 = vld [vmem:[%s13219_s0 + $0x158] sm:$0xff] }
 0x166   :  { %13446 = vst [vmem:[#allocation17_spill] sm:$0xff] %v8228_v52  ;;  %13447 = vst [vmem:[#allocation18_spill] sm:$0xff] %v8240_v9  ;;  %v8277_v36 = vmul.f32 %v6485_v41, %v8170_v1  ;;  %v8283_v12 = vmul.f32 %v6486_v6, %v8170_v1  ;;  %v6488_v6 = vld [vmem:[%s13219_s0 + $0x1a0] sm:$0xff] }
 0x167   :  { %v8251_v57 = vpop.permute.xlu0 %1830  ;;  %13449 = vst [vmem:[#allocation20_spill] sm:$0xff] %v8260_v29  ;;  %2929 = vmatprep.mubr.bf16.mxu0 %v8260_v29  ;;  %3602 = vmatprep.mubr.bf16.mxu1 %v8260_v29 }
 0x168   :  { %13448 = vst [vmem:[#allocation19_spill] sm:$0xff] %v8251_v57  ;;  %13450 = vst [vmem:[#allocation21_spill] sm:$0xff] %v8277_v36 }
 0x169   :  { %v8267_v51 = vpop.permute.xlu1 %1865  ;;  %13451 = vst [vmem:[#allocation22_spill] sm:$0xff] %v8283_v12 }
 0x16a   :  { %v2052_v24 = vadd.f32 %v8267_v51, %v8008_v54  ;;  %v2054_v19 = vadd.f32 %v8267_v51, %v8014_v50  ;;  %v2051_v9 = vadd.f32 %v8267_v51, %v8020_v56  ;;  %v2053_v41 = vadd.f32 %v8267_v51, %v8026_v23  ;;  %v6489_v50 = vld [vmem:[%s13219_s0 + $0x188] sm:$0xff]  ;;  %v6490_v23 = vld [vmem:[%s13219_s0 + $0x198] sm:$0xff] }
 0x16b   :  { %v1621_v54 = vmul.f32 %v6488_v6, %v8198_v38  ;;  %v1618_v56 = vmul.f32 %v6489_v50, %v8198_v38  ;;  %v1620_v29 = vmul.f32 %v6490_v23, %v8198_v38  ;;  %v8315_v6 = vmul.f32 %v6491_v18, %v8228_v52  ;;  %v6493_v23 = vld [vmem:[%s13219_s0 + $0x1f0] sm:$0xff] }
 0x16c   :  { %v8309_v15 = vpop.permute.xlu0 %1436  ;;  %v8321_v50 = vmul.f32 %v6492_v31, %v8228_v52  ;;  %v8328_v38 = vmul.f32 %v6493_v23, %v8170_v1  ;;  %v2276_v18 = vmax.f32 %v2052_v24, 0.0  ;;  %v2278_v16 = vmax.f32 %v2054_v19, 0.0 }
 0x16d   :  { %v8330_v36 = vpop.permute.xlu1 %1870  ;;  %v2275_v40 = vmax.f32 %v2051_v9, 0.0  ;;  %v2277_v39 = vmax.f32 %v2053_v41, 0.0  ;;  %v8342_v1 = vadd.f32 %v8267_v51, %v8062_v4  ;;  %v8361_v23 = vadd.f32 %v8251_v57, %v1619_v55 }
 0x16e   :  { %13452 = vst [vmem:[#allocation23_spill] sm:$0xff] %v8328_v38  ;;  %v2059_v48 = vadd.f32 %v8330_v36, %v7928_v37  ;;  %v2061_v31 = vadd.f32 %v8330_v36, %v7937_v43  ;;  %v2058_v12 = vadd.f32 %v8330_v36, %v7942_v11  ;;  %v2060_v0 = vadd.f32 %v8330_v36, %v7947_v17 }
 0x16f   :  { %v8346_v24 = vadd.f32 %v8330_v36, %v7957_v10  ;;  %v8350_v37 = vadd.f32 %v8267_v51, %v8068_v13  ;;  %v8354_v43 = vadd.f32 %v8330_v36, %v7962_v21  ;;  %v8364_v10 = vadd.f32 %v8251_v57, %v1621_v54  ;;  %v6494_v13 = vld [vmem:[%s13219_s0 + $0x150] sm:$0xff] }
 0x170   :  { %v2283_v11 = vmax.f32 %v2059_v48, 0.0  ;;  %v2285_v9 = vmax.f32 %v2061_v31, 0.0  ;;  %v2282_v19 = vmax.f32 %v2058_v12, 0.0  ;;  %v2284_v17 = vmax.f32 %v2060_v0, 0.0  ;;  %v8356_v41 = vpop.permute.xlu0 %1820 }
 0x171   :  { %v8358_v4 = vpop.permute.xlu1 %1855  ;;  %v8370_v21 = vmul.f32 %v6494_v13, %v8228_v52  ;;  %v8373_v48 = vadd.f32 %v8251_v57, %v1618_v56 }
 0x172   :  { %v2451_v0 = vpack.c.bf16 %v2283_v11, %v2276_v18  ;;  %v2453_v12 = vpack.c.bf16 %v2285_v9, %v2278_v16  ;;  %v2450_v31 = vpack.c.bf16 %v2282_v19, %v2275_v40  ;;  %v2452_v38 = vpack.c.bf16 %v2284_v17, %v2277_v39  ;;  %v6495_v16 = vld [vmem:[%s13219_s0 + $0x160] sm:$0xff] }
 0x173   :  { %v2038_v55 = vadd.f32 %v8358_v4, %v7952_v3  ;;  %v2040_v54 = vadd.f32 %v8358_v4, %v7972_v26  ;;  %v2037_v49 = vadd.f32 %v8358_v4, %v7977_v44  ;;  %v2039_v13 = vadd.f32 %v8358_v4, %v7982_v2  ;;  %v6496_v44 = vld [vmem:[%s13219_s0 + $0x178] sm:$0xff]  ;;  %v6497_v11 = vld [vmem:[%s13219_s0 + $0x120] sm:$0xff] }
 0x174   :  { %2897 = vmatprep.subr.bf16.mxu0 %v2451_v0  ;;  %3570 = vmatprep.subr.bf16.mxu1 %v2453_v12  ;;  %v8387_v39 = vmul.f32 %v6495_v16, %v8228_v52  ;;  %v8390_v3 = vadd.f32 %v8251_v57, %v1620_v29  ;;  %v8397_v2 = vmul.f32 %v6496_v44, %v8228_v52 }
 0x175   :  { %v8399_v40 = vpop.permute.xlu1 %1860  ;;  %2898 = vmatpush1.bf16.msra.mxu0 %v2450_v31  ;;  %3571 = vmatpush1.bf16.msra.mxu1 %v2452_v38  ;;  %v1605_v9 = vmul.f32 %v6497_v11, %v8309_v15  ;;  %v2262_v31 = vmax.f32 %v2038_v55, 0.0  ;;  %v2264_v16 = vmax.f32 %v2040_v54, 0.0  ;;  %v2261_v44 = vmax.f32 %v2037_v49, 0.0  ;;  %v6499_v49 = vld [vmem:[%s13219_s0 + $0x118] sm:$0xff]  ;;  %v6500_v55 = vld [vmem:[%s13219_s0 + $0x128] sm:$0xff] }
 0x176   :  { %v8408_v19 = vpop.permute.xlu0 %1426  ;;  %v2045_v17 = vadd.f32 %v8399_v40, %v8038_v27  ;;  %v2047_v38 = vadd.f32 %v8399_v40, %v8044_v34  ;;  %v2044_v0 = vadd.f32 %v8399_v40, %v8050_v45  ;;  %v2046_v12 = vadd.f32 %v8399_v40, %v8056_v42  ;;  %v6498_v34 = vld [vmem:[%s13219_s0 + $0x130] sm:$0xff] }
 0x177   :  { %v2263_v26 = vmax.f32 %v2039_v13, 0.0  ;;  %v8421_v27 = vadd.f32 %v8356_v41, %v1605_v9  ;;  %v1607_v45 = vmul.f32 %v6498_v34, %v8309_v15  ;;  %v1604_v42 = vmul.f32 %v6499_v49, %v8309_v15 }
 0x178   :  { %v2269_v29 = vmax.f32 %v2045_v17, 0.0  ;;  %v2271_v11 = vmax.f32 %v2047_v38, 0.0  ;;  %v2268_v18 = vmax.f32 %v2044_v0, 0.0  ;;  %v2270_v56 = vmax.f32 %v2046_v12, 0.0 }
 0x179   :  { %v8418_v52 = vpop.permute.xlu1 %1845  ;;  %v1606_v54 = vmul.f32 %v6500_v55, %v8309_v15 }
 0x17a   :  { %v2444_v13 = vpack.c.bf16 %v2269_v29, %v2262_v31  ;;  %v2446_v9 = vpack.c.bf16 %v2271_v11, %v2264_v16  ;;  %v2443_v17 = vpack.c.bf16 %v2268_v18, %v2261_v44  ;;  %v2445_v38 = vpack.c.bf16 %v2270_v56, %v2263_v26  ;;  %v8435_v0 = vpop.permute.xlu0 %1810 }
 0x17b   :  { %v2024_v12 = vadd.f32 %v8418_v52, %v8098_v14  ;;  %v2026_v34 = vadd.f32 %v8418_v52, %v8108_v5  ;;  %v2023_v49 = vadd.f32 %v8418_v52, %v8121_v46  ;;  %v2025_v57 = vadd.f32 %v8418_v52, %v8140_v62 }
 0x17c   :  { %2899 = vmatprep.subr.bf16.mxu0 %v2444_v13  ;;  %3572 = vmatprep.subr.bf16.mxu1 %v2446_v9  ;;  %v2228_v29 = vmax.f32 %v8390_v3, 0.0  ;;  %v8447_v26 = vadd.f32 %v8356_v41, %v1607_v45  ;;  %v8450_v56 = vadd.f32 %v8356_v41, %v1604_v42  ;;  %v8453_v14 = vadd.f32 %v8356_v41, %v1606_v54 }
 0x17d   :  { %v8455_v5 = vpop.permute.xlu1 %1835  ;;  %2900 = vmatpush1.bf16.msra.mxu0 %v2443_v17  ;;  %3573 = vmatpush1.bf16.msra.mxu1 %v2445_v38  ;;  %v2248_v46 = vmax.f32 %v2024_v12, 0.0  ;;  %v2250_v18 = vmax.f32 %v2026_v34, 0.0  ;;  %v2247_v62 = vmax.f32 %v2023_v49, 0.0  ;;  %v2249_v31 = vmax.f32 %v2025_v57, 0.0 }
 0x17e   :  { %v2010_v16 = vadd.f32 %v8455_v5, %v8220_v59  ;;  %v2012_v44 = vadd.f32 %v8455_v5, %v8234_v30  ;;  %v2009_v11 = vadd.f32 %v8455_v5, %v8249_v35  ;;  %v2011_v45 = vadd.f32 %v8455_v5, %v8258_v53 }
 0x17f   :  { %v13453_v42 = vmax.f32 %v8186_v58, 0.0  ;;  %v13454_v54 = vmax.f32 %v8188_v63, 0.0  ;;  %v13455_v57 = vmax.f32 %v8190_v61, 0.0  ;;  %v13456_v59 = vmax.f32 %v8200_v8, 0.0  ;;  %v6501_v63 = vld [vmem:[%s13219_s0 + $0xb0] sm:$0xff]  ;;  %v6502_v8 = vld [vmem:[%s13219_s0 + $0xc0] sm:$0xff] }
 0x180   :  { %v8473_v38 = vpop.permute.xlu0 %1416  ;;  %v2234_v30 = vmax.f32 %v2010_v16, 0.0  ;;  %v2236_v12 = vmax.f32 %v2012_v44, 0.0  ;;  %v2233_v35 = vmax.f32 %v2009_v11, 0.0  ;;  %v2235_v34 = vmax.f32 %v2011_v45, 0.0 }
 0x181   :  { %v2437_v55 = vpack.c.bf16 %v13453_v42, %v2248_v46  ;;  %v2439_v13 = vpack.c.bf16 %v13454_v54, %v2250_v18  ;;  %v2436_v9 = vpack.c.bf16 %v13455_v57, %v2247_v62  ;;  %v2438_v17 = vpack.c.bf16 %v13456_v59, %v2249_v31  ;;  %v8475_v53 = vpop.permute.xlu1 %1825  ;;  %v6503_v46 = vld [vmem:[%s13219_s0 + $0xa8] sm:$0xff] }
 0x182   :  { %v2213_v58 = vmax.f32 %v8421_v27, 0.0  ;;  %v1591_v61 = vmul.f32 %v6501_v63, %v8408_v19  ;;  %v1593_v49 = vmul.f32 %v6502_v8, %v8408_v19  ;;  %v1590_v18 = vmul.f32 %v6503_v46, %v8408_v19 }
 0x183   :  { %2901 = vmatprep.subr.bf16.mxu0 %v2437_v55  ;;  %3574 = vmatprep.subr.bf16.mxu1 %v2439_v13  ;;  %v13457_v62 = vmax.f32 %v8222_v32, 0.0  ;;  %v13458_v16 = vmax.f32 %v8224_v33, 0.0  ;;  %v13459_v11 = vmax.f32 %v8226_v20, 0.0  ;;  %v2215_v42 = vmax.f32 %v8447_v26, 0.0  ;;  %v6504_v20 = vld [vmem:[%s13219_s0 + $0xb8] sm:$0xff]  ;;  %v6513_v26 = vld [vmem:[%s13219_s0 + $0x88] sm:$0xff] }
 0x184   :  { %2902 = vmatpush1.bf16.msra.mxu0 %v2436_v9  ;;  %3575 = vmatpush1.bf16.msra.mxu1 %v2438_v17  ;;  %v13460_v55 = vmax.f32 %v8236_v28, 0.0  ;;  %v1996_v13 = vadd.f32 %v8475_v53, %v8315_v6  ;;  %v1998_v57 = vadd.f32 %v8475_v53, %v8321_v50  ;;  %v1995_v32 = vadd.f32 %v8475_v53, %v8370_v21  ;;  %v8515_v50 = vpop.permute.xlu0 %1800 }
 0x185   :  { %v2430_v31 = vpack.c.bf16 %v13457_v62, %v2234_v30  ;;  %v2432_v44 = vpack.c.bf16 %v13458_v16, %v2236_v12  ;;  %v2429_v45 = vpack.c.bf16 %v13459_v11, %v2233_v35  ;;  %v1997_v33 = vadd.f32 %v8475_v53, %v8387_v39  ;;  %v8513_v59 = vpop.permute.xlu1 %1431  ;;  %v6508_v16 = vld [vmem:[%s13219_s0 + $0xf0] sm:$0xff] }
 0x186   :  { %v2431_v54 = vpack.c.bf16 %v13460_v55, %v2235_v34  ;;  %v1592_v28 = vmul.f32 %v6504_v20, %v8408_v19  ;;  %v2280_v9 = vmax.f32 %v8342_v1, 0.0  ;;  %v2287_v6 = vmax.f32 %v8346_v24, 0.0 }
 0x187   :  { %2903 = vmatprep.subr.bf16.mxu0 %v2430_v31  ;;  %3576 = vmatprep.subr.bf16.mxu1 %v2432_v44  ;;  %v2220_v21 = vmax.f32 %v1996_v13, 0.0  ;;  %v2222_v17 = vmax.f32 %v1998_v57, 0.0  ;;  %v2219_v30 = vmax.f32 %v1995_v32, 0.0  ;;  %v2286_v12 = vmax.f32 %v8354_v43, 0.0 }
 0x188   :  { %2904 = vmatpush1.bf16.msra.mxu0 %v2429_v45  ;;  %3577 = vmatpush1.bf16.msra.mxu1 %v2431_v54  ;;  %v2221_v39 = vmax.f32 %v1997_v33, 0.0  ;;  %v8519_v35 = vadd.f32 %v8435_v0, %v1591_v61  ;;  %v8522_v34 = vadd.f32 %v8435_v0, %v1593_v49  ;;  %v2279_v1 = vmax.f32 %v8350_v37, 0.0  ;;  %v6505_v49 = vld [vmem:[%s13219_s0 + $0xe8] sm:$0xff] }
 0x189   :  { %v13461_v24 = vmax.f32 %v8361_v23, 0.0  ;;  %v13462_v8 = vmax.f32 %v8364_v10, 0.0  ;;  %v13463_v62 = vmax.f32 %v8373_v48, 0.0  ;;  %v8532_v31 = vadd.f32 %v8435_v0, %v1590_v18  ;;  %v6506_v23 = vld [vmem:[%s13219_s0 + $0xf8] sm:$0xff]  ;;  %v6507_v48 = vld [vmem:[%s13219_s0 + $0xe0] sm:$0xff]  ;;  %v8548_v3 = vpop.permute.xlu1 %1815 }
 0x18a   :  { %v2424_v61 = vpack.c.bf16 %v2228_v29, %v2221_v39  ;;  %v1598_v37 = vmul.f32 %v6505_v49, %v8513_v59  ;;  %v1600_v10 = vmul.f32 %v6506_v23, %v8513_v59  ;;  %v1597_v18 = vmul.f32 %v6507_v48, %v8513_v59  ;;  %v6512_v23 = vld [vmem:[%s13219_s0 + $0x78] sm:$0xff] }
 0x18b   :  { %v2423_v63 = vpack.c.bf16 %v13461_v24, %v2220_v21  ;;  %v2425_v46 = vpack.c.bf16 %v13462_v8, %v2222_v17  ;;  %v2422_v43 = vpack.c.bf16 %v13463_v62, %v2219_v30  ;;  %v2212_v29 = vmax.f32 %v8450_v56, 0.0  ;;  %v8563_v57 = vpop.permute.xlu0 %1566  ;;  %v6510_v24 = vld [vmem:[%s13219_s0 + $0x50] sm:$0xff]  ;;  %v6511_v8 = vld [vmem:[%s13219_s0 + $0x38] sm:$0xff] }
 0x18c   :  { %v1599_v44 = vmul.f32 %v6508_v16, %v8513_v59  ;;  %v8555_v11 = vpack.c.bf16 %v2287_v6, %v2280_v9  ;;  %v8557_v45 = vpack.c.bf16 %v2286_v12, %v2279_v1  ;;  %v1982_v55 = vadd.f32 %v8548_v3, %v1598_v37  ;;  %v6509_v9 = vld [vmem:[%s13219_s0 + $0x40] sm:$0xff] }
 0x18d   :  { %2905 = vmatprep.subr.bf16.mxu0 %v2423_v63  ;;  %3578 = vmatprep.subr.bf16.mxu1 %v2425_v46  ;;  %v1984_v54 = vadd.f32 %v8548_v3, %v1600_v10  ;;  %v1981_v13 = vadd.f32 %v8548_v3, %v1597_v18  ;;  %v2214_v56 = vmax.f32 %v8453_v14, 0.0  ;;  %v2199_v33 = vmax.f32 %v8519_v35, 0.0  ;;  %v8573_v14 = vpop.permute.xlu1 %1421  ;;  %v6515_v18 = vld [vmem:[%s13219_s0 + $0x80] sm:$0xff] }
 0x18e   :  { %2906 = vmatpush1.bf16.msra.mxu0 %v2422_v43  ;;  %3579 = vmatpush1.bf16.msra.mxu1 %v2424_v61  ;;  %v1983_v32 = vadd.f32 %v8548_v3, %v1599_v44  ;;  %v2201_v20 = vmax.f32 %v8522_v34, 0.0  ;;  %v1577_v6 = vmul.f32 %v6509_v9, %v8473_v38  ;;  %v2206_v21 = vmax.f32 %v1982_v55, 0.0  ;;  %v6522_v34 = vld [vmem:[%s13219_s0 + $0x18] sm:$0xff] }
 0x18f   :  { %v2208_v17 = vmax.f32 %v1984_v54, 0.0  ;;  %v2205_v30 = vmax.f32 %v1981_v13, 0.0  ;;  %v1976_v12 = vadd.f32 %v8435_v0, %v1592_v28  ;;  %v1579_v63 = vmul.f32 %v6510_v24, %v8473_v38  ;;  %v8591_v49 = vpop.permute.xlu0 %1950  ;;  %v6516_v54 = vld [vmem:[%s13219_s0 + $0x48] sm:$0xff] }
 0x190   :  { %v2207_v39 = vmax.f32 %v1983_v32, 0.0  ;;  %v8576_v1 = vadd.f32 %v8515_v50, %v1577_v6  ;;  %v1576_v46 = vmul.f32 %v6511_v8, %v8473_v38  ;;  %v2416_v28 = vpack.c.bf16 %v2213_v58, %v2206_v21 }
 0x191   :  { %v2418_v62 = vpack.c.bf16 %v2215_v42, %v2208_v17  ;;  %v2415_v43 = vpack.c.bf16 %v2212_v29, %v2205_v30  ;;  %v2198_v61 = vmax.f32 %v8532_v31, 0.0  ;;  %v1584_v10 = vmul.f32 %v6512_v23, %v8573_v14  ;;  %v6514_v42 = vld [vmem:[%s13219_s0 + $0x70] sm:$0xff]  ;;  %v8615_v44 = vpop.permute.xlu1 %1805 }
 0x192   :  { %v2417_v37 = vpack.c.bf16 %v2214_v56, %v2207_v39  ;;  %v8598_v48 = vadd.f32 %v8515_v50, %v1579_v63  ;;  %v8601_v27 = vadd.f32 %v8515_v50, %v1576_v46  ;;  %2907 = vmatprep.subr.bf16.mxu0 %v2416_v28  ;;  %v1586_v58 = vmul.f32 %v6513_v26, %v8573_v14 }
 0x193   :  { %3580 = vmatprep.subr.bf16.mxu1 %v2418_v62  ;;  %v1583_v31 = vmul.f32 %v6514_v42, %v8573_v14  ;;  %v1585_v29 = vmul.f32 %v6515_v18, %v8573_v14  ;;  %v2200_v16 = vmax.f32 %v1976_v12, 0.0  ;;  %2908 = vmatpush1.bf16.msra.mxu0 %v2415_v43  ;;  %v2185_v55 = vmax.f32 %v8576_v1, 0.0  ;;  %v6517_v12 = vld [vmem:[%s13219_s0 + $0x6d0] sm:$0xff]  ;;  %v6520_v18 = vld [vmem:[%s13219_s0 + $0x8] sm:$0xff] }
 0x194   :  { %3581 = vmatpush1.bf16.msra.mxu1 %v2417_v37  ;;  %v1578_v13 = vmul.f32 %v6516_v54, %v8473_v38  ;;  %v2057_v56 = vadd.f32 %v8267_v51, %v8074_v60  ;;  %v2064_v32 = vadd.f32 %v8330_v36, %v7967_v47  ;;  %v1968_v9 = vadd.f32 %v8615_v44, %v1584_v10  ;;  %v6518_v47 = vld [vmem:[%s13219_s0 + $0x6e0] sm:$0xff]  ;;  %v6519_v36 = vld [vmem:[%s13219_s0 + $0x6c8] sm:$0xff]  ;;  %v6530_v1 = vld [vmem:[%s13219_s0 + $0x690] sm:$0xff] }
 0x195   :  { %v1970_v6 = vadd.f32 %v8615_v44, %v1586_v58  ;;  %v1967_v21 = vadd.f32 %v8615_v44, %v1583_v31  ;;  %v1969_v17 = vadd.f32 %v8615_v44, %v1585_v29  ;;  %v1787_v60 = vmul.f32 %v6517_v12, %v8563_v57  ;;  %v8647_v62 = vpop.permute.xlu1 %1411 }
 0x196   :  { %v8631_v30 = vadd.f32 %v8515_v50, %v1578_v13  ;;  %v1789_v51 = vmul.f32 %v6518_v47, %v8563_v57  ;;  %v1786_v39 = vmul.f32 %v6519_v36, %v8563_v57  ;;  %v2192_v24 = vmax.f32 %v1968_v9, 0.0  ;;  %v8645_v28 = vpop.permute.xlu0 %1556 }
 0x197   :  { %v2194_v63 = vmax.f32 %v1970_v6, 0.0  ;;  %v2191_v8 = vmax.f32 %v1967_v21, 0.0  ;;  %v2193_v46 = vmax.f32 %v1969_v17, 0.0  ;;  %13464 = vst [vmem:[#allocation24_spill] sm:$0xff] %v8645_v28  ;;  %v8650_v43 = vadd.f32 %v8591_v49, %v1787_v60 }
 0x198   :  { %v8653_v37 = vadd.f32 %v8591_v49, %v1789_v51  ;;  %v2288_v23 = vmax.f32 %v2064_v32, 0.0  ;;  %v8657_v10 = vadd.f32 %v8358_v4, %v7989_v7  ;;  %v2409_v26 = vpack.c.bf16 %v2199_v33, %v2192_v24  ;;  %v6521_v7 = vld [vmem:[%s13219_s0 + $0x6d8] sm:$0xff] }
 0x199   :  { %v2411_v58 = vpack.c.bf16 %v2201_v20, %v2194_v63  ;;  %v2408_v42 = vpack.c.bf16 %v2198_v61, %v2191_v8  ;;  %v2410_v31 = vpack.c.bf16 %v2200_v16, %v2193_v46  ;;  %v1570_v29 = vmul.f32 %v6520_v18, %v8647_v62  ;;  %v6523_v16 = vld [vmem:[%s13219_s0] sm:$0xff]  ;;  %v8687_v9 = vpop.permute.xlu1 %1795 }
 0x19a   :  { %v8668_v54 = vadd.f32 %v8591_v49, %v1786_v39  ;;  %v1788_v35 = vmul.f32 %v6521_v7, %v8563_v57  ;;  %v2281_v33 = vmax.f32 %v2057_v56, 0.0  ;;  %2909 = vmatprep.subr.bf16.mxu0 %v2409_v26  ;;  %v1572_v20 = vmul.f32 %v6522_v34, %v8647_v62  ;;  %v6524_v56 = vld [vmem:[%s13219_s0 + $0x10] sm:$0xff]  ;;  %v8697_v12 = vpop.permute.xlu0 %1940 }
 0x19b   :  { %3582 = vmatprep.subr.bf16.mxu1 %v2411_v58  ;;  %v2187_v61 = vmax.f32 %v8598_v48, 0.0  ;;  %v1569_v13 = vmul.f32 %v6523_v16, %v8647_v62  ;;  %v1571_v32 = vmul.f32 %v6524_v56, %v8647_v62  ;;  %2910 = vmatpush1.bf16.msra.mxu0 %v2408_v42  ;;  %v2184_v6 = vmax.f32 %v8601_v27, 0.0  ;;  %13465 = vst [vmem:[#allocation25_spill] sm:$0xff] %v8697_v12  ;;  %v6525_v42 = vld [vmem:[%s13219_s0 + $0x660] sm:$0xff]  ;;  %v6528_v16 = vld [vmem:[%s13219_s0 + $0x698] sm:$0xff]  ;;  %v6529_v56 = vld [vmem:[%s13219_s0 + $0x6a8] sm:$0xff] }
 0x19c   :  { %3583 = vmatpush1.bf16.msra.mxu1 %v2410_v31  ;;  %v8691_v48 = vadd.f32 %v8591_v49, %v1788_v35  ;;  %v8693_v21 = vpack.c.bf16 %v2288_v23, %v2281_v33  ;;  %v2049_v17 = vadd.f32 %v8399_v40, %v8080_v25  ;;  %v1954_v60 = vadd.f32 %v8687_v9, %v1570_v29  ;;  %v6526_v31 = vld [vmem:[%s13219_s0 + $0x670] sm:$0xff]  ;;  %v6527_v29 = vld [vmem:[%s13219_s0 + $0x658] sm:$0xff] }
 0x19d   :  { %v1956_v47 = vadd.f32 %v8687_v9, %v1572_v20  ;;  %v1953_v51 = vadd.f32 %v8687_v9, %v1569_v13  ;;  %v1955_v36 = vadd.f32 %v8687_v9, %v1571_v32  ;;  %v2186_v27 = vmax.f32 %v8631_v30, 0.0  ;;  %v8707_v26 = vpop.permute.xlu1 %1561 }
 0x19e   :  { %v2395_v39 = vmax.f32 %v8650_v43, 0.0  ;;  %v2397_v24 = vmax.f32 %v8653_v37, 0.0  ;;  %v2394_v63 = vmax.f32 %v8668_v54, 0.0  ;;  %v2178_v8 = vmax.f32 %v1954_v60, 0.0  ;;  %v6538_v54 = vld [vmem:[%s13219_s0 + $0x638] sm:$0xff] }
 0x19f   :  { %v2180_v25 = vmax.f32 %v1956_v47, 0.0  ;;  %v2177_v46 = vmax.f32 %v1953_v51, 0.0  ;;  %v2179_v23 = vmax.f32 %v1955_v36, 0.0  ;;  %v2396_v58 = vmax.f32 %v8691_v48, 0.0  ;;  %v13467_v47 = vld [vmem:[#allocation5_spill] sm:$0xff]  ;;  %v13468_v36 = vld [vmem:[#allocation7_spill] sm:$0xff] }
 0x1a0   :  { %v1773_v30 = vmul.f32 %v6525_v42, %v8645_v28  ;;  %v1775_v18 = vmul.f32 %v6526_v31, %v8645_v28  ;;  %v1772_v7 = vmul.f32 %v6527_v29, %v8645_v28  ;;  %v2402_v35 = vpack.c.bf16 %v2185_v55, %v2178_v8  ;;  %v8740_v48 = vpop.permute.xlu0 %1546  ;;  %v13469_v8 = vld [vmem:[#allocation6_spill] sm:$0xff] }
 0x1a1   :  { %v2404_v33 = vpack.c.bf16 %v2187_v61, %v2180_v25  ;;  %v2401_v34 = vpack.c.bf16 %v2184_v6, %v2177_v46  ;;  %v2403_v20 = vpack.c.bf16 %v2186_v27, %v2179_v23  ;;  %v1780_v13 = vmul.f32 %v6528_v16, %v8707_v26  ;;  %v6531_v61 = vld [vmem:[%s13219_s0 + $0x6a0] sm:$0xff]  ;;  %13466 = vst [vmem:[#allocation26_spill] sm:$0xff] %v8740_v48  ;;  %v8750_v46 = vpop.permute.xlu1 %1945 }
 0x1a2   :  { %v1782_v32 = vmul.f32 %v6529_v56, %v8707_v26  ;;  %v1779_v55 = vmul.f32 %v6530_v1, %v8707_v26  ;;  %v1781_v6 = vmul.f32 %v6531_v61, %v8707_v26  ;;  %2911 = vmatprep.subr.bf16.mxu0 %v2402_v35  ;;  %v2273_v60 = vmax.f32 %v2049_v17, 0.0  ;;  %v6532_v17 = vld [vmem:[%s13219_s0 + $0x668] sm:$0xff] }
 0x1a3   :  { %3584 = vmatprep.subr.bf16.mxu1 %v2404_v33  ;;  %v2041_v51 = vadd.f32 %v8358_v4, %v13467_v47  ;;  %v2048_v27 = vadd.f32 %v8399_v40, %v13468_v36  ;;  %v8748_v25 = vadd.f32 %v8358_v4, %v13469_v8  ;;  %2912 = vmatpush1.bf16.msra.mxu0 %v2401_v34  ;;  %v2266_v29 = vmax.f32 %v8657_v10, 0.0  ;;  %v6535_v47 = vld [vmem:[%s13219_s0 + $0x5e8] sm:$0xff]  ;;  %v6536_v36 = vld [vmem:[%s13219_s0 + $0x5f8] sm:$0xff] }
 0x1a4   :  { %3585 = vmatpush1.bf16.msra.mxu1 %v2403_v20  ;;  %v8753_v23 = vadd.f32 %v8697_v12, %v1773_v30  ;;  %v8756_v42 = vadd.f32 %v8697_v12, %v1775_v18  ;;  %v1774_v31 = vmul.f32 %v6532_v17, %v8645_v28  ;;  %v2164_v4 = vadd.f32 %v8750_v46, %v1780_v13  ;;  %v6533_v20 = vld [vmem:[%s13219_s0 + $0x5f0] sm:$0xff]  ;;  %v8779_v13 = vpop.permute.xlu0 %1930 }
 0x1a5   :  { %v2166_v35 = vadd.f32 %v8750_v46, %v1782_v32  ;;  %v2163_v33 = vadd.f32 %v8750_v46, %v1779_v55  ;;  %v2165_v30 = vadd.f32 %v8750_v46, %v1781_v6  ;;  %v8768_v34 = vadd.f32 %v8697_v12, %v1772_v7  ;;  %13470 = vst [vmem:[#allocation5_spill] sm:$0xff] %v8779_v13  ;;  %v8781_v61 = vpop.permute.xlu1 %1551  ;;  %v6534_v7 = vld [vmem:[%s13219_s0 + $0x600] sm:$0xff] }
 0x1a6   :  { %v8771_v18 = vadd.f32 %v8697_v12, %v1774_v31  ;;  %v1759_v10 = vmul.f32 %v6533_v20, %v8740_v48  ;;  %v8777_v16 = vpack.c.bf16 %v2273_v60, %v2266_v29  ;;  %v2388_v56 = vmax.f32 %v2164_v4, 0.0  ;;  %13471 = vst [vmem:[#allocation7_spill] sm:$0xff] %v8781_v61 }
 0x1a7   :  { %v2390_v32 = vmax.f32 %v2166_v35, 0.0  ;;  %v2387_v1 = vmax.f32 %v2163_v33, 0.0  ;;  %v2389_v55 = vmax.f32 %v2165_v30, 0.0  ;;  %v1761_v6 = vmul.f32 %v6534_v7, %v8740_v48  ;;  %v6537_v33 = vld [vmem:[%s13219_s0 + $0x628] sm:$0xff] }
 0x1a8   :  { %v1758_v60 = vmul.f32 %v6535_v47, %v8740_v48  ;;  %v1760_v8 = vmul.f32 %v6536_v36, %v8740_v48  ;;  %v2272_v17 = vmax.f32 %v2048_v27, 0.0  ;;  %v2507_v31 = vpack.c.bf16 %v2395_v39, %v2388_v56 }
 0x1a9   :  { %v2509_v29 = vpack.c.bf16 %v2397_v24, %v2390_v32  ;;  %v2506_v4 = vpack.c.bf16 %v2394_v63, %v2387_v1  ;;  %v2508_v35 = vpack.c.bf16 %v2396_v58, %v2389_v55  ;;  %v1766_v30 = vmul.f32 %v6537_v33, %v8781_v61  ;;  %v6539_v24 = vld [vmem:[%s13219_s0 + $0x620] sm:$0xff]  ;;  %v6540_v58 = vld [vmem:[%s13219_s0 + $0x630] sm:$0xff]  ;;  %v13473_v32 = vld [vmem:[#allocation8_spill] sm:$0xff] }
 0x1aa   :  { %v8806_v20 = vadd.f32 %v8779_v13, %v1759_v10  ;;  %v8809_v27 = vadd.f32 %v8779_v13, %v1761_v6  ;;  %v2265_v43 = vmax.f32 %v2041_v51, 0.0  ;;  %2913 = vmatprep.subr.bf16.mxu0 %v2507_v31  ;;  %v2381_v37 = vmax.f32 %v8753_v23, 0.0  ;;  %v8824_v10 = vpop.permute.xlu1 %1935  ;;  %v13474_v55 = vld [vmem:[#allocation12_spill] sm:$0xff] }
 0x1ab   :  { %3586 = vmatprep.subr.bf16.mxu1 %v2509_v29  ;;  %v1768_v39 = vmul.f32 %v6538_v54, %v8781_v61  ;;  %v1765_v63 = vmul.f32 %v6539_v24, %v8781_v61  ;;  %v1767_v51 = vmul.f32 %v6540_v58, %v8781_v61  ;;  %13472 = vst [vmem:[#allocation6_spill] sm:$0xff] %v8824_v10  ;;  %v2383_v23 = vmax.f32 %v8756_v42, 0.0  ;;  %v8833_v6 = vpop.permute.xlu0 %1536 }
 0x1ac   :  { %2914 = vmatpush2.bf16.msra.mxu0 %v2506_v4  ;;  %3587 = vmatpush2.bf16.msra.mxu1 %v2508_v35  ;;  %v8827_v56 = vpack.c.bf16 %v2272_v17, %v2265_v43  ;;  %v2050_v1 = vadd.f32 %v8399_v40, %v13473_v32  ;;  %v2028_v7 = vadd.f32 %v8418_v52, %v13474_v55  ;;  %v2380_v42 = vmax.f32 %v8768_v34, 0.0 }
 0x1ad   :  { %13475 = vst [vmem:[#allocation8_spill] sm:$0xff] %v8833_v6  ;;  %v2150_v47 = vadd.f32 %v8824_v10, %v1766_v30  ;;  %v2152_v36 = vadd.f32 %v8824_v10, %v1768_v39  ;;  %v2149_v31 = vadd.f32 %v8824_v10, %v1765_v63  ;;  %v2151_v29 = vadd.f32 %v8824_v10, %v1767_v51  ;;  %v2521_v10 = vld [vmem:[#allocation2 + $0x40] sm:$0xff] }
 0x1ae   :  { %v2382_v17 = vmax.f32 %v8771_v18, 0.0  ;;  %v8842_v4 = vadd.f32 %v8779_v13, %v1758_v60  ;;  %v8845_v40 = vadd.f32 %v8779_v13, %v1760_v8  ;;  %v8847_v54 = vpop.permute.xlu1 %1541  ;;  %v2367_v39 = vmax.f32 %v8806_v20, 0.0  ;;  %v6541_v8 = vld [vmem:[%s13219_s0 + $0x5b8] sm:$0xff]  ;;  %v6542_v20 = vld [vmem:[%s13219_s0 + $0x580] sm:$0xff] }
 0x1af   :  { %v2374_v35 = vmax.f32 %v2150_v47, 0.0  ;;  %v2376_v33 = vmax.f32 %v2152_v36, 0.0  ;;  %v2373_v43 = vmax.f32 %v2149_v31, 0.0  ;;  %v2375_v30 = vmax.f32 %v2151_v29, 0.0  ;;  %13476 = vst [vmem:[#allocation12_spill] sm:$0xff] %v8847_v54  ;;  %v8851_v32 = vpop.permute.xlu0 %1920  ;;  %v6545_v36 = vld [vmem:[%s13219_s0 + $0x5b0] sm:$0xff] }
 0x1b0   :  { %v2369_v24 = vmax.f32 %v8809_v27, 0.0  ;;  %v2274_v63 = vmax.f32 %v2050_v1, 0.0  ;;  %v2252_v34 = vmax.f32 %v2028_v7, 0.0  ;;  %13477 = vst [vmem:[#allocation27_spill] sm:$0xff] %v8851_v32  ;;  %v1752_v55 = vmul.f32 %v6541_v8, %v8847_v54  ;;  %v6544_v7 = vld [vmem:[%s13219_s0 + $0x5c8] sm:$0xff] }
 0x1b1   :  { %v2500_v58 = vpack.c.bf16 %v2381_v37, %v2374_v35  ;;  %v2502_v18 = vpack.c.bf16 %v2383_v23, %v2376_v33  ;;  %v2499_v51 = vpack.c.bf16 %v2380_v42, %v2373_v43  ;;  %v2501_v60 = vpack.c.bf16 %v2382_v17, %v2375_v30  ;;  %v6543_v37 = vld [vmem:[%s13219_s0 + $0x590] sm:$0xff]  ;;  %v6547_v33 = vld [vmem:[%s13219_s0 + $0x578] sm:$0xff] }
 0x1b2   :  { %v1745_v27 = vmul.f32 %v6542_v20, %v8833_v6  ;;  %v1747_v23 = vmul.f32 %v6543_v37, %v8833_v6  ;;  %v2267_v1 = vmax.f32 %v8748_v25, 0.0  ;;  %v1754_v47 = vmul.f32 %v6544_v7, %v8847_v54  ;;  %v6546_v25 = vld [vmem:[%s13219_s0 + $0x5c0] sm:$0xff]  ;;  %v8879_v17 = vpop.permute.xlu1 %1925  ;;  %v2515_v37 = vld [vmem:[#allocation2 + $0x10] sm:$0xff] }
 0x1b3   :  { %2915 = vmatprep.subr.bf16.mxu0 %v2500_v58  ;;  %3588 = vmatprep.subr.bf16.mxu1 %v2502_v18  ;;  %v1751_v31 = vmul.f32 %v6545_v36, %v8847_v54  ;;  %v2366_v29 = vmax.f32 %v8842_v4, 0.0  ;;  %v1753_v42 = vmul.f32 %v6546_v25, %v8847_v54  ;;  %13478 = vst [vmem:[#allocation28_spill] sm:$0xff] %v8879_v17  ;;  %v2368_v35 = vmax.f32 %v8845_v40, 0.0  ;;  %v13479_v4 = vld [vmem:[#allocation9_spill] sm:$0xff] }
 0x1b4   :  { %2916 = vmatpush2.bf16.msra.mxu0 %v2499_v51  ;;  %3589 = vmatpush2.bf16.msra.mxu1 %v2501_v60  ;;  %v1744_v43 = vmul.f32 %v6547_v33, %v8833_v6  ;;  %v8886_v30 = vpack.c.bf16 %v2274_v63, %v2267_v1  ;;  %v13480_v58 = vmax.f32 %v13479_v4, 0.0  ;;  %v2136_v8 = vadd.f32 %v8879_v17, %v1752_v55  ;;  %v2513_v60 = vld [vmem:[#allocation2] sm:$0xff] }
 0x1b5   :  { %v2138_v20 = vadd.f32 %v8879_v17, %v1754_v47  ;;  %v2135_v51 = vadd.f32 %v8879_v17, %v1751_v31  ;;  %v2137_v40 = vadd.f32 %v8879_v17, %v1753_v42  ;;  %v8897_v7 = vadd.f32 %v8851_v32, %v1745_v27  ;;  %v8909_v42 = vpop.permute.xlu0 %1526 }
 0x1b6   :  { %v8890_v18 = vpack.c.bf16 %v13480_v58, %v2252_v34  ;;  %v8900_v63 = vadd.f32 %v8851_v32, %v1747_v23  ;;  %v8903_v1 = vadd.f32 %v8851_v32, %v1744_v43  ;;  %v6548_v34 = vld [vmem:[%s13219_s0 + $0x588] sm:$0xff]  ;;  %v2360_v47 = vmax.f32 %v2136_v8, 0.0  ;;  %13481 = vst [vmem:[#allocation9_spill] sm:$0xff] %v8909_v42  ;;  %v8911_v27 = vpop.permute.xlu1 %1531  ;;  %v13484_v58 = vld [vmem:[#allocation15_spill] sm:$0xff] }
 0x1b7   :  { %v1746_v55 = vmul.f32 %v6548_v34, %v8833_v6  ;;  %v2362_v36 = vmax.f32 %v2138_v20, 0.0  ;;  %v2359_v31 = vmax.f32 %v2135_v51, 0.0  ;;  %v2361_v25 = vmax.f32 %v2137_v40, 0.0  ;;  %13482 = vst [vmem:[#allocation29_spill] sm:$0xff] %v8911_v27  ;;  %v13483_v43 = vld [vmem:[#allocation14_spill] sm:$0xff] }
 0x1b8   :  { %v8914_v33 = vpack.c.bf16 %v2515_v37, %v2513_v60  ;;  %v8918_v4 = vadd.f32 %v8418_v52, %v13483_v43  ;;  %v8922_v13 = vadd.f32 %v8418_v52, %v13484_v58  ;;  %v2493_v8 = vpack.c.bf16 %v2367_v39, %v2360_v47  ;;  %v6549_v34 = vld [vmem:[%s13219_s0 + $0x548] sm:$0xff]  ;;  %v13485_v43 = vld [vmem:[#allocation21_spill] sm:$0xff]  ;;  %v6550_v52 = vld [vmem:[%s13219_s0 + $0x558] sm:$0xff] }
 0x1b9   :  { %v2130_v23 = vadd.f32 %v8851_v32, %v1746_v55  ;;  %v2495_v20 = vpack.c.bf16 %v2369_v24, %v2362_v36  ;;  %v2492_v51 = vpack.c.bf16 %v2366_v29, %v2359_v31  ;;  %v2494_v40 = vpack.c.bf16 %v2368_v35, %v2361_v25  ;;  %v6551_v24 = vld [vmem:[%s13219_s0 + $0x540] sm:$0xff]  ;;  %v8947_v47 = vpop.permute.xlu0 %1910  ;;  %v6553_v25 = vld [vmem:[%s13219_s0 + $0x510] sm:$0xff] }
 0x1ba   :  { %v1738_v55 = vmul.f32 %v6549_v34, %v8911_v27  ;;  %v2353_v60 = vmax.f32 %v8897_v7, 0.0  ;;  %v2355_v37 = vmax.f32 %v8900_v63, 0.0  ;;  %v8932_v32 = vadd.f32 %v8455_v5, %v13485_v43  ;;  %2917 = vmatprep.subr.bf16.mxu0 %v2493_v8  ;;  %v6552_v7 = vld [vmem:[%s13219_s0 + $0x550] sm:$0xff]  ;;  %13486 = vst [vmem:[#allocation14_spill] sm:$0xff] %v8947_v47  ;;  %v8949_v36 = vpop.permute.xlu1 %1915 }
 0x1bb   :  { %3590 = vmatprep.subr.bf16.mxu1 %v2495_v20  ;;  %v1740_v39 = vmul.f32 %v6550_v52, %v8911_v27  ;;  %v1737_v29 = vmul.f32 %v6551_v24, %v8911_v27  ;;  %v2352_v35 = vmax.f32 %v8903_v1, 0.0  ;;  %v1739_v63 = vmul.f32 %v6552_v7, %v8911_v27  ;;  %13487 = vst [vmem:[#allocation15_spill] sm:$0xff] %v8949_v36  ;;  %v6554_v1 = vld [vmem:[%s13219_s0 + $0x520] sm:$0xff]  ;;  %v13488_v20 = vld [vmem:[#allocation22_spill] sm:$0xff] }
 0x1bc   :  { %2918 = vmatpush2.bf16.msra.mxu0 %v2492_v51  ;;  %3591 = vmatpush2.bf16.msra.mxu1 %v2494_v40  ;;  %v2354_v31 = vmax.f32 %v2130_v23, 0.0  ;;  %v1731_v58 = vmul.f32 %v6553_v25, %v8909_v42  ;;  %v1733_v8 = vmul.f32 %v6554_v1, %v8909_v42  ;;  %v2013_v34 = vadd.f32 %v8455_v5, %v13488_v20  ;;  %v6555_v7 = vld [vmem:[%s13219_s0 + $0x508] sm:$0xff] }
 0x1bd   :  { %v2122_v43 = vadd.f32 %v8949_v36, %v1738_v55  ;;  %v2124_v51 = vadd.f32 %v8949_v36, %v1740_v39  ;;  %v2121_v23 = vadd.f32 %v8949_v36, %v1737_v29  ;;  %v2123_v40 = vadd.f32 %v8949_v36, %v1739_v63  ;;  %v6556_v55 = vld [vmem:[%s13219_s0 + $0x518] sm:$0xff] }
 0x1be   :  { %v8966_v52 = vadd.f32 %v8947_v47, %v1731_v58  ;;  %v8969_v24 = vadd.f32 %v8947_v47, %v1733_v8  ;;  %v1730_v25 = vmul.f32 %v6555_v7, %v8909_v42  ;;  %v1732_v39 = vmul.f32 %v6556_v55, %v8909_v42  ;;  %v8979_v20 = vpop.permute.xlu1 %1521 }
 0x1bf   :  { %v2346_v29 = vmax.f32 %v2122_v43, 0.0  ;;  %v2348_v63 = vmax.f32 %v2124_v51, 0.0  ;;  %v2345_v1 = vmax.f32 %v2121_v23, 0.0  ;;  %v2347_v58 = vmax.f32 %v2123_v40, 0.0  ;;  %13489 = vst [vmem:[#allocation21_spill] sm:$0xff] %v8979_v20  ;;  %v6557_v43 = vld [vmem:[%s13219_s0 + $0x4d8] sm:$0xff] }
 0x1c0   :  { %v2114_v8 = vadd.f32 %v8947_v47, %v1730_v25  ;;  %v2116_v36 = vadd.f32 %v8947_v47, %v1732_v39  ;;  %v2251_v6 = vmax.f32 %v8918_v4, 0.0  ;;  %v2253_v7 = vmax.f32 %v8922_v13, 0.0  ;;  %v8985_v12 = vpop.permute.xlu0 %1516  ;;  %v6558_v13 = vld [vmem:[%s13219_s0 + $0x4e8] sm:$0xff]  ;;  %v13494_v39 = vld [vmem:[#allocation11_spill] sm:$0xff] }
 0x1c1   :  { %v2486_v27 = vpack.c.bf16 %v2353_v60, %v2346_v29  ;;  %v2488_v17 = vpack.c.bf16 %v2355_v37, %v2348_v63  ;;  %v2485_v48 = vpack.c.bf16 %v2352_v35, %v2345_v1  ;;  %v2487_v54 = vpack.c.bf16 %v2354_v31, %v2347_v58  ;;  %13490 = vst [vmem:[#allocation22_spill] sm:$0xff] %v8985_v12  ;;  %v6559_v37 = vld [vmem:[%s13219_s0 + $0x4d0] sm:$0xff] }
 0x1c2   :  { %v1724_v51 = vmul.f32 %v6557_v43, %v8979_v20  ;;  %v2339_v23 = vmax.f32 %v8966_v52, 0.0  ;;  %v2238_v40 = vmax.f32 %v8932_v32, 0.0  ;;  %v2237_v25 = vmax.f32 %v2013_v34, 0.0  ;;  %v6560_v32 = vld [vmem:[%s13219_s0 + $0x4e0] sm:$0xff]  ;;  %v13492_v52 = vld [vmem:[#allocation10_spill] sm:$0xff] }
 0x1c3   :  { %2919 = vmatprep.subr.bf16.mxu0 %v2486_v27  ;;  %3592 = vmatprep.subr.bf16.mxu1 %v2488_v17  ;;  %v1726_v4 = vmul.f32 %v6558_v13, %v8979_v20  ;;  %v2341_v60 = vmax.f32 %v8969_v24, 0.0  ;;  %v1723_v35 = vmul.f32 %v6559_v37, %v8979_v20  ;;  %v1725_v17 = vmul.f32 %v6560_v32, %v8979_v20  ;;  %v9006_v27 = vpop.permute.xlu1 %1905  ;;  %v2524_v20 = vld [vmem:[#allocation2 + $0x58] sm:$0xff] }
 0x1c4   :  { %13491 = vst [vmem:[#allocation30_spill] sm:$0xff] %v9006_v27  ;;  %2920 = vmatpush2.bf16.msra.mxu0 %v2485_v48  ;;  %3593 = vmatpush2.bf16.msra.mxu1 %v2487_v54  ;;  %v2338_v31 = vmax.f32 %v2114_v8, 0.0  ;;  %v2340_v34 = vmax.f32 %v2116_v36, 0.0  ;;  %v13493_v24 = vmax.f32 %v13492_v52, 0.0  ;;  %v13495_v29 = vmax.f32 %v13494_v39, 0.0  ;;  %v9020_v48 = vpop.permute.xlu0 %1900  ;;  %v6561_v54 = vld [vmem:[%s13219_s0 + $0x4a0] sm:$0xff] }
 0x1c5   :  { %v2108_v1 = vadd.f32 %v9006_v27, %v1724_v51  ;;  %v2110_v58 = vadd.f32 %v9006_v27, %v1726_v4  ;;  %v2107_v43 = vadd.f32 %v9006_v27, %v1723_v35  ;;  %v2109_v13 = vadd.f32 %v9006_v27, %v1725_v17  ;;  %13496 = vst [vmem:[#allocation10_spill] sm:$0xff] %v9020_v48  ;;  %v6562_v36 = vld [vmem:[%s13219_s0 + $0x4b0] sm:$0xff]  ;;  %v2520_v27 = vld [vmem:[#allocation2 + $0x38] sm:$0xff] }
 0x1c6   :  { %v9010_v55 = vpack.c.bf16 %v13493_v24, %v2251_v6  ;;  %v9014_v63 = vpack.c.bf16 %v13495_v29, %v2253_v7  ;;  %v1717_v6 = vmul.f32 %v6561_v54, %v8985_v12  ;;  %v1719_v8 = vmul.f32 %v6562_v36, %v8985_v12  ;;  %v13497_v7 = vld [vmem:[#allocation16_spill] sm:$0xff] }
 0x1c7   :  { %v13498_v51 = vmax.f32 %v13497_v7, 0.0  ;;  %v13499_v37 = vmax.f32 %v8238_v22, 0.0  ;;  %v2332_v32 = vmax.f32 %v2108_v1, 0.0  ;;  %v2334_v17 = vmax.f32 %v2110_v58, 0.0  ;;  %v9038_v39 = vpop.permute.xlu1 %1511  ;;  %v6563_v54 = vld [vmem:[%s13219_s0 + $0x498] sm:$0xff]  ;;  %v6564_v22 = vld [vmem:[%s13219_s0 + $0x4a8] sm:$0xff] }
 0x1c8   :  { %v2331_v52 = vmax.f32 %v2107_v43, 0.0  ;;  %v2333_v24 = vmax.f32 %v2109_v13, 0.0  ;;  %13501 = vst [vmem:[#allocation16_spill] sm:$0xff] %v9038_v39  ;;  %v2101_v29 = vadd.f32 %v9020_v48, %v1717_v6  ;;  %v1716_v36 = vmul.f32 %v6563_v54, %v8985_v12  ;;  %v6565_v6 = vld [vmem:[%s13219_s0 + $0x468] sm:$0xff] }
 0x1c9   :  { %v9032_v4 = vpack.c.bf16 %v13498_v51, %v2238_v40  ;;  %v9036_v35 = vpack.c.bf16 %v13499_v37, %v2237_v25  ;;  %v1718_v40 = vmul.f32 %v6564_v22, %v8985_v12  ;;  %v13502_v25 = vld [vmem:[#allocation23_spill] sm:$0xff]  ;;  %v2479_v58 = vpack.c.bf16 %v2339_v23, %v2332_v32  ;;  %v13503_v32 = vld [vmem:[#allocation18_spill] sm:$0xff] }
 0x1ca   :  { %v2015_v1 = vadd.f32 %v8455_v5, %v13502_v25  ;;  %v2481_v43 = vpack.c.bf16 %v2341_v60, %v2334_v17  ;;  %v2478_v13 = vpack.c.bf16 %v2338_v31, %v2331_v52  ;;  %v2480_v7 = vpack.c.bf16 %v2340_v34, %v2333_v24  ;;  %v6566_v5 = vld [vmem:[%s13219_s0 + $0x478] sm:$0xff]  ;;  %v6567_v60 = vld [vmem:[%s13219_s0 + $0x460] sm:$0xff]  ;;  %v6568_v34 = vld [vmem:[%s13219_s0 + $0x470] sm:$0xff] }
 0x1cb   :  { %13500 = vst [vmem:[#allocation11_spill] sm:$0xff] %v9036_v35  ;;  %v1710_v51 = vmul.f32 %v6565_v6, %v9038_v39  ;;  %v2103_v37 = vadd.f32 %v9020_v48, %v1719_v8  ;;  %v2100_v54 = vadd.f32 %v9020_v48, %v1716_v36  ;;  %v2102_v47 = vadd.f32 %v9020_v48, %v1718_v40  ;;  %v9071_v52 = vpop.permute.xlu1 %1895  ;;  %v6569_v22 = vld [vmem:[%s13219_s0 + $0x1b0] sm:$0xff]  ;;  %v13505_v40 = vld [vmem:[#allocation13_spill] sm:$0xff] }
 0x1cc   :  { %2921 = vmatprep.subr.bf16.mxu0 %v2479_v58  ;;  %3594 = vmatprep.subr.bf16.mxu1 %v2481_v43  ;;  %v1712_v23 = vmul.f32 %v6566_v5, %v9038_v39  ;;  %v1709_v31 = vmul.f32 %v6567_v60, %v9038_v39  ;;  %v1711_v8 = vmul.f32 %v6568_v34, %v9038_v39  ;;  %v2246_v17 = vmax.f32 %v13503_v32, 0.0  ;;  %v9081_v43 = vpop.permute.xlu0 %1506  ;;  %v13507_v34 = vld [vmem:[#allocation19_spill] sm:$0xff]  ;;  %v2518_v39 = vld [vmem:[#allocation2 + $0x28] sm:$0xff] }
 0x1cd   :  { %13504 = vst [vmem:[#allocation23_spill] sm:$0xff] %v9071_v52  ;;  %2922 = vmatpush2.bf16.msra.mxu0 %v2478_v13  ;;  %3595 = vmatpush2.bf16.msra.mxu1 %v2480_v7  ;;  %v2325_v24 = vmax.f32 %v2101_v29, 0.0  ;;  %v2239_v36 = vmax.f32 %v2015_v1, 0.0  ;;  %v1623_v25 = vmul.f32 %v6569_v22, %v13505_v40  ;;  %v9079_v58 = vadd.f32 %v8475_v53, %v8397_v2 }
 0x1ce   :  { %13506 = vst [vmem:[#allocation18_spill] sm:$0xff] %v9081_v43  ;;  %v2094_v6 = vadd.f32 %v9071_v52, %v1710_v51  ;;  %v2096_v5 = vadd.f32 %v9071_v52, %v1712_v23  ;;  %v2093_v13 = vadd.f32 %v9071_v52, %v1709_v31  ;;  %v2095_v29 = vadd.f32 %v9071_v52, %v1711_v8  ;;  %v6570_v51 = vld [vmem:[%s13219_s0 + $0x430] sm:$0xff]  ;;  %v2517_v8 = vld [vmem:[#allocation2 + $0x20] sm:$0xff] }
 0x1cf   :  { %v2327_v1 = vmax.f32 %v2103_v37, 0.0  ;;  %v2324_v7 = vmax.f32 %v2100_v54, 0.0  ;;  %v2326_v60 = vmax.f32 %v2102_v47, 0.0  ;;  %v9088_v32 = vadd.f32 %v13507_v34, %v1623_v25  ;;  %v6571_v37 = vld [vmem:[%s13219_s0 + $0x440] sm:$0xff]  ;;  %v6572_v54 = vld [vmem:[%s13219_s0 + $0x428] sm:$0xff]  ;;  %v2519_v25 = vld [vmem:[#allocation2 + $0x30] sm:$0xff]  ;;  %v9106_v35 = vpop.permute.xlu1 %1501 }
 0x1d0   :  { %v2318_v22 = vmax.f32 %v2094_v6, 0.0  ;;  %v2320_v48 = vmax.f32 %v2096_v5, 0.0  ;;  %v2317_v2 = vmax.f32 %v2093_v13, 0.0  ;;  %v2319_v12 = vmax.f32 %v2095_v29, 0.0  ;;  %v2522_v5 = vld [vmem:[#allocation2 + $0x48] sm:$0xff]  ;;  %v9104_v13 = vpop.permute.xlu0 %1890  ;;  %13509 = vst [vmem:[#allocation19_spill] sm:$0xff] %v9106_v35 }
 0x1d1   :  { %v1703_v23 = vmul.f32 %v6570_v51, %v9081_v43  ;;  %v1705_v47 = vmul.f32 %v6571_v37, %v9081_v43  ;;  %v1702_v31 = vmul.f32 %v6572_v54, %v9081_v43  ;;  %v9102_v6 = vpack.c.bf16 %v2246_v17, %v2239_v36  ;;  %13508 = vst [vmem:[#allocation13_spill] sm:$0xff] %v9104_v13  ;;  %v2523_v37 = vld [vmem:[#allocation2 + $0x50] sm:$0xff]  ;;  %v6573_v17 = vld [vmem:[%s13219_s0 + $0x438] sm:$0xff] }
 0x1d2   :  { %v2472_v29 = vpack.c.bf16 %v2325_v24, %v2318_v22  ;;  %v2474_v51 = vpack.c.bf16 %v2327_v1, %v2320_v48  ;;  %v2471_v52 = vpack.c.bf16 %v2324_v7, %v2317_v2  ;;  %v2473_v42 = vpack.c.bf16 %v2326_v60, %v2319_v12  ;;  %v6574_v1 = vld [vmem:[%s13219_s0 + $0x170] sm:$0xff]  ;;  %v13510_v7 = vld [vmem:[#allocation17_spill] sm:$0xff] }
 0x1d3   :  { %v2087_v28 = vadd.f32 %v9104_v13, %v1703_v23  ;;  %v2089_v54 = vadd.f32 %v9104_v13, %v1705_v47  ;;  %v2086_v61 = vadd.f32 %v9104_v13, %v1702_v31  ;;  %v1704_v24 = vmul.f32 %v6573_v17, %v9081_v43  ;;  %v6576_v47 = vld [vmem:[%s13219_s0 + $0x408] sm:$0xff]  ;;  %v9146_v31 = vpop.permute.xlu1 %1885 }
 0x1d4   :  { %2923 = vmatprep.subr.bf16.mxu0 %v2472_v29  ;;  %3596 = vmatprep.subr.bf16.mxu1 %v2474_v51  ;;  %v9115_v12 = vpack.c.bf16 %v2520_v27, %v2518_v39  ;;  %v9117_v48 = vpack.c.bf16 %v2519_v25, %v2517_v8  ;;  %v2224_v36 = vmax.f32 %v9079_v58, 0.0  ;;  %v1615_v60 = vmul.f32 %v6574_v1, %v13510_v7  ;;  %v6575_v39 = vld [vmem:[%s13219_s0 + $0x3f8] sm:$0xff]  ;;  %v6579_v29 = vld [vmem:[%s13219_s0 + $0x1a8] sm:$0xff] }
 0x1d5   :  { %2924 = vmatpush2.bf16.msra.mxu0 %v2471_v52  ;;  %3597 = vmatpush2.bf16.msra.mxu1 %v2473_v42  ;;  %v2088_v22 = vadd.f32 %v9104_v13, %v1704_v24  ;;  %v2231_v2 = vmax.f32 %v9088_v32, 0.0  ;;  %v9126_v23 = vpack.c.bf16 %v2524_v20, %v2522_v5  ;;  %v9128_v27 = vpack.c.bf16 %v2523_v37, %v2521_v10  ;;  %v6577_v52 = vld [vmem:[%s13219_s0 + $0x3f0] sm:$0xff]  ;;  %v6578_v10 = vld [vmem:[%s13219_s0 + $0x400] sm:$0xff]  ;;  %v9152_v37 = vpop.permute.xlu0 %1496 }
 0x1d6   :  { %v1696_v58 = vmul.f32 %v6575_v39, %v9106_v35  ;;  %v1698_v42 = vmul.f32 %v6576_v47, %v9106_v35  ;;  %v1695_v20 = vmul.f32 %v6577_v52, %v9106_v35  ;;  %v1697_v32 = vmul.f32 %v6578_v10, %v9106_v35  ;;  %13511 = vst [vmem:[#allocation17_spill] sm:$0xff] %v9146_v31 }
 0x1d7   :  { %v2311_v8 = vmax.f32 %v2087_v28, 0.0  ;;  %v2313_v25 = vmax.f32 %v2089_v54, 0.0  ;;  %v2310_v5 = vmax.f32 %v2086_v61, 0.0  ;;  %v1622_v51 = vmul.f32 %v6579_v29, %v13505_v40  ;;  %13512 = vst [vmem:[#allocation31_spill] sm:$0xff] %v9152_v37 }
 0x1d8   :  { %v2080_v17 = vadd.f32 %v9146_v31, %v1696_v58  ;;  %v2082_v24 = vadd.f32 %v9146_v31, %v1698_v42  ;;  %v2079_v1 = vadd.f32 %v9146_v31, %v1695_v20  ;;  %v2081_v39 = vadd.f32 %v9146_v31, %v1697_v32  ;;  %v6580_v58 = vld [vmem:[%s13219_s0 + $0x3c0] sm:$0xff]  ;;  %v6583_v20 = vld [vmem:[%s13219_s0 + $0x1b8] sm:$0xff] }
 0x1d9   :  { %v2312_v47 = vmax.f32 %v2088_v22, 0.0  ;;  %v9158_v28 = vpack.c.bf16 %v2231_v2, %v2224_v36  ;;  %v9161_v61 = vadd.f32 %v8475_v53, %v1615_v60  ;;  %v9164_v54 = vadd.f32 %v13507_v34, %v1622_v51  ;;  %v6581_v36 = vld [vmem:[%s13219_s0 + $0x3d0] sm:$0xff]  ;;  %v6582_v22 = vld [vmem:[%s13219_s0 + $0x180] sm:$0xff]  ;;  %v9182_v51 = vpop.permute.xlu0 %1880 }
 0x1da   :  { %v2304_v52 = vmax.f32 %v2080_v17, 0.0  ;;  %v2306_v10 = vmax.f32 %v2082_v24, 0.0  ;;  %v2303_v29 = vmax.f32 %v2079_v1, 0.0  ;;  %v2305_v13 = vmax.f32 %v2081_v39, 0.0  ;;  %13513 = vst [vmem:[#allocation32_spill] sm:$0xff] %v9182_v51 }
 0x1db   :  { %v1689_v42 = vmul.f32 %v6580_v58, %v9152_v37  ;;  %v1691_v60 = vmul.f32 %v6581_v36, %v9152_v37  ;;  %v1617_v2 = vmul.f32 %v6582_v22, %v13510_v7  ;;  %v1624_v32 = vmul.f32 %v6583_v20, %v13505_v40  ;;  %v9184_v58 = vpop.permute.xlu1 %1491  ;;  %v6584_v7 = vld [vmem:[%s13219_s0 + $0x3b8] sm:$0xff]  ;;  %v6585_v40 = vld [vmem:[%s13219_s0 + $0x3c8] sm:$0xff] }
 0x1dc   :  { %v2465_v17 = vpack.c.bf16 %v2311_v8, %v2304_v52  ;;  %v2467_v24 = vpack.c.bf16 %v2313_v25, %v2306_v10  ;;  %v2464_v1 = vpack.c.bf16 %v2310_v5, %v2303_v29  ;;  %v2466_v39 = vpack.c.bf16 %v2312_v47, %v2305_v13  ;;  %13514 = vst [vmem:[#allocation33_spill] sm:$0xff] %v9184_v58  ;;  %v6586_v25 = vld [vmem:[%s13219_s0 + $0x108] sm:$0xff]  ;;  %v6587_v47 = vld [vmem:[%s13219_s0 + $0x140] sm:$0xff] }
 0x1dd   :  { %v2073_v36 = vadd.f32 %v9182_v51, %v1689_v42  ;;  %v1688_v22 = vmul.f32 %v6584_v7, %v9152_v37  ;;  %v1690_v20 = vmul.f32 %v6585_v40, %v9152_v37  ;;  %v2001_v8 = vadd.f32 %v8475_v53, %v1617_v2  ;;  %v6588_v53 = vld [vmem:[%s13219_s0 + $0x388] sm:$0xff]  ;;  %v6589_v2 = vld [vmem:[%s13219_s0 + $0x398] sm:$0xff] }
 0x1de   :  { %2925 = vmatprep.subr.bf16.mxu0 %v2465_v17  ;;  %3598 = vmatprep.subr.bf16.mxu1 %v2467_v24  ;;  %v2075_v13 = vadd.f32 %v9182_v51, %v1691_v60  ;;  %v1602_v5 = vmul.f32 %v6586_v25, %v8513_v59  ;;  %v1609_v52 = vmul.f32 %v6587_v47, %v8309_v15  ;;  %v2223_v60 = vmax.f32 %v9161_v61, 0.0  ;;  %v6590_v24 = vld [vmem:[%s13219_s0 + $0x380] sm:$0xff] }
 0x1df   :  { %2926 = vmatpush2.bf16.msra.mxu0 %v2464_v1  ;;  %3599 = vmatpush2.bf16.msra.mxu1 %v2466_v39  ;;  %v1682_v10 = vmul.f32 %v6588_v53, %v9184_v58  ;;  %v2072_v29 = vadd.f32 %v9182_v51, %v1688_v22  ;;  %v2074_v42 = vadd.f32 %v9182_v51, %v1690_v20  ;;  %v6591_v39 = vld [vmem:[%s13219_s0 + $0x390] sm:$0xff]  ;;  %v9225_v22 = vpop.permute.xlu1 %1875  ;;  %v2297_v40 = vmax.f32 %v2073_v36, 0.0 }
 0x1e0   :  { %v1684_v17 = vmul.f32 %v6589_v2, %v9184_v58  ;;  %v1681_v1 = vmul.f32 %v6590_v24, %v9184_v58  ;;  %v1683_v7 = vmul.f32 %v6591_v39, %v9184_v58  ;;  %v1986_v61 = vadd.f32 %v8548_v3, %v1602_v5 }
 0x1e1   :  { %v2008_v20 = vadd.f32 %v13507_v34, %v1624_v32  ;;  %v2225_v25 = vmax.f32 %v2001_v8, 0.0  ;;  %v1993_v47 = vadd.f32 %v8356_v41, %v1609_v52  ;;  %v2066_v53 = vadd.f32 %v9225_v22, %v1682_v10  ;;  %v6592_v52 = vld [vmem:[%s13219_s0 + $0x100] sm:$0xff] }
 0x1e2   :  { %v2068_v2 = vadd.f32 %v9225_v22, %v1684_v17  ;;  %v2065_v24 = vadd.f32 %v9225_v22, %v1681_v1  ;;  %v2067_v51 = vadd.f32 %v9225_v22, %v1683_v7  ;;  %v2299_v37 = vmax.f32 %v2075_v13, 0.0 }
 0x1e3   :  { %v2296_v39 = vmax.f32 %v2072_v29, 0.0  ;;  %v2298_v58 = vmax.f32 %v2074_v42, 0.0  ;;  %v2210_v5 = vmax.f32 %v1986_v61, 0.0  ;;  %v2290_v31 = vmax.f32 %v2066_v53, 0.0  ;;  %v6594_v61 = vld [vmem:[%s13219_s0 + $0x110] sm:$0xff] }
 0x1e4   :  { %v2292_v43 = vmax.f32 %v2068_v2, 0.0  ;;  %v2289_v36 = vmax.f32 %v2065_v24, 0.0  ;;  %v2291_v35 = vmax.f32 %v2067_v51, 0.0  ;;  %v2230_v34 = vmax.f32 %v9164_v54, 0.0  ;;  %v6593_v54 = vld [vmem:[%s13219_s0 + $0x138] sm:$0xff]  ;;  %v6597_v2 = vld [vmem:[%s13219_s0 + $0xd0] sm:$0xff] }
 0x1e5   :  { %v2232_v32 = vmax.f32 %v2008_v20, 0.0  ;;  %v2217_v8 = vmax.f32 %v1993_v47, 0.0  ;;  %v1601_v10 = vmul.f32 %v6592_v52, %v8513_v59  ;;  %v2458_v17 = vpack.c.bf16 %v2297_v40, %v2290_v31  ;;  %v6595_v31 = vld [vmem:[%s13219_s0 + $0x148] sm:$0xff]  ;;  %v2525_v52 = vld [vmem:[#allocation2 + $0x60] sm:$0xff] }
 0x1e6   :  { %v2460_v1 = vpack.c.bf16 %v2299_v37, %v2292_v43  ;;  %v2457_v13 = vpack.c.bf16 %v2296_v39, %v2289_v36  ;;  %v2459_v29 = vpack.c.bf16 %v2298_v58, %v2291_v35  ;;  %v9238_v42 = vpack.c.bf16 %v2230_v34, %v2223_v60  ;;  %v2526_v58 = vld [vmem:[#allocation2 + $0x68] sm:$0xff]  ;;  %v2528_v60 = vld [vmem:[#allocation2 + $0x78] sm:$0xff]  ;;  %v6600_v34 = vld [vmem:[%s13219_s0 + $0xa0] sm:$0xff] }
 0x1e7   :  { %v9240_v7 = vpack.c.bf16 %v2232_v32, %v2225_v25  ;;  %v1608_v51 = vmul.f32 %v6593_v54, %v8309_v15  ;;  %v1603_v20 = vmul.f32 %v6594_v61, %v8513_v59  ;;  %2927 = vmatprep.subr.bf16.mxu0 %v2458_v17  ;;  %v9250_v43 = vpack.c.bf16 %v2217_v8, %v2210_v5  ;;  %v6596_v25 = vld [vmem:[%s13219_s0 + $0x98] sm:$0xff] }
 0x1e8   :  { %3600 = vmatprep.subr.bf16.mxu1 %v2460_v1  ;;  %v1985_v35 = vadd.f32 %v8548_v3, %v1601_v10  ;;  %v1610_v37 = vmul.f32 %v6595_v31, %v8309_v15  ;;  %2928 = vmatpush2.bf16.msra.mxu0 %v2457_v13  ;;  %v1588_v47 = vmul.f32 %v6596_v25, %v8573_v14  ;;  %v13515_v53 = vmov 0   ;;  %v2527_v10 = vld [vmem:[#allocation2 + $0x70] sm:$0xff]  ;;  %v6601_v1 = vld [vmem:[%s13219_s0 + $0xd8] sm:$0xff] }
 0x1e9   :  { %3601 = vmatpush2.bf16.msra.mxu1 %v2459_v29  ;;  %v1992_v40 = vadd.f32 %v8356_v41, %v1608_v51  ;;  %v1987_v59 = vadd.f32 %v8548_v3, %v1603_v20  ;;  %4243 = vmatprep.subr.bf16.mxu0 %v8555_v11  ;;  %v1595_v24 = vmul.f32 %v6597_v2, %v8408_v19  ;;  %v6598_v3 = vld [vmem:[%s13219_s0 + $0x90] sm:$0xff]  ;;  %v6602_v29 = vld [vmem:[%s13219_s0 + $0x28] sm:$0xff] }
 0x1ea   :  { %4916 = vmatprep.subr.bf16.mxu1 %v13515_v53  ;;  %v1994_v15 = vadd.f32 %v8356_v41, %v1610_v37  ;;  %v1587_v39 = vmul.f32 %v6598_v3, %v8573_v14  ;;  %v1972_v5 = vadd.f32 %v8615_v44, %v1588_v47  ;;  %v9275_v36 = vpack.c.bf16 %v2528_v60, %v2526_v58  ;;  %v6599_v41 = vld [vmem:[%s13219_s0 + $0xc8] sm:$0xff] }
 0x1eb   :  { %v1594_v11 = vmul.f32 %v6599_v41, %v8408_v19  ;;  %v1589_v32 = vmul.f32 %v6600_v34, %v8573_v14  ;;  %2930 = vmatmul.mubr.bf16.vlgmr.msra.gmra.mxu0 %v8914_v33  ;;  %v2209_v8 = vmax.f32 %v1985_v35, 0.0  ;;  %v1596_v13 = vmul.f32 %v6601_v1, %v8408_v19 }
 0x1ec   :  { %3603 = vmatmul.mubr.bf16.vlgmr.msra.gmra.mxu1 %v8914_v33  ;;  %v1971_v17 = vadd.f32 %v8615_v44, %v1587_v39  ;;  %v1574_v14 = vmul.f32 %v6602_v29, %v8647_v62  ;;  %4244 = vmatpush1.bf16.msra.mxu0 %v8557_v45  ;;  %v2211_v54 = vmax.f32 %v1987_v59, 0.0  ;;  %v1979_v51 = vadd.f32 %v8435_v0, %v1595_v24  ;;  %v6603_v45 = vld [vmem:[%s13219_s0 + $0x60] sm:$0xff]  ;;  %v6605_v24 = vld [vmem:[%s13219_s0 + $0x58] sm:$0xff] }
 0x1ed   :  { %4917 = vmatpush1.bf16.msra.mxu1 %v8693_v21  ;;  %v1978_v61 = vadd.f32 %v8435_v0, %v1594_v11  ;;  %v1973_v20 = vadd.f32 %v8615_v44, %v1589_v32  ;;  %4245 = vmatprep.subr.bf16.mxu0 %v8777_v16  ;;  %v2216_v19 = vmax.f32 %v1992_v40, 0.0  ;;  %v1980_v35 = vadd.f32 %v8435_v0, %v1596_v13  ;;  %v6604_v59 = vld [vmem:[%s13219_s0 + $0x20] sm:$0xff]  ;;  %v6609_v13 = vld [vmem:[%s13219_s0 + $0x6f0] sm:$0xff] }
 0x1ee   :  { %4918 = vmatprep.subr.bf16.mxu1 %v13515_v53  ;;  %v1581_v21 = vmul.f32 %v6603_v45, %v8473_v38  ;;  %v1958_v31 = vadd.f32 %v8687_v9, %v1574_v14  ;;  %2939 = vmatprep.mubr.bf16.mxu0 %v9115_v12  ;;  %v2218_v44 = vmax.f32 %v1994_v15, 0.0  ;;  %v2196_v37 = vmax.f32 %v1972_v5, 0.0  ;;  %v6612_v45 = vld [vmem:[%s13219_s0 + $0x6e8] sm:$0xff] }
 0x1ef   :  { %3612 = vmatprep.mubr.bf16.mxu1 %v9115_v12  ;;  %v9311_v16 = vpack.c.bf16 %v2527_v10, %v2525_v52  ;;  %v2195_v58 = vmax.f32 %v1971_v17, 0.0  ;;  %v9313_v60 = vpack.c.bf16 %v2216_v19, %v2209_v8  ;;  %v2197_v0 = vmax.f32 %v1973_v20, 0.0  ;;  %v6611_v20 = vld [vmem:[%s13219_s0 + $0x6c0] sm:$0xff] }
 0x1f0   :  { %v1965_v40 = vadd.f32 %v8515_v50, %v1581_v21  ;;  %v1573_v25 = vmul.f32 %v6604_v59, %v8647_v62  ;;  %4246 = vmatpush1.bf16.msra.mxu0 %v8827_v56  ;;  %v9322_v47 = vpack.c.bf16 %v2218_v44, %v2211_v54  ;;  %v2203_v15 = vmax.f32 %v1979_v51, 0.0  ;;  %v6610_v54 = vld [vmem:[%s13219_s0 + $0x6b0] sm:$0xff]  ;;  %v2530_v51 = vld [vmem:[#allocation2 + $0x88] sm:$0xff] }
 0x1f1   :  { %4919 = vmatpush1.bf16.msra.mxu1 %v8886_v30  ;;  %v2202_v2 = vmax.f32 %v1978_v61, 0.0  ;;  %v1580_v3 = vmul.f32 %v6605_v24, %v8473_v38  ;;  %4247 = vmatprep.subr.bf16.mxu0 %v8890_v18  ;;  %v2204_v39 = vmax.f32 %v1980_v35, 0.0  ;;  %v2182_v5 = vmax.f32 %v1958_v31, 0.0  ;;  %v6606_v30 = vld [vmem:[%s13219_s0 + $0x30] sm:$0xff]  ;;  %v6607_v18 = vld [vmem:[%s13219_s0 + $0x6b8] sm:$0xff]  ;;  %v2529_v31 = vld [vmem:[#allocation2 + $0x80] sm:$0xff] }
 0x1f2   :  { %4920 = vmatprep.subr.bf16.mxu1 %v13515_v53  ;;  %v9331_v56 = vadd.f32 %v8687_v9, %v1573_v25  ;;  %v1575_v41 = vmul.f32 %v6606_v30, %v8647_v62  ;;  %v9337_v11 = vpack.c.bf16 %v2203_v15, %v2196_v37  ;;  %v1784_v8 = vmul.f32 %v6607_v18, %v8707_v26  ;;  %v6608_v62 = vld [vmem:[%s13219_s0 + $0x68] sm:$0xff]  ;;  %v2532_v61 = vld [vmem:[#allocation2 + $0x98] sm:$0xff]  ;;  %v2531_v44 = vld [vmem:[#allocation2 + $0x90] sm:$0xff] }
 0x1f3   :  { %v9339_v34 = vpack.c.bf16 %v2202_v2, %v2195_v58  ;;  %v1964_v32 = vadd.f32 %v8515_v50, %v1580_v3  ;;  %2940 = vmatmul.mubr.bf16.gmra.mxu0 %v9117_v48  ;;  %v9348_v52 = vpack.c.bf16 %v2204_v39, %v2197_v0  ;;  %v2189_v10 = vmax.f32 %v1965_v40, 0.0  ;;  %v6614_v0 = vld [vmem:[%s13219_s0 + $0x648] sm:$0xff]  ;;  %v13516_v40 = vld [vmem:[#allocation7_spill] sm:$0xff]  ;;  %v6615_v25 = vld [vmem:[%s13219_s0 + $0x680] sm:$0xff] }
 0x1f4   :  { %3613 = vmatmul.mubr.bf16.gmra.mxu1 %v9117_v48  ;;  %v1582_v17 = vmul.f32 %v6608_v62, %v8473_v38  ;;  %v1959_v1 = vadd.f32 %v8687_v9, %v1575_v41  ;;  %4248 = vmatpush1.bf16.msra.mxu0 %v9010_v55  ;;  %v1791_v29 = vmul.f32 %v6609_v13, %v8563_v57  ;;  %v2181_v55 = vmax.f32 %v9331_v56, 0.0  ;;  %v13517_v15 = vld [vmem:[#allocation24_spill] sm:$0xff]  ;;  %v13518_v24 = vld [vmem:[#allocation11_spill] sm:$0xff]  ;;  %v13519_v30 = vld [vmem:[#allocation6_spill] sm:$0xff] }
 0x1f5   :  { %4921 = vmatpush1.bf16.msra.mxu1 %v9014_v63  ;;  %v2168_v14 = vadd.f32 %v8750_v46, %v1784_v8  ;;  %v1783_v38 = vmul.f32 %v6610_v54, %v8707_v26  ;;  %4249 = vmatprep.subr.bf16.mxu0 %v9032_v4  ;;  %v9368_v9 = vpack.c.bf16 %v2189_v10, %v2182_v5  ;;  %v2188_v4 = vmax.f32 %v1964_v32, 0.0  ;;  %v13520_v32 = vld [vmem:[#allocation25_spill] sm:$0xff]  ;;  %v6617_v13 = vld [vmem:[%s13219_s0 + $0x678] sm:$0xff] }
 0x1f6   :  { %4922 = vmatprep.subr.bf16.mxu1 %v13515_v53  ;;  %v1966_v63 = vadd.f32 %v8515_v50, %v1582_v17  ;;  %v1785_v19 = vmul.f32 %v6611_v20, %v8707_v26  ;;  %2949 = vmatprep.mubr.bf16.mxu0 %v9126_v23  ;;  %v2175_v35 = vadd.f32 %v8591_v49, %v1791_v29  ;;  %v6613_v26 = vld [vmem:[%s13219_s0 + $0x6f8] sm:$0xff]  ;;  %v2183_v3 = vmax.f32 %v1959_v1, 0.0  ;;  %v6616_v62 = vld [vmem:[%s13219_s0 + $0x640] sm:$0xff] }
 0x1f7   :  { %3622 = vmatprep.mubr.bf16.mxu1 %v9126_v23  ;;  %v1790_v50 = vmul.f32 %v6612_v45, %v8563_v57  ;;  %v2167_v21 = vadd.f32 %v8750_v46, %v1783_v38  ;;  %v1792_v37 = vmul.f32 %v6613_v26, %v8563_v57  ;;  %v1770_v59 = vmul.f32 %v6614_v0, %v13516_v40  ;;  %v2536_v26 = vld [vmem:[#allocation2 + $0xb8] sm:$0xff] }
 0x1f8   :  { %v2169_v58 = vadd.f32 %v8750_v46, %v1785_v19  ;;  %v1777_v2 = vmul.f32 %v6615_v25, %v13517_v15  ;;  %4250 = vmatpush1.bf16.msra.mxu0 %v13518_v24  ;;  %v2392_v57 = vmax.f32 %v2168_v14, 0.0  ;;  %v9399_v39 = vpack.c.bf16 %v2532_v61, %v2530_v51  ;;  %v13522_v25 = vld [vmem:[#allocation26_spill] sm:$0xff] }
 0x1f9   :  { %4923 = vmatpush1.bf16.msra.mxu1 %v9102_v6  ;;  %v2174_v46 = vadd.f32 %v8591_v49, %v1790_v50  ;;  %4251 = vmatprep.subr.bf16.mxu0 %v9158_v28  ;;  %v2190_v5 = vmax.f32 %v1966_v63, 0.0  ;;  %v2176_v56 = vadd.f32 %v8591_v49, %v1792_v37  ;;  %v2154_v41 = vadd.f32 %v13519_v30, %v1770_v59  ;;  %v6621_v37 = vld [vmem:[%s13219_s0 + $0x5d0] sm:$0xff] }
 0x1fa   :  { %4924 = vmatprep.subr.bf16.mxu1 %v13515_v53  ;;  %v2161_v18 = vadd.f32 %v13520_v32, %v1777_v2  ;;  %v2399_v8 = vmax.f32 %v2175_v35, 0.0  ;;  %v9407_v10 = vpack.c.bf16 %v2531_v44, %v2529_v31  ;;  %v2391_v6 = vmax.f32 %v2167_v21, 0.0  ;;  %v13521_v35 = vld [vmem:[#allocation12_spill] sm:$0xff]  ;;  %v2534_v44 = vld [vmem:[#allocation2 + $0xa8] sm:$0xff]  ;;  %v6622_v59 = vld [vmem:[%s13219_s0 + $0x610] sm:$0xff] }
 0x1fb   :  { %v1769_v17 = vmul.f32 %v6616_v62, %v13516_v40  ;;  %2950 = vmatmul.mubr.bf16.gmra.mxu0 %v9128_v27  ;;  %v9415_v28 = vpack.c.bf16 %v2188_v4, %v2181_v55  ;;  %v2393_v49 = vmax.f32 %v2169_v58, 0.0  ;;  %v2378_v1 = vmax.f32 %v2154_v41, 0.0  ;;  %v6620_v4 = vld [vmem:[%s13219_s0 + $0x5d8] sm:$0xff]  ;;  %v2533_v41 = vld [vmem:[#allocation2 + $0xa0] sm:$0xff] }
 0x1fc   :  { %3623 = vmatmul.mubr.bf16.gmra.mxu1 %v9128_v27  ;;  %v1776_v29 = vmul.f32 %v6617_v13, %v13517_v15  ;;  %4252 = vmatpush1.bf16.msra.mxu0 %v9238_v42  ;;  %v9423_v14 = vpack.c.bf16 %v2190_v5, %v2183_v3  ;;  %v9425_v54 = vpack.c.bf16 %v2399_v8, %v2392_v57  ;;  %v2398_v38 = vmax.f32 %v2174_v46, 0.0  ;;  %v6618_v42 = vld [vmem:[%s13219_s0 + $0x650] sm:$0xff]  ;;  %v13523_v2 = vld [vmem:[#allocation28_spill] sm:$0xff]  ;;  %v6624_v46 = vld [vmem:[%s13219_s0 + $0x5e0] sm:$0xff] }
 0x1fd   :  { %4925 = vmatpush1.bf16.msra.mxu1 %v9240_v7  ;;  %v9428_v55 = vadd.f32 %v13519_v30, %v1769_v17  ;;  %4253 = vmatprep.subr.bf16.mxu0 %v9250_v43  ;;  %v2400_v63 = vmax.f32 %v2176_v56, 0.0  ;;  %v2385_v51 = vmax.f32 %v2161_v18, 0.0  ;;  %v1771_v7 = vmul.f32 %v6618_v42, %v13516_v40  ;;  %v6619_v43 = vld [vmem:[%s13219_s0 + $0x688] sm:$0xff]  ;;  %v13524_v56 = vld [vmem:[#allocation5_spill] sm:$0xff]  ;;  %v6625_v18 = vld [vmem:[%s13219_s0 + $0x618] sm:$0xff] }
 0x1fe   :  { %4926 = vmatprep.subr.bf16.mxu1 %v13515_v53  ;;  %v9433_v61 = vadd.f32 %v13520_v32, %v1776_v29  ;;  %2959 = vmatprep.mubr.bf16.mxu0 %v9275_v36  ;;  %v9441_v20 = vpack.c.bf16 %v2398_v38, %v2391_v6  ;;  %v1778_v19 = vmul.f32 %v6619_v43, %v13517_v15  ;;  %v6626_v6 = vld [vmem:[%s13219_s0 + $0x568] sm:$0xff]  ;;  %v13525_v62 = vld [vmem:[#allocation29_spill] sm:$0xff]  ;;  %v13526_v38 = vld [vmem:[#allocation8_spill] sm:$0xff] }
 0x1ff   :  { %3632 = vmatprep.mubr.bf16.mxu1 %v9275_v36  ;;  %v1756_v45 = vmul.f32 %v6620_v4, %v13521_v35  ;;  %v9451_v50 = vpack.c.bf16 %v2400_v63, %v2393_v49  ;;  %v9453_v21 = vpack.c.bf16 %v2385_v51, %v2378_v1  ;;  %v2155_v31 = vadd.f32 %v13519_v30, %v1771_v7  ;;  %v6627_v29 = vld [vmem:[%s13219_s0 + $0x5a0] sm:$0xff]  ;;  %v13527_v42 = vld [vmem:[#allocation15_spill] sm:$0xff] }
 0x200   :  { %v1755_v58 = vmul.f32 %v6621_v37, %v13521_v35  ;;  %4254 = vmatpush1.bf16.msra.mxu0 %v9313_v60  ;;  %v2377_v0 = vmax.f32 %v9428_v55, 0.0  ;;  %v2162_v40 = vadd.f32 %v13520_v32, %v1778_v19  ;;  %v1763_v15 = vmul.f32 %v6622_v59, %v13522_v25  ;;  %v2535_v32 = vld [vmem:[#allocation2 + $0xb0] sm:$0xff] }
 0x201   :  { %4927 = vmatpush1.bf16.msra.mxu1 %v9322_v47  ;;  %v2140_v24 = vadd.f32 %v13523_v2, %v1756_v45  ;;  %4255 = vmatprep.subr.bf16.mxu0 %v9337_v11  ;;  %v2384_v60 = vmax.f32 %v9433_v61, 0.0  ;;  %v6623_v47 = vld [vmem:[%s13219_s0 + $0x608] sm:$0xff]  ;;  %v1757_v5 = vmul.f32 %v6624_v46, %v13521_v35  ;;  %v9482_v30 = vpack.c.bf16 %v2536_v26, %v2534_v44  ;;  %v13528_v4 = vld [vmem:[#allocation27_spill] sm:$0xff] }
 0x202   :  { %4928 = vmatprep.subr.bf16.mxu1 %v13515_v53  ;;  %v1762_v3 = vmul.f32 %v6623_v47, %v13522_v25  ;;  %v2139_v57 = vadd.f32 %v13523_v2, %v1755_v58  ;;  %v2147_v11 = vadd.f32 %v13524_v56, %v1763_v15  ;;  %v1764_v8 = vmul.f32 %v6625_v18, %v13522_v25  ;;  %v6629_v58 = vld [vmem:[%s13219_s0 + $0x598] sm:$0xff]  ;;  %v2539_v18 = vld [vmem:[#allocation2 + $0xd0] sm:$0xff] }
 0x203   :  { %v1742_v17 = vmul.f32 %v6626_v6, %v13525_v62  ;;  %2960 = vmatmul.mubr.bf16.gmra.mxu0 %v9311_v16  ;;  %v2379_v49 = vmax.f32 %v2155_v31, 0.0  ;;  %v2141_v13 = vadd.f32 %v13523_v2, %v1757_v5  ;;  %v1749_v55 = vmul.f32 %v6627_v29, %v13526_v38  ;;  %v6630_v2 = vld [vmem:[%s13219_s0 + $0x570] sm:$0xff]  ;;  %v13531_v29 = vld [vmem:[#allocation30_spill] sm:$0xff] }
 0x204   :  { %3633 = vmatmul.mubr.bf16.gmra.mxu1 %v9311_v16  ;;  %v2146_v1 = vadd.f32 %v13524_v56, %v1762_v3  ;;  %4256 = vmatpush1.bf16.msra.mxu0 %v9339_v34  ;;  %v2386_v63 = vmax.f32 %v2162_v40, 0.0  ;;  %v2364_v51 = vmax.f32 %v2140_v24, 0.0  ;;  %v2148_v61 = vadd.f32 %v13524_v56, %v1764_v8  ;;  %v6628_v34 = vld [vmem:[%s13219_s0 + $0x560] sm:$0xff]  ;;  %v2538_v3 = vld [vmem:[#allocation2 + $0xc8] sm:$0xff]  ;;  %v6632_v56 = vld [vmem:[%s13219_s0 + $0x4f8] sm:$0xff] }
 0x205   :  { %4929 = vmatpush1.bf16.msra.mxu1 %v9348_v52  ;;  %v2126_v7 = vadd.f32 %v13527_v42, %v1742_v17  ;;  %4257 = vmatprep.subr.bf16.mxu0 %v9368_v9  ;;  %v9506_v43 = vpack.c.bf16 %v2535_v32, %v2533_v41  ;;  %v2363_v19 = vmax.f32 %v2139_v57, 0.0  ;;  %v2133_v35 = vadd.f32 %v13528_v4, %v1749_v55  ;;  %v2540_v57 = vld [vmem:[#allocation2 + $0xd8] sm:$0xff]  ;;  %v2537_v32 = vld [vmem:[#allocation2 + $0xc0] sm:$0xff] }
 0x206   :  { %4930 = vmatprep.subr.bf16.mxu1 %v13515_v53  ;;  %v1741_v52 = vmul.f32 %v6628_v34, %v13525_v62  ;;  %2969 = vmatprep.mubr.bf16.mxu0 %v9399_v39  ;;  %v9515_v45 = vpack.c.bf16 %v2384_v60, %v2377_v0  ;;  %v2371_v9 = vmax.f32 %v2147_v11, 0.0  ;;  %v2365_v31 = vmax.f32 %v2141_v13, 0.0  ;;  %v13529_v11 = vld [vmem:[#allocation21_spill] sm:$0xff]  ;;  %v6638_v34 = vld [vmem:[%s13219_s0 + $0x538] sm:$0xff] }
 0x207   :  { %3642 = vmatprep.mubr.bf16.mxu1 %v9399_v39  ;;  %v2350_v44 = vmax.f32 %v2126_v7, 0.0  ;;  %v2505_v26 = vpack.c.bf16 %v2386_v63, %v2379_v49  ;;  %v2370_v37 = vmax.f32 %v2146_v1, 0.0  ;;  %v1748_v40 = vmul.f32 %v6629_v58, %v13526_v38  ;;  %v13530_v17 = vld [vmem:[#allocation9_spill] sm:$0xff]  ;;  %v6634_v1 = vld [vmem:[%s13219_s0 + $0x4f0] sm:$0xff]  ;;  %v13532_v7 = vld [vmem:[#allocation16_spill] sm:$0xff] }
 0x208   :  { %v2125_v59 = vadd.f32 %v13527_v42, %v1741_v52  ;;  %4258 = vmatpush1.bf16.msra.mxu0 %v9415_v28  ;;  %v2497_v25 = vpack.c.bf16 %v2371_v9, %v2364_v51  ;;  %v2372_v0 = vmax.f32 %v2148_v61, 0.0  ;;  %v2357_v15 = vmax.f32 %v2133_v35, 0.0  ;;  %v6631_v28 = vld [vmem:[%s13219_s0 + $0x5a8] sm:$0xff]  ;;  %v6635_v63 = vld [vmem:[%s13219_s0 + $0x500] sm:$0xff] }
 0x209   :  { %4931 = vmatpush1.bf16.msra.mxu1 %v9423_v14  ;;  %v1743_v24 = vmul.f32 %v6630_v2, %v13525_v62  ;;  %4259 = vmatprep.subr.bf16.mxu0 %v9425_v54  ;;  %v9530_v60 = vpack.c.bf16 %v2370_v37, %v2363_v19  ;;  %v2132_v47 = vadd.f32 %v13528_v4, %v1748_v40  ;;  %v6633_v62 = vld [vmem:[%s13219_s0 + $0x530] sm:$0xff]  ;;  %v6639_v58 = vld [vmem:[%s13219_s0 + $0x4c0] sm:$0xff]  ;;  %v13534_v40 = vld [vmem:[#allocation22_spill] sm:$0xff] }
 0x20a   :  { %4932 = vmatprep.subr.bf16.mxu1 %v13515_v53  ;;  %v1750_v14 = vmul.f32 %v6631_v28, %v13526_v38  ;;  %v9537_v46 = vpack.c.bf16 %v2372_v0, %v2365_v31  ;;  %v9539_v5 = vpack.c.bf16 %v2357_v15, %v2350_v44  ;;  %v1728_v41 = vmul.f32 %v6632_v56, %v13529_v11  ;;  %v13533_v44 = vld [vmem:[#allocation14_spill] sm:$0xff]  ;;  %v13535_v0 = vld [vmem:[#allocation23_spill] sm:$0xff] }
 0x20b   :  { %v2127_v54 = vadd.f32 %v13527_v42, %v1743_v24  ;;  %2970 = vmatmul.mubr.bf16.gmra.mxu0 %v9407_v10  ;;  %v2349_v8 = vmax.f32 %v2125_v59, 0.0  ;;  %v1735_v49 = vmul.f32 %v6633_v62, %v13530_v17  ;;  %v1727_v13 = vmul.f32 %v6634_v1, %v13529_v11  ;;  %v6643_v62 = vld [vmem:[%s13219_s0 + $0x4c8] sm:$0xff] }
 0x20c   :  { %3643 = vmatmul.mubr.bf16.gmra.mxu1 %v9407_v10  ;;  %v2134_v6 = vadd.f32 %v13528_v4, %v1750_v14  ;;  %4260 = vmatpush2.bf16.msra.mxu0 %v9441_v20  ;;  %v2112_v38 = vadd.f32 %v13531_v29, %v1728_v41  ;;  %v9560_v55 = vpack.c.bf16 %v2540_v57, %v2538_v3  ;;  %v2356_v61 = vmax.f32 %v2132_v47, 0.0  ;;  %v6640_v47 = vld [vmem:[%s13219_s0 + $0x480] sm:$0xff] }
 0x20d   :  { %4933 = vmatpush2.bf16.msra.mxu1 %v9451_v50  ;;  %v1729_v51 = vmul.f32 %v6635_v63, %v13529_v11  ;;  %4261 = vmatprep.subr.bf16.mxu0 %v9453_v21  ;;  %v9568_v42 = vpack.c.bf16 %v2539_v18, %v2537_v32  ;;  %v2111_v20 = vadd.f32 %v13531_v29, %v1727_v13  ;;  %v6636_v50 = vld [vmem:[%s13219_s0 + $0x488] sm:$0xff]  ;;  %v2351_v4 = vmax.f32 %v2127_v54, 0.0  ;;  %v2544_v63 = vld [vmem:[#allocation2 + $0xf8] sm:$0xff] }
 0x20e   :  { %4934 = vmatprep.subr.bf16.mxu1 %v13515_v53  ;;  %v1714_v19 = vmul.f32 %v6636_v50, %v13532_v7  ;;  %2979 = vmatprep.mubr.bf16.mxu0 %v9482_v30  ;;  %v6637_v21 = vld [vmem:[%s13219_s0 + $0x528] sm:$0xff]  ;;  %v1736_v52 = vmul.f32 %v6638_v34, %v13530_v17  ;;  %v2489_v31 = vpack.c.bf16 %v2356_v61, %v2349_v8  ;;  %v2358_v14 = vmax.f32 %v2134_v6, 0.0 }
 0x20f   :  { %3652 = vmatprep.mubr.bf16.mxu1 %v9482_v30  ;;  %v1734_v35 = vmul.f32 %v6637_v21, %v13530_v17  ;;  %v2113_v9 = vadd.f32 %v13531_v29, %v1729_v51  ;;  %v2119_v37 = vadd.f32 %v13533_v44, %v1735_v49  ;;  %v1721_v59 = vmul.f32 %v6639_v58, %v13534_v40  ;;  %v13536_v54 = vld [vmem:[#allocation10_spill] sm:$0xff] }
 0x210   :  { %v2098_v15 = vadd.f32 %v13535_v0, %v1714_v19  ;;  %4262 = vmatpush2.bf16.msra.mxu0 %v9515_v45  ;;  %v2120_v24 = vadd.f32 %v13533_v44, %v1736_v52  ;;  %v1713_v28 = vmul.f32 %v6640_v47, %v13532_v7  ;;  %v2336_v3 = vmax.f32 %v2112_v38, 0.0  ;;  %v2542_v38 = vld [vmem:[#allocation2 + $0xe8] sm:$0xff]  ;;  %v13539_v52 = vld [vmem:[#allocation17_spill] sm:$0xff] }
 0x211   :  { %4935 = vmatpush2.bf16.msra.mxu1 %v2505_v26  ;;  %v2118_v2 = vadd.f32 %v13533_v44, %v1734_v35  ;;  %4263 = vmatprep.subr.bf16.mxu0 %v2497_v25  ;;  %v2335_v57 = vmax.f32 %v2111_v20, 0.0  ;;  %v2105_v56 = vadd.f32 %v13536_v54, %v1721_v59  ;;  %v2337_v45 = vmax.f32 %v2113_v9, 0.0  ;;  %v6641_v26 = vld [vmem:[%s13219_s0 + $0x4b8] sm:$0xff]  ;;  %v6642_v25 = vld [vmem:[%s13219_s0 + $0x490] sm:$0xff]  ;;  %v13538_v21 = vld [vmem:[#allocation18_spill] sm:$0xff] }
 0x212   :  { %4936 = vmatprep.subr.bf16.mxu1 %v13515_v53  ;;  %v1720_v11 = vmul.f32 %v6641_v26, %v13534_v40  ;;  %v2097_v41 = vadd.f32 %v13535_v0, %v1713_v28  ;;  %v1715_v32 = vmul.f32 %v6642_v25, %v13532_v7  ;;  %v2491_v18 = vpack.c.bf16 %v2358_v14, %v2351_v4  ;;  %v6650_v26 = vld [vmem:[%s13219_s0 + $0x458] sm:$0xff] }
 0x213   :  { %2980 = vmatmul.mubr.bf16.gmra.mxu0 %v9506_v43  ;;  %v2343_v8 = vmax.f32 %v2119_v37, 0.0  ;;  %v2322_v6 = vmax.f32 %v2098_v15, 0.0  ;;  %v1722_v17 = vmul.f32 %v6643_v62, %v13534_v40  ;;  %v2342_v49 = vmax.f32 %v2118_v2, 0.0  ;;  %v6646_v37 = vld [vmem:[%s13219_s0 + $0x410] sm:$0xff]  ;;  %v6648_v2 = vld [vmem:[%s13219_s0 + $0x420] sm:$0xff] }
 0x214   :  { %3653 = vmatmul.mubr.bf16.gmra.mxu1 %v9506_v43  ;;  %4264 = vmatpush2.bf16.msra.mxu0 %v9530_v60  ;;  %v2344_v1 = vmax.f32 %v2120_v24, 0.0  ;;  %v2104_v13 = vadd.f32 %v13536_v54, %v1720_v11  ;;  %v2099_v29 = vadd.f32 %v13535_v0, %v1715_v32  ;;  %v2329_v61 = vmax.f32 %v2105_v56, 0.0  ;;  %v6644_v60 = vld [vmem:[%s13219_s0 + $0x418] sm:$0xff]  ;;  %v6647_v0 = vld [vmem:[%s13219_s0 + $0x448] sm:$0xff]  ;;  %v6651_v32 = vld [vmem:[%s13219_s0 + $0x3e0] sm:$0xff] }
 0x215   :  { %4937 = vmatpush2.bf16.msra.mxu1 %v9537_v46  ;;  %4265 = vmatprep.subr.bf16.mxu0 %v9539_v5  ;;  %v2483_v51 = vpack.c.bf16 %v2343_v8, %v2336_v3  ;;  %v2106_v20 = vadd.f32 %v13536_v54, %v1722_v17  ;;  %v13537_v46 = vld [vmem:[#allocation19_spill] sm:$0xff]  ;;  %v2482_v7 = vpack.c.bf16 %v2342_v49, %v2335_v57  ;;  %v2321_v4 = vmax.f32 %v2097_v41, 0.0  ;;  %v6649_v3 = vld [vmem:[%s13219_s0 + $0x3a8] sm:$0xff]  ;;  %v13541_v57 = vld [vmem:[#allocation33_spill] sm:$0xff] }
 0x216   :  { %4938 = vmatprep.subr.bf16.mxu1 %v13515_v53  ;;  %v1700_v50 = vmul.f32 %v6644_v60, %v13537_v46  ;;  %2989 = vmatprep.mubr.bf16.mxu0 %v9560_v55  ;;  %v2484_v19 = vpack.c.bf16 %v2344_v1, %v2337_v45  ;;  %v6645_v5 = vld [vmem:[%s13219_s0 + $0x450] sm:$0xff]  ;;  %v2476_v34 = vpack.c.bf16 %v2329_v61, %v2322_v6  ;;  %v2328_v40 = vmax.f32 %v2104_v13, 0.0  ;;  %v6652_v62 = vld [vmem:[%s13219_s0 + $0x3a0] sm:$0xff] }
 0x217   :  { %3662 = vmatprep.mubr.bf16.mxu1 %v9560_v55  ;;  %v1707_v35 = vmul.f32 %v6645_v5, %v13538_v21  ;;  %v9634_v44 = vpack.c.bf16 %v2544_v63, %v2542_v38  ;;  %v1699_v58 = vmul.f32 %v6646_v37, %v13537_v46  ;;  %v2323_v59 = vmax.f32 %v2099_v29, 0.0  ;;  %v2541_v1 = vld [vmem:[#allocation2 + $0xe0] sm:$0xff]  ;;  %v2543_v13 = vld [vmem:[#allocation2 + $0xf0] sm:$0xff]  ;;  %v2546_v37 = vld [vmem:[#allocation2 + $0x108] sm:$0xff] }
 0x218   :  { %v2084_v9 = vadd.f32 %v13539_v52, %v1700_v50  ;;  %4266 = vmatpush2.bf16.msra.mxu0 %v2489_v31  ;;  %v1706_v15 = vmul.f32 %v6647_v0, %v13538_v21  ;;  %v1701_v24 = vmul.f32 %v6648_v2, %v13537_v46  ;;  %v2330_v47 = vmax.f32 %v2106_v20, 0.0  ;;  %v13540_v31 = vld [vmem:[#allocation13_spill] sm:$0xff]  ;;  %v6653_v38 = vld [vmem:[%s13219_s0 + $0x3b0] sm:$0xff]  ;;  %v13543_v20 = vld [vmem:[#allocation32_spill] sm:$0xff] }
 0x219   :  { %4939 = vmatpush2.bf16.msra.mxu1 %v2491_v18  ;;  %4267 = vmatprep.subr.bf16.mxu0 %v2483_v51  ;;  %v2091_v28 = vadd.f32 %v13540_v31, %v1707_v35  ;;  %v2083_v14 = vadd.f32 %v13539_v52, %v1699_v58  ;;  %v1686_v54 = vmul.f32 %v6649_v3, %v13541_v57  ;;  %v13542_v18 = vld [vmem:[#allocation31_spill] sm:$0xff]  ;;  %v2548_v58 = vld [vmem:[#allocation2 + $0x118] sm:$0xff] }
 0x21a   :  { %4940 = vmatprep.subr.bf16.mxu1 %v13515_v53  ;;  %v2475_v56 = vpack.c.bf16 %v2328_v40, %v2321_v4  ;;  %v2090_v45 = vadd.f32 %v13540_v31, %v1706_v15  ;;  %v1708_v11 = vmul.f32 %v6650_v26, %v13538_v21  ;;  %v2085_v41 = vadd.f32 %v13539_v52, %v1701_v24  ;;  %v6655_v4 = vld [vmem:[%s13219_s0 + $0x3e8] sm:$0xff] }
 0x21b   :  { %2990 = vmatmul.mubr.bf16.gmra.mxu0 %v9568_v42  ;;  %v2308_v25 = vmax.f32 %v2084_v9, 0.0  ;;  %v1693_v8 = vmul.f32 %v6651_v32, %v13542_v18  ;;  %v2070_v6 = vadd.f32 %v9225_v22, %v1686_v54  ;;  %v1685_v17 = vmul.f32 %v6652_v62, %v13541_v57  ;;  %v2547_v54 = vld [vmem:[#allocation2 + $0x110] sm:$0xff] }
 0x21c   :  { %3663 = vmatmul.mubr.bf16.gmra.mxu1 %v9568_v42  ;;  %4268 = vmatpush2.bf16.msra.mxu0 %v2482_v7  ;;  %v2477_v49 = vpack.c.bf16 %v2330_v47, %v2323_v59  ;;  %v2092_v29 = vadd.f32 %v13540_v31, %v1708_v11  ;;  %v1687_v63 = vmul.f32 %v6653_v38, %v13541_v57  ;;  %v2315_v51 = vmax.f32 %v2091_v28, 0.0  ;;  %v6654_v7 = vld [vmem:[%s13219_s0 + $0x3d8] sm:$0xff]  ;;  %v2545_v57 = vld [vmem:[#allocation2 + $0x100] sm:$0xff]  ;;  %v2551_v32 = vld [vmem:[#allocation2 + $0x130] sm:$0xff] }
 0x21d   :  { %4941 = vmatpush2.bf16.msra.mxu1 %v2484_v19  ;;  %4269 = vmatprep.subr.bf16.mxu0 %v2476_v34  ;;  %v2307_v61 = vmax.f32 %v2083_v14, 0.0  ;;  %v2077_v60 = vadd.f32 %v13543_v20, %v1693_v8  ;;  %v2069_v46 = vadd.f32 %v9225_v22, %v1685_v17  ;;  %v2309_v50 = vmax.f32 %v2085_v41, 0.0  ;;  %v2556_v8 = vld [vmem:[#allocation2 + $0x158] sm:$0xff]  ;;  %v2553_v17 = vld [vmem:[#allocation2 + $0x140] sm:$0xff] }
 0x21e   :  { %4942 = vmatprep.subr.bf16.mxu1 %v13515_v53  ;;  %2999 = vmatprep.mubr.bf16.mxu0 %v9634_v44  ;;  %v1692_v19 = vmul.f32 %v6654_v7, %v13542_v18  ;;  %v1694_v5 = vmul.f32 %v6655_v4, %v13542_v18  ;;  %v2071_v21 = vadd.f32 %v9225_v22, %v1687_v63  ;;  %v2314_v52 = vmax.f32 %v2090_v45, 0.0  ;;  %v2552_v45 = vld [vmem:[#allocation2 + $0x138] sm:$0xff]  ;;  %v2554_v18 = vld [vmem:[#allocation2 + $0x148] sm:$0xff]  ;;  %v2557_v63 = vld [vmem:[#allocation2 + $0x160] sm:$0xff] }
 0x21f   :  { %3672 = vmatprep.mubr.bf16.mxu1 %v9634_v44  ;;  %v2469_v35 = vpack.c.bf16 %v2315_v51, %v2308_v25  ;;  %v9691_v34 = vpack.c.bf16 %v2543_v13, %v2541_v1  ;;  %v2294_v9 = vmax.f32 %v2070_v6, 0.0  ;;  %v2316_v40 = vmax.f32 %v2092_v29, 0.0  ;;  %v2558_v1 = vld [vmem:[#allocation2 + $0x168] sm:$0xff]  ;;  %v2560_v13 = vld [vmem:[#allocation2 + $0x178] sm:$0xff]  ;;  %v2559_v51 = vld [vmem:[#allocation2 + $0x170] sm:$0xff] }
 0x220   :  { %4270 = vmatpush2.bf16.msra.mxu0 %v2475_v56  ;;  %v2076_v59 = vadd.f32 %v13543_v20, %v1692_v19  ;;  %v2078_v0 = vadd.f32 %v13543_v20, %v1694_v5  ;;  %v2468_v15 = vpack.c.bf16 %v2314_v52, %v2307_v61  ;;  %v2301_v2 = vmax.f32 %v2077_v60, 0.0  ;;  %v2550_v56 = vld [vmem:[#allocation2 + $0x128] sm:$0xff]  ;;  %v2564_v20 = vld [vmem:[#allocation2 + $0x198] sm:$0xff]  ;;  %v2563_v7 = vld [vmem:[#allocation2 + $0x190] sm:$0xff] }
 0x221   :  { %4943 = vmatpush2.bf16.msra.mxu1 %v2477_v49  ;;  %4271 = vmatprep.subr.bf16.mxu0 %v2469_v35  ;;  %v2470_v22 = vpack.c.bf16 %v2316_v40, %v2309_v50  ;;  %v2293_v24 = vmax.f32 %v2069_v46, 0.0  ;;  %v2295_v47 = vmax.f32 %v2071_v21, 0.0  ;;  %v9696_v31 = vpack.c.bf16 %v2548_v58, %v2546_v37  ;;  %v2555_v49 = vld [vmem:[#allocation2 + $0x150] sm:$0xff]  ;;  %v2562_v61 = vld [vmem:[#allocation2 + $0x188] sm:$0xff]  ;;  %v2561_v50 = vld [vmem:[#allocation2 + $0x180] sm:$0xff] }
 0x222   :  { %4944 = vmatprep.subr.bf16.mxu1 %v13515_v53  ;;  %v2462_v28 = vpack.c.bf16 %v2301_v2, %v2294_v9  ;;  %v2300_v14 = vmax.f32 %v2076_v59, 0.0  ;;  %v2302_v3 = vmax.f32 %v2078_v0, 0.0  ;;  %v9703_v41 = vpack.c.bf16 %v2547_v54, %v2545_v57  ;;  %v2566_v19 = vld [vmem:[#allocation2 + $0x1a8] sm:$0xff]  ;;  %v2568_v4 = vld [vmem:[#allocation2 + $0x1b8] sm:$0xff]  ;;  %v2565_v35 = vld [vmem:[#allocation2 + $0x1a0] sm:$0xff] }
 0x223   :  { %3000 = vmatmul.mubr.bf16.gmra.mxu0 %v9691_v34  ;;  %v9705_v25 = vpack.c.bf16 %v2552_v45, %v2550_v56  ;;  %v9713_v62 = vpack.c.bf16 %v2556_v8, %v2554_v18  ;;  %v9719_v29 = vpack.c.bf16 %v2555_v49, %v2553_v17  ;;  %v9721_v38 = vpack.c.bf16 %v2560_v13, %v2558_v1  ;;  %v2567_v52 = vld [vmem:[#allocation2 + $0x1b0] sm:$0xff]  ;;  %v2570_v9 = vld [vmem:[#allocation2 + $0x1c8] sm:$0xff]  ;;  %v2572_v37 = vld [vmem:[#allocation2 + $0x1d8] sm:$0xff] }
 0x224   :  { %3673 = vmatmul.mubr.bf16.gmra.mxu1 %v9691_v34  ;;  %4272 = vmatpush2.bf16.msra.mxu0 %v2468_v15  ;;  %v2461_v26 = vpack.c.bf16 %v2300_v14, %v2293_v24  ;;  %v2463_v11 = vpack.c.bf16 %v2302_v3, %v2295_v47  ;;  %v9727_v60 = vpack.c.bf16 %v2559_v51, %v2557_v63  ;;  %v2569_v59 = vld [vmem:[#allocation2 + $0x1c0] sm:$0xff]  ;;  %v2571_v0 = vld [vmem:[#allocation2 + $0x1d0] sm:$0xff]  ;;  %v2574_v15 = vld [vmem:[#allocation2 + $0x1e8] sm:$0xff] }
 0x225   :  { %4945 = vmatpush2.bf16.msra.mxu1 %v2470_v22  ;;  %4273 = vmatprep.subr.bf16.mxu0 %v2462_v28  ;;  %v9729_v46 = vpack.c.bf16 %v2564_v20, %v2562_v61  ;;  %v9735_v5 = vpack.c.bf16 %v2563_v7, %v2561_v50  ;;  %v9737_v21 = vpack.c.bf16 %v2568_v4, %v2566_v19  ;;  %v2576_v2 = vld [vmem:[#allocation2 + $0x1f8] sm:$0xff]  ;;  %v2573_v47 = vld [vmem:[#allocation2 + $0x1e0] sm:$0xff]  ;;  %v2575_v28 = vld [vmem:[#allocation2 + $0x1f0] sm:$0xff] }
 0x226   :  { %4946 = vmatprep.subr.bf16.mxu1 %v13515_v53  ;;  %3009 = vmatprep.mubr.bf16.mxu0 %v9696_v31  ;;  %v2549_v53 = vld [vmem:[#allocation2 + $0x120] sm:$0xff]  ;;  %v9743_v58 = vpack.c.bf16 %v2567_v52, %v2565_v35  ;;  %v9745_v40 = vpack.c.bf16 %v2572_v37, %v2570_v9  ;;  %v9751_v22 = vpack.c.bf16 %v2571_v0, %v2569_v59  ;;  %v2578_v14 = vld [vmem:[#allocation2 + $0x208] sm:$0xff]  ;;  %v2580_v3 = vld [vmem:[#allocation2 + $0x218] sm:$0xff] }
 0x227   :  { %3682 = vmatprep.mubr.bf16.mxu1 %v9696_v31  ;;  %v9711_v6 = vpack.c.bf16 %v2551_v32, %v2549_v53  ;;  %v9753_v24 = vpack.c.bf16 %v2576_v2, %v2574_v15  ;;  %v9759_v57 = vpack.c.bf16 %v2575_v28, %v2573_v47  ;;  %v9761_v54 = vpack.c.bf16 %v2580_v3, %v2578_v14  ;;  %v2577_v56 = vld [vmem:[#allocation2 + $0x200] sm:$0xff]  ;;  %v2579_v45 = vld [vmem:[#allocation2 + $0x210] sm:$0xff]  ;;  %v2586_v17 = vld [vmem:[#allocation2 + $0x248] sm:$0xff] }
 0x228   :  { %4274 = vmatpush2.bf16.msra.mxu0 %v2461_v26  ;;  %v2582_v26 = vld [vmem:[#allocation2 + $0x228] sm:$0xff]  ;;  %v9767_v53 = vpack.c.bf16 %v2579_v45, %v2577_v56  ;;  %v2581_v18 = vld [vmem:[#allocation2 + $0x220] sm:$0xff]  ;;  %v2583_v8 = vld [vmem:[#allocation2 + $0x230] sm:$0xff] }
 0x229   :  { %4947 = vmatpush2.bf16.msra.mxu1 %v2463_v11  ;;  %v2584_v11 = vld [vmem:[#allocation2 + $0x238] sm:$0xff]  ;;  %v9775_v1 = vpack.c.bf16 %v2583_v8, %v2581_v18  ;;  %v2585_v63 = vld [vmem:[#allocation2 + $0x240] sm:$0xff]  ;;  %v2587_v51 = vld [vmem:[#allocation2 + $0x250] sm:$0xff] }
 0x22a   :  { %v9769_v32 = vpack.c.bf16 %v2584_v11, %v2582_v26  ;;  %v2588_v49 = vld [vmem:[#allocation2 + $0x258] sm:$0xff]  ;;  %v2590_v61 = vld [vmem:[#allocation2 + $0x268] sm:$0xff]  ;;  %v9783_v50 = vpack.c.bf16 %v2587_v51, %v2585_v63  ;;  %v2589_v19 = vld [vmem:[#allocation2 + $0x260] sm:$0xff] }
 0x22b   :  { %3010 = vmatmul.mubr.bf16.gmra.mxu0 %v9703_v41  ;;  %v9777_v13 = vpack.c.bf16 %v2588_v49, %v2586_v17  ;;  %v2592_v20 = vld [vmem:[#allocation2 + $0x278] sm:$0xff]  ;;  %v2591_v4 = vld [vmem:[#allocation2 + $0x270] sm:$0xff]  ;;  %v2594_v35 = vld [vmem:[#allocation2 + $0x288] sm:$0xff] }
 0x22c   :  { %3683 = vmatmul.mubr.bf16.gmra.mxu1 %v9703_v41  ;;  %3019 = vmatprep.mubr.bf16.mxu0 %v9705_v25  ;;  %v9785_v7 = vpack.c.bf16 %v2592_v20, %v2590_v61  ;;  %v2596_v52 = vld [vmem:[#allocation2 + $0x298] sm:$0xff]  ;;  %v9791_v9 = vpack.c.bf16 %v2591_v4, %v2589_v19  ;;  %v2593_v59 = vld [vmem:[#allocation2 + $0x280] sm:$0xff]  ;;  %v2595_v0 = vld [vmem:[#allocation2 + $0x290] sm:$0xff] }
 0x22d   :  { %3692 = vmatprep.mubr.bf16.mxu1 %v9705_v25  ;;  %v9793_v37 = vpack.c.bf16 %v2596_v52, %v2594_v35  ;;  %v2598_v15 = vld [vmem:[#allocation2 + $0x2a8] sm:$0xff]  ;;  %v2600_v2 = vld [vmem:[#allocation2 + $0x2b8] sm:$0xff]  ;;  %v9799_v47 = vpack.c.bf16 %v2595_v0, %v2593_v59  ;;  %v2597_v14 = vld [vmem:[#allocation2 + $0x2a0] sm:$0xff] }
 0x22e   :  { %v9801_v28 = vpack.c.bf16 %v2600_v2, %v2598_v15  ;;  %v2599_v3 = vld [vmem:[#allocation2 + $0x2b0] sm:$0xff]  ;;  %v2602_v56 = vld [vmem:[#allocation2 + $0x2c8] sm:$0xff]  ;;  %v2604_v45 = vld [vmem:[#allocation2 + $0x2d8] sm:$0xff] }
 0x22f   :  { %v9807_v26 = vpack.c.bf16 %v2599_v3, %v2597_v14  ;;  %v9809_v11 = vpack.c.bf16 %v2604_v45, %v2602_v56  ;;  %v2601_v18 = vld [vmem:[#allocation2 + $0x2c0] sm:$0xff]  ;;  %v2603_v8 = vld [vmem:[#allocation2 + $0x2d0] sm:$0xff]  ;;  %v2606_v17 = vld [vmem:[#allocation2 + $0x2e8] sm:$0xff] }
 0x230   :  { %v2608_v49 = vld [vmem:[#allocation2 + $0x2f8] sm:$0xff]  ;;  %v9815_v63 = vpack.c.bf16 %v2603_v8, %v2601_v18  ;;  %v2605_v61 = vld [vmem:[#allocation2 + $0x2e0] sm:$0xff]  ;;  %v2607_v20 = vld [vmem:[#allocation2 + $0x2f0] sm:$0xff] }
 0x231   :  { %v9817_v51 = vpack.c.bf16 %v2608_v49, %v2606_v17  ;;  %v2610_v19 = vld [vmem:[#allocation2 + $0x308] sm:$0xff]  ;;  %v2612_v4 = vld [vmem:[#allocation2 + $0x318] sm:$0xff]  ;;  %v9823_v35 = vpack.c.bf16 %v2607_v20, %v2605_v61  ;;  %v2609_v59 = vld [vmem:[#allocation2 + $0x300] sm:$0xff] }
 0x232   :  { %v9825_v52 = vpack.c.bf16 %v2612_v4, %v2610_v19  ;;  %v2611_v0 = vld [vmem:[#allocation2 + $0x310] sm:$0xff]  ;;  %v2614_v15 = vld [vmem:[#allocation2 + $0x328] sm:$0xff]  ;;  %v2616_v2 = vld [vmem:[#allocation2 + $0x338] sm:$0xff] }
 0x233   :  { %3020 = vmatmul.mubr.bf16.gmra.mxu0 %v9711_v6  ;;  %v9831_v14 = vpack.c.bf16 %v2611_v0, %v2609_v59  ;;  %v9833_v3 = vpack.c.bf16 %v2616_v2, %v2614_v15  ;;  %v2613_v18 = vld [vmem:[#allocation2 + $0x320] sm:$0xff]  ;;  %v2615_v8 = vld [vmem:[#allocation2 + $0x330] sm:$0xff]  ;;  %v2618_v61 = vld [vmem:[#allocation2 + $0x348] sm:$0xff] }
 0x234   :  { %3693 = vmatmul.mubr.bf16.gmra.mxu1 %v9711_v6  ;;  %3029 = vmatprep.mubr.bf16.mxu0 %v9713_v62  ;;  %v2620_v20 = vld [vmem:[#allocation2 + $0x358] sm:$0xff]  ;;  %v9851_v59 = vpack.c.bf16 %v2615_v8, %v2613_v18  ;;  %v2617_v18 = vld [vmem:[#allocation2 + $0x340] sm:$0xff]  ;;  %v2619_v8 = vld [vmem:[#allocation2 + $0x350] sm:$0xff] }
 0x235   :  { %3702 = vmatprep.mubr.bf16.mxu1 %v9713_v62  ;;  %v9859_v0 = vpack.c.bf16 %v2620_v20, %v2618_v61  ;;  %v2622_v61 = vld [vmem:[#allocation2 + $0x368] sm:$0xff]  ;;  %v2624_v20 = vld [vmem:[#allocation2 + $0x378] sm:$0xff] }
 0x23b   :  { %3030 = vmatmul.mubr.bf16.gmra.mxu0 %v9719_v29 }
 0x23c   :  { %3703 = vmatmul.mubr.bf16.gmra.mxu1 %v9719_v29  ;;  %3039 = vmatprep.mubr.bf16.mxu0 %v9721_v38 }
 0x23d   :  { %3712 = vmatprep.mubr.bf16.mxu1 %v9721_v38 }
 0x243   :  { %3040 = vmatmul.mubr.bf16.gmra.mxu0 %v9727_v60 }
 0x244   :  { %3713 = vmatmul.mubr.bf16.gmra.mxu1 %v9727_v60  ;;  %3049 = vmatprep.mubr.bf16.mxu0 %v9729_v46 }
 0x245   :  { %3722 = vmatprep.mubr.bf16.mxu1 %v9729_v46 }
 0x24b   :  { %3050 = vmatmul.mubr.bf16.gmra.mxu0 %v9735_v5 }
 0x24c   :  { %3723 = vmatmul.mubr.bf16.gmra.mxu1 %v9735_v5  ;;  %3059 = vmatprep.mubr.bf16.mxu0 %v9737_v21 }
 0x24d   :  { %3732 = vmatprep.mubr.bf16.mxu1 %v9737_v21 }
 0x253   :  { %3060 = vmatmul.mubr.bf16.gmra.mxu0 %v9743_v58 }
 0x254   :  { %3733 = vmatmul.mubr.bf16.gmra.mxu1 %v9743_v58  ;;  %3069 = vmatprep.mubr.bf16.mxu0 %v9745_v40 }
 0x255   :  { %3742 = vmatprep.mubr.bf16.mxu1 %v9745_v40 }
 0x25b   :  { %3070 = vmatmul.mubr.bf16.gmra.mxu0 %v9751_v22 }
 0x25c   :  { %3743 = vmatmul.mubr.bf16.gmra.mxu1 %v9751_v22  ;;  %3079 = vmatprep.mubr.bf16.mxu0 %v9753_v24 }
 0x25d   :  { %3752 = vmatprep.mubr.bf16.mxu1 %v9753_v24 }
 0x263   :  { %3080 = vmatmul.mubr.bf16.gmra.mxu0 %v9759_v57 }
 0x264   :  { %3753 = vmatmul.mubr.bf16.gmra.mxu1 %v9759_v57  ;;  %3089 = vmatprep.mubr.bf16.mxu0 %v9761_v54 }
 0x265   :  { %3762 = vmatprep.mubr.bf16.mxu1 %v9761_v54 }
 0x26b   :  { %3090 = vmatmul.mubr.bf16.gmra.mxu0 %v9767_v53 }
 0x26c   :  { %3763 = vmatmul.mubr.bf16.gmra.mxu1 %v9767_v53  ;;  %3099 = vmatprep.mubr.bf16.mxu0 %v9769_v32 }
 0x26d   :  { %3772 = vmatprep.mubr.bf16.mxu1 %v9769_v32 }
 0x273   :  { %3100 = vmatmul.mubr.bf16.gmra.mxu0 %v9775_v1 }
 0x274   :  { %3773 = vmatmul.mubr.bf16.gmra.mxu1 %v9775_v1  ;;  %3109 = vmatprep.mubr.bf16.mxu0 %v9777_v13 }
 0x275   :  { %3782 = vmatprep.mubr.bf16.mxu1 %v9777_v13 }
 0x27b   :  { %3110 = vmatmul.mubr.bf16.gmra.mxu0 %v9783_v50 }
 0x27c   :  { %3783 = vmatmul.mubr.bf16.gmra.mxu1 %v9783_v50  ;;  %3119 = vmatprep.mubr.bf16.mxu0 %v9785_v7 }
 0x27d   :  { %3792 = vmatprep.mubr.bf16.mxu1 %v9785_v7 }
 0x283   :  { %3120 = vmatmul.mubr.bf16.gmra.mxu0 %v9791_v9 }
 0x284   :  { %3793 = vmatmul.mubr.bf16.gmra.mxu1 %v9791_v9  ;;  %3129 = vmatprep.mubr.bf16.mxu0 %v9793_v37 }
 0x285   :  { %3802 = vmatprep.mubr.bf16.mxu1 %v9793_v37 }
 0x28b   :  { %3130 = vmatmul.mubr.bf16.gmra.mxu0 %v9799_v47 }
 0x28c   :  { %3803 = vmatmul.mubr.bf16.gmra.mxu1 %v9799_v47  ;;  %3139 = vmatprep.mubr.bf16.mxu0 %v9801_v28 }
 0x28d   :  { %3812 = vmatprep.mubr.bf16.mxu1 %v9801_v28 }
 0x293   :  { %3140 = vmatmul.mubr.bf16.gmra.mxu0 %v9807_v26 }
 0x294   :  { %3813 = vmatmul.mubr.bf16.gmra.mxu1 %v9807_v26  ;;  %3149 = vmatprep.mubr.bf16.mxu0 %v9809_v11 }
 0x295   :  { %3822 = vmatprep.mubr.bf16.mxu1 %v9809_v11 }
 0x29b   :  { %3150 = vmatmul.mubr.bf16.gmra.mxu0 %v9815_v63 }
 0x29c   :  { %3823 = vmatmul.mubr.bf16.gmra.mxu1 %v9815_v63  ;;  %3159 = vmatprep.mubr.bf16.mxu0 %v9817_v51 }
 0x29d   :  { %3832 = vmatprep.mubr.bf16.mxu1 %v9817_v51 }
 0x2a3   :  { %3160 = vmatmul.mubr.bf16.gmra.mxu0 %v9823_v35 }
 0x2a4   :  { %3833 = vmatmul.mubr.bf16.gmra.mxu1 %v9823_v35  ;;  %3169 = vmatprep.mubr.bf16.mxu0 %v9825_v52 }
 0x2a5   :  { %3842 = vmatprep.mubr.bf16.mxu1 %v9825_v52 }
 0x2ab   :  { %v2931_v56 = vpop.f32.mrf.mxu0  ;;  %3170 = vmatmul.mubr.bf16.gmra.mxu0 %v9831_v14 }
 0x2ac   :  { %v3604_v45 = vpop.f32.mrf.mxu1  ;;  %3843 = vmatmul.mubr.bf16.gmra.mxu1 %v9831_v14  ;;  %5461 = vst [vmem:[%s13223_s4] sm:$0xff] %v2931_v56  ;;  %3179 = vmatprep.mubr.bf16.mxu0 %v9833_v3 }
 0x2ad   :  { %5463 = vst [vmem:[%s13223_s4 + $0x10] sm:$0xff] %v3604_v45  ;;  %3852 = vmatprep.mubr.bf16.mxu1 %v9833_v3  ;;  %v2933_v17 = vpop.f32.mrf.mxu0 }
 0x2ae   :  { %v3606_v49 = vpop.f32.mrf.mxu1  ;;  %5462 = vst [vmem:[%s13223_s4 + $0x8] sm:$0xff] %v2933_v17 }
 0x2af   :  { %5464 = vst [vmem:[%s13223_s4 + $0x18] sm:$0xff] %v3606_v49  ;;  %v2935_v19 = vpop.f32.mrf.mxu0 }
 0x2b0   :  { %v3608_v4 = vpop.f32.mrf.mxu1  ;;  %5468 = vst [vmem:[%s13223_s4 + $0x38] sm:$0xff] %v2935_v19 }
 0x2b1   :  { %5470 = vst [vmem:[%s13223_s4 + $0x48] sm:$0xff] %v3608_v4  ;;  %v2937_v15 = vpop.f32.mrf.mxu0 }
 0x2b2   :  { %v3610_v2 = vpop.f32.mrf.mxu1  ;;  %5469 = vst [vmem:[%s13223_s4 + $0x40] sm:$0xff] %v2937_v15  ;;  %v9883_v15 = vpack.c.bf16 %v2619_v8, %v2617_v18 }
 0x2b3   :  { %5471 = vst [vmem:[%s13223_s4 + $0x50] sm:$0xff] %v3610_v2  ;;  %v2941_v56 = vpop.f32.mrf.mxu0  ;;  %3180 = vmatmul.mubr.bf16.gmra.mxu0 %v9851_v59  ;;  %v9891_v2 = vpack.c.bf16 %v2624_v20, %v2622_v61 }
 0x2b4   :  { %v3614_v45 = vpop.f32.mrf.mxu1  ;;  %3853 = vmatmul.mubr.bf16.gmra.mxu1 %v9851_v59  ;;  %5475 = vst [vmem:[%s13223_s4 + $0x70] sm:$0xff] %v2941_v56  ;;  %3189 = vmatprep.mubr.bf16.mxu0 %v9859_v0 }
 0x2b5   :  { %5477 = vst [vmem:[%s13223_s4 + $0x80] sm:$0xff] %v3614_v45  ;;  %3862 = vmatprep.mubr.bf16.mxu1 %v9859_v0  ;;  %v2943_v17 = vpop.f32.mrf.mxu0  ;;  %13544 = vst [vmem:[#allocation7_spill] sm:$0xff] %v9891_v2 }
 0x2b6   :  { %v3616_v49 = vpop.f32.mrf.mxu1  ;;  %5476 = vst [vmem:[%s13223_s4 + $0x78] sm:$0xff] %v2943_v17  ;;  %v2621_v17 = vld [vmem:[#allocation2 + $0x360] sm:$0xff] }
 0x2b7   :  { %5478 = vst [vmem:[%s13223_s4 + $0x88] sm:$0xff] %v3616_v49  ;;  %v2945_v19 = vpop.f32.mrf.mxu0  ;;  %v2623_v49 = vld [vmem:[#allocation2 + $0x370] sm:$0xff] }
 0x2b8   :  { %v3618_v4 = vpop.f32.mrf.mxu1  ;;  %5482 = vst [vmem:[%s13223_s4 + $0xa8] sm:$0xff] %v2945_v19  ;;  %v2626_v19 = vld [vmem:[#allocation2 + $0x388] sm:$0xff] }
 0x2b9   :  { %5484 = vst [vmem:[%s13223_s4 + $0xb8] sm:$0xff] %v3618_v4  ;;  %v2947_v56 = vpop.f32.mrf.mxu0  ;;  %v2628_v4 = vld [vmem:[#allocation2 + $0x398] sm:$0xff] }
 0x2ba   :  { %v3620_v45 = vpop.f32.mrf.mxu1  ;;  %5483 = vst [vmem:[%s13223_s4 + $0xb0] sm:$0xff] %v2947_v56 }
 0x2bb   :  { %5485 = vst [vmem:[%s13223_s4 + $0xc0] sm:$0xff] %v3620_v45  ;;  %v2951_v18 = vpop.f32.mrf.mxu0  ;;  %3190 = vmatmul.mubr.bf16.gmra.mxu0 %v9883_v15 }
 0x2bc   :  { %v3624_v8 = vpop.f32.mrf.mxu1  ;;  %3863 = vmatmul.mubr.bf16.gmra.mxu1 %v9883_v15  ;;  %5489 = vst [vmem:[%s13223_s4 + $0xe0] sm:$0xff] %v2951_v18  ;;  %3199 = vmatprep.mubr.bf16.mxu0 %v9891_v2  ;;  %v9915_v18 = vpack.c.bf16 %v2623_v49, %v2621_v17 }
 0x2bd   :  { %5491 = vst [vmem:[%s13223_s4 + $0xf0] sm:$0xff] %v3624_v8  ;;  %3872 = vmatprep.mubr.bf16.mxu1 %v9891_v2  ;;  %v2953_v61 = vpop.f32.mrf.mxu0  ;;  %v9923_v8 = vpack.c.bf16 %v2628_v4, %v2626_v19 }
 0x2be   :  { %v3626_v20 = vpop.f32.mrf.mxu1  ;;  %5490 = vst [vmem:[%s13223_s4 + $0xe8] sm:$0xff] %v2953_v61  ;;  %13545 = vst [vmem:[#allocation24_spill] sm:$0xff] %v9915_v18 }
 0x2bf   :  { %5492 = vst [vmem:[%s13223_s4 + $0xf8] sm:$0xff] %v3626_v20  ;;  %v2955_v56 = vpop.f32.mrf.mxu0  ;;  %13546 = vst [vmem:[#allocation11_spill] sm:$0xff] %v9923_v8  ;;  %v2627_v20 = vld [vmem:[#allocation2 + $0x390] sm:$0xff] }
 0x2c0   :  { %v3628_v45 = vpop.f32.mrf.mxu1  ;;  %5496 = vst [vmem:[%s13223_s4 + $0x118] sm:$0xff] %v2955_v56  ;;  %v2630_v56 = vld [vmem:[#allocation2 + $0x3a8] sm:$0xff] }
 0x2c1   :  { %5498 = vst [vmem:[%s13223_s4 + $0x128] sm:$0xff] %v3628_v45  ;;  %v2957_v2 = vpop.f32.mrf.mxu0  ;;  %v2632_v45 = vld [vmem:[#allocation2 + $0x3b8] sm:$0xff] }
 0x2c2   :  { %v3630_v61 = vpop.f32.mrf.mxu1  ;;  %5497 = vst [vmem:[%s13223_s4 + $0x120] sm:$0xff] %v2957_v2  ;;  %v2625_v2 = vld [vmem:[#allocation2 + $0x380] sm:$0xff] }
 0x2c3   :  { %5499 = vst [vmem:[%s13223_s4 + $0x130] sm:$0xff] %v3630_v61  ;;  %v2961_v17 = vpop.f32.mrf.mxu0  ;;  %3200 = vmatmul.mubr.bf16.gmra.mxu0 %v9915_v18 }
 0x2c4   :  { %v3634_v49 = vpop.f32.mrf.mxu1  ;;  %3873 = vmatmul.mubr.bf16.gmra.mxu1 %v9915_v18  ;;  %5503 = vst [vmem:[%s13223_s4 + $0x150] sm:$0xff] %v2961_v17  ;;  %3209 = vmatprep.mubr.bf16.mxu0 %v9923_v8 }
 0x2c5   :  { %5505 = vst [vmem:[%s13223_s4 + $0x160] sm:$0xff] %v3634_v49  ;;  %3882 = vmatprep.mubr.bf16.mxu1 %v9923_v8  ;;  %v2963_v19 = vpop.f32.mrf.mxu0  ;;  %v9947_v49 = vpack.c.bf16 %v2627_v20, %v2625_v2  ;;  %v9955_v8 = vpack.c.bf16 %v2632_v45, %v2630_v56 }
 0x2c6   :  { %v3636_v4 = vpop.f32.mrf.mxu1  ;;  %5504 = vst [vmem:[%s13223_s4 + $0x158] sm:$0xff] %v2963_v19 }
 0x2c7   :  { %5506 = vst [vmem:[%s13223_s4 + $0x168] sm:$0xff] %v3636_v4  ;;  %v2965_v61 = vpop.f32.mrf.mxu0  ;;  %13547 = vst [vmem:[#allocation6_spill] sm:$0xff] %v9947_v49  ;;  %v2631_v4 = vld [vmem:[#allocation2 + $0x3b0] sm:$0xff] }
 0x2c8   :  { %v3638_v17 = vpop.f32.mrf.mxu1  ;;  %5510 = vst [vmem:[%s13223_s4 + $0x188] sm:$0xff] %v2965_v61  ;;  %13548 = vst [vmem:[#allocation25_spill] sm:$0xff] %v9955_v8  ;;  %v2634_v61 = vld [vmem:[#allocation2 + $0x3c8] sm:$0xff] }
 0x2c9   :  { %5512 = vst [vmem:[%s13223_s4 + $0x198] sm:$0xff] %v3638_v17  ;;  %v2967_v18 = vpop.f32.mrf.mxu0  ;;  %v2636_v17 = vld [vmem:[#allocation2 + $0x3d8] sm:$0xff] }
 0x2ca   :  { %v3640_v19 = vpop.f32.mrf.mxu1  ;;  %5511 = vst [vmem:[%s13223_s4 + $0x190] sm:$0xff] %v2967_v18  ;;  %v2629_v18 = vld [vmem:[#allocation2 + $0x3a0] sm:$0xff] }
 0x2cb   :  { %5513 = vst [vmem:[%s13223_s4 + $0x1a0] sm:$0xff] %v3640_v19  ;;  %v2971_v2 = vpop.f32.mrf.mxu0  ;;  %3210 = vmatmul.mubr.bf16.gmra.mxu0 %v9947_v49 }
 0x2cc   :  { %v3644_v20 = vpop.f32.mrf.mxu1  ;;  %3883 = vmatmul.mubr.bf16.gmra.mxu1 %v9947_v49  ;;  %5517 = vst [vmem:[%s13223_s4 + $0x1c0] sm:$0xff] %v2971_v2  ;;  %3219 = vmatprep.mubr.bf16.mxu0 %v9955_v8 }
 0x2cd   :  { %5519 = vst [vmem:[%s13223_s4 + $0x1d0] sm:$0xff] %v3644_v20  ;;  %3892 = vmatprep.mubr.bf16.mxu1 %v9955_v8  ;;  %v2973_v56 = vpop.f32.mrf.mxu0  ;;  %v9979_v20 = vpack.c.bf16 %v2631_v4, %v2629_v18  ;;  %v9987_v8 = vpack.c.bf16 %v2636_v17, %v2634_v61 }
 0x2ce   :  { %v3646_v45 = vpop.f32.mrf.mxu1  ;;  %5518 = vst [vmem:[%s13223_s4 + $0x1c8] sm:$0xff] %v2973_v56 }
 0x2cf   :  { %5520 = vst [vmem:[%s13223_s4 + $0x1d8] sm:$0xff] %v3646_v45  ;;  %v2975_v19 = vpop.f32.mrf.mxu0  ;;  %13549 = vst [vmem:[#allocation12_spill] sm:$0xff] %v9979_v20  ;;  %v2635_v45 = vld [vmem:[#allocation2 + $0x3d0] sm:$0xff] }
 0x2d0   :  { %v3648_v2 = vpop.f32.mrf.mxu1  ;;  %5524 = vst [vmem:[%s13223_s4 + $0x1f8] sm:$0xff] %v2975_v19  ;;  %13550 = vst [vmem:[#allocation26_spill] sm:$0xff] %v9987_v8  ;;  %v2638_v19 = vld [vmem:[#allocation2 + $0x3e8] sm:$0xff] }
 0x2d1   :  { %5526 = vst [vmem:[%s13223_s4 + $0x208] sm:$0xff] %v3648_v2  ;;  %v2977_v49 = vpop.f32.mrf.mxu0  ;;  %v2640_v2 = vld [vmem:[#allocation2 + $0x3f8] sm:$0xff] }
 0x2d2   :  { %v3650_v56 = vpop.f32.mrf.mxu1  ;;  %5525 = vst [vmem:[%s13223_s4 + $0x200] sm:$0xff] %v2977_v49  ;;  %v2633_v49 = vld [vmem:[#allocation2 + $0x3c0] sm:$0xff] }
 0x2d3   :  { %5527 = vst [vmem:[%s13223_s4 + $0x210] sm:$0xff] %v3650_v56  ;;  %v2981_v18 = vpop.f32.mrf.mxu0  ;;  %3220 = vmatmul.mubr.bf16.gmra.mxu0 %v9979_v20 }
 0x2d4   :  { %v3654_v4 = vpop.f32.mrf.mxu1  ;;  %3893 = vmatmul.mubr.bf16.gmra.mxu1 %v9979_v20  ;;  %5531 = vst [vmem:[%s13223_s4 + $0x230] sm:$0xff] %v2981_v18  ;;  %3229 = vmatprep.mubr.bf16.mxu0 %v9987_v8 }
 0x2d5   :  { %5533 = vst [vmem:[%s13223_s4 + $0x240] sm:$0xff] %v3654_v4  ;;  %3902 = vmatprep.mubr.bf16.mxu1 %v9987_v8  ;;  %v2983_v61 = vpop.f32.mrf.mxu0  ;;  %v10011_v4 = vpack.c.bf16 %v2635_v45, %v2633_v49  ;;  %v10019_v8 = vpack.c.bf16 %v2640_v2, %v2638_v19 }
 0x2d6   :  { %v3656_v17 = vpop.f32.mrf.mxu1  ;;  %5532 = vst [vmem:[%s13223_s4 + $0x238] sm:$0xff] %v2983_v61 }
 0x2d7   :  { %5534 = vst [vmem:[%s13223_s4 + $0x248] sm:$0xff] %v3656_v17  ;;  %v2985_v56 = vpop.f32.mrf.mxu0  ;;  %13551 = vst [vmem:[#allocation28_spill] sm:$0xff] %v10011_v4  ;;  %v2639_v17 = vld [vmem:[#allocation2 + $0x3f0] sm:$0xff] }
 0x2d8   :  { %v3658_v18 = vpop.f32.mrf.mxu1  ;;  %5538 = vst [vmem:[%s13223_s4 + $0x268] sm:$0xff] %v2985_v56  ;;  %13552 = vst [vmem:[#allocation5_spill] sm:$0xff] %v10019_v8  ;;  %v2642_v56 = vld [vmem:[#allocation2 + $0x408] sm:$0xff] }
 0x2d9   :  { %5540 = vst [vmem:[%s13223_s4 + $0x278] sm:$0xff] %v3658_v18  ;;  %v2987_v20 = vpop.f32.mrf.mxu0  ;;  %v2644_v18 = vld [vmem:[#allocation2 + $0x418] sm:$0xff] }
 0x2da   :  { %v3660_v61 = vpop.f32.mrf.mxu1  ;;  %5539 = vst [vmem:[%s13223_s4 + $0x270] sm:$0xff] %v2987_v20  ;;  %v2637_v20 = vld [vmem:[#allocation2 + $0x3e0] sm:$0xff] }
 0x2db   :  { %5541 = vst [vmem:[%s13223_s4 + $0x280] sm:$0xff] %v3660_v61  ;;  %v2991_v49 = vpop.f32.mrf.mxu0  ;;  %3230 = vmatmul.mubr.bf16.gmra.mxu0 %v10011_v4 }
 0x2dc   :  { %v3664_v45 = vpop.f32.mrf.mxu1  ;;  %3903 = vmatmul.mubr.bf16.gmra.mxu1 %v10011_v4  ;;  %5545 = vst [vmem:[%s13223_s4 + $0x2a0] sm:$0xff] %v2991_v49  ;;  %3239 = vmatprep.mubr.bf16.mxu0 %v10019_v8 }
 0x2dd   :  { %5547 = vst [vmem:[%s13223_s4 + $0x2b0] sm:$0xff] %v3664_v45  ;;  %3912 = vmatprep.mubr.bf16.mxu1 %v10019_v8  ;;  %v2993_v19 = vpop.f32.mrf.mxu0  ;;  %v10043_v45 = vpack.c.bf16 %v2639_v17, %v2637_v20  ;;  %v10051_v8 = vpack.c.bf16 %v2644_v18, %v2642_v56 }
 0x2de   :  { %v3666_v2 = vpop.f32.mrf.mxu1  ;;  %5546 = vst [vmem:[%s13223_s4 + $0x2a8] sm:$0xff] %v2993_v19 }
 0x2df   :  { %5548 = vst [vmem:[%s13223_s4 + $0x2b8] sm:$0xff] %v3666_v2  ;;  %v2995_v61 = vpop.f32.mrf.mxu0  ;;  %13553 = vst [vmem:[#allocation29_spill] sm:$0xff] %v10043_v45  ;;  %v2643_v2 = vld [vmem:[#allocation2 + $0x410] sm:$0xff] }
 0x2e0   :  { %v3668_v49 = vpop.f32.mrf.mxu1  ;;  %5552 = vst [vmem:[%s13223_s4 + $0x2d8] sm:$0xff] %v2995_v61  ;;  %13554 = vst [vmem:[#allocation8_spill] sm:$0xff] %v10051_v8  ;;  %v2646_v61 = vld [vmem:[#allocation2 + $0x428] sm:$0xff] }
 0x2e1   :  { %5554 = vst [vmem:[%s13223_s4 + $0x2e8] sm:$0xff] %v3668_v49  ;;  %v2997_v4 = vpop.f32.mrf.mxu0  ;;  %v2648_v49 = vld [vmem:[#allocation2 + $0x438] sm:$0xff] }
 0x2e2   :  { %v3670_v19 = vpop.f32.mrf.mxu1  ;;  %5553 = vst [vmem:[%s13223_s4 + $0x2e0] sm:$0xff] %v2997_v4  ;;  %v2641_v4 = vld [vmem:[#allocation2 + $0x400] sm:$0xff] }
 0x2e3   :  { %5555 = vst [vmem:[%s13223_s4 + $0x2f0] sm:$0xff] %v3670_v19  ;;  %v3001_v20 = vpop.f32.mrf.mxu0  ;;  %3240 = vmatmul.mubr.bf16.gmra.mxu0 %v10043_v45 }
 0x2e4   :  { %v3674_v17 = vpop.f32.mrf.mxu1  ;;  %3913 = vmatmul.mubr.bf16.gmra.mxu1 %v10043_v45  ;;  %5559 = vst [vmem:[%s13223_s4 + $0x310] sm:$0xff] %v3001_v20  ;;  %3249 = vmatprep.mubr.bf16.mxu0 %v10051_v8 }
 0x2e5   :  { %5561 = vst [vmem:[%s13223_s4 + $0x320] sm:$0xff] %v3674_v17  ;;  %3922 = vmatprep.mubr.bf16.mxu1 %v10051_v8  ;;  %v3003_v56 = vpop.f32.mrf.mxu0  ;;  %v10075_v17 = vpack.c.bf16 %v2643_v2, %v2641_v4  ;;  %v10083_v8 = vpack.c.bf16 %v2648_v49, %v2646_v61 }
 0x2e6   :  { %v3676_v18 = vpop.f32.mrf.mxu1  ;;  %5560 = vst [vmem:[%s13223_s4 + $0x318] sm:$0xff] %v3003_v56 }
 0x2e7   :  { %5562 = vst [vmem:[%s13223_s4 + $0x328] sm:$0xff] %v3676_v18  ;;  %v3005_v19 = vpop.f32.mrf.mxu0  ;;  %13555 = vst [vmem:[#allocation15_spill] sm:$0xff] %v10075_v17  ;;  %v2647_v18 = vld [vmem:[#allocation2 + $0x430] sm:$0xff] }
 0x2e8   :  { %v3678_v20 = vpop.f32.mrf.mxu1  ;;  %5566 = vst [vmem:[%s13223_s4 + $0x348] sm:$0xff] %v3005_v19  ;;  %13556 = vst [vmem:[#allocation27_spill] sm:$0xff] %v10083_v8  ;;  %v2650_v19 = vld [vmem:[#allocation2 + $0x448] sm:$0xff] }
 0x2e9   :  { %5568 = vst [vmem:[%s13223_s4 + $0x358] sm:$0xff] %v3678_v20  ;;  %v3007_v45 = vpop.f32.mrf.mxu0  ;;  %v2652_v20 = vld [vmem:[#allocation2 + $0x458] sm:$0xff] }
 0x2ea   :  { %v3680_v56 = vpop.f32.mrf.mxu1  ;;  %5567 = vst [vmem:[%s13223_s4 + $0x350] sm:$0xff] %v3007_v45  ;;  %v2645_v45 = vld [vmem:[#allocation2 + $0x420] sm:$0xff] }
 0x2eb   :  { %5569 = vst [vmem:[%s13223_s4 + $0x360] sm:$0xff] %v3680_v56  ;;  %v3011_v4 = vpop.f32.mrf.mxu0  ;;  %3250 = vmatmul.mubr.bf16.gmra.mxu0 %v10075_v17 }
 0x2ec   :  { %v3684_v2 = vpop.f32.mrf.mxu1  ;;  %3923 = vmatmul.mubr.bf16.gmra.mxu1 %v10075_v17  ;;  %5573 = vst [vmem:[%s13223_s4 + $0x380] sm:$0xff] %v3011_v4  ;;  %3259 = vmatprep.mubr.bf16.mxu0 %v10083_v8 }
 0x2ed   :  { %5575 = vst [vmem:[%s13223_s4 + $0x390] sm:$0xff] %v3684_v2  ;;  %3932 = vmatprep.mubr.bf16.mxu1 %v10083_v8  ;;  %v3013_v61 = vpop.f32.mrf.mxu0  ;;  %v10107_v2 = vpack.c.bf16 %v2647_v18, %v2645_v45  ;;  %v10115_v8 = vpack.c.bf16 %v2652_v20, %v2650_v19 }
 0x2ee   :  { %v3686_v49 = vpop.f32.mrf.mxu1  ;;  %5574 = vst [vmem:[%s13223_s4 + $0x388] sm:$0xff] %v3013_v61 }
 0x2ef   :  { %5576 = vst [vmem:[%s13223_s4 + $0x398] sm:$0xff] %v3686_v49  ;;  %v3015_v56 = vpop.f32.mrf.mxu0  ;;  %13557 = vst [vmem:[#allocation21_spill] sm:$0xff] %v10107_v2  ;;  %v2651_v49 = vld [vmem:[#allocation2 + $0x450] sm:$0xff] }
 0x2f0   :  { %v3688_v4 = vpop.f32.mrf.mxu1  ;;  %5580 = vst [vmem:[%s13223_s4 + $0x3b8] sm:$0xff] %v3015_v56  ;;  %13558 = vst [vmem:[#allocation9_spill] sm:$0xff] %v10115_v8  ;;  %v2654_v56 = vld [vmem:[#allocation2 + $0x468] sm:$0xff] }
 0x2f1   :  { %5582 = vst [vmem:[%s13223_s4 + $0x3c8] sm:$0xff] %v3688_v4  ;;  %v3017_v17 = vpop.f32.mrf.mxu0  ;;  %v2656_v4 = vld [vmem:[#allocation2 + $0x478] sm:$0xff] }
 0x2f2   :  { %v3690_v61 = vpop.f32.mrf.mxu1  ;;  %5581 = vst [vmem:[%s13223_s4 + $0x3c0] sm:$0xff] %v3017_v17  ;;  %v2649_v17 = vld [vmem:[#allocation2 + $0x440] sm:$0xff] }
 0x2f3   :  { %5583 = vst [vmem:[%s13223_s4 + $0x3d0] sm:$0xff] %v3690_v61  ;;  %v3021_v45 = vpop.f32.mrf.mxu0  ;;  %3260 = vmatmul.mubr.bf16.gmra.mxu0 %v10107_v2 }
 0x2f4   :  { %v3694_v18 = vpop.f32.mrf.mxu1  ;;  %3933 = vmatmul.mubr.bf16.gmra.mxu1 %v10107_v2  ;;  %5587 = vst [vmem:[%s13223_s4 + $0x3f0] sm:$0xff] %v3021_v45  ;;  %3269 = vmatprep.mubr.bf16.mxu0 %v10115_v8 }
 0x2f5   :  { %5589 = vst [vmem:[%s13223_s4 + $0x400] sm:$0xff] %v3694_v18  ;;  %3942 = vmatprep.mubr.bf16.mxu1 %v10115_v8  ;;  %v3023_v19 = vpop.f32.mrf.mxu0  ;;  %v10139_v18 = vpack.c.bf16 %v2651_v49, %v2649_v17  ;;  %v10147_v8 = vpack.c.bf16 %v2656_v4, %v2654_v56 }
 0x2f6   :  { %v3696_v20 = vpop.f32.mrf.mxu1  ;;  %5588 = vst [vmem:[%s13223_s4 + $0x3f8] sm:$0xff] %v3023_v19 }
 0x2f7   :  { %5590 = vst [vmem:[%s13223_s4 + $0x408] sm:$0xff] %v3696_v20  ;;  %v3025_v61 = vpop.f32.mrf.mxu0  ;;  %13559 = vst [vmem:[#allocation30_spill] sm:$0xff] %v10139_v18  ;;  %v2655_v20 = vld [vmem:[#allocation2 + $0x470] sm:$0xff] }
 0x2f8   :  { %v3698_v45 = vpop.f32.mrf.mxu1  ;;  %5594 = vst [vmem:[%s13223_s4 + $0x428] sm:$0xff] %v3025_v61  ;;  %13560 = vst [vmem:[#allocation16_spill] sm:$0xff] %v10147_v8  ;;  %v2658_v61 = vld [vmem:[#allocation2 + $0x488] sm:$0xff] }
 0x2f9   :  { %5596 = vst [vmem:[%s13223_s4 + $0x438] sm:$0xff] %v3698_v45  ;;  %v3027_v2 = vpop.f32.mrf.mxu0  ;;  %v2660_v45 = vld [vmem:[#allocation2 + $0x498] sm:$0xff] }
 0x2fa   :  { %v3700_v19 = vpop.f32.mrf.mxu1  ;;  %5595 = vst [vmem:[%s13223_s4 + $0x430] sm:$0xff] %v3027_v2  ;;  %v2653_v2 = vld [vmem:[#allocation2 + $0x460] sm:$0xff] }
 0x2fb   :  { %5597 = vst [vmem:[%s13223_s4 + $0x440] sm:$0xff] %v3700_v19  ;;  %v3031_v17 = vpop.f32.mrf.mxu0  ;;  %3270 = vmatmul.mubr.bf16.gmra.mxu0 %v10139_v18 }
 0x2fc   :  { %v3704_v49 = vpop.f32.mrf.mxu1  ;;  %3943 = vmatmul.mubr.bf16.gmra.mxu1 %v10139_v18  ;;  %5601 = vst [vmem:[%s13223_s4 + $0x460] sm:$0xff] %v3031_v17  ;;  %3279 = vmatprep.mubr.bf16.mxu0 %v10147_v8 }
 0x2fd   :  { %5603 = vst [vmem:[%s13223_s4 + $0x470] sm:$0xff] %v3704_v49  ;;  %3952 = vmatprep.mubr.bf16.mxu1 %v10147_v8  ;;  %v3033_v56 = vpop.f32.mrf.mxu0  ;;  %v10171_v49 = vpack.c.bf16 %v2655_v20, %v2653_v2  ;;  %v10179_v8 = vpack.c.bf16 %v2660_v45, %v2658_v61 }
 0x2fe   :  { %v3706_v4 = vpop.f32.mrf.mxu1  ;;  %5602 = vst [vmem:[%s13223_s4 + $0x468] sm:$0xff] %v3033_v56 }
 0x2ff   :  { %5604 = vst [vmem:[%s13223_s4 + $0x478] sm:$0xff] %v3706_v4  ;;  %v3035_v19 = vpop.f32.mrf.mxu0  ;;  %13561 = vst [vmem:[#allocation14_spill] sm:$0xff] %v10171_v49  ;;  %v2659_v4 = vld [vmem:[#allocation2 + $0x490] sm:$0xff] }
 0x300   :  { %v3708_v17 = vpop.f32.mrf.mxu1  ;;  %5608 = vst [vmem:[%s13223_s4 + $0x498] sm:$0xff] %v3035_v19  ;;  %13562 = vst [vmem:[#allocation22_spill] sm:$0xff] %v10179_v8  ;;  %v2662_v19 = vld [vmem:[#allocation2 + $0x4a8] sm:$0xff] }
 0x301   :  { %5610 = vst [vmem:[%s13223_s4 + $0x4a8] sm:$0xff] %v3708_v17  ;;  %v3037_v18 = vpop.f32.mrf.mxu0  ;;  %v2664_v17 = vld [vmem:[#allocation2 + $0x4b8] sm:$0xff] }
 0x302   :  { %v3710_v56 = vpop.f32.mrf.mxu1  ;;  %5609 = vst [vmem:[%s13223_s4 + $0x4a0] sm:$0xff] %v3037_v18  ;;  %v2657_v18 = vld [vmem:[#allocation2 + $0x480] sm:$0xff] }
 0x303   :  { %5611 = vst [vmem:[%s13223_s4 + $0x4b0] sm:$0xff] %v3710_v56  ;;  %v3041_v2 = vpop.f32.mrf.mxu0  ;;  %3280 = vmatmul.mubr.bf16.gmra.mxu0 %v10171_v49 }
 0x304   :  { %v3714_v20 = vpop.f32.mrf.mxu1  ;;  %3953 = vmatmul.mubr.bf16.gmra.mxu1 %v10171_v49  ;;  %5615 = vst [vmem:[%s13223_s4 + $0x4d0] sm:$0xff] %v3041_v2  ;;  %3289 = vmatprep.mubr.bf16.mxu0 %v10179_v8 }
 0x305   :  { %5617 = vst [vmem:[%s13223_s4 + $0x4e0] sm:$0xff] %v3714_v20  ;;  %3962 = vmatprep.mubr.bf16.mxu1 %v10179_v8  ;;  %v3043_v61 = vpop.f32.mrf.mxu0  ;;  %v10203_v20 = vpack.c.bf16 %v2659_v4, %v2657_v18  ;;  %v10211_v8 = vpack.c.bf16 %v2664_v17, %v2662_v19 }
 0x306   :  { %v3716_v45 = vpop.f32.mrf.mxu1  ;;  %5616 = vst [vmem:[%s13223_s4 + $0x4d8] sm:$0xff] %v3043_v61 }
 0x307   :  { %5618 = vst [vmem:[%s13223_s4 + $0x4e8] sm:$0xff] %v3716_v45  ;;  %v3045_v56 = vpop.f32.mrf.mxu0  ;;  %13563 = vst [vmem:[#allocation23_spill] sm:$0xff] %v10203_v20  ;;  %v2663_v45 = vld [vmem:[#allocation2 + $0x4b0] sm:$0xff] }
 0x308   :  { %v3718_v2 = vpop.f32.mrf.mxu1  ;;  %5622 = vst [vmem:[%s13223_s4 + $0x508] sm:$0xff] %v3045_v56  ;;  %13564 = vst [vmem:[#allocation10_spill] sm:$0xff] %v10211_v8  ;;  %v2666_v56 = vld [vmem:[#allocation2 + $0x4c8] sm:$0xff] }
 0x309   :  { %5624 = vst [vmem:[%s13223_s4 + $0x518] sm:$0xff] %v3718_v2  ;;  %v3047_v49 = vpop.f32.mrf.mxu0  ;;  %v2668_v2 = vld [vmem:[#allocation2 + $0x4d8] sm:$0xff] }
 0x30a   :  { %v3720_v61 = vpop.f32.mrf.mxu1  ;;  %5623 = vst [vmem:[%s13223_s4 + $0x510] sm:$0xff] %v3047_v49  ;;  %v2661_v49 = vld [vmem:[#allocation2 + $0x4a0] sm:$0xff] }
 0x30b   :  { %5625 = vst [vmem:[%s13223_s4 + $0x520] sm:$0xff] %v3720_v61  ;;  %v3051_v18 = vpop.f32.mrf.mxu0  ;;  %3290 = vmatmul.mubr.bf16.gmra.mxu0 %v10203_v20 }
 0x30c   :  { %v3724_v4 = vpop.f32.mrf.mxu1  ;;  %3963 = vmatmul.mubr.bf16.gmra.mxu1 %v10203_v20  ;;  %5629 = vst [vmem:[%s13223_s4 + $0x540] sm:$0xff] %v3051_v18  ;;  %3299 = vmatprep.mubr.bf16.mxu0 %v10211_v8 }
 0x30d   :  { %5631 = vst [vmem:[%s13223_s4 + $0x550] sm:$0xff] %v3724_v4  ;;  %3972 = vmatprep.mubr.bf16.mxu1 %v10211_v8  ;;  %v3053_v19 = vpop.f32.mrf.mxu0  ;;  %v10235_v4 = vpack.c.bf16 %v2663_v45, %v2661_v49  ;;  %v10243_v8 = vpack.c.bf16 %v2668_v2, %v2666_v56 }
 0x30e   :  { %v3726_v17 = vpop.f32.mrf.mxu1  ;;  %5630 = vst [vmem:[%s13223_s4 + $0x548] sm:$0xff] %v3053_v19 }
 0x30f   :  { %5632 = vst [vmem:[%s13223_s4 + $0x558] sm:$0xff] %v3726_v17  ;;  %v3055_v61 = vpop.f32.mrf.mxu0  ;;  %13565 = vst [vmem:[#allocation19_spill] sm:$0xff] %v10235_v4  ;;  %v2667_v17 = vld [vmem:[#allocation2 + $0x4d0] sm:$0xff] }
 0x310   :  { %v3728_v18 = vpop.f32.mrf.mxu1  ;;  %5636 = vst [vmem:[%s13223_s4 + $0x578] sm:$0xff] %v3055_v61  ;;  %13566 = vst [vmem:[#allocation18_spill] sm:$0xff] %v10243_v8  ;;  %v2670_v61 = vld [vmem:[#allocation2 + $0x4e8] sm:$0xff] }
 0x311   :  { %5638 = vst [vmem:[%s13223_s4 + $0x588] sm:$0xff] %v3728_v18  ;;  %v3057_v20 = vpop.f32.mrf.mxu0  ;;  %v2672_v18 = vld [vmem:[#allocation2 + $0x4f8] sm:$0xff] }
 0x312   :  { %v3730_v19 = vpop.f32.mrf.mxu1  ;;  %5637 = vst [vmem:[%s13223_s4 + $0x580] sm:$0xff] %v3057_v20  ;;  %v2665_v20 = vld [vmem:[#allocation2 + $0x4c0] sm:$0xff] }
 0x313   :  { %5639 = vst [vmem:[%s13223_s4 + $0x590] sm:$0xff] %v3730_v19  ;;  %v3061_v49 = vpop.f32.mrf.mxu0  ;;  %3300 = vmatmul.mubr.bf16.gmra.mxu0 %v10235_v4 }
 0x314   :  { %v3734_v45 = vpop.f32.mrf.mxu1  ;;  %3973 = vmatmul.mubr.bf16.gmra.mxu1 %v10235_v4  ;;  %5643 = vst [vmem:[%s13223_s4 + $0x5b0] sm:$0xff] %v3061_v49  ;;  %3309 = vmatprep.mubr.bf16.mxu0 %v10243_v8 }
 0x315   :  { %5645 = vst [vmem:[%s13223_s4 + $0x5c0] sm:$0xff] %v3734_v45  ;;  %3982 = vmatprep.mubr.bf16.mxu1 %v10243_v8  ;;  %v3063_v56 = vpop.f32.mrf.mxu0  ;;  %v10267_v45 = vpack.c.bf16 %v2667_v17, %v2665_v20  ;;  %v10275_v8 = vpack.c.bf16 %v2672_v18, %v2670_v61 }
 0x316   :  { %v3736_v2 = vpop.f32.mrf.mxu1  ;;  %5644 = vst [vmem:[%s13223_s4 + $0x5b8] sm:$0xff] %v3063_v56 }
 0x317   :  { %5646 = vst [vmem:[%s13223_s4 + $0x5c8] sm:$0xff] %v3736_v2  ;;  %v3065_v19 = vpop.f32.mrf.mxu0  ;;  %13567 = vst [vmem:[#allocation17_spill] sm:$0xff] %v10267_v45  ;;  %v2671_v2 = vld [vmem:[#allocation2 + $0x4f0] sm:$0xff] }
 0x318   :  { %v3738_v49 = vpop.f32.mrf.mxu1  ;;  %5650 = vst [vmem:[%s13223_s4 + $0x5e8] sm:$0xff] %v3065_v19  ;;  %13568 = vst [vmem:[#allocation13_spill] sm:$0xff] %v10275_v8  ;;  %v2674_v19 = vld [vmem:[#allocation2 + $0x508] sm:$0xff] }
 0x319   :  { %5652 = vst [vmem:[%s13223_s4 + $0x5f8] sm:$0xff] %v3738_v49  ;;  %v3067_v4 = vpop.f32.mrf.mxu0  ;;  %v2676_v49 = vld [vmem:[#allocation2 + $0x518] sm:$0xff] }
 0x31a   :  { %v3740_v56 = vpop.f32.mrf.mxu1  ;;  %5651 = vst [vmem:[%s13223_s4 + $0x5f0] sm:$0xff] %v3067_v4  ;;  %v2669_v4 = vld [vmem:[#allocation2 + $0x4e0] sm:$0xff] }
 0x31b   :  { %5653 = vst [vmem:[%s13223_s4 + $0x600] sm:$0xff] %v3740_v56  ;;  %v3071_v20 = vpop.f32.mrf.mxu0  ;;  %3310 = vmatmul.mubr.bf16.gmra.mxu0 %v10267_v45 }
 0x31c   :  { %v3744_v17 = vpop.f32.mrf.mxu1  ;;  %3983 = vmatmul.mubr.bf16.gmra.mxu1 %v10267_v45  ;;  %5657 = vst [vmem:[%s13223_s4 + $0x620] sm:$0xff] %v3071_v20  ;;  %3319 = vmatprep.mubr.bf16.mxu0 %v10275_v8 }
 0x31d   :  { %5659 = vst [vmem:[%s13223_s4 + $0x630] sm:$0xff] %v3744_v17  ;;  %3992 = vmatprep.mubr.bf16.mxu1 %v10275_v8  ;;  %v3073_v61 = vpop.f32.mrf.mxu0  ;;  %v10299_v17 = vpack.c.bf16 %v2671_v2, %v2669_v4  ;;  %v10307_v8 = vpack.c.bf16 %v2676_v49, %v2674_v19 }
 0x31e   :  { %v3746_v18 = vpop.f32.mrf.mxu1  ;;  %5658 = vst [vmem:[%s13223_s4 + $0x628] sm:$0xff] %v3073_v61 }
 0x31f   :  { %5660 = vst [vmem:[%s13223_s4 + $0x638] sm:$0xff] %v3746_v18  ;;  %v3075_v56 = vpop.f32.mrf.mxu0  ;;  %13569 = vst [vmem:[#allocation33_spill] sm:$0xff] %v10299_v17  ;;  %v2675_v18 = vld [vmem:[#allocation2 + $0x510] sm:$0xff] }
 0x320   :  { %v3748_v20 = vpop.f32.mrf.mxu1  ;;  %5664 = vst [vmem:[%s13223_s4 + $0x658] sm:$0xff] %v3075_v56  ;;  %13570 = vst [vmem:[#allocation31_spill] sm:$0xff] %v10307_v8  ;;  %v2678_v56 = vld [vmem:[#allocation2 + $0x528] sm:$0xff] }
 0x321   :  { %5666 = vst [vmem:[%s13223_s4 + $0x668] sm:$0xff] %v3748_v20  ;;  %v3077_v45 = vpop.f32.mrf.mxu0  ;;  %v2680_v20 = vld [vmem:[#allocation2 + $0x538] sm:$0xff] }
 0x322   :  { %v3750_v61 = vpop.f32.mrf.mxu1  ;;  %5665 = vst [vmem:[%s13223_s4 + $0x660] sm:$0xff] %v3077_v45  ;;  %v2673_v45 = vld [vmem:[#allocation2 + $0x500] sm:$0xff] }
 0x323   :  { %5667 = vst [vmem:[%s13223_s4 + $0x670] sm:$0xff] %v3750_v61  ;;  %v3081_v4 = vpop.f32.mrf.mxu0  ;;  %3320 = vmatmul.mubr.bf16.gmra.mxu0 %v10299_v17 }
 0x324   :  { %v3754_v2 = vpop.f32.mrf.mxu1  ;;  %3993 = vmatmul.mubr.bf16.gmra.mxu1 %v10299_v17  ;;  %5671 = vst [vmem:[%s13223_s4 + $0x690] sm:$0xff] %v3081_v4  ;;  %3329 = vmatprep.mubr.bf16.mxu0 %v10307_v8 }
 0x325   :  { %5673 = vst [vmem:[%s13223_s4 + $0x6a0] sm:$0xff] %v3754_v2  ;;  %4002 = vmatprep.mubr.bf16.mxu1 %v10307_v8  ;;  %v3083_v19 = vpop.f32.mrf.mxu0  ;;  %v10331_v2 = vpack.c.bf16 %v2675_v18, %v2673_v45  ;;  %v10339_v8 = vpack.c.bf16 %v2680_v20, %v2678_v56 }
 0x326   :  { %v3756_v49 = vpop.f32.mrf.mxu1  ;;  %5672 = vst [vmem:[%s13223_s4 + $0x698] sm:$0xff] %v3083_v19 }
 0x327   :  { %5674 = vst [vmem:[%s13223_s4 + $0x6a8] sm:$0xff] %v3756_v49  ;;  %v3085_v61 = vpop.f32.mrf.mxu0  ;;  %13571 = vst [vmem:[#allocation32_spill] sm:$0xff] %v10331_v2  ;;  %v2679_v49 = vld [vmem:[#allocation2 + $0x530] sm:$0xff] }
 0x328   :  { %v3758_v4 = vpop.f32.mrf.mxu1  ;;  %5678 = vst [vmem:[%s13223_s4 + $0x6c8] sm:$0xff] %v3085_v61  ;;  %13572 = vst [vmem:[#allocation34_spill] sm:$0xff] %v10339_v8  ;;  %v2682_v61 = vld [vmem:[#allocation2 + $0x548] sm:$0xff] }
 0x329   :  { %5680 = vst [vmem:[%s13223_s4 + $0x6d8] sm:$0xff] %v3758_v4  ;;  %v3087_v17 = vpop.f32.mrf.mxu0  ;;  %v2684_v4 = vld [vmem:[#allocation2 + $0x558] sm:$0xff] }
 0x32a   :  { %v3760_v19 = vpop.f32.mrf.mxu1  ;;  %5679 = vst [vmem:[%s13223_s4 + $0x6d0] sm:$0xff] %v3087_v17  ;;  %v2677_v17 = vld [vmem:[#allocation2 + $0x520] sm:$0xff] }
 0x32b   :  { %5681 = vst [vmem:[%s13223_s4 + $0x6e0] sm:$0xff] %v3760_v19  ;;  %v3091_v45 = vpop.f32.mrf.mxu0  ;;  %3330 = vmatmul.mubr.bf16.gmra.mxu0 %v10331_v2 }
 0x32c   :  { %v3764_v18 = vpop.f32.mrf.mxu1  ;;  %4003 = vmatmul.mubr.bf16.gmra.mxu1 %v10331_v2  ;;  %5685 = vst [vmem:[%s13223_s4 + $0x700] sm:$0xff] %v3091_v45  ;;  %3339 = vmatprep.mubr.bf16.mxu0 %v10339_v8 }
 0x32d   :  { %5687 = vst [vmem:[%s13223_s4 + $0x710] sm:$0xff] %v3764_v18  ;;  %4012 = vmatprep.mubr.bf16.mxu1 %v10339_v8  ;;  %v3093_v56 = vpop.f32.mrf.mxu0  ;;  %v10363_v18 = vpack.c.bf16 %v2679_v49, %v2677_v17  ;;  %v10371_v8 = vpack.c.bf16 %v2684_v4, %v2682_v61 }
 0x32e   :  { %v3766_v20 = vpop.f32.mrf.mxu1  ;;  %5686 = vst [vmem:[%s13223_s4 + $0x708] sm:$0xff] %v3093_v56 }
 0x32f   :  { %5688 = vst [vmem:[%s13223_s4 + $0x718] sm:$0xff] %v3766_v20  ;;  %v3095_v19 = vpop.f32.mrf.mxu0  ;;  %13573 = vst [vmem:[#allocation35_spill] sm:$0xff] %v10363_v18  ;;  %v2683_v20 = vld [vmem:[#allocation2 + $0x550] sm:$0xff] }
 0x330   :  { %v3768_v45 = vpop.f32.mrf.mxu1  ;;  %5692 = vst [vmem:[%s13223_s4 + $0x738] sm:$0xff] %v3095_v19  ;;  %13574 = vst [vmem:[#allocation36_spill] sm:$0xff] %v10371_v8  ;;  %v2686_v19 = vld [vmem:[#allocation2 + $0x568] sm:$0xff] }
 0x331   :  { %5694 = vst [vmem:[%s13223_s4 + $0x748] sm:$0xff] %v3768_v45  ;;  %v3097_v2 = vpop.f32.mrf.mxu0  ;;  %v2688_v45 = vld [vmem:[#allocation2 + $0x578] sm:$0xff] }
 0x332   :  { %v3770_v56 = vpop.f32.mrf.mxu1  ;;  %5693 = vst [vmem:[%s13223_s4 + $0x740] sm:$0xff] %v3097_v2  ;;  %v2681_v2 = vld [vmem:[#allocation2 + $0x540] sm:$0xff] }
 0x333   :  { %5695 = vst [vmem:[%s13223_s4 + $0x750] sm:$0xff] %v3770_v56  ;;  %v3101_v17 = vpop.f32.mrf.mxu0  ;;  %3340 = vmatmul.mubr.bf16.gmra.mxu0 %v10363_v18 }
 0x334   :  { %v3774_v49 = vpop.f32.mrf.mxu1  ;;  %4013 = vmatmul.mubr.bf16.gmra.mxu1 %v10363_v18  ;;  %5699 = vst [vmem:[%s13223_s4 + $0x770] sm:$0xff] %v3101_v17  ;;  %3349 = vmatprep.mubr.bf16.mxu0 %v10371_v8 }
 0x335   :  { %5701 = vst [vmem:[%s13223_s4 + $0x780] sm:$0xff] %v3774_v49  ;;  %4022 = vmatprep.mubr.bf16.mxu1 %v10371_v8  ;;  %v3103_v61 = vpop.f32.mrf.mxu0  ;;  %v10395_v49 = vpack.c.bf16 %v2683_v20, %v2681_v2  ;;  %v10403_v8 = vpack.c.bf16 %v2688_v45, %v2686_v19 }
 0x336   :  { %v3776_v4 = vpop.f32.mrf.mxu1  ;;  %5700 = vst [vmem:[%s13223_s4 + $0x778] sm:$0xff] %v3103_v61 }
 0x337   :  { %5702 = vst [vmem:[%s13223_s4 + $0x788] sm:$0xff] %v3776_v4  ;;  %v3105_v56 = vpop.f32.mrf.mxu0  ;;  %13575 = vst [vmem:[#allocation37_spill] sm:$0xff] %v10395_v49  ;;  %v2687_v4 = vld [vmem:[#allocation2 + $0x570] sm:$0xff] }
 0x338   :  { %v3778_v17 = vpop.f32.mrf.mxu1  ;;  %5706 = vst [vmem:[%s13223_s4 + $0x7a8] sm:$0xff] %v3105_v56  ;;  %13576 = vst [vmem:[#allocation38_spill] sm:$0xff] %v10403_v8  ;;  %v2690_v56 = vld [vmem:[#allocation2 + $0x588] sm:$0xff] }
 0x339   :  { %5708 = vst [vmem:[%s13223_s4 + $0x7b8] sm:$0xff] %v3778_v17  ;;  %v3107_v18 = vpop.f32.mrf.mxu0  ;;  %v2692_v17 = vld [vmem:[#allocation2 + $0x598] sm:$0xff] }
 0x33a   :  { %v3780_v61 = vpop.f32.mrf.mxu1  ;;  %5707 = vst [vmem:[%s13223_s4 + $0x7b0] sm:$0xff] %v3107_v18  ;;  %v2685_v18 = vld [vmem:[#allocation2 + $0x560] sm:$0xff] }
 0x33b   :  { %5709 = vst [vmem:[%s13223_s4 + $0x7c0] sm:$0xff] %v3780_v61  ;;  %v3111_v2 = vpop.f32.mrf.mxu0  ;;  %3350 = vmatmul.mubr.bf16.gmra.mxu0 %v10395_v49 }
 0x33c   :  { %v3784_v20 = vpop.f32.mrf.mxu1  ;;  %4023 = vmatmul.mubr.bf16.gmra.mxu1 %v10395_v49  ;;  %5713 = vst [vmem:[%s13223_s4 + $0x7e0] sm:$0xff] %v3111_v2  ;;  %3359 = vmatprep.mubr.bf16.mxu0 %v10403_v8 }
 0x33d   :  { %5715 = vst [vmem:[%s13223_s4 + $0x7f0] sm:$0xff] %v3784_v20  ;;  %4032 = vmatprep.mubr.bf16.mxu1 %v10403_v8  ;;  %v3113_v19 = vpop.f32.mrf.mxu0  ;;  %v10427_v20 = vpack.c.bf16 %v2687_v4, %v2685_v18  ;;  %v10435_v8 = vpack.c.bf16 %v2692_v17, %v2690_v56 }
 0x33e   :  { %v3786_v45 = vpop.f32.mrf.mxu1  ;;  %5714 = vst [vmem:[%s13223_s4 + $0x7e8] sm:$0xff] %v3113_v19 }
 0x33f   :  { %5716 = vst [vmem:[%s13223_s4 + $0x7f8] sm:$0xff] %v3786_v45  ;;  %v3115_v61 = vpop.f32.mrf.mxu0  ;;  %13577 = vst [vmem:[#allocation39_spill] sm:$0xff] %v10427_v20  ;;  %v2691_v45 = vld [vmem:[#allocation2 + $0x590] sm:$0xff] }
 0x340   :  { %v3788_v2 = vpop.f32.mrf.mxu1  ;;  %5720 = vst [vmem:[%s13223_s4 + $0x818] sm:$0xff] %v3115_v61  ;;  %13578 = vst [vmem:[#allocation40_spill] sm:$0xff] %v10435_v8  ;;  %v2694_v61 = vld [vmem:[#allocation2 + $0x5a8] sm:$0xff] }
 0x341   :  { %5722 = vst [vmem:[%s13223_s4 + $0x828] sm:$0xff] %v3788_v2  ;;  %v3117_v49 = vpop.f32.mrf.mxu0  ;;  %v2696_v2 = vld [vmem:[#allocation2 + $0x5b8] sm:$0xff] }
 0x342   :  { %v3790_v19 = vpop.f32.mrf.mxu1  ;;  %5721 = vst [vmem:[%s13223_s4 + $0x820] sm:$0xff] %v3117_v49  ;;  %v2689_v49 = vld [vmem:[#allocation2 + $0x580] sm:$0xff] }
 0x343   :  { %5723 = vst [vmem:[%s13223_s4 + $0x830] sm:$0xff] %v3790_v19  ;;  %v3121_v18 = vpop.f32.mrf.mxu0  ;;  %3360 = vmatmul.mubr.bf16.gmra.mxu0 %v10427_v20 }
 0x344   :  { %v3794_v4 = vpop.f32.mrf.mxu1  ;;  %4033 = vmatmul.mubr.bf16.gmra.mxu1 %v10427_v20  ;;  %5727 = vst [vmem:[%s13223_s4 + $0x850] sm:$0xff] %v3121_v18  ;;  %3369 = vmatprep.mubr.bf16.mxu0 %v10435_v8 }
 0x345   :  { %5729 = vst [vmem:[%s13223_s4 + $0x860] sm:$0xff] %v3794_v4  ;;  %4042 = vmatprep.mubr.bf16.mxu1 %v10435_v8  ;;  %v3123_v56 = vpop.f32.mrf.mxu0  ;;  %v10459_v4 = vpack.c.bf16 %v2691_v45, %v2689_v49  ;;  %v10467_v8 = vpack.c.bf16 %v2696_v2, %v2694_v61 }
 0x346   :  { %v3796_v17 = vpop.f32.mrf.mxu1  ;;  %5728 = vst [vmem:[%s13223_s4 + $0x858] sm:$0xff] %v3123_v56 }
 0x347   :  { %5730 = vst [vmem:[%s13223_s4 + $0x868] sm:$0xff] %v3796_v17  ;;  %v3125_v19 = vpop.f32.mrf.mxu0  ;;  %13579 = vst [vmem:[#allocation41_spill] sm:$0xff] %v10459_v4  ;;  %v2695_v17 = vld [vmem:[#allocation2 + $0x5b0] sm:$0xff] }
 0x348   :  { %v3798_v18 = vpop.f32.mrf.mxu1  ;;  %5734 = vst [vmem:[%s13223_s4 + $0x888] sm:$0xff] %v3125_v19  ;;  %13580 = vst [vmem:[#allocation42_spill] sm:$0xff] %v10467_v8  ;;  %v2698_v19 = vld [vmem:[#allocation2 + $0x5c8] sm:$0xff] }
 0x349   :  { %5736 = vst [vmem:[%s13223_s4 + $0x898] sm:$0xff] %v3798_v18  ;;  %v3127_v20 = vpop.f32.mrf.mxu0  ;;  %v2700_v18 = vld [vmem:[#allocation2 + $0x5d8] sm:$0xff] }
 0x34a   :  { %v3800_v56 = vpop.f32.mrf.mxu1  ;;  %5735 = vst [vmem:[%s13223_s4 + $0x890] sm:$0xff] %v3127_v20  ;;  %v2693_v20 = vld [vmem:[#allocation2 + $0x5a0] sm:$0xff] }
 0x34b   :  { %5737 = vst [vmem:[%s13223_s4 + $0x8a0] sm:$0xff] %v3800_v56  ;;  %v3131_v49 = vpop.f32.mrf.mxu0  ;;  %3370 = vmatmul.mubr.bf16.gmra.mxu0 %v10459_v4 }
 0x34c   :  { %v3804_v45 = vpop.f32.mrf.mxu1  ;;  %4043 = vmatmul.mubr.bf16.gmra.mxu1 %v10459_v4  ;;  %5741 = vst [vmem:[%s13223_s4 + $0x8c0] sm:$0xff] %v3131_v49  ;;  %3379 = vmatprep.mubr.bf16.mxu0 %v10467_v8 }
 0x34d   :  { %5743 = vst [vmem:[%s13223_s4 + $0x8d0] sm:$0xff] %v3804_v45  ;;  %4052 = vmatprep.mubr.bf16.mxu1 %v10467_v8  ;;  %v3133_v61 = vpop.f32.mrf.mxu0  ;;  %v10491_v45 = vpack.c.bf16 %v2695_v17, %v2693_v20  ;;  %v10499_v8 = vpack.c.bf16 %v2700_v18, %v2698_v19 }
 0x34e   :  { %v3806_v2 = vpop.f32.mrf.mxu1  ;;  %5742 = vst [vmem:[%s13223_s4 + $0x8c8] sm:$0xff] %v3133_v61 }
 0x34f   :  { %5744 = vst [vmem:[%s13223_s4 + $0x8d8] sm:$0xff] %v3806_v2  ;;  %v3135_v56 = vpop.f32.mrf.mxu0  ;;  %13581 = vst [vmem:[#allocation43_spill] sm:$0xff] %v10491_v45  ;;  %v2699_v2 = vld [vmem:[#allocation2 + $0x5d0] sm:$0xff] }
 0x350   :  { %v3808_v49 = vpop.f32.mrf.mxu1  ;;  %5748 = vst [vmem:[%s13223_s4 + $0x8f8] sm:$0xff] %v3135_v56  ;;  %13582 = vst [vmem:[#allocation44_spill] sm:$0xff] %v10499_v8  ;;  %v2702_v56 = vld [vmem:[#allocation2 + $0x5e8] sm:$0xff] }
 0x351   :  { %5750 = vst [vmem:[%s13223_s4 + $0x908] sm:$0xff] %v3808_v49  ;;  %v3137_v4 = vpop.f32.mrf.mxu0  ;;  %v2704_v49 = vld [vmem:[#allocation2 + $0x5f8] sm:$0xff] }
 0x352   :  { %v3810_v61 = vpop.f32.mrf.mxu1  ;;  %5749 = vst [vmem:[%s13223_s4 + $0x900] sm:$0xff] %v3137_v4  ;;  %v2697_v4 = vld [vmem:[#allocation2 + $0x5c0] sm:$0xff] }
 0x353   :  { %5751 = vst [vmem:[%s13223_s4 + $0x910] sm:$0xff] %v3810_v61  ;;  %v3141_v20 = vpop.f32.mrf.mxu0  ;;  %3380 = vmatmul.mubr.bf16.gmra.mxu0 %v10491_v45 }
 0x354   :  { %v3814_v17 = vpop.f32.mrf.mxu1  ;;  %4053 = vmatmul.mubr.bf16.gmra.mxu1 %v10491_v45  ;;  %5755 = vst [vmem:[%s13223_s4 + $0x930] sm:$0xff] %v3141_v20  ;;  %3389 = vmatprep.mubr.bf16.mxu0 %v10499_v8 }
 0x355   :  { %5757 = vst [vmem:[%s13223_s4 + $0x940] sm:$0xff] %v3814_v17  ;;  %4062 = vmatprep.mubr.bf16.mxu1 %v10499_v8  ;;  %v3143_v19 = vpop.f32.mrf.mxu0  ;;  %v10523_v17 = vpack.c.bf16 %v2699_v2, %v2697_v4  ;;  %v10531_v8 = vpack.c.bf16 %v2704_v49, %v2702_v56 }
 0x356   :  { %v3816_v18 = vpop.f32.mrf.mxu1  ;;  %5756 = vst [vmem:[%s13223_s4 + $0x938] sm:$0xff] %v3143_v19 }
 0x357   :  { %5758 = vst [vmem:[%s13223_s4 + $0x948] sm:$0xff] %v3816_v18  ;;  %v3145_v61 = vpop.f32.mrf.mxu0  ;;  %13583 = vst [vmem:[#allocation45_spill] sm:$0xff] %v10523_v17  ;;  %v2703_v18 = vld [vmem:[#allocation2 + $0x5f0] sm:$0xff] }
 0x358   :  { %v3818_v20 = vpop.f32.mrf.mxu1  ;;  %5762 = vst [vmem:[%s13223_s4 + $0x968] sm:$0xff] %v3145_v61  ;;  %13584 = vst [vmem:[#allocation46_spill] sm:$0xff] %v10531_v8  ;;  %v2706_v61 = vld [vmem:[#allocation2 + $0x608] sm:$0xff] }
 0x359   :  { %5764 = vst [vmem:[%s13223_s4 + $0x978] sm:$0xff] %v3818_v20  ;;  %v3147_v45 = vpop.f32.mrf.mxu0  ;;  %v2708_v20 = vld [vmem:[#allocation2 + $0x618] sm:$0xff] }
 0x35a   :  { %v3820_v19 = vpop.f32.mrf.mxu1  ;;  %5763 = vst [vmem:[%s13223_s4 + $0x970] sm:$0xff] %v3147_v45  ;;  %v2701_v45 = vld [vmem:[#allocation2 + $0x5e0] sm:$0xff] }
 0x35b   :  { %5765 = vst [vmem:[%s13223_s4 + $0x980] sm:$0xff] %v3820_v19  ;;  %v3151_v4 = vpop.f32.mrf.mxu0  ;;  %3390 = vmatmul.mubr.bf16.gmra.mxu0 %v10523_v17 }
 0x35c   :  { %v3824_v2 = vpop.f32.mrf.mxu1  ;;  %4063 = vmatmul.mubr.bf16.gmra.mxu1 %v10523_v17  ;;  %5769 = vst [vmem:[%s13223_s4 + $0x9a0] sm:$0xff] %v3151_v4  ;;  %3399 = vmatprep.mubr.bf16.mxu0 %v10531_v8 }
 0x35d   :  { %5771 = vst [vmem:[%s13223_s4 + $0x9b0] sm:$0xff] %v3824_v2  ;;  %4072 = vmatprep.mubr.bf16.mxu1 %v10531_v8  ;;  %v3153_v56 = vpop.f32.mrf.mxu0  ;;  %v10555_v2 = vpack.c.bf16 %v2703_v18, %v2701_v45  ;;  %v10563_v8 = vpack.c.bf16 %v2708_v20, %v2706_v61 }
 0x35e   :  { %v3826_v49 = vpop.f32.mrf.mxu1  ;;  %5770 = vst [vmem:[%s13223_s4 + $0x9a8] sm:$0xff] %v3153_v56 }
 0x35f   :  { %5772 = vst [vmem:[%s13223_s4 + $0x9b8] sm:$0xff] %v3826_v49  ;;  %v3155_v19 = vpop.f32.mrf.mxu0  ;;  %13585 = vst [vmem:[#allocation47_spill] sm:$0xff] %v10555_v2  ;;  %v2707_v49 = vld [vmem:[#allocation2 + $0x610] sm:$0xff] }
 0x360   :  { %v3828_v4 = vpop.f32.mrf.mxu1  ;;  %5776 = vst [vmem:[%s13223_s4 + $0x9d8] sm:$0xff] %v3155_v19  ;;  %13586 = vst [vmem:[#allocation48_spill] sm:$0xff] %v10563_v8  ;;  %v2710_v19 = vld [vmem:[#allocation2 + $0x628] sm:$0xff] }
 0x361   :  { %5778 = vst [vmem:[%s13223_s4 + $0x9e8] sm:$0xff] %v3828_v4  ;;  %v3157_v17 = vpop.f32.mrf.mxu0  ;;  %v2712_v4 = vld [vmem:[#allocation2 + $0x638] sm:$0xff] }
 0x362   :  { %v3830_v56 = vpop.f32.mrf.mxu1  ;;  %5777 = vst [vmem:[%s13223_s4 + $0x9e0] sm:$0xff] %v3157_v17  ;;  %v2705_v17 = vld [vmem:[#allocation2 + $0x600] sm:$0xff] }
 0x363   :  { %5779 = vst [vmem:[%s13223_s4 + $0x9f0] sm:$0xff] %v3830_v56  ;;  %v3161_v45 = vpop.f32.mrf.mxu0  ;;  %3400 = vmatmul.mubr.bf16.gmra.mxu0 %v10555_v2 }
 0x364   :  { %v3834_v18 = vpop.f32.mrf.mxu1  ;;  %4073 = vmatmul.mubr.bf16.gmra.mxu1 %v10555_v2  ;;  %5783 = vst [vmem:[%s13223_s4 + $0xa10] sm:$0xff] %v3161_v45  ;;  %3409 = vmatprep.mubr.bf16.mxu0 %v10563_v8 }
 0x365   :  { %5785 = vst [vmem:[%s13223_s4 + $0xa20] sm:$0xff] %v3834_v18  ;;  %4082 = vmatprep.mubr.bf16.mxu1 %v10563_v8  ;;  %v3163_v61 = vpop.f32.mrf.mxu0  ;;  %v10587_v18 = vpack.c.bf16 %v2707_v49, %v2705_v17  ;;  %v10595_v8 = vpack.c.bf16 %v2712_v4, %v2710_v19 }
 0x366   :  { %v3836_v20 = vpop.f32.mrf.mxu1  ;;  %5784 = vst [vmem:[%s13223_s4 + $0xa18] sm:$0xff] %v3163_v61 }
 0x367   :  { %5786 = vst [vmem:[%s13223_s4 + $0xa28] sm:$0xff] %v3836_v20  ;;  %v3165_v56 = vpop.f32.mrf.mxu0  ;;  %13587 = vst [vmem:[#allocation49_spill] sm:$0xff] %v10587_v18  ;;  %v2711_v20 = vld [vmem:[#allocation2 + $0x630] sm:$0xff] }
 0x368   :  { %v3838_v45 = vpop.f32.mrf.mxu1  ;;  %5790 = vst [vmem:[%s13223_s4 + $0xa48] sm:$0xff] %v3165_v56  ;;  %13588 = vst [vmem:[#allocation50_spill] sm:$0xff] %v10595_v8  ;;  %v2714_v56 = vld [vmem:[#allocation2 + $0x648] sm:$0xff] }
 0x369   :  { %5792 = vst [vmem:[%s13223_s4 + $0xa58] sm:$0xff] %v3838_v45  ;;  %v3167_v2 = vpop.f32.mrf.mxu0  ;;  %v2716_v45 = vld [vmem:[#allocation2 + $0x658] sm:$0xff] }
 0x36a   :  { %v3840_v61 = vpop.f32.mrf.mxu1  ;;  %5791 = vst [vmem:[%s13223_s4 + $0xa50] sm:$0xff] %v3167_v2  ;;  %v2709_v2 = vld [vmem:[#allocation2 + $0x620] sm:$0xff] }
 0x36b   :  { %5793 = vst [vmem:[%s13223_s4 + $0xa60] sm:$0xff] %v3840_v61  ;;  %v3171_v17 = vpop.f32.mrf.mxu0  ;;  %3410 = vmatmul.mubr.bf16.gmra.mxu0 %v10587_v18 }
 0x36c   :  { %v3844_v49 = vpop.f32.mrf.mxu1  ;;  %4083 = vmatmul.mubr.bf16.gmra.mxu1 %v10587_v18  ;;  %5797 = vst [vmem:[%s13223_s4 + $0xa80] sm:$0xff] %v3171_v17  ;;  %3419 = vmatprep.mubr.bf16.mxu0 %v10595_v8 }
 0x36d   :  { %5799 = vst [vmem:[%s13223_s4 + $0xa90] sm:$0xff] %v3844_v49  ;;  %4092 = vmatprep.mubr.bf16.mxu1 %v10595_v8  ;;  %v3173_v19 = vpop.f32.mrf.mxu0  ;;  %v10619_v49 = vpack.c.bf16 %v2711_v20, %v2709_v2  ;;  %v10627_v8 = vpack.c.bf16 %v2716_v45, %v2714_v56 }
 0x36e   :  { %v3846_v4 = vpop.f32.mrf.mxu1  ;;  %5798 = vst [vmem:[%s13223_s4 + $0xa88] sm:$0xff] %v3173_v19 }
 0x36f   :  { %5800 = vst [vmem:[%s13223_s4 + $0xa98] sm:$0xff] %v3846_v4  ;;  %v3175_v61 = vpop.f32.mrf.mxu0  ;;  %13589 = vst [vmem:[#allocation51_spill] sm:$0xff] %v10619_v49  ;;  %v2715_v4 = vld [vmem:[#allocation2 + $0x650] sm:$0xff] }
 0x370   :  { %v3848_v17 = vpop.f32.mrf.mxu1  ;;  %5804 = vst [vmem:[%s13223_s4 + $0xab8] sm:$0xff] %v3175_v61  ;;  %13590 = vst [vmem:[#allocation52_spill] sm:$0xff] %v10627_v8  ;;  %v2718_v61 = vld [vmem:[#allocation2 + $0x668] sm:$0xff] }
 0x371   :  { %5806 = vst [vmem:[%s13223_s4 + $0xac8] sm:$0xff] %v3848_v17  ;;  %v3177_v18 = vpop.f32.mrf.mxu0  ;;  %v2720_v17 = vld [vmem:[#allocation2 + $0x678] sm:$0xff] }
 0x372   :  { %v3850_v19 = vpop.f32.mrf.mxu1  ;;  %5805 = vst [vmem:[%s13223_s4 + $0xac0] sm:$0xff] %v3177_v18  ;;  %v2713_v18 = vld [vmem:[#allocation2 + $0x640] sm:$0xff] }
 0x373   :  { %5807 = vst [vmem:[%s13223_s4 + $0xad0] sm:$0xff] %v3850_v19  ;;  %v3181_v2 = vpop.f32.mrf.mxu0  ;;  %3420 = vmatmul.mubr.bf16.gmra.mxu0 %v10619_v49 }
 0x374   :  { %v3854_v20 = vpop.f32.mrf.mxu1  ;;  %4093 = vmatmul.mubr.bf16.gmra.mxu1 %v10619_v49  ;;  %5811 = vst [vmem:[%s13223_s4 + $0xaf0] sm:$0xff] %v3181_v2  ;;  %3429 = vmatprep.mubr.bf16.mxu0 %v10627_v8 }
 0x375   :  { %5813 = vst [vmem:[%s13223_s4 + $0xb00] sm:$0xff] %v3854_v20  ;;  %4102 = vmatprep.mubr.bf16.mxu1 %v10627_v8  ;;  %v3183_v56 = vpop.f32.mrf.mxu0  ;;  %v10651_v20 = vpack.c.bf16 %v2715_v4, %v2713_v18  ;;  %v10659_v8 = vpack.c.bf16 %v2720_v17, %v2718_v61 }
 0x376   :  { %v3856_v45 = vpop.f32.mrf.mxu1  ;;  %5812 = vst [vmem:[%s13223_s4 + $0xaf8] sm:$0xff] %v3183_v56 }
 0x377   :  { %5814 = vst [vmem:[%s13223_s4 + $0xb08] sm:$0xff] %v3856_v45  ;;  %v3185_v19 = vpop.f32.mrf.mxu0  ;;  %13591 = vst [vmem:[#allocation53_spill] sm:$0xff] %v10651_v20  ;;  %v2719_v45 = vld [vmem:[#allocation2 + $0x670] sm:$0xff] }
 0x378   :  { %v3858_v2 = vpop.f32.mrf.mxu1  ;;  %5818 = vst [vmem:[%s13223_s4 + $0xb28] sm:$0xff] %v3185_v19  ;;  %13592 = vst [vmem:[#allocation54_spill] sm:$0xff] %v10659_v8  ;;  %v2722_v19 = vld [vmem:[#allocation2 + $0x688] sm:$0xff] }
 0x379   :  { %5820 = vst [vmem:[%s13223_s4 + $0xb38] sm:$0xff] %v3858_v2  ;;  %v3187_v49 = vpop.f32.mrf.mxu0  ;;  %v2724_v2 = vld [vmem:[#allocation2 + $0x698] sm:$0xff] }
 0x37a   :  { %v3860_v56 = vpop.f32.mrf.mxu1  ;;  %5819 = vst [vmem:[%s13223_s4 + $0xb30] sm:$0xff] %v3187_v49  ;;  %v2717_v49 = vld [vmem:[#allocation2 + $0x660] sm:$0xff] }
 0x37b   :  { %5821 = vst [vmem:[%s13223_s4 + $0xb40] sm:$0xff] %v3860_v56  ;;  %v3191_v18 = vpop.f32.mrf.mxu0  ;;  %3430 = vmatmul.mubr.bf16.gmra.mxu0 %v10651_v20 }
 0x37c   :  { %v3864_v4 = vpop.f32.mrf.mxu1  ;;  %4103 = vmatmul.mubr.bf16.gmra.mxu1 %v10651_v20  ;;  %5825 = vst [vmem:[%s13223_s4 + $0xb60] sm:$0xff] %v3191_v18  ;;  %3439 = vmatprep.mubr.bf16.mxu0 %v10659_v8 }
 0x37d   :  { %5827 = vst [vmem:[%s13223_s4 + $0xb70] sm:$0xff] %v3864_v4  ;;  %4112 = vmatprep.mubr.bf16.mxu1 %v10659_v8  ;;  %v3193_v61 = vpop.f32.mrf.mxu0  ;;  %v10683_v4 = vpack.c.bf16 %v2719_v45, %v2717_v49  ;;  %v10691_v8 = vpack.c.bf16 %v2724_v2, %v2722_v19 }
 0x37e   :  { %v3866_v17 = vpop.f32.mrf.mxu1  ;;  %5826 = vst [vmem:[%s13223_s4 + $0xb68] sm:$0xff] %v3193_v61 }
 0x37f   :  { %5828 = vst [vmem:[%s13223_s4 + $0xb78] sm:$0xff] %v3866_v17  ;;  %v3195_v56 = vpop.f32.mrf.mxu0  ;;  %13593 = vst [vmem:[#allocation55_spill] sm:$0xff] %v10683_v4  ;;  %v2723_v17 = vld [vmem:[#allocation2 + $0x690] sm:$0xff] }
 0x380   :  { %v3868_v18 = vpop.f32.mrf.mxu1  ;;  %5832 = vst [vmem:[%s13223_s4 + $0xb98] sm:$0xff] %v3195_v56  ;;  %13594 = vst [vmem:[#allocation56_spill] sm:$0xff] %v10691_v8  ;;  %v2726_v56 = vld [vmem:[#allocation2 + $0x6a8] sm:$0xff] }
 0x381   :  { %5834 = vst [vmem:[%s13223_s4 + $0xba8] sm:$0xff] %v3868_v18  ;;  %v3197_v20 = vpop.f32.mrf.mxu0  ;;  %v2728_v18 = vld [vmem:[#allocation2 + $0x6b8] sm:$0xff] }
 0x382   :  { %v3870_v61 = vpop.f32.mrf.mxu1  ;;  %5833 = vst [vmem:[%s13223_s4 + $0xba0] sm:$0xff] %v3197_v20  ;;  %v2721_v20 = vld [vmem:[#allocation2 + $0x680] sm:$0xff] }
 0x383   :  { %5835 = vst [vmem:[%s13223_s4 + $0xbb0] sm:$0xff] %v3870_v61  ;;  %v3201_v49 = vpop.f32.mrf.mxu0  ;;  %3440 = vmatmul.mubr.bf16.gmra.mxu0 %v10683_v4 }
 0x384   :  { %v3874_v45 = vpop.f32.mrf.mxu1  ;;  %4113 = vmatmul.mubr.bf16.gmra.mxu1 %v10683_v4  ;;  %5839 = vst [vmem:[%s13223_s4 + $0xbd0] sm:$0xff] %v3201_v49  ;;  %3449 = vmatprep.mubr.bf16.mxu0 %v10691_v8 }
 0x385   :  { %5841 = vst [vmem:[%s13223_s4 + $0xbe0] sm:$0xff] %v3874_v45  ;;  %4122 = vmatprep.mubr.bf16.mxu1 %v10691_v8  ;;  %v3203_v19 = vpop.f32.mrf.mxu0  ;;  %v10715_v45 = vpack.c.bf16 %v2723_v17, %v2721_v20  ;;  %v10723_v8 = vpack.c.bf16 %v2728_v18, %v2726_v56 }
 0x386   :  { %v3876_v2 = vpop.f32.mrf.mxu1  ;;  %5840 = vst [vmem:[%s13223_s4 + $0xbd8] sm:$0xff] %v3203_v19 }
 0x387   :  { %5842 = vst [vmem:[%s13223_s4 + $0xbe8] sm:$0xff] %v3876_v2  ;;  %v3205_v61 = vpop.f32.mrf.mxu0  ;;  %13595 = vst [vmem:[#allocation57_spill] sm:$0xff] %v10715_v45  ;;  %v2727_v2 = vld [vmem:[#allocation2 + $0x6b0] sm:$0xff] }
 0x388   :  { %v3878_v49 = vpop.f32.mrf.mxu1  ;;  %5846 = vst [vmem:[%s13223_s4 + $0xc08] sm:$0xff] %v3205_v61  ;;  %13596 = vst [vmem:[#allocation58_spill] sm:$0xff] %v10723_v8  ;;  %v2730_v61 = vld [vmem:[#allocation2 + $0x6c8] sm:$0xff] }
 0x389   :  { %5848 = vst [vmem:[%s13223_s4 + $0xc18] sm:$0xff] %v3878_v49  ;;  %v3207_v4 = vpop.f32.mrf.mxu0  ;;  %v2732_v49 = vld [vmem:[#allocation2 + $0x6d8] sm:$0xff] }
 0x38a   :  { %v3880_v19 = vpop.f32.mrf.mxu1  ;;  %5847 = vst [vmem:[%s13223_s4 + $0xc10] sm:$0xff] %v3207_v4  ;;  %v2725_v4 = vld [vmem:[#allocation2 + $0x6a0] sm:$0xff] }
 0x38b   :  { %5849 = vst [vmem:[%s13223_s4 + $0xc20] sm:$0xff] %v3880_v19  ;;  %v3211_v20 = vpop.f32.mrf.mxu0  ;;  %3450 = vmatmul.mubr.bf16.gmra.mxu0 %v10715_v45 }
 0x38c   :  { %v3884_v17 = vpop.f32.mrf.mxu1  ;;  %4123 = vmatmul.mubr.bf16.gmra.mxu1 %v10715_v45  ;;  %5853 = vst [vmem:[%s13223_s4 + $0xc40] sm:$0xff] %v3211_v20  ;;  %3459 = vmatprep.mubr.bf16.mxu0 %v10723_v8 }
 0x38d   :  { %5855 = vst [vmem:[%s13223_s4 + $0xc50] sm:$0xff] %v3884_v17  ;;  %4132 = vmatprep.mubr.bf16.mxu1 %v10723_v8  ;;  %v3213_v56 = vpop.f32.mrf.mxu0  ;;  %v10747_v17 = vpack.c.bf16 %v2727_v2, %v2725_v4  ;;  %v10755_v8 = vpack.c.bf16 %v2732_v49, %v2730_v61 }
 0x38e   :  { %v3886_v18 = vpop.f32.mrf.mxu1  ;;  %5854 = vst [vmem:[%s13223_s4 + $0xc48] sm:$0xff] %v3213_v56 }
 0x38f   :  { %5856 = vst [vmem:[%s13223_s4 + $0xc58] sm:$0xff] %v3886_v18  ;;  %v3215_v19 = vpop.f32.mrf.mxu0  ;;  %13597 = vst [vmem:[#allocation59_spill] sm:$0xff] %v10747_v17  ;;  %v2731_v18 = vld [vmem:[#allocation2 + $0x6d0] sm:$0xff] }
 0x390   :  { %v3888_v20 = vpop.f32.mrf.mxu1  ;;  %5860 = vst [vmem:[%s13223_s4 + $0xc78] sm:$0xff] %v3215_v19  ;;  %13598 = vst [vmem:[#allocation60_spill] sm:$0xff] %v10755_v8  ;;  %v2734_v19 = vld [vmem:[#allocation2 + $0x6e8] sm:$0xff] }
 0x391   :  { %5862 = vst [vmem:[%s13223_s4 + $0xc88] sm:$0xff] %v3888_v20  ;;  %v3217_v45 = vpop.f32.mrf.mxu0  ;;  %v2736_v20 = vld [vmem:[#allocation2 + $0x6f8] sm:$0xff] }
 0x392   :  { %v3890_v56 = vpop.f32.mrf.mxu1  ;;  %5861 = vst [vmem:[%s13223_s4 + $0xc80] sm:$0xff] %v3217_v45  ;;  %v2729_v45 = vld [vmem:[#allocation2 + $0x6c0] sm:$0xff] }
 0x393   :  { %5863 = vst [vmem:[%s13223_s4 + $0xc90] sm:$0xff] %v3890_v56  ;;  %v3221_v4 = vpop.f32.mrf.mxu0  ;;  %3460 = vmatmul.mubr.bf16.gmra.mxu0 %v10747_v17 }
 0x394   :  { %v3894_v2 = vpop.f32.mrf.mxu1  ;;  %4133 = vmatmul.mubr.bf16.gmra.mxu1 %v10747_v17  ;;  %5867 = vst [vmem:[%s13223_s4 + $0xcb0] sm:$0xff] %v3221_v4  ;;  %3469 = vmatprep.mubr.bf16.mxu0 %v10755_v8 }
 0x395   :  { %5869 = vst [vmem:[%s13223_s4 + $0xcc0] sm:$0xff] %v3894_v2  ;;  %4142 = vmatprep.mubr.bf16.mxu1 %v10755_v8  ;;  %v3223_v61 = vpop.f32.mrf.mxu0  ;;  %v10779_v2 = vpack.c.bf16 %v2731_v18, %v2729_v45  ;;  %v10787_v8 = vpack.c.bf16 %v2736_v20, %v2734_v19 }
 0x396   :  { %v3896_v49 = vpop.f32.mrf.mxu1  ;;  %5868 = vst [vmem:[%s13223_s4 + $0xcb8] sm:$0xff] %v3223_v61 }
 0x397   :  { %5870 = vst [vmem:[%s13223_s4 + $0xcc8] sm:$0xff] %v3896_v49  ;;  %v3225_v56 = vpop.f32.mrf.mxu0  ;;  %13599 = vst [vmem:[#allocation61_spill] sm:$0xff] %v10779_v2  ;;  %v2735_v49 = vld [vmem:[#allocation2 + $0x6f0] sm:$0xff] }
 0x398   :  { %v3898_v4 = vpop.f32.mrf.mxu1  ;;  %5874 = vst [vmem:[%s13223_s4 + $0xce8] sm:$0xff] %v3225_v56  ;;  %13600 = vst [vmem:[#allocation62_spill] sm:$0xff] %v10787_v8  ;;  %v2738_v56 = vld [vmem:[#allocation2 + $0x708] sm:$0xff] }
 0x399   :  { %5876 = vst [vmem:[%s13223_s4 + $0xcf8] sm:$0xff] %v3898_v4  ;;  %v3227_v17 = vpop.f32.mrf.mxu0  ;;  %v2740_v4 = vld [vmem:[#allocation2 + $0x718] sm:$0xff] }
 0x39a   :  { %v3900_v61 = vpop.f32.mrf.mxu1  ;;  %5875 = vst [vmem:[%s13223_s4 + $0xcf0] sm:$0xff] %v3227_v17  ;;  %v2733_v17 = vld [vmem:[#allocation2 + $0x6e0] sm:$0xff] }
 0x39b   :  { %5877 = vst [vmem:[%s13223_s4 + $0xd00] sm:$0xff] %v3900_v61  ;;  %v3231_v45 = vpop.f32.mrf.mxu0  ;;  %3470 = vmatmul.mubr.bf16.gmra.mxu0 %v10779_v2 }
 0x39c   :  { %v3904_v18 = vpop.f32.mrf.mxu1  ;;  %4143 = vmatmul.mubr.bf16.gmra.mxu1 %v10779_v2  ;;  %5881 = vst [vmem:[%s13223_s4 + $0xd20] sm:$0xff] %v3231_v45  ;;  %3479 = vmatprep.mubr.bf16.mxu0 %v10787_v8 }
 0x39d   :  { %5883 = vst [vmem:[%s13223_s4 + $0xd30] sm:$0xff] %v3904_v18  ;;  %4152 = vmatprep.mubr.bf16.mxu1 %v10787_v8  ;;  %v3233_v19 = vpop.f32.mrf.mxu0  ;;  %v10811_v18 = vpack.c.bf16 %v2735_v49, %v2733_v17  ;;  %v10819_v8 = vpack.c.bf16 %v2740_v4, %v2738_v56 }
 0x39e   :  { %v3906_v20 = vpop.f32.mrf.mxu1  ;;  %5882 = vst [vmem:[%s13223_s4 + $0xd28] sm:$0xff] %v3233_v19 }
 0x39f   :  { %5884 = vst [vmem:[%s13223_s4 + $0xd38] sm:$0xff] %v3906_v20  ;;  %v3235_v61 = vpop.f32.mrf.mxu0  ;;  %13601 = vst [vmem:[#allocation63_spill] sm:$0xff] %v10811_v18  ;;  %v2739_v20 = vld [vmem:[#allocation2 + $0x710] sm:$0xff] }
 0x3a0   :  { %v3908_v45 = vpop.f32.mrf.mxu1  ;;  %5888 = vst [vmem:[%s13223_s4 + $0xd58] sm:$0xff] %v3235_v61  ;;  %13602 = vst [vmem:[#allocation64_spill] sm:$0xff] %v10819_v8  ;;  %v2742_v61 = vld [vmem:[#allocation2 + $0x728] sm:$0xff] }
 0x3a1   :  { %5890 = vst [vmem:[%s13223_s4 + $0xd68] sm:$0xff] %v3908_v45  ;;  %v3237_v2 = vpop.f32.mrf.mxu0  ;;  %v2744_v45 = vld [vmem:[#allocation2 + $0x738] sm:$0xff] }
 0x3a2   :  { %v3910_v19 = vpop.f32.mrf.mxu1  ;;  %5889 = vst [vmem:[%s13223_s4 + $0xd60] sm:$0xff] %v3237_v2  ;;  %v2737_v2 = vld [vmem:[#allocation2 + $0x700] sm:$0xff] }
 0x3a3   :  { %5891 = vst [vmem:[%s13223_s4 + $0xd70] sm:$0xff] %v3910_v19  ;;  %v3241_v17 = vpop.f32.mrf.mxu0  ;;  %3480 = vmatmul.mubr.bf16.gmra.mxu0 %v10811_v18 }
 0x3a4   :  { %v3914_v49 = vpop.f32.mrf.mxu1  ;;  %4153 = vmatmul.mubr.bf16.gmra.mxu1 %v10811_v18  ;;  %5895 = vst [vmem:[%s13223_s4 + $0xd90] sm:$0xff] %v3241_v17  ;;  %3489 = vmatprep.mubr.bf16.mxu0 %v10819_v8 }
 0x3a5   :  { %5897 = vst [vmem:[%s13223_s4 + $0xda0] sm:$0xff] %v3914_v49  ;;  %4162 = vmatprep.mubr.bf16.mxu1 %v10819_v8  ;;  %v3243_v56 = vpop.f32.mrf.mxu0  ;;  %v10843_v49 = vpack.c.bf16 %v2739_v20, %v2737_v2  ;;  %v10851_v8 = vpack.c.bf16 %v2744_v45, %v2742_v61 }
 0x3a6   :  { %v3916_v4 = vpop.f32.mrf.mxu1  ;;  %5896 = vst [vmem:[%s13223_s4 + $0xd98] sm:$0xff] %v3243_v56 }
 0x3a7   :  { %5898 = vst [vmem:[%s13223_s4 + $0xda8] sm:$0xff] %v3916_v4  ;;  %v3245_v19 = vpop.f32.mrf.mxu0  ;;  %13603 = vst [vmem:[#allocation65_spill] sm:$0xff] %v10843_v49  ;;  %v2743_v4 = vld [vmem:[#allocation2 + $0x730] sm:$0xff] }
 0x3a8   :  { %v3918_v17 = vpop.f32.mrf.mxu1  ;;  %5902 = vst [vmem:[%s13223_s4 + $0xdc8] sm:$0xff] %v3245_v19  ;;  %13604 = vst [vmem:[#allocation66_spill] sm:$0xff] %v10851_v8  ;;  %v2746_v19 = vld [vmem:[#allocation2 + $0x748] sm:$0xff] }
 0x3a9   :  { %5904 = vst [vmem:[%s13223_s4 + $0xdd8] sm:$0xff] %v3918_v17  ;;  %v3247_v18 = vpop.f32.mrf.mxu0  ;;  %v2748_v17 = vld [vmem:[#allocation2 + $0x758] sm:$0xff] }
 0x3aa   :  { %v3920_v56 = vpop.f32.mrf.mxu1  ;;  %5903 = vst [vmem:[%s13223_s4 + $0xdd0] sm:$0xff] %v3247_v18  ;;  %v2741_v18 = vld [vmem:[#allocation2 + $0x720] sm:$0xff] }
 0x3ab   :  { %5905 = vst [vmem:[%s13223_s4 + $0xde0] sm:$0xff] %v3920_v56  ;;  %v3251_v2 = vpop.f32.mrf.mxu0  ;;  %3490 = vmatmul.mubr.bf16.gmra.mxu0 %v10843_v49 }
 0x3ac   :  { %v3924_v20 = vpop.f32.mrf.mxu1  ;;  %4163 = vmatmul.mubr.bf16.gmra.mxu1 %v10843_v49  ;;  %5909 = vst [vmem:[%s13223_s4 + $0xe00] sm:$0xff] %v3251_v2  ;;  %3499 = vmatprep.mubr.bf16.mxu0 %v10851_v8 }
 0x3ad   :  { %5911 = vst [vmem:[%s13223_s4 + $0xe10] sm:$0xff] %v3924_v20  ;;  %4172 = vmatprep.mubr.bf16.mxu1 %v10851_v8  ;;  %v3253_v61 = vpop.f32.mrf.mxu0  ;;  %v10875_v20 = vpack.c.bf16 %v2743_v4, %v2741_v18  ;;  %v10883_v8 = vpack.c.bf16 %v2748_v17, %v2746_v19 }
 0x3ae   :  { %v3926_v45 = vpop.f32.mrf.mxu1  ;;  %5910 = vst [vmem:[%s13223_s4 + $0xe08] sm:$0xff] %v3253_v61 }
 0x3af   :  { %5912 = vst [vmem:[%s13223_s4 + $0xe18] sm:$0xff] %v3926_v45  ;;  %v3255_v56 = vpop.f32.mrf.mxu0  ;;  %13605 = vst [vmem:[#allocation67_spill] sm:$0xff] %v10875_v20  ;;  %v2747_v45 = vld [vmem:[#allocation2 + $0x750] sm:$0xff] }
 0x3b0   :  { %v3928_v2 = vpop.f32.mrf.mxu1  ;;  %5916 = vst [vmem:[%s13223_s4 + $0xe38] sm:$0xff] %v3255_v56  ;;  %13606 = vst [vmem:[#allocation68_spill] sm:$0xff] %v10883_v8  ;;  %v2750_v56 = vld [vmem:[#allocation2 + $0x768] sm:$0xff] }
 0x3b1   :  { %5918 = vst [vmem:[%s13223_s4 + $0xe48] sm:$0xff] %v3928_v2  ;;  %v3257_v49 = vpop.f32.mrf.mxu0  ;;  %v2752_v2 = vld [vmem:[#allocation2 + $0x778] sm:$0xff] }
 0x3b2   :  { %v3930_v61 = vpop.f32.mrf.mxu1  ;;  %5917 = vst [vmem:[%s13223_s4 + $0xe40] sm:$0xff] %v3257_v49  ;;  %v2745_v49 = vld [vmem:[#allocation2 + $0x740] sm:$0xff] }
 0x3b3   :  { %5919 = vst [vmem:[%s13223_s4 + $0xe50] sm:$0xff] %v3930_v61  ;;  %v3261_v18 = vpop.f32.mrf.mxu0  ;;  %3500 = vmatmul.mubr.bf16.gmra.mxu0 %v10875_v20 }
 0x3b4   :  { %v3934_v4 = vpop.f32.mrf.mxu1  ;;  %4173 = vmatmul.mubr.bf16.gmra.mxu1 %v10875_v20  ;;  %5923 = vst [vmem:[%s13223_s4 + $0xe70] sm:$0xff] %v3261_v18  ;;  %3509 = vmatprep.mubr.bf16.mxu0 %v10883_v8 }
 0x3b5   :  { %5925 = vst [vmem:[%s13223_s4 + $0xe80] sm:$0xff] %v3934_v4  ;;  %4182 = vmatprep.mubr.bf16.mxu1 %v10883_v8  ;;  %v3263_v19 = vpop.f32.mrf.mxu0  ;;  %v10907_v4 = vpack.c.bf16 %v2747_v45, %v2745_v49  ;;  %v10915_v8 = vpack.c.bf16 %v2752_v2, %v2750_v56 }
 0x3b6   :  { %v3936_v17 = vpop.f32.mrf.mxu1  ;;  %5924 = vst [vmem:[%s13223_s4 + $0xe78] sm:$0xff] %v3263_v19 }
 0x3b7   :  { %5926 = vst [vmem:[%s13223_s4 + $0xe88] sm:$0xff] %v3936_v17  ;;  %v3265_v61 = vpop.f32.mrf.mxu0  ;;  %13607 = vst [vmem:[#allocation69_spill] sm:$0xff] %v10907_v4  ;;  %v2751_v17 = vld [vmem:[#allocation2 + $0x770] sm:$0xff] }
 0x3b8   :  { %v3938_v18 = vpop.f32.mrf.mxu1  ;;  %5930 = vst [vmem:[%s13223_s4 + $0xea8] sm:$0xff] %v3265_v61  ;;  %13608 = vst [vmem:[#allocation70_spill] sm:$0xff] %v10915_v8  ;;  %v2754_v61 = vld [vmem:[#allocation2 + $0x788] sm:$0xff] }
 0x3b9   :  { %5932 = vst [vmem:[%s13223_s4 + $0xeb8] sm:$0xff] %v3938_v18  ;;  %v3267_v20 = vpop.f32.mrf.mxu0  ;;  %v2756_v18 = vld [vmem:[#allocation2 + $0x798] sm:$0xff] }
 0x3ba   :  { %v3940_v19 = vpop.f32.mrf.mxu1  ;;  %5931 = vst [vmem:[%s13223_s4 + $0xeb0] sm:$0xff] %v3267_v20  ;;  %v2749_v20 = vld [vmem:[#allocation2 + $0x760] sm:$0xff] }
 0x3bb   :  { %5933 = vst [vmem:[%s13223_s4 + $0xec0] sm:$0xff] %v3940_v19  ;;  %v3271_v49 = vpop.f32.mrf.mxu0  ;;  %3510 = vmatmul.mubr.bf16.gmra.mxu0 %v10907_v4 }
 0x3bc   :  { %v3944_v45 = vpop.f32.mrf.mxu1  ;;  %4183 = vmatmul.mubr.bf16.gmra.mxu1 %v10907_v4  ;;  %5937 = vst [vmem:[%s13223_s4 + $0xee0] sm:$0xff] %v3271_v49  ;;  %3519 = vmatprep.mubr.bf16.mxu0 %v10915_v8 }
 0x3bd   :  { %5939 = vst [vmem:[%s13223_s4 + $0xef0] sm:$0xff] %v3944_v45  ;;  %4192 = vmatprep.mubr.bf16.mxu1 %v10915_v8  ;;  %v3273_v56 = vpop.f32.mrf.mxu0  ;;  %v10939_v45 = vpack.c.bf16 %v2751_v17, %v2749_v20  ;;  %v10947_v8 = vpack.c.bf16 %v2756_v18, %v2754_v61 }
 0x3be   :  { %v3946_v2 = vpop.f32.mrf.mxu1  ;;  %5938 = vst [vmem:[%s13223_s4 + $0xee8] sm:$0xff] %v3273_v56 }
 0x3bf   :  { %5940 = vst [vmem:[%s13223_s4 + $0xef8] sm:$0xff] %v3946_v2  ;;  %v3275_v19 = vpop.f32.mrf.mxu0  ;;  %13609 = vst [vmem:[#allocation71_spill] sm:$0xff] %v10939_v45  ;;  %v2755_v2 = vld [vmem:[#allocation2 + $0x790] sm:$0xff] }
 0x3c0   :  { %v3948_v49 = vpop.f32.mrf.mxu1  ;;  %5944 = vst [vmem:[%s13223_s4 + $0xf18] sm:$0xff] %v3275_v19  ;;  %13610 = vst [vmem:[#allocation72_spill] sm:$0xff] %v10947_v8  ;;  %v2758_v19 = vld [vmem:[#allocation2 + $0x7a8] sm:$0xff] }
 0x3c1   :  { %5946 = vst [vmem:[%s13223_s4 + $0xf28] sm:$0xff] %v3948_v49  ;;  %v3277_v4 = vpop.f32.mrf.mxu0  ;;  %v2760_v49 = vld [vmem:[#allocation2 + $0x7b8] sm:$0xff] }
 0x3c2   :  { %v3950_v56 = vpop.f32.mrf.mxu1  ;;  %5945 = vst [vmem:[%s13223_s4 + $0xf20] sm:$0xff] %v3277_v4  ;;  %v2753_v4 = vld [vmem:[#allocation2 + $0x780] sm:$0xff] }
 0x3c3   :  { %5947 = vst [vmem:[%s13223_s4 + $0xf30] sm:$0xff] %v3950_v56  ;;  %v3281_v20 = vpop.f32.mrf.mxu0  ;;  %3520 = vmatmul.mubr.bf16.gmra.mxu0 %v10939_v45 }
 0x3c4   :  { %v3954_v17 = vpop.f32.mrf.mxu1  ;;  %4193 = vmatmul.mubr.bf16.gmra.mxu1 %v10939_v45  ;;  %5951 = vst [vmem:[%s13223_s4 + $0xf50] sm:$0xff] %v3281_v20  ;;  %3529 = vmatprep.mubr.bf16.mxu0 %v10947_v8 }
 0x3c5   :  { %5953 = vst [vmem:[%s13223_s4 + $0xf60] sm:$0xff] %v3954_v17  ;;  %4202 = vmatprep.mubr.bf16.mxu1 %v10947_v8  ;;  %v3283_v61 = vpop.f32.mrf.mxu0  ;;  %v10971_v17 = vpack.c.bf16 %v2755_v2, %v2753_v4  ;;  %v10979_v8 = vpack.c.bf16 %v2760_v49, %v2758_v19 }
 0x3c6   :  { %v3956_v18 = vpop.f32.mrf.mxu1  ;;  %5952 = vst [vmem:[%s13223_s4 + $0xf58] sm:$0xff] %v3283_v61 }
 0x3c7   :  { %5954 = vst [vmem:[%s13223_s4 + $0xf68] sm:$0xff] %v3956_v18  ;;  %v3285_v56 = vpop.f32.mrf.mxu0  ;;  %13611 = vst [vmem:[#allocation73_spill] sm:$0xff] %v10971_v17  ;;  %v2759_v18 = vld [vmem:[#allocation2 + $0x7b0] sm:$0xff] }
 0x3c8   :  { %v3958_v20 = vpop.f32.mrf.mxu1  ;;  %5958 = vst [vmem:[%s13223_s4 + $0xf88] sm:$0xff] %v3285_v56  ;;  %13612 = vst [vmem:[#allocation74_spill] sm:$0xff] %v10979_v8  ;;  %v2762_v56 = vld [vmem:[#allocation2 + $0x7c8] sm:$0xff] }
 0x3c9   :  { %5960 = vst [vmem:[%s13223_s4 + $0xf98] sm:$0xff] %v3958_v20  ;;  %v3287_v45 = vpop.f32.mrf.mxu0  ;;  %v2764_v20 = vld [vmem:[#allocation2 + $0x7d8] sm:$0xff] }
 0x3ca   :  { %v3960_v61 = vpop.f32.mrf.mxu1  ;;  %5959 = vst [vmem:[%s13223_s4 + $0xf90] sm:$0xff] %v3287_v45  ;;  %v2757_v45 = vld [vmem:[#allocation2 + $0x7a0] sm:$0xff] }
 0x3cb   :  { %5961 = vst [vmem:[%s13223_s4 + $0xfa0] sm:$0xff] %v3960_v61  ;;  %v3291_v4 = vpop.f32.mrf.mxu0  ;;  %3530 = vmatmul.mubr.bf16.gmra.mxu0 %v10971_v17 }
 0x3cc   :  { %v3964_v2 = vpop.f32.mrf.mxu1  ;;  %4203 = vmatmul.mubr.bf16.gmra.mxu1 %v10971_v17  ;;  %5965 = vst [vmem:[%s13223_s4 + $0xfc0] sm:$0xff] %v3291_v4  ;;  %3539 = vmatprep.mubr.bf16.mxu0 %v10979_v8 }
 0x3cd   :  { %5967 = vst [vmem:[%s13223_s4 + $0xfd0] sm:$0xff] %v3964_v2  ;;  %4212 = vmatprep.mubr.bf16.mxu1 %v10979_v8  ;;  %v3293_v19 = vpop.f32.mrf.mxu0  ;;  %v11003_v2 = vpack.c.bf16 %v2759_v18, %v2757_v45  ;;  %v11011_v8 = vpack.c.bf16 %v2764_v20, %v2762_v56 }
 0x3ce   :  { %v3966_v49 = vpop.f32.mrf.mxu1  ;;  %5966 = vst [vmem:[%s13223_s4 + $0xfc8] sm:$0xff] %v3293_v19 }
 0x3cf   :  { %5968 = vst [vmem:[%s13223_s4 + $0xfd8] sm:$0xff] %v3966_v49  ;;  %v3295_v61 = vpop.f32.mrf.mxu0  ;;  %13613 = vst [vmem:[#allocation75_spill] sm:$0xff] %v11003_v2  ;;  %v2763_v49 = vld [vmem:[#allocation2 + $0x7d0] sm:$0xff] }
 0x3d0   :  { %v3968_v4 = vpop.f32.mrf.mxu1  ;;  %5972 = vst [vmem:[%s13223_s4 + $0xff8] sm:$0xff] %v3295_v61  ;;  %13614 = vst [vmem:[#allocation76_spill] sm:$0xff] %v11011_v8  ;;  %v2766_v61 = vld [vmem:[#allocation2 + $0x7e8] sm:$0xff] }
 0x3d1   :  { %5974 = vst [vmem:[%s13223_s4 + $0x1008] sm:$0xff] %v3968_v4  ;;  %v3297_v17 = vpop.f32.mrf.mxu0  ;;  %v2768_v4 = vld [vmem:[#allocation2 + $0x7f8] sm:$0xff] }
 0x3d2   :  { %v3970_v19 = vpop.f32.mrf.mxu1  ;;  %5973 = vst [vmem:[%s13223_s4 + $0x1000] sm:$0xff] %v3297_v17  ;;  %v2761_v17 = vld [vmem:[#allocation2 + $0x7c0] sm:$0xff] }
 0x3d3   :  { %5975 = vst [vmem:[%s13223_s4 + $0x1010] sm:$0xff] %v3970_v19  ;;  %v3301_v45 = vpop.f32.mrf.mxu0  ;;  %3540 = vmatmul.mubr.bf16.gmra.mxu0 %v11003_v2 }
 0x3d4   :  { %v3974_v18 = vpop.f32.mrf.mxu1  ;;  %4213 = vmatmul.mubr.bf16.gmra.mxu1 %v11003_v2  ;;  %5979 = vst [vmem:[%s13223_s4 + $0x1030] sm:$0xff] %v3301_v45  ;;  %3549 = vmatprep.mubr.bf16.mxu0 %v11011_v8 }
 0x3d5   :  { %5981 = vst [vmem:[%s13223_s4 + $0x1040] sm:$0xff] %v3974_v18  ;;  %4222 = vmatprep.mubr.bf16.mxu1 %v11011_v8  ;;  %v3303_v56 = vpop.f32.mrf.mxu0  ;;  %v11035_v18 = vpack.c.bf16 %v2763_v49, %v2761_v17  ;;  %v11043_v8 = vpack.c.bf16 %v2768_v4, %v2766_v61 }
 0x3d6   :  { %v3976_v20 = vpop.f32.mrf.mxu1  ;;  %5980 = vst [vmem:[%s13223_s4 + $0x1038] sm:$0xff] %v3303_v56 }
 0x3d7   :  { %5982 = vst [vmem:[%s13223_s4 + $0x1048] sm:$0xff] %v3976_v20  ;;  %v3305_v19 = vpop.f32.mrf.mxu0  ;;  %v2767_v20 = vld [vmem:[#allocation2 + $0x7f0] sm:$0xff] }
 0x3d8   :  { %v3978_v45 = vpop.f32.mrf.mxu1  ;;  %5986 = vst [vmem:[%s13223_s4 + $0x1068] sm:$0xff] %v3305_v19 }
 0x3d9   :  { %5988 = vst [vmem:[%s13223_s4 + $0x1078] sm:$0xff] %v3978_v45  ;;  %v3307_v2 = vpop.f32.mrf.mxu0 }
 0x3da   :  { %v3980_v56 = vpop.f32.mrf.mxu1  ;;  %5987 = vst [vmem:[%s13223_s4 + $0x1070] sm:$0xff] %v3307_v2  ;;  %v2765_v2 = vld [vmem:[#allocation2 + $0x7e0] sm:$0xff] }
 0x3db   :  { %5989 = vst [vmem:[%s13223_s4 + $0x1080] sm:$0xff] %v3980_v56  ;;  %v3311_v17 = vpop.f32.mrf.mxu0  ;;  %3550 = vmatmul.mubr.bf16.gmra.mxu0 %v11035_v18  ;;  %v11067_v56 = vpack.c.bf16 %v2767_v20, %v2765_v2 }
 0x3dc   :  { %v3984_v49 = vpop.f32.mrf.mxu1  ;;  %4223 = vmatmul.mubr.bf16.gmra.mxu1 %v11035_v18  ;;  %5993 = vst [vmem:[%s13223_s4 + $0x10a0] sm:$0xff] %v3311_v17  ;;  %3559 = vmatprep.mubr.bf16.mxu0 %v11043_v8 }
 0x3dd   :  { %5995 = vst [vmem:[%s13223_s4 + $0x10b0] sm:$0xff] %v3984_v49  ;;  %4232 = vmatprep.mubr.bf16.mxu1 %v11043_v8  ;;  %v3313_v61 = vpop.f32.mrf.mxu0 }
 0x3de   :  { %v3986_v4 = vpop.f32.mrf.mxu1  ;;  %5994 = vst [vmem:[%s13223_s4 + $0x10a8] sm:$0xff] %v3313_v61  ;;  %v13615_v61 = vld [vmem:[#allocation20_spill] sm:$0xff] }
 0x3df   :  { %5996 = vst [vmem:[%s13223_s4 + $0x10b8] sm:$0xff] %v3986_v4  ;;  %v3315_v19 = vpop.f32.mrf.mxu0 }
 0x3e0   :  { %v3988_v45 = vpop.f32.mrf.mxu1  ;;  %6000 = vst [vmem:[%s13223_s4 + $0x10d8] sm:$0xff] %v3315_v19 }
 0x3e1   :  { %6002 = vst [vmem:[%s13223_s4 + $0x10e8] sm:$0xff] %v3988_v45  ;;  %v3317_v17 = vpop.f32.mrf.mxu0 }
 0x3e2   :  { %v3990_v49 = vpop.f32.mrf.mxu1  ;;  %6001 = vst [vmem:[%s13223_s4 + $0x10e0] sm:$0xff] %v3317_v17 }
 0x3e3   :  { %6003 = vst [vmem:[%s13223_s4 + $0x10f0] sm:$0xff] %v3990_v49  ;;  %v3321_v2 = vpop.f32.mrf.mxu0  ;;  %3560 = vmatmul.mubr.bf16.gmra.mxu0 %v11067_v56 }
 0x3e4   :  { %v3994_v20 = vpop.f32.mrf.mxu1  ;;  %4233 = vmatmul.mubr.bf16.gmra.mxu1 %v11067_v56  ;;  %6007 = vst [vmem:[%s13223_s4 + $0x1110] sm:$0xff] %v3321_v2  ;;  %4275 = vmatprep.mubr.bf16.mxu0 %v13615_v61 }
 0x3e5   :  { %6009 = vst [vmem:[%s13223_s4 + $0x1120] sm:$0xff] %v3994_v20  ;;  %4948 = vmatprep.mubr.bf16.mxu1 %v13615_v61  ;;  %v3323_v4 = vpop.f32.mrf.mxu0 }
 0x3e6   :  { %v3996_v19 = vpop.f32.mrf.mxu1  ;;  %6008 = vst [vmem:[%s13223_s4 + $0x1118] sm:$0xff] %v3323_v4 }
 0x3e7   :  { %6010 = vst [vmem:[%s13223_s4 + $0x1128] sm:$0xff] %v3996_v19  ;;  %v3325_v45 = vpop.f32.mrf.mxu0 }
 0x3e8   :  { %v3998_v17 = vpop.f32.mrf.mxu1  ;;  %6014 = vst [vmem:[%s13223_s4 + $0x1148] sm:$0xff] %v3325_v45 }
 0x3e9   :  { %6016 = vst [vmem:[%s13223_s4 + $0x1158] sm:$0xff] %v3998_v17  ;;  %v3327_v49 = vpop.f32.mrf.mxu0 }
 0x3ea   :  { %v4000_v2 = vpop.f32.mrf.mxu1  ;;  %6015 = vst [vmem:[%s13223_s4 + $0x1150] sm:$0xff] %v3327_v49 }
 0x3eb   :  { %6017 = vst [vmem:[%s13223_s4 + $0x1160] sm:$0xff] %v4000_v2  ;;  %v3331_v20 = vpop.f32.mrf.mxu0  ;;  %4276 = vmatmul.mubr.bf16.vlgmr.msra.gmra.mxu0 %v8914_v33 }
 0x3ec   :  { %v4004_v61 = vpop.f32.mrf.mxu1  ;;  %4949 = vmatmul.mubr.bf16.vlgmr.msra.gmra.mxu1 %v8914_v33  ;;  %6021 = vst [vmem:[%s13223_s4 + $0x1180] sm:$0xff] %v3331_v20  ;;  %4285 = vmatprep.mubr.bf16.mxu0 %v9115_v12 }
 0x3ed   :  { %6023 = vst [vmem:[%s13223_s4 + $0x1190] sm:$0xff] %v4004_v61  ;;  %4956 = vmatprep.mubr.bf16.mxu1 %v9115_v12  ;;  %v3333_v4 = vpop.f32.mrf.mxu0 }
 0x3ee   :  { %v4006_v19 = vpop.f32.mrf.mxu1  ;;  %6022 = vst [vmem:[%s13223_s4 + $0x1188] sm:$0xff] %v3333_v4 }
 0x3ef   :  { %6024 = vst [vmem:[%s13223_s4 + $0x1198] sm:$0xff] %v4006_v19  ;;  %v3335_v33 = vpop.f32.mrf.mxu0 }
 0x3f0   :  { %v4008_v45 = vpop.f32.mrf.mxu1  ;;  %6028 = vst [vmem:[%s13223_s4 + $0x11b8] sm:$0xff] %v3335_v33 }
 0x3f1   :  { %6030 = vst [vmem:[%s13223_s4 + $0x11c8] sm:$0xff] %v4008_v45  ;;  %v3337_v12 = vpop.f32.mrf.mxu0 }
 0x3f2   :  { %v4010_v17 = vpop.f32.mrf.mxu1  ;;  %6029 = vst [vmem:[%s13223_s4 + $0x11c0] sm:$0xff] %v3337_v12 }
 0x3f3   :  { %6031 = vst [vmem:[%s13223_s4 + $0x11d0] sm:$0xff] %v4010_v17  ;;  %v3341_v49 = vpop.f32.mrf.mxu0  ;;  %4286 = vmatmul.mubr.bf16.gmra.mxu0 %v9117_v48 }
 0x3f4   :  { %v4014_v2 = vpop.f32.mrf.mxu1  ;;  %4957 = vmatmul.mubr.bf16.gmra.mxu1 %v9117_v48  ;;  %6035 = vst [vmem:[%s13223_s4 + $0x11f0] sm:$0xff] %v3341_v49  ;;  %4295 = vmatprep.mubr.bf16.mxu0 %v9126_v23 }
 0x3f5   :  { %6037 = vst [vmem:[%s13223_s4 + $0x1200] sm:$0xff] %v4014_v2  ;;  %4964 = vmatprep.mubr.bf16.mxu1 %v9126_v23  ;;  %v3343_v20 = vpop.f32.mrf.mxu0 }
 0x3f6   :  { %v4016_v61 = vpop.f32.mrf.mxu1  ;;  %6036 = vst [vmem:[%s13223_s4 + $0x11f8] sm:$0xff] %v3343_v20 }
 0x3f7   :  { %6038 = vst [vmem:[%s13223_s4 + $0x1208] sm:$0xff] %v4016_v61  ;;  %v3345_v48 = vpop.f32.mrf.mxu0 }
 0x3f8   :  { %v4018_v4 = vpop.f32.mrf.mxu1  ;;  %6042 = vst [vmem:[%s13223_s4 + $0x1228] sm:$0xff] %v3345_v48 }
 0x3f9   :  { %6044 = vst [vmem:[%s13223_s4 + $0x1238] sm:$0xff] %v4018_v4  ;;  %v3347_v23 = vpop.f32.mrf.mxu0 }
 0x3fa   :  { %v4020_v19 = vpop.f32.mrf.mxu1  ;;  %6043 = vst [vmem:[%s13223_s4 + $0x1230] sm:$0xff] %v3347_v23 }
 0x3fb   :  { %6045 = vst [vmem:[%s13223_s4 + $0x1240] sm:$0xff] %v4020_v19  ;;  %v3351_v33 = vpop.f32.mrf.mxu0  ;;  %4296 = vmatmul.mubr.bf16.gmra.mxu0 %v9128_v27 }
 0x3fc   :  { %v4024_v45 = vpop.f32.mrf.mxu1  ;;  %4965 = vmatmul.mubr.bf16.gmra.mxu1 %v9128_v27  ;;  %6049 = vst [vmem:[%s13223_s4 + $0x1260] sm:$0xff] %v3351_v33  ;;  %4305 = vmatprep.mubr.bf16.mxu0 %v9275_v36 }
 0x3fd   :  { %6051 = vst [vmem:[%s13223_s4 + $0x1270] sm:$0xff] %v4024_v45  ;;  %4972 = vmatprep.mubr.bf16.mxu1 %v9275_v36  ;;  %v3353_v12 = vpop.f32.mrf.mxu0 }
 0x3fe   :  { %v4026_v17 = vpop.f32.mrf.mxu1  ;;  %6050 = vst [vmem:[%s13223_s4 + $0x1268] sm:$0xff] %v3353_v12 }
 0x3ff   :  { %6052 = vst [vmem:[%s13223_s4 + $0x1278] sm:$0xff] %v4026_v17  ;;  %v3355_v27 = vpop.f32.mrf.mxu0 }
 0x400   :  { %v4028_v49 = vpop.f32.mrf.mxu1  ;;  %6056 = vst [vmem:[%s13223_s4 + $0x1298] sm:$0xff] %v3355_v27 }
 0x401   :  { %6058 = vst [vmem:[%s13223_s4 + $0x12a8] sm:$0xff] %v4028_v49  ;;  %v3357_v36 = vpop.f32.mrf.mxu0 }
 0x402   :  { %v4030_v2 = vpop.f32.mrf.mxu1  ;;  %6057 = vst [vmem:[%s13223_s4 + $0x12a0] sm:$0xff] %v3357_v36 }
 0x403   :  { %6059 = vst [vmem:[%s13223_s4 + $0x12b0] sm:$0xff] %v4030_v2  ;;  %v3361_v20 = vpop.f32.mrf.mxu0  ;;  %4306 = vmatmul.mubr.bf16.gmra.mxu0 %v9311_v16 }
 0x404   :  { %v4034_v61 = vpop.f32.mrf.mxu1  ;;  %4973 = vmatmul.mubr.bf16.gmra.mxu1 %v9311_v16  ;;  %6063 = vst [vmem:[%s13223_s4 + $0x12d0] sm:$0xff] %v3361_v20  ;;  %4315 = vmatprep.mubr.bf16.mxu0 %v9399_v39 }
 0x405   :  { %6065 = vst [vmem:[%s13223_s4 + $0x12e0] sm:$0xff] %v4034_v61  ;;  %4980 = vmatprep.mubr.bf16.mxu1 %v9399_v39  ;;  %v3363_v48 = vpop.f32.mrf.mxu0 }
 0x406   :  { %v4036_v4 = vpop.f32.mrf.mxu1  ;;  %6064 = vst [vmem:[%s13223_s4 + $0x12d8] sm:$0xff] %v3363_v48 }
 0x407   :  { %6066 = vst [vmem:[%s13223_s4 + $0x12e8] sm:$0xff] %v4036_v4  ;;  %v3365_v16 = vpop.f32.mrf.mxu0 }
 0x408   :  { %v4038_v23 = vpop.f32.mrf.mxu1  ;;  %6070 = vst [vmem:[%s13223_s4 + $0x1308] sm:$0xff] %v3365_v16 }
 0x409   :  { %6072 = vst [vmem:[%s13223_s4 + $0x1318] sm:$0xff] %v4038_v23  ;;  %v3367_v39 = vpop.f32.mrf.mxu0 }
 0x40a   :  { %v4040_v19 = vpop.f32.mrf.mxu1  ;;  %6071 = vst [vmem:[%s13223_s4 + $0x1310] sm:$0xff] %v3367_v39 }
 0x40b   :  { %6073 = vst [vmem:[%s13223_s4 + $0x1320] sm:$0xff] %v4040_v19  ;;  %v3371_v33 = vpop.f32.mrf.mxu0  ;;  %4316 = vmatmul.mubr.bf16.gmra.mxu0 %v9407_v10 }
 0x40c   :  { %v4044_v45 = vpop.f32.mrf.mxu1  ;;  %4981 = vmatmul.mubr.bf16.gmra.mxu1 %v9407_v10  ;;  %6077 = vst [vmem:[%s13223_s4 + $0x1340] sm:$0xff] %v3371_v33  ;;  %4325 = vmatprep.mubr.bf16.mxu0 %v9482_v30 }
 0x40d   :  { %6079 = vst [vmem:[%s13223_s4 + $0x1350] sm:$0xff] %v4044_v45  ;;  %4988 = vmatprep.mubr.bf16.mxu1 %v9482_v30  ;;  %v3373_v12 = vpop.f32.mrf.mxu0 }
 0x40e   :  { %v4046_v17 = vpop.f32.mrf.mxu1  ;;  %6078 = vst [vmem:[%s13223_s4 + $0x1348] sm:$0xff] %v3373_v12 }
 0x40f   :  { %6080 = vst [vmem:[%s13223_s4 + $0x1358] sm:$0xff] %v4046_v17  ;;  %v3375_v10 = vpop.f32.mrf.mxu0 }
 0x410   :  { %v4048_v27 = vpop.f32.mrf.mxu1  ;;  %6084 = vst [vmem:[%s13223_s4 + $0x1378] sm:$0xff] %v3375_v10 }
 0x411   :  { %6086 = vst [vmem:[%s13223_s4 + $0x1388] sm:$0xff] %v4048_v27  ;;  %v3377_v30 = vpop.f32.mrf.mxu0 }
 0x412   :  { %v4050_v49 = vpop.f32.mrf.mxu1  ;;  %6085 = vst [vmem:[%s13223_s4 + $0x1380] sm:$0xff] %v3377_v30 }
 0x413   :  { %6087 = vst [vmem:[%s13223_s4 + $0x1390] sm:$0xff] %v4050_v49  ;;  %v3381_v36 = vpop.f32.mrf.mxu0  ;;  %4326 = vmatmul.mubr.bf16.gmra.mxu0 %v9506_v43 }
 0x414   :  { %v4054_v2 = vpop.f32.mrf.mxu1  ;;  %4989 = vmatmul.mubr.bf16.gmra.mxu1 %v9506_v43  ;;  %6091 = vst [vmem:[%s13223_s4 + $0x13b0] sm:$0xff] %v3381_v36  ;;  %4335 = vmatprep.mubr.bf16.mxu0 %v9560_v55 }
 0x415   :  { %6093 = vst [vmem:[%s13223_s4 + $0x13c0] sm:$0xff] %v4054_v2  ;;  %4996 = vmatprep.mubr.bf16.mxu1 %v9560_v55  ;;  %v3383_v20 = vpop.f32.mrf.mxu0 }
 0x416   :  { %v4056_v61 = vpop.f32.mrf.mxu1  ;;  %6092 = vst [vmem:[%s13223_s4 + $0x13b8] sm:$0xff] %v3383_v20 }
 0x417   :  { %6094 = vst [vmem:[%s13223_s4 + $0x13c8] sm:$0xff] %v4056_v61  ;;  %v3385_v43 = vpop.f32.mrf.mxu0 }
 0x418   :  { %v4058_v48 = vpop.f32.mrf.mxu1  ;;  %6098 = vst [vmem:[%s13223_s4 + $0x13e8] sm:$0xff] %v3385_v43 }
 0x419   :  { %6100 = vst [vmem:[%s13223_s4 + $0x13f8] sm:$0xff] %v4058_v48  ;;  %v3387_v55 = vpop.f32.mrf.mxu0 }
 0x41a   :  { %v4060_v4 = vpop.f32.mrf.mxu1  ;;  %6099 = vst [vmem:[%s13223_s4 + $0x13f0] sm:$0xff] %v3387_v55 }
 0x41b   :  { %6101 = vst [vmem:[%s13223_s4 + $0x1400] sm:$0xff] %v4060_v4  ;;  %v3391_v16 = vpop.f32.mrf.mxu0  ;;  %4336 = vmatmul.mubr.bf16.gmra.mxu0 %v9568_v42 }
 0x41c   :  { %v4064_v23 = vpop.f32.mrf.mxu1  ;;  %4997 = vmatmul.mubr.bf16.gmra.mxu1 %v9568_v42  ;;  %6105 = vst [vmem:[%s13223_s4 + $0x1420] sm:$0xff] %v3391_v16  ;;  %4345 = vmatprep.mubr.bf16.mxu0 %v9634_v44 }
 0x41d   :  { %6107 = vst [vmem:[%s13223_s4 + $0x1430] sm:$0xff] %v4064_v23  ;;  %5004 = vmatprep.mubr.bf16.mxu1 %v9634_v44  ;;  %v3393_v39 = vpop.f32.mrf.mxu0 }
 0x41e   :  { %v4066_v19 = vpop.f32.mrf.mxu1  ;;  %6106 = vst [vmem:[%s13223_s4 + $0x1428] sm:$0xff] %v3393_v39 }
 0x41f   :  { %6108 = vst [vmem:[%s13223_s4 + $0x1438] sm:$0xff] %v4066_v19  ;;  %v3395_v42 = vpop.f32.mrf.mxu0 }
 0x420   :  { %v4068_v33 = vpop.f32.mrf.mxu1  ;;  %6112 = vst [vmem:[%s13223_s4 + $0x1458] sm:$0xff] %v3395_v42 }
 0x421   :  { %6114 = vst [vmem:[%s13223_s4 + $0x1468] sm:$0xff] %v4068_v33  ;;  %v3397_v44 = vpop.f32.mrf.mxu0 }
 0x422   :  { %v4070_v45 = vpop.f32.mrf.mxu1  ;;  %6113 = vst [vmem:[%s13223_s4 + $0x1460] sm:$0xff] %v3397_v44 }
 0x423   :  { %6115 = vst [vmem:[%s13223_s4 + $0x1470] sm:$0xff] %v4070_v45  ;;  %v3401_v12 = vpop.f32.mrf.mxu0  ;;  %4346 = vmatmul.mubr.bf16.gmra.mxu0 %v9691_v34 }
 0x424   :  { %v4074_v17 = vpop.f32.mrf.mxu1  ;;  %5005 = vmatmul.mubr.bf16.gmra.mxu1 %v9691_v34  ;;  %6119 = vst [vmem:[%s13223_s4 + $0x1490] sm:$0xff] %v3401_v12  ;;  %4355 = vmatprep.mubr.bf16.mxu0 %v9696_v31 }
 0x425   :  { %6121 = vst [vmem:[%s13223_s4 + $0x14a0] sm:$0xff] %v4074_v17  ;;  %5012 = vmatprep.mubr.bf16.mxu1 %v9696_v31  ;;  %v3403_v10 = vpop.f32.mrf.mxu0 }
 0x426   :  { %v4076_v27 = vpop.f32.mrf.mxu1  ;;  %6120 = vst [vmem:[%s13223_s4 + $0x1498] sm:$0xff] %v3403_v10 }
 0x427   :  { %6122 = vst [vmem:[%s13223_s4 + $0x14a8] sm:$0xff] %v4076_v27  ;;  %v3405_v34 = vpop.f32.mrf.mxu0 }
 0x428   :  { %v4078_v30 = vpop.f32.mrf.mxu1  ;;  %6126 = vst [vmem:[%s13223_s4 + $0x14c8] sm:$0xff] %v3405_v34 }
 0x429   :  { %6128 = vst [vmem:[%s13223_s4 + $0x14d8] sm:$0xff] %v4078_v30  ;;  %v3407_v31 = vpop.f32.mrf.mxu0 }
 0x42a   :  { %v4080_v49 = vpop.f32.mrf.mxu1  ;;  %6127 = vst [vmem:[%s13223_s4 + $0x14d0] sm:$0xff] %v3407_v31 }
 0x42b   :  { %6129 = vst [vmem:[%s13223_s4 + $0x14e0] sm:$0xff] %v4080_v49  ;;  %v3411_v36 = vpop.f32.mrf.mxu0  ;;  %4356 = vmatmul.mubr.bf16.gmra.mxu0 %v9703_v41 }
 0x42c   :  { %v4084_v2 = vpop.f32.mrf.mxu1  ;;  %5013 = vmatmul.mubr.bf16.gmra.mxu1 %v9703_v41  ;;  %6133 = vst [vmem:[%s13223_s4 + $0x1500] sm:$0xff] %v3411_v36  ;;  %4365 = vmatprep.mubr.bf16.mxu0 %v9705_v25 }
 0x42d   :  { %6135 = vst [vmem:[%s13223_s4 + $0x1510] sm:$0xff] %v4084_v2  ;;  %5020 = vmatprep.mubr.bf16.mxu1 %v9705_v25  ;;  %v3413_v20 = vpop.f32.mrf.mxu0 }
 0x42e   :  { %v4086_v61 = vpop.f32.mrf.mxu1  ;;  %6134 = vst [vmem:[%s13223_s4 + $0x1508] sm:$0xff] %v3413_v20 }
 0x42f   :  { %6136 = vst [vmem:[%s13223_s4 + $0x1518] sm:$0xff] %v4086_v61  ;;  %v3415_v41 = vpop.f32.mrf.mxu0 }
 0x430   :  { %v4088_v43 = vpop.f32.mrf.mxu1  ;;  %6140 = vst [vmem:[%s13223_s4 + $0x1538] sm:$0xff] %v3415_v41 }
 0x431   :  { %6142 = vst [vmem:[%s13223_s4 + $0x1548] sm:$0xff] %v4088_v43  ;;  %v3417_v25 = vpop.f32.mrf.mxu0 }
 0x432   :  { %v4090_v48 = vpop.f32.mrf.mxu1  ;;  %6141 = vst [vmem:[%s13223_s4 + $0x1540] sm:$0xff] %v3417_v25 }
 0x433   :  { %6143 = vst [vmem:[%s13223_s4 + $0x1550] sm:$0xff] %v4090_v48  ;;  %v3421_v55 = vpop.f32.mrf.mxu0  ;;  %4366 = vmatmul.mubr.bf16.gmra.mxu0 %v9711_v6 }
 0x434   :  { %v4094_v4 = vpop.f32.mrf.mxu1  ;;  %5021 = vmatmul.mubr.bf16.gmra.mxu1 %v9711_v6  ;;  %6147 = vst [vmem:[%s13223_s4 + $0x1570] sm:$0xff] %v3421_v55  ;;  %4375 = vmatprep.mubr.bf16.mxu0 %v9713_v62 }
 0x435   :  { %6149 = vst [vmem:[%s13223_s4 + $0x1580] sm:$0xff] %v4094_v4  ;;  %5028 = vmatprep.mubr.bf16.mxu1 %v9713_v62  ;;  %v3423_v16 = vpop.f32.mrf.mxu0 }
 0x436   :  { %v4096_v23 = vpop.f32.mrf.mxu1  ;;  %6148 = vst [vmem:[%s13223_s4 + $0x1578] sm:$0xff] %v3423_v16 }
 0x437   :  { %6150 = vst [vmem:[%s13223_s4 + $0x1588] sm:$0xff] %v4096_v23  ;;  %v3425_v6 = vpop.f32.mrf.mxu0 }
 0x438   :  { %v4098_v39 = vpop.f32.mrf.mxu1  ;;  %6154 = vst [vmem:[%s13223_s4 + $0x15a8] sm:$0xff] %v3425_v6 }
 0x439   :  { %6156 = vst [vmem:[%s13223_s4 + $0x15b8] sm:$0xff] %v4098_v39  ;;  %v3427_v62 = vpop.f32.mrf.mxu0 }
 0x43a   :  { %v4100_v19 = vpop.f32.mrf.mxu1  ;;  %6155 = vst [vmem:[%s13223_s4 + $0x15b0] sm:$0xff] %v3427_v62 }
 0x43b   :  { %6157 = vst [vmem:[%s13223_s4 + $0x15c0] sm:$0xff] %v4100_v19  ;;  %v3431_v42 = vpop.f32.mrf.mxu0  ;;  %4376 = vmatmul.mubr.bf16.gmra.mxu0 %v9719_v29 }
 0x43c   :  { %v4104_v33 = vpop.f32.mrf.mxu1  ;;  %5029 = vmatmul.mubr.bf16.gmra.mxu1 %v9719_v29  ;;  %6161 = vst [vmem:[%s13223_s4 + $0x15e0] sm:$0xff] %v3431_v42  ;;  %4385 = vmatprep.mubr.bf16.mxu0 %v9721_v38 }
 0x43d   :  { %6163 = vst [vmem:[%s13223_s4 + $0x15f0] sm:$0xff] %v4104_v33  ;;  %5036 = vmatprep.mubr.bf16.mxu1 %v9721_v38  ;;  %v3433_v44 = vpop.f32.mrf.mxu0 }
 0x43e   :  { %v4106_v45 = vpop.f32.mrf.mxu1  ;;  %6162 = vst [vmem:[%s13223_s4 + $0x15e8] sm:$0xff] %v3433_v44 }
 0x43f   :  { %6164 = vst [vmem:[%s13223_s4 + $0x15f8] sm:$0xff] %v4106_v45  ;;  %v3435_v29 = vpop.f32.mrf.mxu0 }
 0x440   :  { %v4108_v12 = vpop.f32.mrf.mxu1  ;;  %6168 = vst [vmem:[%s13223_s4 + $0x1618] sm:$0xff] %v3435_v29 }
 0x441   :  { %6170 = vst [vmem:[%s13223_s4 + $0x1628] sm:$0xff] %v4108_v12  ;;  %v3437_v38 = vpop.f32.mrf.mxu0 }
 0x442   :  { %v4110_v17 = vpop.f32.mrf.mxu1  ;;  %6169 = vst [vmem:[%s13223_s4 + $0x1620] sm:$0xff] %v3437_v38 }
 0x443   :  { %6171 = vst [vmem:[%s13223_s4 + $0x1630] sm:$0xff] %v4110_v17  ;;  %v3441_v10 = vpop.f32.mrf.mxu0  ;;  %4386 = vmatmul.mubr.bf16.gmra.mxu0 %v9727_v60 }
 0x444   :  { %v4114_v27 = vpop.f32.mrf.mxu1  ;;  %5037 = vmatmul.mubr.bf16.gmra.mxu1 %v9727_v60  ;;  %6175 = vst [vmem:[%s13223_s4 + $0x1650] sm:$0xff] %v3441_v10  ;;  %4395 = vmatprep.mubr.bf16.mxu0 %v9729_v46 }
 0x445   :  { %6177 = vst [vmem:[%s13223_s4 + $0x1660] sm:$0xff] %v4114_v27  ;;  %5044 = vmatprep.mubr.bf16.mxu1 %v9729_v46  ;;  %v3443_v34 = vpop.f32.mrf.mxu0 }
 0x446   :  { %v4116_v30 = vpop.f32.mrf.mxu1  ;;  %6176 = vst [vmem:[%s13223_s4 + $0x1658] sm:$0xff] %v3443_v34 }
 0x447   :  { %6178 = vst [vmem:[%s13223_s4 + $0x1668] sm:$0xff] %v4116_v30  ;;  %v3445_v60 = vpop.f32.mrf.mxu0 }
 0x448   :  { %v4118_v31 = vpop.f32.mrf.mxu1  ;;  %6182 = vst [vmem:[%s13223_s4 + $0x1688] sm:$0xff] %v3445_v60 }
 0x449   :  { %6184 = vst [vmem:[%s13223_s4 + $0x1698] sm:$0xff] %v4118_v31  ;;  %v3447_v46 = vpop.f32.mrf.mxu0 }
 0x44a   :  { %v4120_v49 = vpop.f32.mrf.mxu1  ;;  %6183 = vst [vmem:[%s13223_s4 + $0x1690] sm:$0xff] %v3447_v46 }
 0x44b   :  { %6185 = vst [vmem:[%s13223_s4 + $0x16a0] sm:$0xff] %v4120_v49  ;;  %v3451_v36 = vpop.f32.mrf.mxu0  ;;  %4396 = vmatmul.mubr.bf16.gmra.mxu0 %v9735_v5 }
 0x44c   :  { %v4124_v2 = vpop.f32.mrf.mxu1  ;;  %5045 = vmatmul.mubr.bf16.gmra.mxu1 %v9735_v5  ;;  %6189 = vst [vmem:[%s13223_s4 + $0x16c0] sm:$0xff] %v3451_v36  ;;  %4405 = vmatprep.mubr.bf16.mxu0 %v9737_v21 }
 0x44d   :  { %6191 = vst [vmem:[%s13223_s4 + $0x16d0] sm:$0xff] %v4124_v2  ;;  %5052 = vmatprep.mubr.bf16.mxu1 %v9737_v21  ;;  %v3453_v20 = vpop.f32.mrf.mxu0 }
 0x44e   :  { %v4126_v61 = vpop.f32.mrf.mxu1  ;;  %6190 = vst [vmem:[%s13223_s4 + $0x16c8] sm:$0xff] %v3453_v20 }
 0x44f   :  { %6192 = vst [vmem:[%s13223_s4 + $0x16d8] sm:$0xff] %v4126_v61  ;;  %v3455_v5 = vpop.f32.mrf.mxu0 }
 0x450   :  { %v4128_v41 = vpop.f32.mrf.mxu1  ;;  %6196 = vst [vmem:[%s13223_s4 + $0x16f8] sm:$0xff] %v3455_v5 }
 0x451   :  { %6198 = vst [vmem:[%s13223_s4 + $0x1708] sm:$0xff] %v4128_v41  ;;  %v3457_v21 = vpop.f32.mrf.mxu0 }
 0x452   :  { %v4130_v43 = vpop.f32.mrf.mxu1  ;;  %6197 = vst [vmem:[%s13223_s4 + $0x1700] sm:$0xff] %v3457_v21 }
 0x453   :  { %6199 = vst [vmem:[%s13223_s4 + $0x1710] sm:$0xff] %v4130_v43  ;;  %v3461_v25 = vpop.f32.mrf.mxu0  ;;  %4406 = vmatmul.mubr.bf16.gmra.mxu0 %v9743_v58 }
 0x454   :  { %v4134_v48 = vpop.f32.mrf.mxu1  ;;  %5053 = vmatmul.mubr.bf16.gmra.mxu1 %v9743_v58  ;;  %6203 = vst [vmem:[%s13223_s4 + $0x1730] sm:$0xff] %v3461_v25  ;;  %4415 = vmatprep.mubr.bf16.mxu0 %v9745_v40 }
 0x455   :  { %6205 = vst [vmem:[%s13223_s4 + $0x1740] sm:$0xff] %v4134_v48  ;;  %5060 = vmatprep.mubr.bf16.mxu1 %v9745_v40  ;;  %v3463_v55 = vpop.f32.mrf.mxu0 }
 0x456   :  { %v4136_v4 = vpop.f32.mrf.mxu1  ;;  %6204 = vst [vmem:[%s13223_s4 + $0x1738] sm:$0xff] %v3463_v55 }
 0x457   :  { %6206 = vst [vmem:[%s13223_s4 + $0x1748] sm:$0xff] %v4136_v4  ;;  %v3465_v58 = vpop.f32.mrf.mxu0 }
 0x458   :  { %v4138_v16 = vpop.f32.mrf.mxu1  ;;  %6210 = vst [vmem:[%s13223_s4 + $0x1768] sm:$0xff] %v3465_v58 }
 0x459   :  { %6212 = vst [vmem:[%s13223_s4 + $0x1778] sm:$0xff] %v4138_v16  ;;  %v3467_v40 = vpop.f32.mrf.mxu0 }
 0x45a   :  { %v4140_v23 = vpop.f32.mrf.mxu1  ;;  %6211 = vst [vmem:[%s13223_s4 + $0x1770] sm:$0xff] %v3467_v40 }
 0x45b   :  { %6213 = vst [vmem:[%s13223_s4 + $0x1780] sm:$0xff] %v4140_v23  ;;  %v3471_v6 = vpop.f32.mrf.mxu0  ;;  %4416 = vmatmul.mubr.bf16.gmra.mxu0 %v9751_v22 }
 0x45c   :  { %v4144_v39 = vpop.f32.mrf.mxu1  ;;  %5061 = vmatmul.mubr.bf16.gmra.mxu1 %v9751_v22  ;;  %6217 = vst [vmem:[%s13223_s4 + $0x17a0] sm:$0xff] %v3471_v6  ;;  %4425 = vmatprep.mubr.bf16.mxu0 %v9753_v24 }
 0x45d   :  { %6219 = vst [vmem:[%s13223_s4 + $0x17b0] sm:$0xff] %v4144_v39  ;;  %5068 = vmatprep.mubr.bf16.mxu1 %v9753_v24  ;;  %v3473_v62 = vpop.f32.mrf.mxu0 }
 0x45e   :  { %v4146_v19 = vpop.f32.mrf.mxu1  ;;  %6218 = vst [vmem:[%s13223_s4 + $0x17a8] sm:$0xff] %v3473_v62 }
 0x45f   :  { %6220 = vst [vmem:[%s13223_s4 + $0x17b8] sm:$0xff] %v4146_v19  ;;  %v3475_v22 = vpop.f32.mrf.mxu0 }
 0x460   :  { %v4148_v42 = vpop.f32.mrf.mxu1  ;;  %6224 = vst [vmem:[%s13223_s4 + $0x17d8] sm:$0xff] %v3475_v22 }
 0x461   :  { %6226 = vst [vmem:[%s13223_s4 + $0x17e8] sm:$0xff] %v4148_v42  ;;  %v3477_v24 = vpop.f32.mrf.mxu0 }
 0x462   :  { %v4150_v33 = vpop.f32.mrf.mxu1  ;;  %6225 = vst [vmem:[%s13223_s4 + $0x17e0] sm:$0xff] %v3477_v24 }
 0x463   :  { %6227 = vst [vmem:[%s13223_s4 + $0x17f0] sm:$0xff] %v4150_v33  ;;  %v3481_v44 = vpop.f32.mrf.mxu0  ;;  %4426 = vmatmul.mubr.bf16.gmra.mxu0 %v9759_v57 }
 0x464   :  { %v4154_v45 = vpop.f32.mrf.mxu1  ;;  %5069 = vmatmul.mubr.bf16.gmra.mxu1 %v9759_v57  ;;  %6231 = vst [vmem:[%s13223_s4 + $0x1810] sm:$0xff] %v3481_v44  ;;  %4435 = vmatprep.mubr.bf16.mxu0 %v9761_v54 }
 0x465   :  { %6233 = vst [vmem:[%s13223_s4 + $0x1820] sm:$0xff] %v4154_v45  ;;  %5076 = vmatprep.mubr.bf16.mxu1 %v9761_v54  ;;  %v3483_v29 = vpop.f32.mrf.mxu0 }
 0x466   :  { %v4156_v12 = vpop.f32.mrf.mxu1  ;;  %6232 = vst [vmem:[%s13223_s4 + $0x1818] sm:$0xff] %v3483_v29 }
 0x467   :  { %6234 = vst [vmem:[%s13223_s4 + $0x1828] sm:$0xff] %v4156_v12  ;;  %v3485_v57 = vpop.f32.mrf.mxu0 }
 0x468   :  { %v4158_v38 = vpop.f32.mrf.mxu1  ;;  %6238 = vst [vmem:[%s13223_s4 + $0x1848] sm:$0xff] %v3485_v57 }
 0x469   :  { %6240 = vst [vmem:[%s13223_s4 + $0x1858] sm:$0xff] %v4158_v38  ;;  %v3487_v54 = vpop.f32.mrf.mxu0 }
 0x46a   :  { %v4160_v17 = vpop.f32.mrf.mxu1  ;;  %6239 = vst [vmem:[%s13223_s4 + $0x1850] sm:$0xff] %v3487_v54 }
 0x46b   :  { %6241 = vst [vmem:[%s13223_s4 + $0x1860] sm:$0xff] %v4160_v17  ;;  %v3491_v10 = vpop.f32.mrf.mxu0  ;;  %4436 = vmatmul.mubr.bf16.gmra.mxu0 %v9767_v53 }
 0x46c   :  { %v4164_v27 = vpop.f32.mrf.mxu1  ;;  %5077 = vmatmul.mubr.bf16.gmra.mxu1 %v9767_v53  ;;  %6245 = vst [vmem:[%s13223_s4 + $0x1880] sm:$0xff] %v3491_v10  ;;  %4445 = vmatprep.mubr.bf16.mxu0 %v9769_v32 }
 0x46d   :  { %6247 = vst [vmem:[%s13223_s4 + $0x1890] sm:$0xff] %v4164_v27  ;;  %5084 = vmatprep.mubr.bf16.mxu1 %v9769_v32  ;;  %v3493_v34 = vpop.f32.mrf.mxu0 }
 0x46e   :  { %v4166_v30 = vpop.f32.mrf.mxu1  ;;  %6246 = vst [vmem:[%s13223_s4 + $0x1888] sm:$0xff] %v3493_v34 }
 0x46f   :  { %6248 = vst [vmem:[%s13223_s4 + $0x1898] sm:$0xff] %v4166_v30  ;;  %v3495_v53 = vpop.f32.mrf.mxu0 }
 0x470   :  { %v4168_v60 = vpop.f32.mrf.mxu1  ;;  %6252 = vst [vmem:[%s13223_s4 + $0x18b8] sm:$0xff] %v3495_v53 }
 0x471   :  { %6254 = vst [vmem:[%s13223_s4 + $0x18c8] sm:$0xff] %v4168_v60  ;;  %v3497_v32 = vpop.f32.mrf.mxu0 }
 0x472   :  { %v4170_v31 = vpop.f32.mrf.mxu1  ;;  %6253 = vst [vmem:[%s13223_s4 + $0x18c0] sm:$0xff] %v3497_v32 }
 0x473   :  { %6255 = vst [vmem:[%s13223_s4 + $0x18d0] sm:$0xff] %v4170_v31  ;;  %v3501_v46 = vpop.f32.mrf.mxu0  ;;  %4446 = vmatmul.mubr.bf16.gmra.mxu0 %v9775_v1 }
 0x474   :  { %v4174_v49 = vpop.f32.mrf.mxu1  ;;  %5085 = vmatmul.mubr.bf16.gmra.mxu1 %v9775_v1  ;;  %6259 = vst [vmem:[%s13223_s4 + $0x18f0] sm:$0xff] %v3501_v46  ;;  %4455 = vmatprep.mubr.bf16.mxu0 %v9777_v13 }
 0x475   :  { %6261 = vst [vmem:[%s13223_s4 + $0x1900] sm:$0xff] %v4174_v49  ;;  %5092 = vmatprep.mubr.bf16.mxu1 %v9777_v13  ;;  %v3503_v36 = vpop.f32.mrf.mxu0 }
 0x476   :  { %v4176_v2 = vpop.f32.mrf.mxu1  ;;  %6260 = vst [vmem:[%s13223_s4 + $0x18f8] sm:$0xff] %v3503_v36 }
 0x477   :  { %6262 = vst [vmem:[%s13223_s4 + $0x1908] sm:$0xff] %v4176_v2  ;;  %v3505_v1 = vpop.f32.mrf.mxu0 }
 0x478   :  { %v4178_v20 = vpop.f32.mrf.mxu1  ;;  %6266 = vst [vmem:[%s13223_s4 + $0x1928] sm:$0xff] %v3505_v1 }
 0x479   :  { %6268 = vst [vmem:[%s13223_s4 + $0x1938] sm:$0xff] %v4178_v20  ;;  %v3507_v13 = vpop.f32.mrf.mxu0 }
 0x47a   :  { %v4180_v61 = vpop.f32.mrf.mxu1  ;;  %6267 = vst [vmem:[%s13223_s4 + $0x1930] sm:$0xff] %v3507_v13 }
 0x47b   :  { %6269 = vst [vmem:[%s13223_s4 + $0x1940] sm:$0xff] %v4180_v61  ;;  %v3511_v5 = vpop.f32.mrf.mxu0  ;;  %4456 = vmatmul.mubr.bf16.gmra.mxu0 %v9783_v50 }
 0x47c   :  { %v4184_v41 = vpop.f32.mrf.mxu1  ;;  %5093 = vmatmul.mubr.bf16.gmra.mxu1 %v9783_v50  ;;  %6273 = vst [vmem:[%s13223_s4 + $0x1960] sm:$0xff] %v3511_v5  ;;  %4465 = vmatprep.mubr.bf16.mxu0 %v9785_v7 }
 0x47d   :  { %6275 = vst [vmem:[%s13223_s4 + $0x1970] sm:$0xff] %v4184_v41  ;;  %5100 = vmatprep.mubr.bf16.mxu1 %v9785_v7  ;;  %v3513_v21 = vpop.f32.mrf.mxu0 }
 0x47e   :  { %v4186_v43 = vpop.f32.mrf.mxu1  ;;  %6274 = vst [vmem:[%s13223_s4 + $0x1968] sm:$0xff] %v3513_v21 }
 0x47f   :  { %6276 = vst [vmem:[%s13223_s4 + $0x1978] sm:$0xff] %v4186_v43  ;;  %v3515_v50 = vpop.f32.mrf.mxu0 }
 0x480   :  { %v4188_v25 = vpop.f32.mrf.mxu1  ;;  %6280 = vst [vmem:[%s13223_s4 + $0x1998] sm:$0xff] %v3515_v50 }
 0x481   :  { %6282 = vst [vmem:[%s13223_s4 + $0x19a8] sm:$0xff] %v4188_v25  ;;  %v3517_v7 = vpop.f32.mrf.mxu0 }
 0x482   :  { %v4190_v48 = vpop.f32.mrf.mxu1  ;;  %6281 = vst [vmem:[%s13223_s4 + $0x19a0] sm:$0xff] %v3517_v7  ;;  %v13616_v7 = vld [vmem:[#allocation7_spill] sm:$0xff] }
 0x483   :  { %6283 = vst [vmem:[%s13223_s4 + $0x19b0] sm:$0xff] %v4190_v48  ;;  %v3521_v55 = vpop.f32.mrf.mxu0  ;;  %4466 = vmatmul.mubr.bf16.gmra.mxu0 %v9791_v9 }
 0x484   :  { %v4194_v4 = vpop.f32.mrf.mxu1  ;;  %5101 = vmatmul.mubr.bf16.gmra.mxu1 %v9791_v9  ;;  %6287 = vst [vmem:[%s13223_s4 + $0x19d0] sm:$0xff] %v3521_v55  ;;  %4475 = vmatprep.mubr.bf16.mxu0 %v9793_v37 }
 0x485   :  { %6289 = vst [vmem:[%s13223_s4 + $0x19e0] sm:$0xff] %v4194_v4  ;;  %5108 = vmatprep.mubr.bf16.mxu1 %v9793_v37  ;;  %v3523_v58 = vpop.f32.mrf.mxu0 }
 0x486   :  { %v4196_v16 = vpop.f32.mrf.mxu1  ;;  %6288 = vst [vmem:[%s13223_s4 + $0x19d8] sm:$0xff] %v3523_v58 }
 0x487   :  { %6290 = vst [vmem:[%s13223_s4 + $0x19e8] sm:$0xff] %v4196_v16  ;;  %v3525_v9 = vpop.f32.mrf.mxu0 }
 0x488   :  { %v4198_v40 = vpop.f32.mrf.mxu1  ;;  %6294 = vst [vmem:[%s13223_s4 + $0x1a08] sm:$0xff] %v3525_v9 }
 0x489   :  { %6296 = vst [vmem:[%s13223_s4 + $0x1a18] sm:$0xff] %v4198_v40  ;;  %v3527_v37 = vpop.f32.mrf.mxu0  ;;  %v13617_v40 = vld [vmem:[#allocation24_spill] sm:$0xff] }
 0x48a   :  { %v4200_v23 = vpop.f32.mrf.mxu1  ;;  %6295 = vst [vmem:[%s13223_s4 + $0x1a10] sm:$0xff] %v3527_v37 }
 0x48b   :  { %6297 = vst [vmem:[%s13223_s4 + $0x1a20] sm:$0xff] %v4200_v23  ;;  %v3531_v6 = vpop.f32.mrf.mxu0  ;;  %4476 = vmatmul.mubr.bf16.gmra.mxu0 %v9799_v47  ;;  %v13618_v23 = vld [vmem:[#allocation11_spill] sm:$0xff] }
 0x48c   :  { %v4204_v39 = vpop.f32.mrf.mxu1  ;;  %5109 = vmatmul.mubr.bf16.gmra.mxu1 %v9799_v47  ;;  %6301 = vst [vmem:[%s13223_s4 + $0x1a40] sm:$0xff] %v3531_v6  ;;  %4485 = vmatprep.mubr.bf16.mxu0 %v9801_v28 }
 0x48d   :  { %6303 = vst [vmem:[%s13223_s4 + $0x1a50] sm:$0xff] %v4204_v39  ;;  %5116 = vmatprep.mubr.bf16.mxu1 %v9801_v28  ;;  %v3533_v62 = vpop.f32.mrf.mxu0 }
 0x48e   :  { %v4206_v19 = vpop.f32.mrf.mxu1  ;;  %6302 = vst [vmem:[%s13223_s4 + $0x1a48] sm:$0xff] %v3533_v62 }
 0x48f   :  { %6304 = vst [vmem:[%s13223_s4 + $0x1a58] sm:$0xff] %v4206_v19  ;;  %v3535_v47 = vpop.f32.mrf.mxu0 }
 0x490   :  { %v4208_v22 = vpop.f32.mrf.mxu1  ;;  %6308 = vst [vmem:[%s13223_s4 + $0x1a78] sm:$0xff] %v3535_v47 }
 0x491   :  { %6310 = vst [vmem:[%s13223_s4 + $0x1a88] sm:$0xff] %v4208_v22  ;;  %v3537_v28 = vpop.f32.mrf.mxu0 }
 0x492   :  { %v4210_v42 = vpop.f32.mrf.mxu1  ;;  %6309 = vst [vmem:[%s13223_s4 + $0x1a80] sm:$0xff] %v3537_v28 }
 0x493   :  { %6311 = vst [vmem:[%s13223_s4 + $0x1a90] sm:$0xff] %v4210_v42  ;;  %v3541_v24 = vpop.f32.mrf.mxu0  ;;  %4486 = vmatmul.mubr.bf16.gmra.mxu0 %v9807_v26  ;;  %v13619_v42 = vld [vmem:[#allocation6_spill] sm:$0xff] }
 0x494   :  { %v4214_v33 = vpop.f32.mrf.mxu1  ;;  %5117 = vmatmul.mubr.bf16.gmra.mxu1 %v9807_v26  ;;  %6315 = vst [vmem:[%s13223_s4 + $0x1ab0] sm:$0xff] %v3541_v24  ;;  %4495 = vmatprep.mubr.bf16.mxu0 %v9809_v11 }
 0x495   :  { %6317 = vst [vmem:[%s13223_s4 + $0x1ac0] sm:$0xff] %v4214_v33  ;;  %5124 = vmatprep.mubr.bf16.mxu1 %v9809_v11  ;;  %v3543_v44 = vpop.f32.mrf.mxu0  ;;  %v13620_v33 = vld [vmem:[#allocation25_spill] sm:$0xff] }
 0x496   :  { %v4216_v45 = vpop.f32.mrf.mxu1  ;;  %6316 = vst [vmem:[%s13223_s4 + $0x1ab8] sm:$0xff] %v3543_v44 }
 0x497   :  { %6318 = vst [vmem:[%s13223_s4 + $0x1ac8] sm:$0xff] %v4216_v45  ;;  %v3545_v26 = vpop.f32.mrf.mxu0 }
 0x498   :  { %v4218_v29 = vpop.f32.mrf.mxu1  ;;  %6322 = vst [vmem:[%s13223_s4 + $0x1ae8] sm:$0xff] %v3545_v26 }
 0x499   :  { %6324 = vst [vmem:[%s13223_s4 + $0x1af8] sm:$0xff] %v4218_v29  ;;  %v3547_v11 = vpop.f32.mrf.mxu0 }
 0x49a   :  { %v4220_v12 = vpop.f32.mrf.mxu1  ;;  %6323 = vst [vmem:[%s13223_s4 + $0x1af0] sm:$0xff] %v3547_v11 }
 0x49b   :  { %6325 = vst [vmem:[%s13223_s4 + $0x1b00] sm:$0xff] %v4220_v12  ;;  %v3551_v57 = vpop.f32.mrf.mxu0  ;;  %4496 = vmatmul.mubr.bf16.gmra.mxu0 %v9815_v63 }
 0x49c   :  { %v4224_v38 = vpop.f32.mrf.mxu1  ;;  %5125 = vmatmul.mubr.bf16.gmra.mxu1 %v9815_v63  ;;  %6329 = vst [vmem:[%s13223_s4 + $0x1b20] sm:$0xff] %v3551_v57  ;;  %4505 = vmatprep.mubr.bf16.mxu0 %v9817_v51 }
 0x49d   :  { %6331 = vst [vmem:[%s13223_s4 + $0x1b30] sm:$0xff] %v4224_v38  ;;  %5132 = vmatprep.mubr.bf16.mxu1 %v9817_v51  ;;  %v3553_v54 = vpop.f32.mrf.mxu0  ;;  %v13621_v38 = vld [vmem:[#allocation12_spill] sm:$0xff] }
 0x49e   :  { %v4226_v17 = vpop.f32.mrf.mxu1  ;;  %6330 = vst [vmem:[%s13223_s4 + $0x1b28] sm:$0xff] %v3553_v54 }
 0x49f   :  { %6332 = vst [vmem:[%s13223_s4 + $0x1b38] sm:$0xff] %v4226_v17  ;;  %v3555_v63 = vpop.f32.mrf.mxu0  ;;  %v13622_v17 = vld [vmem:[#allocation26_spill] sm:$0xff] }
 0x4a0   :  { %v4228_v10 = vpop.f32.mrf.mxu1  ;;  %6336 = vst [vmem:[%s13223_s4 + $0x1b58] sm:$0xff] %v3555_v63 }
 0x4a1   :  { %6338 = vst [vmem:[%s13223_s4 + $0x1b68] sm:$0xff] %v4228_v10  ;;  %v3557_v51 = vpop.f32.mrf.mxu0 }
 0x4a2   :  { %v4230_v27 = vpop.f32.mrf.mxu1  ;;  %6337 = vst [vmem:[%s13223_s4 + $0x1b60] sm:$0xff] %v3557_v51 }
 0x4a3   :  { %6339 = vst [vmem:[%s13223_s4 + $0x1b70] sm:$0xff] %v4230_v27  ;;  %v3561_v34 = vpop.f32.mrf.mxu0  ;;  %4506 = vmatmul.mubr.bf16.gmra.mxu0 %v9823_v35 }
 0x4a4   :  { %v4234_v30 = vpop.f32.mrf.mxu1  ;;  %5133 = vmatmul.mubr.bf16.gmra.mxu1 %v9823_v35  ;;  %6343 = vst [vmem:[%s13223_s4 + $0x1b90] sm:$0xff] %v3561_v34  ;;  %4515 = vmatprep.mubr.bf16.mxu0 %v9825_v52 }
 0x4a5   :  { %6345 = vst [vmem:[%s13223_s4 + $0x1ba0] sm:$0xff] %v4234_v30  ;;  %5140 = vmatprep.mubr.bf16.mxu1 %v9825_v52  ;;  %v3563_v53 = vpop.f32.mrf.mxu0 }
 0x4a6   :  { %v4236_v60 = vpop.f32.mrf.mxu1  ;;  %6344 = vst [vmem:[%s13223_s4 + $0x1b98] sm:$0xff] %v3563_v53 }
 0x4a7   :  { %6346 = vst [vmem:[%s13223_s4 + $0x1ba8] sm:$0xff] %v4236_v60  ;;  %v3565_v35 = vpop.f32.mrf.mxu0  ;;  %v13623_v60 = vld [vmem:[#allocation28_spill] sm:$0xff] }
 0x4a8   :  { %v4238_v32 = vpop.f32.mrf.mxu1  ;;  %6350 = vst [vmem:[%s13223_s4 + $0x1bc8] sm:$0xff] %v3565_v35 }
 0x4a9   :  { %6352 = vst [vmem:[%s13223_s4 + $0x1bd8] sm:$0xff] %v4238_v32  ;;  %v3567_v52 = vpop.f32.mrf.mxu0  ;;  %v13624_v32 = vld [vmem:[#allocation5_spill] sm:$0xff] }
 0x4aa   :  { %v4240_v31 = vpop.f32.mrf.mxu1  ;;  %6351 = vst [vmem:[%s13223_s4 + $0x1bd0] sm:$0xff] %v3567_v52 }
 0x4ab   :  { %6353 = vst [vmem:[%s13223_s4 + $0x1be0] sm:$0xff] %v4240_v31  ;;  %v4277_v46 = vpop.f32.mrf.mxu0  ;;  %4516 = vmatmul.mubr.bf16.gmra.mxu0 %v9831_v14 }
 0x4ac   :  { %v4950_v49 = vpop.f32.mrf.mxu1  ;;  %5141 = vmatmul.mubr.bf16.gmra.mxu1 %v9831_v14  ;;  %5465 = vst [vmem:[%s13223_s4 + $0x20] sm:$0xff] %v4277_v46  ;;  %4525 = vmatprep.mubr.bf16.mxu0 %v9833_v3 }
 0x4ad   :  { %5467 = vst.msk [vmem:[%s13223_s4 + $0x30] sm:$0xff] %vm261_vm0, %v4950_v49  ;;  %5148 = vmatprep.mubr.bf16.mxu1 %v9833_v3  ;;  %v4279_v36 = vpop.f32.mrf.mxu0 }
 0x4ae   :  { %v4952_v2 = vpop.f32.mrf.mxu1  ;;  %5466 = vst [vmem:[%s13223_s4 + $0x28] sm:$0xff] %v4279_v36 }
 0x4af   :  { %v4281_v14 = vpop.f32.mrf.mxu0 }
 0x4b0   :  { %v4953_v1 = vpop.f32.mrf.mxu1  ;;  %5472 = vst [vmem:[%s13223_s4 + $0x58] sm:$0xff] %v4281_v14 }
 0x4b1   :  { %5474 = vst.msk [vmem:[%s13223_s4 + $0x68] sm:$0xff] %vm261_vm0, %v4953_v1  ;;  %v4283_v20 = vpop.f32.mrf.mxu0  ;;  %v13625_v1 = vld [vmem:[#allocation29_spill] sm:$0xff] }
 0x4b2   :  { %v4955_v13 = vpop.f32.mrf.mxu1  ;;  %5473 = vst [vmem:[%s13223_s4 + $0x60] sm:$0xff] %v4283_v20 }
 0x4b3   :  { %v4287_v3 = vpop.f32.mrf.mxu0  ;;  %4526 = vmatmul.mubr.bf16.gmra.mxu0 %v9851_v59  ;;  %v13626_v13 = vld [vmem:[#allocation8_spill] sm:$0xff] }
 0x4b4   :  { %v4958_v61 = vpop.f32.mrf.mxu1  ;;  %5149 = vmatmul.mubr.bf16.gmra.mxu1 %v9851_v59  ;;  %5479 = vst [vmem:[%s13223_s4 + $0x90] sm:$0xff] %v4287_v3  ;;  %4535 = vmatprep.mubr.bf16.mxu0 %v9859_v0 }
 0x4b5   :  { %5481 = vst.msk [vmem:[%s13223_s4 + $0xa0] sm:$0xff] %vm261_vm0, %v4958_v61  ;;  %5156 = vmatprep.mubr.bf16.mxu1 %v9859_v0  ;;  %v4289_v5 = vpop.f32.mrf.mxu0 }
 0x4b6   :  { %v4960_v41 = vpop.f32.mrf.mxu1  ;;  %5480 = vst [vmem:[%s13223_s4 + $0x98] sm:$0xff] %v4289_v5 }
 0x4b7   :  { %v4291_v59 = vpop.f32.mrf.mxu0 }
 0x4b8   :  { %v4961_v21 = vpop.f32.mrf.mxu1  ;;  %5486 = vst [vmem:[%s13223_s4 + $0xc8] sm:$0xff] %v4291_v59 }
 0x4b9   :  { %5488 = vst.msk [vmem:[%s13223_s4 + $0xd8] sm:$0xff] %vm261_vm0, %v4961_v21  ;;  %v4293_v43 = vpop.f32.mrf.mxu0 }
 0x4ba   :  { %v4963_v50 = vpop.f32.mrf.mxu1  ;;  %5487 = vst [vmem:[%s13223_s4 + $0xd0] sm:$0xff] %v4293_v43 }
 0x4bb   :  { %v4297_v0 = vpop.f32.mrf.mxu0  ;;  %4536 = vmatmul.mubr.bf16.gmra.mxu0 %v9883_v15  ;;  %v13627_v50 = vld [vmem:[#allocation15_spill] sm:$0xff] }
 0x4bc   :  { %v4966_v25 = vpop.f32.mrf.mxu1  ;;  %5157 = vmatmul.mubr.bf16.gmra.mxu1 %v9883_v15  ;;  %5493 = vst [vmem:[%s13223_s4 + $0x100] sm:$0xff] %v4297_v0  ;;  %4545 = vmatprep.mubr.bf16.mxu0 %v13616_v7 }
 0x4bd   :  { %5495 = vst.msk [vmem:[%s13223_s4 + $0x110] sm:$0xff] %vm261_vm0, %v4966_v25  ;;  %5164 = vmatprep.mubr.bf16.mxu1 %v13616_v7  ;;  %v4299_v48 = vpop.f32.mrf.mxu0  ;;  %v13628_v25 = vld [vmem:[#allocation27_spill] sm:$0xff] }
 0x4be   :  { %v4968_v55 = vpop.f32.mrf.mxu1  ;;  %5494 = vst [vmem:[%s13223_s4 + $0x108] sm:$0xff] %v4299_v48 }
 0x4bf   :  { %v4301_v15 = vpop.f32.mrf.mxu0 }
 0x4c0   :  { %v4969_v4 = vpop.f32.mrf.mxu1  ;;  %5500 = vst [vmem:[%s13223_s4 + $0x138] sm:$0xff] %v4301_v15 }
 0x4c1   :  { %5502 = vst.msk [vmem:[%s13223_s4 + $0x148] sm:$0xff] %vm261_vm0, %v4969_v4  ;;  %v4303_v58 = vpop.f32.mrf.mxu0 }
 0x4c2   :  { %v4971_v16 = vpop.f32.mrf.mxu1  ;;  %5501 = vst [vmem:[%s13223_s4 + $0x140] sm:$0xff] %v4303_v58 }
 0x4c3   :  { %v4307_v9 = vpop.f32.mrf.mxu0  ;;  %4546 = vmatmul.mubr.bf16.gmra.mxu0 %v13617_v40 }
 0x4c4   :  { %v4974_v37 = vpop.f32.mrf.mxu1  ;;  %5165 = vmatmul.mubr.bf16.gmra.mxu1 %v13617_v40  ;;  %5507 = vst [vmem:[%s13223_s4 + $0x170] sm:$0xff] %v4307_v9  ;;  %4555 = vmatprep.mubr.bf16.mxu0 %v13618_v23  ;;  %v13629_v9 = vld [vmem:[#allocation21_spill] sm:$0xff] }
 0x4c5   :  { %5509 = vst.msk [vmem:[%s13223_s4 + $0x180] sm:$0xff] %vm261_vm0, %v4974_v37  ;;  %5172 = vmatprep.mubr.bf16.mxu1 %v13618_v23  ;;  %v4309_v6 = vpop.f32.mrf.mxu0  ;;  %v13630_v37 = vld [vmem:[#allocation9_spill] sm:$0xff] }
 0x4c6   :  { %v4976_v39 = vpop.f32.mrf.mxu1  ;;  %5508 = vst [vmem:[%s13223_s4 + $0x178] sm:$0xff] %v4309_v6 }
 0x4c7   :  { %v4311_v62 = vpop.f32.mrf.mxu0 }
 0x4c8   :  { %v4977_v19 = vpop.f32.mrf.mxu1  ;;  %5514 = vst [vmem:[%s13223_s4 + $0x1a8] sm:$0xff] %v4311_v62 }
 0x4c9   :  { %5516 = vst.msk [vmem:[%s13223_s4 + $0x1b8] sm:$0xff] %vm261_vm0, %v4977_v19  ;;  %v4313_v47 = vpop.f32.mrf.mxu0 }
 0x4ca   :  { %v4979_v22 = vpop.f32.mrf.mxu1  ;;  %5515 = vst [vmem:[%s13223_s4 + $0x1b0] sm:$0xff] %v4313_v47 }
 0x4cb   :  { %v4317_v28 = vpop.f32.mrf.mxu0  ;;  %4556 = vmatmul.mubr.bf16.gmra.mxu0 %v13619_v42 }
 0x4cc   :  { %v4982_v24 = vpop.f32.mrf.mxu1  ;;  %5173 = vmatmul.mubr.bf16.gmra.mxu1 %v13619_v42  ;;  %5521 = vst [vmem:[%s13223_s4 + $0x1e0] sm:$0xff] %v4317_v28  ;;  %4565 = vmatprep.mubr.bf16.mxu0 %v13620_v33  ;;  %v13631_v28 = vld [vmem:[#allocation30_spill] sm:$0xff] }
 0x4cd   :  { %5523 = vst.msk [vmem:[%s13223_s4 + $0x1f0] sm:$0xff] %vm261_vm0, %v4982_v24  ;;  %5180 = vmatprep.mubr.bf16.mxu1 %v13620_v33  ;;  %v4319_v44 = vpop.f32.mrf.mxu0  ;;  %v13632_v24 = vld [vmem:[#allocation16_spill] sm:$0xff] }
 0x4ce   :  { %v4984_v45 = vpop.f32.mrf.mxu1  ;;  %5522 = vst [vmem:[%s13223_s4 + $0x1e8] sm:$0xff] %v4319_v44 }
 0x4cf   :  { %v4321_v26 = vpop.f32.mrf.mxu0 }
 0x4d0   :  { %v4985_v29 = vpop.f32.mrf.mxu1  ;;  %5528 = vst [vmem:[%s13223_s4 + $0x218] sm:$0xff] %v4321_v26 }
 0x4d1   :  { %5530 = vst.msk [vmem:[%s13223_s4 + $0x228] sm:$0xff] %vm261_vm0, %v4985_v29  ;;  %v4323_v11 = vpop.f32.mrf.mxu0 }
 0x4d2   :  { %v4987_v12 = vpop.f32.mrf.mxu1  ;;  %5529 = vst [vmem:[%s13223_s4 + $0x220] sm:$0xff] %v4323_v11 }
 0x4d3   :  { %v4327_v57 = vpop.f32.mrf.mxu0  ;;  %4566 = vmatmul.mubr.bf16.gmra.mxu0 %v13621_v38 }
 0x4d4   :  { %v4990_v54 = vpop.f32.mrf.mxu1  ;;  %5181 = vmatmul.mubr.bf16.gmra.mxu1 %v13621_v38  ;;  %5535 = vst [vmem:[%s13223_s4 + $0x250] sm:$0xff] %v4327_v57  ;;  %4575 = vmatprep.mubr.bf16.mxu0 %v13622_v17  ;;  %v13633_v57 = vld [vmem:[#allocation14_spill] sm:$0xff] }
 0x4d5   :  { %5537 = vst.msk [vmem:[%s13223_s4 + $0x260] sm:$0xff] %vm261_vm0, %v4990_v54  ;;  %5188 = vmatprep.mubr.bf16.mxu1 %v13622_v17  ;;  %v4329_v63 = vpop.f32.mrf.mxu0  ;;  %v13634_v54 = vld [vmem:[#allocation22_spill] sm:$0xff] }
 0x4d6   :  { %v4992_v10 = vpop.f32.mrf.mxu1  ;;  %5536 = vst [vmem:[%s13223_s4 + $0x258] sm:$0xff] %v4329_v63 }
 0x4d7   :  { %v4331_v51 = vpop.f32.mrf.mxu0 }
 0x4d8   :  { %v4993_v27 = vpop.f32.mrf.mxu1  ;;  %5542 = vst [vmem:[%s13223_s4 + $0x288] sm:$0xff] %v4331_v51 }
 0x4d9   :  { %5544 = vst.msk [vmem:[%s13223_s4 + $0x298] sm:$0xff] %vm261_vm0, %v4993_v27  ;;  %v4333_v34 = vpop.f32.mrf.mxu0 }
 0x4da   :  { %v4995_v30 = vpop.f32.mrf.mxu1  ;;  %5543 = vst [vmem:[%s13223_s4 + $0x290] sm:$0xff] %v4333_v34 }
 0x4db   :  { %v4337_v53 = vpop.f32.mrf.mxu0  ;;  %4576 = vmatmul.mubr.bf16.gmra.mxu0 %v13623_v60 }
 0x4dc   :  { %v4998_v35 = vpop.f32.mrf.mxu1  ;;  %5189 = vmatmul.mubr.bf16.gmra.mxu1 %v13623_v60  ;;  %5549 = vst [vmem:[%s13223_s4 + $0x2c0] sm:$0xff] %v4337_v53  ;;  %4585 = vmatprep.mubr.bf16.mxu0 %v13624_v32  ;;  %v13635_v53 = vld [vmem:[#allocation23_spill] sm:$0xff] }
 0x4dd   :  { %5551 = vst.msk [vmem:[%s13223_s4 + $0x2d0] sm:$0xff] %vm261_vm0, %v4998_v35  ;;  %5196 = vmatprep.mubr.bf16.mxu1 %v13624_v32  ;;  %v4339_v52 = vpop.f32.mrf.mxu0  ;;  %v13636_v35 = vld [vmem:[#allocation10_spill] sm:$0xff] }
 0x4de   :  { %v5000_v31 = vpop.f32.mrf.mxu1  ;;  %5550 = vst [vmem:[%s13223_s4 + $0x2c8] sm:$0xff] %v4339_v52 }
 0x4df   :  { %v4341_v46 = vpop.f32.mrf.mxu0 }
 0x4e0   :  { %v5001_v49 = vpop.f32.mrf.mxu1  ;;  %5556 = vst [vmem:[%s13223_s4 + $0x2f8] sm:$0xff] %v4341_v46 }
 0x4e1   :  { %5558 = vst.msk [vmem:[%s13223_s4 + $0x308] sm:$0xff] %vm261_vm0, %v5001_v49  ;;  %v4343_v36 = vpop.f32.mrf.mxu0 }
 0x4e2   :  { %v5003_v2 = vpop.f32.mrf.mxu1  ;;  %5557 = vst [vmem:[%s13223_s4 + $0x300] sm:$0xff] %v4343_v36 }
 0x4e3   :  { %v4347_v14 = vpop.f32.mrf.mxu0  ;;  %4586 = vmatmul.mubr.bf16.gmra.mxu0 %v13625_v1 }
 0x4e4   :  { %v5006_v20 = vpop.f32.mrf.mxu1  ;;  %5197 = vmatmul.mubr.bf16.gmra.mxu1 %v13625_v1  ;;  %5563 = vst [vmem:[%s13223_s4 + $0x330] sm:$0xff] %v4347_v14  ;;  %4595 = vmatprep.mubr.bf16.mxu0 %v13626_v13  ;;  %v13637_v14 = vld [vmem:[#allocation19_spill] sm:$0xff] }
 0x4e5   :  { %5565 = vst.msk [vmem:[%s13223_s4 + $0x340] sm:$0xff] %vm261_vm0, %v5006_v20  ;;  %5204 = vmatprep.mubr.bf16.mxu1 %v13626_v13  ;;  %v4349_v3 = vpop.f32.mrf.mxu0  ;;  %v13638_v20 = vld [vmem:[#allocation18_spill] sm:$0xff] }
 0x4e6   :  { %v5008_v61 = vpop.f32.mrf.mxu1  ;;  %5564 = vst [vmem:[%s13223_s4 + $0x338] sm:$0xff] %v4349_v3 }
 0x4e7   :  { %v4351_v5 = vpop.f32.mrf.mxu0 }
 0x4e8   :  { %v5009_v41 = vpop.f32.mrf.mxu1  ;;  %5570 = vst [vmem:[%s13223_s4 + $0x368] sm:$0xff] %v4351_v5 }
 0x4e9   :  { %5572 = vst.msk [vmem:[%s13223_s4 + $0x378] sm:$0xff] %vm261_vm0, %v5009_v41  ;;  %v4353_v59 = vpop.f32.mrf.mxu0 }
 0x4ea   :  { %v5011_v21 = vpop.f32.mrf.mxu1  ;;  %5571 = vst [vmem:[%s13223_s4 + $0x370] sm:$0xff] %v4353_v59 }
 0x4eb   :  { %v4357_v43 = vpop.f32.mrf.mxu0  ;;  %4596 = vmatmul.mubr.bf16.gmra.mxu0 %v13627_v50 }
 0x4ec   :  { %v5014_v0 = vpop.f32.mrf.mxu1  ;;  %5205 = vmatmul.mubr.bf16.gmra.mxu1 %v13627_v50  ;;  %5577 = vst [vmem:[%s13223_s4 + $0x3a0] sm:$0xff] %v4357_v43  ;;  %4605 = vmatprep.mubr.bf16.mxu0 %v13628_v25  ;;  %v13639_v43 = vld [vmem:[#allocation17_spill] sm:$0xff] }
 0x4ed   :  { %5579 = vst.msk [vmem:[%s13223_s4 + $0x3b0] sm:$0xff] %vm261_vm0, %v5014_v0  ;;  %5212 = vmatprep.mubr.bf16.mxu1 %v13628_v25  ;;  %v4359_v7 = vpop.f32.mrf.mxu0  ;;  %v13640_v0 = vld [vmem:[#allocation13_spill] sm:$0xff] }
 0x4ee   :  { %v5016_v48 = vpop.f32.mrf.mxu1  ;;  %5578 = vst [vmem:[%s13223_s4 + $0x3a8] sm:$0xff] %v4359_v7 }
 0x4ef   :  { %v4361_v55 = vpop.f32.mrf.mxu0 }
 0x4f0   :  { %v5017_v15 = vpop.f32.mrf.mxu1  ;;  %5584 = vst [vmem:[%s13223_s4 + $0x3d8] sm:$0xff] %v4361_v55 }
 0x4f1   :  { %5586 = vst.msk [vmem:[%s13223_s4 + $0x3e8] sm:$0xff] %vm261_vm0, %v5017_v15  ;;  %v4363_v4 = vpop.f32.mrf.mxu0 }
 0x4f2   :  { %v5019_v58 = vpop.f32.mrf.mxu1  ;;  %5585 = vst [vmem:[%s13223_s4 + $0x3e0] sm:$0xff] %v4363_v4 }
 0x4f3   :  { %v4367_v16 = vpop.f32.mrf.mxu0  ;;  %4606 = vmatmul.mubr.bf16.gmra.mxu0 %v13629_v9 }
 0x4f4   :  { %v5022_v40 = vpop.f32.mrf.mxu1  ;;  %5213 = vmatmul.mubr.bf16.gmra.mxu1 %v13629_v9  ;;  %5591 = vst [vmem:[%s13223_s4 + $0x410] sm:$0xff] %v4367_v16  ;;  %4615 = vmatprep.mubr.bf16.mxu0 %v13630_v37  ;;  %v13641_v16 = vld [vmem:[#allocation33_spill] sm:$0xff] }
 0x4f5   :  { %5593 = vst.msk [vmem:[%s13223_s4 + $0x420] sm:$0xff] %vm261_vm0, %v5022_v40  ;;  %5220 = vmatprep.mubr.bf16.mxu1 %v13630_v37  ;;  %v4369_v23 = vpop.f32.mrf.mxu0  ;;  %v13642_v40 = vld [vmem:[#allocation31_spill] sm:$0xff] }
 0x4f6   :  { %v5024_v6 = vpop.f32.mrf.mxu1  ;;  %5592 = vst [vmem:[%s13223_s4 + $0x418] sm:$0xff] %v4369_v23 }
 0x4f7   :  { %v4371_v39 = vpop.f32.mrf.mxu0 }
 0x4f8   :  { %v5025_v62 = vpop.f32.mrf.mxu1  ;;  %5598 = vst [vmem:[%s13223_s4 + $0x448] sm:$0xff] %v4371_v39 }
 0x4f9   :  { %5600 = vst.msk [vmem:[%s13223_s4 + $0x458] sm:$0xff] %vm261_vm0, %v5025_v62  ;;  %v4373_v19 = vpop.f32.mrf.mxu0 }
 0x4fa   :  { %v5027_v47 = vpop.f32.mrf.mxu1  ;;  %5599 = vst [vmem:[%s13223_s4 + $0x450] sm:$0xff] %v4373_v19 }
 0x4fb   :  { %v4377_v22 = vpop.f32.mrf.mxu0  ;;  %4616 = vmatmul.mubr.bf16.gmra.mxu0 %v13631_v28 }
 0x4fc   :  { %v5030_v42 = vpop.f32.mrf.mxu1  ;;  %5221 = vmatmul.mubr.bf16.gmra.mxu1 %v13631_v28  ;;  %5605 = vst [vmem:[%s13223_s4 + $0x480] sm:$0xff] %v4377_v22  ;;  %4625 = vmatprep.mubr.bf16.mxu0 %v13632_v24  ;;  %v13643_v22 = vld [vmem:[#allocation32_spill] sm:$0xff] }
 0x4fd   :  { %5607 = vst.msk [vmem:[%s13223_s4 + $0x490] sm:$0xff] %vm261_vm0, %v5030_v42  ;;  %5228 = vmatprep.mubr.bf16.mxu1 %v13632_v24  ;;  %v4379_v33 = vpop.f32.mrf.mxu0  ;;  %v13644_v42 = vld [vmem:[#allocation34_spill] sm:$0xff] }
 0x4fe   :  { %v5032_v44 = vpop.f32.mrf.mxu1  ;;  %5606 = vst [vmem:[%s13223_s4 + $0x488] sm:$0xff] %v4379_v33 }
 0x4ff   :  { %v4381_v45 = vpop.f32.mrf.mxu0 }
 0x500   :  { %v5033_v26 = vpop.f32.mrf.mxu1  ;;  %5612 = vst [vmem:[%s13223_s4 + $0x4b8] sm:$0xff] %v4381_v45 }
 0x501   :  { %5614 = vst.msk [vmem:[%s13223_s4 + $0x4c8] sm:$0xff] %vm261_vm0, %v5033_v26  ;;  %v4383_v29 = vpop.f32.mrf.mxu0 }
 0x502   :  { %v5035_v11 = vpop.f32.mrf.mxu1  ;;  %5613 = vst [vmem:[%s13223_s4 + $0x4c0] sm:$0xff] %v4383_v29 }
 0x503   :  { %v4387_v12 = vpop.f32.mrf.mxu0  ;;  %4626 = vmatmul.mubr.bf16.gmra.mxu0 %v13633_v57 }
 0x504   :  { %v5038_v38 = vpop.f32.mrf.mxu1  ;;  %5229 = vmatmul.mubr.bf16.gmra.mxu1 %v13633_v57  ;;  %5619 = vst [vmem:[%s13223_s4 + $0x4f0] sm:$0xff] %v4387_v12  ;;  %4635 = vmatprep.mubr.bf16.mxu0 %v13634_v54  ;;  %v13645_v12 = vld [vmem:[#allocation35_spill] sm:$0xff] }
 0x505   :  { %5621 = vst.msk [vmem:[%s13223_s4 + $0x500] sm:$0xff] %vm261_vm0, %v5038_v38  ;;  %5236 = vmatprep.mubr.bf16.mxu1 %v13634_v54  ;;  %v4389_v17 = vpop.f32.mrf.mxu0  ;;  %v13646_v38 = vld [vmem:[#allocation36_spill] sm:$0xff] }
 0x506   :  { %v5040_v63 = vpop.f32.mrf.mxu1  ;;  %5620 = vst [vmem:[%s13223_s4 + $0x4f8] sm:$0xff] %v4389_v17 }
 0x507   :  { %v4391_v10 = vpop.f32.mrf.mxu0 }
 0x508   :  { %v5041_v51 = vpop.f32.mrf.mxu1  ;;  %5626 = vst [vmem:[%s13223_s4 + $0x528] sm:$0xff] %v4391_v10 }
 0x509   :  { %5628 = vst.msk [vmem:[%s13223_s4 + $0x538] sm:$0xff] %vm261_vm0, %v5041_v51  ;;  %v4393_v27 = vpop.f32.mrf.mxu0 }
 0x50a   :  { %v5043_v34 = vpop.f32.mrf.mxu1  ;;  %5627 = vst [vmem:[%s13223_s4 + $0x530] sm:$0xff] %v4393_v27 }
 0x50b   :  { %v4397_v30 = vpop.f32.mrf.mxu0  ;;  %4636 = vmatmul.mubr.bf16.gmra.mxu0 %v13635_v53 }
 0x50c   :  { %v5046_v60 = vpop.f32.mrf.mxu1  ;;  %5237 = vmatmul.mubr.bf16.gmra.mxu1 %v13635_v53  ;;  %5633 = vst [vmem:[%s13223_s4 + $0x560] sm:$0xff] %v4397_v30  ;;  %4645 = vmatprep.mubr.bf16.mxu0 %v13636_v35  ;;  %v13647_v30 = vld [vmem:[#allocation37_spill] sm:$0xff] }
 0x50d   :  { %5635 = vst.msk [vmem:[%s13223_s4 + $0x570] sm:$0xff] %vm261_vm0, %v5046_v60  ;;  %5244 = vmatprep.mubr.bf16.mxu1 %v13636_v35  ;;  %v4399_v32 = vpop.f32.mrf.mxu0  ;;  %v13648_v60 = vld [vmem:[#allocation38_spill] sm:$0xff] }
 0x50e   :  { %v5048_v52 = vpop.f32.mrf.mxu1  ;;  %5634 = vst [vmem:[%s13223_s4 + $0x568] sm:$0xff] %v4399_v32 }
 0x50f   :  { %v4401_v31 = vpop.f32.mrf.mxu0 }
 0x510   :  { %v5049_v46 = vpop.f32.mrf.mxu1  ;;  %5640 = vst [vmem:[%s13223_s4 + $0x598] sm:$0xff] %v4401_v31 }
 0x511   :  { %5642 = vst.msk [vmem:[%s13223_s4 + $0x5a8] sm:$0xff] %vm261_vm0, %v5049_v46  ;;  %v4403_v49 = vpop.f32.mrf.mxu0 }
 0x512   :  { %v5051_v36 = vpop.f32.mrf.mxu1  ;;  %5641 = vst [vmem:[%s13223_s4 + $0x5a0] sm:$0xff] %v4403_v49 }
 0x513   :  { %v4407_v2 = vpop.f32.mrf.mxu0  ;;  %4646 = vmatmul.mubr.bf16.gmra.mxu0 %v13637_v14 }
 0x514   :  { %v5054_v1 = vpop.f32.mrf.mxu1  ;;  %5245 = vmatmul.mubr.bf16.gmra.mxu1 %v13637_v14  ;;  %5647 = vst [vmem:[%s13223_s4 + $0x5d0] sm:$0xff] %v4407_v2  ;;  %4655 = vmatprep.mubr.bf16.mxu0 %v13638_v20  ;;  %v13649_v2 = vld [vmem:[#allocation39_spill] sm:$0xff] }
 0x515   :  { %5649 = vst.msk [vmem:[%s13223_s4 + $0x5e0] sm:$0xff] %vm261_vm0, %v5054_v1  ;;  %5252 = vmatprep.mubr.bf16.mxu1 %v13638_v20  ;;  %v4409_v13 = vpop.f32.mrf.mxu0  ;;  %v13650_v1 = vld [vmem:[#allocation40_spill] sm:$0xff] }
 0x516   :  { %v5056_v3 = vpop.f32.mrf.mxu1  ;;  %5648 = vst [vmem:[%s13223_s4 + $0x5d8] sm:$0xff] %v4409_v13 }
 0x517   :  { %v4411_v61 = vpop.f32.mrf.mxu0 }
 0x518   :  { %v5057_v5 = vpop.f32.mrf.mxu1  ;;  %5654 = vst [vmem:[%s13223_s4 + $0x608] sm:$0xff] %v4411_v61 }
 0x519   :  { %5656 = vst.msk [vmem:[%s13223_s4 + $0x618] sm:$0xff] %vm261_vm0, %v5057_v5  ;;  %v4413_v41 = vpop.f32.mrf.mxu0 }
 0x51a   :  { %v5059_v59 = vpop.f32.mrf.mxu1  ;;  %5655 = vst [vmem:[%s13223_s4 + $0x610] sm:$0xff] %v4413_v41 }
 0x51b   :  { %v4417_v21 = vpop.f32.mrf.mxu0  ;;  %4656 = vmatmul.mubr.bf16.gmra.mxu0 %v13639_v43 }
 0x51c   :  { %v5062_v50 = vpop.f32.mrf.mxu1  ;;  %5253 = vmatmul.mubr.bf16.gmra.mxu1 %v13639_v43  ;;  %5661 = vst [vmem:[%s13223_s4 + $0x640] sm:$0xff] %v4417_v21  ;;  %4665 = vmatprep.mubr.bf16.mxu0 %v13640_v0  ;;  %v13651_v21 = vld [vmem:[#allocation41_spill] sm:$0xff] }
 0x51d   :  { %5663 = vst.msk [vmem:[%s13223_s4 + $0x650] sm:$0xff] %vm261_vm0, %v5062_v50  ;;  %5260 = vmatprep.mubr.bf16.mxu1 %v13640_v0  ;;  %v4419_v25 = vpop.f32.mrf.mxu0  ;;  %v13652_v50 = vld [vmem:[#allocation42_spill] sm:$0xff] }
 0x51e   :  { %v5064_v7 = vpop.f32.mrf.mxu1  ;;  %5662 = vst [vmem:[%s13223_s4 + $0x648] sm:$0xff] %v4419_v25 }
 0x51f   :  { %v4421_v48 = vpop.f32.mrf.mxu0 }
 0x520   :  { %v5065_v55 = vpop.f32.mrf.mxu1  ;;  %5668 = vst [vmem:[%s13223_s4 + $0x678] sm:$0xff] %v4421_v48 }
 0x521   :  { %5670 = vst.msk [vmem:[%s13223_s4 + $0x688] sm:$0xff] %vm261_vm0, %v5065_v55  ;;  %v4423_v15 = vpop.f32.mrf.mxu0 }
 0x522   :  { %v5067_v4 = vpop.f32.mrf.mxu1  ;;  %5669 = vst [vmem:[%s13223_s4 + $0x680] sm:$0xff] %v4423_v15 }
 0x523   :  { %v4427_v58 = vpop.f32.mrf.mxu0  ;;  %4666 = vmatmul.mubr.bf16.gmra.mxu0 %v13641_v16 }
 0x524   :  { %v5070_v9 = vpop.f32.mrf.mxu1  ;;  %5261 = vmatmul.mubr.bf16.gmra.mxu1 %v13641_v16  ;;  %5675 = vst [vmem:[%s13223_s4 + $0x6b0] sm:$0xff] %v4427_v58  ;;  %4675 = vmatprep.mubr.bf16.mxu0 %v13642_v40  ;;  %v13653_v58 = vld [vmem:[#allocation43_spill] sm:$0xff] }
 0x525   :  { %5677 = vst.msk [vmem:[%s13223_s4 + $0x6c0] sm:$0xff] %vm261_vm0, %v5070_v9  ;;  %5268 = vmatprep.mubr.bf16.mxu1 %v13642_v40  ;;  %v4429_v37 = vpop.f32.mrf.mxu0  ;;  %v13654_v9 = vld [vmem:[#allocation44_spill] sm:$0xff] }
 0x526   :  { %v5072_v23 = vpop.f32.mrf.mxu1  ;;  %5676 = vst [vmem:[%s13223_s4 + $0x6b8] sm:$0xff] %v4429_v37 }
 0x527   :  { %v4431_v6 = vpop.f32.mrf.mxu0 }
 0x528   :  { %v5073_v39 = vpop.f32.mrf.mxu1  ;;  %5682 = vst [vmem:[%s13223_s4 + $0x6e8] sm:$0xff] %v4431_v6 }
 0x529   :  { %5684 = vst.msk [vmem:[%s13223_s4 + $0x6f8] sm:$0xff] %vm261_vm0, %v5073_v39  ;;  %v4433_v62 = vpop.f32.mrf.mxu0 }
 0x52a   :  { %v5075_v19 = vpop.f32.mrf.mxu1  ;;  %5683 = vst [vmem:[%s13223_s4 + $0x6f0] sm:$0xff] %v4433_v62 }
 0x52b   :  { %v4437_v47 = vpop.f32.mrf.mxu0  ;;  %4676 = vmatmul.mubr.bf16.gmra.mxu0 %v13643_v22 }
 0x52c   :  { %v5078_v28 = vpop.f32.mrf.mxu1  ;;  %5269 = vmatmul.mubr.bf16.gmra.mxu1 %v13643_v22  ;;  %5689 = vst [vmem:[%s13223_s4 + $0x720] sm:$0xff] %v4437_v47  ;;  %4685 = vmatprep.mubr.bf16.mxu0 %v13644_v42  ;;  %v13655_v47 = vld [vmem:[#allocation45_spill] sm:$0xff] }
 0x52d   :  { %5691 = vst.msk [vmem:[%s13223_s4 + $0x730] sm:$0xff] %vm261_vm0, %v5078_v28  ;;  %5276 = vmatprep.mubr.bf16.mxu1 %v13644_v42  ;;  %v4439_v24 = vpop.f32.mrf.mxu0  ;;  %v13656_v28 = vld [vmem:[#allocation46_spill] sm:$0xff] }
 0x52e   :  { %v5080_v33 = vpop.f32.mrf.mxu1  ;;  %5690 = vst [vmem:[%s13223_s4 + $0x728] sm:$0xff] %v4439_v24 }
 0x52f   :  { %v4441_v44 = vpop.f32.mrf.mxu0 }
 0x530   :  { %v5081_v45 = vpop.f32.mrf.mxu1  ;;  %5696 = vst [vmem:[%s13223_s4 + $0x758] sm:$0xff] %v4441_v44 }
 0x531   :  { %5698 = vst.msk [vmem:[%s13223_s4 + $0x768] sm:$0xff] %vm261_vm0, %v5081_v45  ;;  %v4443_v26 = vpop.f32.mrf.mxu0 }
 0x532   :  { %v5083_v29 = vpop.f32.mrf.mxu1  ;;  %5697 = vst [vmem:[%s13223_s4 + $0x760] sm:$0xff] %v4443_v26 }
 0x533   :  { %v4447_v11 = vpop.f32.mrf.mxu0  ;;  %4686 = vmatmul.mubr.bf16.gmra.mxu0 %v13645_v12 }
 0x534   :  { %v5086_v57 = vpop.f32.mrf.mxu1  ;;  %5277 = vmatmul.mubr.bf16.gmra.mxu1 %v13645_v12  ;;  %5703 = vst [vmem:[%s13223_s4 + $0x790] sm:$0xff] %v4447_v11  ;;  %4695 = vmatprep.mubr.bf16.mxu0 %v13646_v38  ;;  %v13657_v11 = vld [vmem:[#allocation47_spill] sm:$0xff] }
 0x535   :  { %5705 = vst.msk [vmem:[%s13223_s4 + $0x7a0] sm:$0xff] %vm261_vm0, %v5086_v57  ;;  %5284 = vmatprep.mubr.bf16.mxu1 %v13646_v38  ;;  %v4449_v54 = vpop.f32.mrf.mxu0  ;;  %v13658_v57 = vld [vmem:[#allocation48_spill] sm:$0xff] }
 0x536   :  { %v5088_v17 = vpop.f32.mrf.mxu1  ;;  %5704 = vst [vmem:[%s13223_s4 + $0x798] sm:$0xff] %v4449_v54 }
 0x537   :  { %v4451_v63 = vpop.f32.mrf.mxu0 }
 0x538   :  { %v5089_v10 = vpop.f32.mrf.mxu1  ;;  %5710 = vst [vmem:[%s13223_s4 + $0x7c8] sm:$0xff] %v4451_v63 }
 0x539   :  { %5712 = vst.msk [vmem:[%s13223_s4 + $0x7d8] sm:$0xff] %vm261_vm0, %v5089_v10  ;;  %v4453_v51 = vpop.f32.mrf.mxu0 }
 0x53a   :  { %v5091_v27 = vpop.f32.mrf.mxu1  ;;  %5711 = vst [vmem:[%s13223_s4 + $0x7d0] sm:$0xff] %v4453_v51 }
 0x53b   :  { %v4457_v34 = vpop.f32.mrf.mxu0  ;;  %4696 = vmatmul.mubr.bf16.gmra.mxu0 %v13647_v30 }
 0x53c   :  { %v5094_v53 = vpop.f32.mrf.mxu1  ;;  %5285 = vmatmul.mubr.bf16.gmra.mxu1 %v13647_v30  ;;  %5717 = vst [vmem:[%s13223_s4 + $0x800] sm:$0xff] %v4457_v34  ;;  %4705 = vmatprep.mubr.bf16.mxu0 %v13648_v60  ;;  %v13659_v34 = vld [vmem:[#allocation49_spill] sm:$0xff] }
 0x53d   :  { %5719 = vst.msk [vmem:[%s13223_s4 + $0x810] sm:$0xff] %vm261_vm0, %v5094_v53  ;;  %5292 = vmatprep.mubr.bf16.mxu1 %v13648_v60  ;;  %v4459_v35 = vpop.f32.mrf.mxu0  ;;  %v13660_v53 = vld [vmem:[#allocation50_spill] sm:$0xff] }
 0x53e   :  { %v5096_v32 = vpop.f32.mrf.mxu1  ;;  %5718 = vst [vmem:[%s13223_s4 + $0x808] sm:$0xff] %v4459_v35 }
 0x53f   :  { %v4461_v52 = vpop.f32.mrf.mxu0 }
 0x540   :  { %v5097_v31 = vpop.f32.mrf.mxu1  ;;  %5724 = vst [vmem:[%s13223_s4 + $0x838] sm:$0xff] %v4461_v52 }
 0x541   :  { %5726 = vst.msk [vmem:[%s13223_s4 + $0x848] sm:$0xff] %vm261_vm0, %v5097_v31  ;;  %v4463_v46 = vpop.f32.mrf.mxu0 }
 0x542   :  { %v5099_v49 = vpop.f32.mrf.mxu1  ;;  %5725 = vst [vmem:[%s13223_s4 + $0x840] sm:$0xff] %v4463_v46 }
 0x543   :  { %v4467_v36 = vpop.f32.mrf.mxu0  ;;  %4706 = vmatmul.mubr.bf16.gmra.mxu0 %v13649_v2 }
 0x544   :  { %v5102_v14 = vpop.f32.mrf.mxu1  ;;  %5293 = vmatmul.mubr.bf16.gmra.mxu1 %v13649_v2  ;;  %5731 = vst [vmem:[%s13223_s4 + $0x870] sm:$0xff] %v4467_v36  ;;  %4715 = vmatprep.mubr.bf16.mxu0 %v13650_v1  ;;  %v13661_v36 = vld [vmem:[#allocation51_spill] sm:$0xff] }
 0x545   :  { %5733 = vst.msk [vmem:[%s13223_s4 + $0x880] sm:$0xff] %vm261_vm0, %v5102_v14  ;;  %5300 = vmatprep.mubr.bf16.mxu1 %v13650_v1  ;;  %v4469_v20 = vpop.f32.mrf.mxu0  ;;  %v13662_v14 = vld [vmem:[#allocation52_spill] sm:$0xff] }
 0x546   :  { %v5104_v13 = vpop.f32.mrf.mxu1  ;;  %5732 = vst [vmem:[%s13223_s4 + $0x878] sm:$0xff] %v4469_v20 }
 0x547   :  { %v4471_v3 = vpop.f32.mrf.mxu0 }
 0x548   :  { %v5105_v61 = vpop.f32.mrf.mxu1  ;;  %5738 = vst [vmem:[%s13223_s4 + $0x8a8] sm:$0xff] %v4471_v3 }
 0x549   :  { %5740 = vst.msk [vmem:[%s13223_s4 + $0x8b8] sm:$0xff] %vm261_vm0, %v5105_v61  ;;  %v4473_v5 = vpop.f32.mrf.mxu0 }
 0x54a   :  { %v5107_v41 = vpop.f32.mrf.mxu1  ;;  %5739 = vst [vmem:[%s13223_s4 + $0x8b0] sm:$0xff] %v4473_v5 }
 0x54b   :  { %v4477_v59 = vpop.f32.mrf.mxu0  ;;  %4716 = vmatmul.mubr.bf16.gmra.mxu0 %v13651_v21 }
 0x54c   :  { %v5110_v43 = vpop.f32.mrf.mxu1  ;;  %5301 = vmatmul.mubr.bf16.gmra.mxu1 %v13651_v21  ;;  %5745 = vst [vmem:[%s13223_s4 + $0x8e0] sm:$0xff] %v4477_v59  ;;  %4725 = vmatprep.mubr.bf16.mxu0 %v13652_v50  ;;  %v13663_v59 = vld [vmem:[#allocation53_spill] sm:$0xff] }
 0x54d   :  { %5747 = vst.msk [vmem:[%s13223_s4 + $0x8f0] sm:$0xff] %vm261_vm0, %v5110_v43  ;;  %5308 = vmatprep.mubr.bf16.mxu1 %v13652_v50  ;;  %v4479_v0 = vpop.f32.mrf.mxu0  ;;  %v13664_v43 = vld [vmem:[#allocation54_spill] sm:$0xff] }
 0x54e   :  { %v5112_v25 = vpop.f32.mrf.mxu1  ;;  %5746 = vst [vmem:[%s13223_s4 + $0x8e8] sm:$0xff] %v4479_v0 }
 0x54f   :  { %v4481_v7 = vpop.f32.mrf.mxu0 }
 0x550   :  { %v5113_v48 = vpop.f32.mrf.mxu1  ;;  %5752 = vst [vmem:[%s13223_s4 + $0x918] sm:$0xff] %v4481_v7 }
 0x551   :  { %5754 = vst.msk [vmem:[%s13223_s4 + $0x928] sm:$0xff] %vm261_vm0, %v5113_v48  ;;  %v4483_v55 = vpop.f32.mrf.mxu0 }
 0x552   :  { %v5115_v15 = vpop.f32.mrf.mxu1  ;;  %5753 = vst [vmem:[%s13223_s4 + $0x920] sm:$0xff] %v4483_v55 }
 0x553   :  { %v4487_v4 = vpop.f32.mrf.mxu0  ;;  %4726 = vmatmul.mubr.bf16.gmra.mxu0 %v13653_v58 }
 0x554   :  { %v5118_v16 = vpop.f32.mrf.mxu1  ;;  %5309 = vmatmul.mubr.bf16.gmra.mxu1 %v13653_v58  ;;  %5759 = vst [vmem:[%s13223_s4 + $0x950] sm:$0xff] %v4487_v4  ;;  %4735 = vmatprep.mubr.bf16.mxu0 %v13654_v9  ;;  %v13665_v4 = vld [vmem:[#allocation55_spill] sm:$0xff] }
 0x555   :  { %5761 = vst.msk [vmem:[%s13223_s4 + $0x960] sm:$0xff] %vm261_vm0, %v5118_v16  ;;  %5316 = vmatprep.mubr.bf16.mxu1 %v13654_v9  ;;  %v4489_v40 = vpop.f32.mrf.mxu0  ;;  %v13666_v16 = vld [vmem:[#allocation56_spill] sm:$0xff] }
 0x556   :  { %v5120_v37 = vpop.f32.mrf.mxu1  ;;  %5760 = vst [vmem:[%s13223_s4 + $0x958] sm:$0xff] %v4489_v40 }
 0x557   :  { %v4491_v23 = vpop.f32.mrf.mxu0 }
 0x558   :  { %v5121_v6 = vpop.f32.mrf.mxu1  ;;  %5766 = vst [vmem:[%s13223_s4 + $0x988] sm:$0xff] %v4491_v23 }
 0x559   :  { %5768 = vst.msk [vmem:[%s13223_s4 + $0x998] sm:$0xff] %vm261_vm0, %v5121_v6  ;;  %v4493_v39 = vpop.f32.mrf.mxu0 }
 0x55a   :  { %v5123_v62 = vpop.f32.mrf.mxu1  ;;  %5767 = vst [vmem:[%s13223_s4 + $0x990] sm:$0xff] %v4493_v39 }
 0x55b   :  { %v4497_v19 = vpop.f32.mrf.mxu0  ;;  %4736 = vmatmul.mubr.bf16.gmra.mxu0 %v13655_v47 }
 0x55c   :  { %v5126_v22 = vpop.f32.mrf.mxu1  ;;  %5317 = vmatmul.mubr.bf16.gmra.mxu1 %v13655_v47  ;;  %5773 = vst [vmem:[%s13223_s4 + $0x9c0] sm:$0xff] %v4497_v19  ;;  %4745 = vmatprep.mubr.bf16.mxu0 %v13656_v28  ;;  %v13667_v19 = vld [vmem:[#allocation57_spill] sm:$0xff] }
 0x55d   :  { %5775 = vst.msk [vmem:[%s13223_s4 + $0x9d0] sm:$0xff] %vm261_vm0, %v5126_v22  ;;  %5324 = vmatprep.mubr.bf16.mxu1 %v13656_v28  ;;  %v4499_v42 = vpop.f32.mrf.mxu0  ;;  %v13668_v22 = vld [vmem:[#allocation58_spill] sm:$0xff] }
 0x55e   :  { %v5128_v24 = vpop.f32.mrf.mxu1  ;;  %5774 = vst [vmem:[%s13223_s4 + $0x9c8] sm:$0xff] %v4499_v42 }
 0x55f   :  { %v4501_v33 = vpop.f32.mrf.mxu0 }
 0x560   :  { %v5129_v44 = vpop.f32.mrf.mxu1  ;;  %5780 = vst [vmem:[%s13223_s4 + $0x9f8] sm:$0xff] %v4501_v33 }
 0x561   :  { %5782 = vst.msk [vmem:[%s13223_s4 + $0xa08] sm:$0xff] %vm261_vm0, %v5129_v44  ;;  %v4503_v45 = vpop.f32.mrf.mxu0 }
 0x562   :  { %v5131_v26 = vpop.f32.mrf.mxu1  ;;  %5781 = vst [vmem:[%s13223_s4 + $0xa00] sm:$0xff] %v4503_v45 }
 0x563   :  { %v4507_v29 = vpop.f32.mrf.mxu0  ;;  %4746 = vmatmul.mubr.bf16.gmra.mxu0 %v13657_v11 }
 0x564   :  { %v5134_v12 = vpop.f32.mrf.mxu1  ;;  %5325 = vmatmul.mubr.bf16.gmra.mxu1 %v13657_v11  ;;  %5787 = vst [vmem:[%s13223_s4 + $0xa30] sm:$0xff] %v4507_v29  ;;  %4755 = vmatprep.mubr.bf16.mxu0 %v13658_v57  ;;  %v13669_v29 = vld [vmem:[#allocation59_spill] sm:$0xff] }
 0x565   :  { %5789 = vst.msk [vmem:[%s13223_s4 + $0xa40] sm:$0xff] %vm261_vm0, %v5134_v12  ;;  %5332 = vmatprep.mubr.bf16.mxu1 %v13658_v57  ;;  %v4509_v38 = vpop.f32.mrf.mxu0  ;;  %v13670_v12 = vld [vmem:[#allocation60_spill] sm:$0xff] }
 0x566   :  { %v5136_v54 = vpop.f32.mrf.mxu1  ;;  %5788 = vst [vmem:[%s13223_s4 + $0xa38] sm:$0xff] %v4509_v38 }
 0x567   :  { %v4511_v17 = vpop.f32.mrf.mxu0 }
 0x568   :  { %v5137_v63 = vpop.f32.mrf.mxu1  ;;  %5794 = vst [vmem:[%s13223_s4 + $0xa68] sm:$0xff] %v4511_v17 }
 0x569   :  { %5796 = vst.msk [vmem:[%s13223_s4 + $0xa78] sm:$0xff] %vm261_vm0, %v5137_v63  ;;  %v4513_v10 = vpop.f32.mrf.mxu0 }
 0x56a   :  { %v5139_v51 = vpop.f32.mrf.mxu1  ;;  %5795 = vst [vmem:[%s13223_s4 + $0xa70] sm:$0xff] %v4513_v10 }
 0x56b   :  { %v4517_v27 = vpop.f32.mrf.mxu0  ;;  %4756 = vmatmul.mubr.bf16.gmra.mxu0 %v13659_v34 }
 0x56c   :  { %v5142_v30 = vpop.f32.mrf.mxu1  ;;  %5333 = vmatmul.mubr.bf16.gmra.mxu1 %v13659_v34  ;;  %5801 = vst [vmem:[%s13223_s4 + $0xaa0] sm:$0xff] %v4517_v27  ;;  %4765 = vmatprep.mubr.bf16.mxu0 %v13660_v53  ;;  %v13671_v27 = vld [vmem:[#allocation61_spill] sm:$0xff] }
 0x56d   :  { %5803 = vst.msk [vmem:[%s13223_s4 + $0xab0] sm:$0xff] %vm261_vm0, %v5142_v30  ;;  %5340 = vmatprep.mubr.bf16.mxu1 %v13660_v53  ;;  %v4519_v60 = vpop.f32.mrf.mxu0  ;;  %v13672_v30 = vld [vmem:[#allocation62_spill] sm:$0xff] }
 0x56e   :  { %v5144_v35 = vpop.f32.mrf.mxu1  ;;  %5802 = vst [vmem:[%s13223_s4 + $0xaa8] sm:$0xff] %v4519_v60 }
 0x56f   :  { %v4521_v32 = vpop.f32.mrf.mxu0 }
 0x570   :  { %v5145_v52 = vpop.f32.mrf.mxu1  ;;  %5808 = vst [vmem:[%s13223_s4 + $0xad8] sm:$0xff] %v4521_v32 }
 0x571   :  { %5810 = vst.msk [vmem:[%s13223_s4 + $0xae8] sm:$0xff] %vm261_vm0, %v5145_v52  ;;  %v4523_v31 = vpop.f32.mrf.mxu0 }
 0x572   :  { %v5147_v46 = vpop.f32.mrf.mxu1  ;;  %5809 = vst [vmem:[%s13223_s4 + $0xae0] sm:$0xff] %v4523_v31 }
 0x573   :  { %v4527_v49 = vpop.f32.mrf.mxu0  ;;  %4766 = vmatmul.mubr.bf16.gmra.mxu0 %v13661_v36 }
 0x574   :  { %v5150_v2 = vpop.f32.mrf.mxu1  ;;  %5341 = vmatmul.mubr.bf16.gmra.mxu1 %v13661_v36  ;;  %5815 = vst [vmem:[%s13223_s4 + $0xb10] sm:$0xff] %v4527_v49  ;;  %4775 = vmatprep.mubr.bf16.mxu0 %v13662_v14  ;;  %v13673_v49 = vld [vmem:[#allocation63_spill] sm:$0xff] }
 0x575   :  { %5817 = vst.msk [vmem:[%s13223_s4 + $0xb20] sm:$0xff] %vm261_vm0, %v5150_v2  ;;  %5348 = vmatprep.mubr.bf16.mxu1 %v13662_v14  ;;  %v4529_v1 = vpop.f32.mrf.mxu0  ;;  %v13674_v2 = vld [vmem:[#allocation64_spill] sm:$0xff] }
 0x576   :  { %v5152_v20 = vpop.f32.mrf.mxu1  ;;  %5816 = vst [vmem:[%s13223_s4 + $0xb18] sm:$0xff] %v4529_v1 }
 0x577   :  { %v4531_v13 = vpop.f32.mrf.mxu0 }
 0x578   :  { %v5153_v3 = vpop.f32.mrf.mxu1  ;;  %5822 = vst [vmem:[%s13223_s4 + $0xb48] sm:$0xff] %v4531_v13 }
 0x579   :  { %5824 = vst.msk [vmem:[%s13223_s4 + $0xb58] sm:$0xff] %vm261_vm0, %v5153_v3  ;;  %v4533_v61 = vpop.f32.mrf.mxu0 }
 0x57a   :  { %v5155_v5 = vpop.f32.mrf.mxu1  ;;  %5823 = vst [vmem:[%s13223_s4 + $0xb50] sm:$0xff] %v4533_v61 }
 0x57b   :  { %v4537_v41 = vpop.f32.mrf.mxu0  ;;  %4776 = vmatmul.mubr.bf16.gmra.mxu0 %v13663_v59 }
 0x57c   :  { %v5158_v21 = vpop.f32.mrf.mxu1  ;;  %5349 = vmatmul.mubr.bf16.gmra.mxu1 %v13663_v59  ;;  %5829 = vst [vmem:[%s13223_s4 + $0xb80] sm:$0xff] %v4537_v41  ;;  %4785 = vmatprep.mubr.bf16.mxu0 %v13664_v43  ;;  %v13675_v41 = vld [vmem:[#allocation65_spill] sm:$0xff] }
 0x57d   :  { %5831 = vst.msk [vmem:[%s13223_s4 + $0xb90] sm:$0xff] %vm261_vm0, %v5158_v21  ;;  %5356 = vmatprep.mubr.bf16.mxu1 %v13664_v43  ;;  %v4539_v50 = vpop.f32.mrf.mxu0  ;;  %v13676_v21 = vld [vmem:[#allocation66_spill] sm:$0xff] }
 0x57e   :  { %v5160_v0 = vpop.f32.mrf.mxu1  ;;  %5830 = vst [vmem:[%s13223_s4 + $0xb88] sm:$0xff] %v4539_v50 }
 0x57f   :  { %v4541_v25 = vpop.f32.mrf.mxu0 }
 0x580   :  { %v5161_v7 = vpop.f32.mrf.mxu1  ;;  %5836 = vst [vmem:[%s13223_s4 + $0xbb8] sm:$0xff] %v4541_v25 }
 0x581   :  { %5838 = vst.msk [vmem:[%s13223_s4 + $0xbc8] sm:$0xff] %vm261_vm0, %v5161_v7  ;;  %v4543_v48 = vpop.f32.mrf.mxu0 }
 0x582   :  { %v5163_v55 = vpop.f32.mrf.mxu1  ;;  %5837 = vst [vmem:[%s13223_s4 + $0xbc0] sm:$0xff] %v4543_v48 }
 0x583   :  { %v4547_v15 = vpop.f32.mrf.mxu0  ;;  %4786 = vmatmul.mubr.bf16.gmra.mxu0 %v13665_v4 }
 0x584   :  { %v5166_v58 = vpop.f32.mrf.mxu1  ;;  %5357 = vmatmul.mubr.bf16.gmra.mxu1 %v13665_v4  ;;  %5843 = vst [vmem:[%s13223_s4 + $0xbf0] sm:$0xff] %v4547_v15  ;;  %4795 = vmatprep.mubr.bf16.mxu0 %v13666_v16  ;;  %v13677_v15 = vld [vmem:[#allocation67_spill] sm:$0xff] }
 0x585   :  { %5845 = vst.msk [vmem:[%s13223_s4 + $0xc00] sm:$0xff] %vm261_vm0, %v5166_v58  ;;  %5364 = vmatprep.mubr.bf16.mxu1 %v13666_v16  ;;  %v4549_v9 = vpop.f32.mrf.mxu0  ;;  %v13678_v58 = vld [vmem:[#allocation68_spill] sm:$0xff] }
 0x586   :  { %v5168_v40 = vpop.f32.mrf.mxu1  ;;  %5844 = vst [vmem:[%s13223_s4 + $0xbf8] sm:$0xff] %v4549_v9 }
 0x587   :  { %v4551_v37 = vpop.f32.mrf.mxu0 }
 0x588   :  { %v5169_v23 = vpop.f32.mrf.mxu1  ;;  %5850 = vst [vmem:[%s13223_s4 + $0xc28] sm:$0xff] %v4551_v37 }
 0x589   :  { %5852 = vst.msk [vmem:[%s13223_s4 + $0xc38] sm:$0xff] %vm261_vm0, %v5169_v23  ;;  %v4553_v6 = vpop.f32.mrf.mxu0 }
 0x58a   :  { %v5171_v39 = vpop.f32.mrf.mxu1  ;;  %5851 = vst [vmem:[%s13223_s4 + $0xc30] sm:$0xff] %v4553_v6 }
 0x58b   :  { %v4557_v62 = vpop.f32.mrf.mxu0  ;;  %4796 = vmatmul.mubr.bf16.gmra.mxu0 %v13667_v19 }
 0x58c   :  { %v5174_v47 = vpop.f32.mrf.mxu1  ;;  %5365 = vmatmul.mubr.bf16.gmra.mxu1 %v13667_v19  ;;  %5857 = vst [vmem:[%s13223_s4 + $0xc60] sm:$0xff] %v4557_v62  ;;  %4805 = vmatprep.mubr.bf16.mxu0 %v13668_v22  ;;  %v13679_v62 = vld [vmem:[#allocation69_spill] sm:$0xff] }
 0x58d   :  { %5859 = vst.msk [vmem:[%s13223_s4 + $0xc70] sm:$0xff] %vm261_vm0, %v5174_v47  ;;  %5372 = vmatprep.mubr.bf16.mxu1 %v13668_v22  ;;  %v4559_v28 = vpop.f32.mrf.mxu0  ;;  %v13680_v47 = vld [vmem:[#allocation70_spill] sm:$0xff] }
 0x58e   :  { %v5176_v42 = vpop.f32.mrf.mxu1  ;;  %5858 = vst [vmem:[%s13223_s4 + $0xc68] sm:$0xff] %v4559_v28 }
 0x58f   :  { %v4561_v24 = vpop.f32.mrf.mxu0 }
 0x590   :  { %v5177_v33 = vpop.f32.mrf.mxu1  ;;  %5864 = vst [vmem:[%s13223_s4 + $0xc98] sm:$0xff] %v4561_v24 }
 0x591   :  { %5866 = vst.msk [vmem:[%s13223_s4 + $0xca8] sm:$0xff] %vm261_vm0, %v5177_v33  ;;  %v4563_v44 = vpop.f32.mrf.mxu0 }
 0x592   :  { %v5179_v45 = vpop.f32.mrf.mxu1  ;;  %5865 = vst [vmem:[%s13223_s4 + $0xca0] sm:$0xff] %v4563_v44 }
 0x593   :  { %v4567_v26 = vpop.f32.mrf.mxu0  ;;  %4806 = vmatmul.mubr.bf16.gmra.mxu0 %v13669_v29 }
 0x594   :  { %v5182_v11 = vpop.f32.mrf.mxu1  ;;  %5373 = vmatmul.mubr.bf16.gmra.mxu1 %v13669_v29  ;;  %5871 = vst [vmem:[%s13223_s4 + $0xcd0] sm:$0xff] %v4567_v26  ;;  %4815 = vmatprep.mubr.bf16.mxu0 %v13670_v12  ;;  %v13681_v26 = vld [vmem:[#allocation71_spill] sm:$0xff] }
 0x595   :  { %5873 = vst.msk [vmem:[%s13223_s4 + $0xce0] sm:$0xff] %vm261_vm0, %v5182_v11  ;;  %5380 = vmatprep.mubr.bf16.mxu1 %v13670_v12  ;;  %v4569_v57 = vpop.f32.mrf.mxu0  ;;  %v13682_v11 = vld [vmem:[#allocation72_spill] sm:$0xff] }
 0x596   :  { %v5184_v38 = vpop.f32.mrf.mxu1  ;;  %5872 = vst [vmem:[%s13223_s4 + $0xcd8] sm:$0xff] %v4569_v57 }
 0x597   :  { %v4571_v54 = vpop.f32.mrf.mxu0 }
 0x598   :  { %v5185_v17 = vpop.f32.mrf.mxu1  ;;  %5878 = vst [vmem:[%s13223_s4 + $0xd08] sm:$0xff] %v4571_v54 }
 0x599   :  { %5880 = vst.msk [vmem:[%s13223_s4 + $0xd18] sm:$0xff] %vm261_vm0, %v5185_v17  ;;  %v4573_v63 = vpop.f32.mrf.mxu0 }
 0x59a   :  { %v5187_v10 = vpop.f32.mrf.mxu1  ;;  %5879 = vst [vmem:[%s13223_s4 + $0xd10] sm:$0xff] %v4573_v63 }
 0x59b   :  { %v4577_v51 = vpop.f32.mrf.mxu0  ;;  %4816 = vmatmul.mubr.bf16.gmra.mxu0 %v13671_v27 }
 0x59c   :  { %v5190_v34 = vpop.f32.mrf.mxu1  ;;  %5381 = vmatmul.mubr.bf16.gmra.mxu1 %v13671_v27  ;;  %5885 = vst [vmem:[%s13223_s4 + $0xd40] sm:$0xff] %v4577_v51  ;;  %4825 = vmatprep.mubr.bf16.mxu0 %v13672_v30  ;;  %v13683_v51 = vld [vmem:[#allocation73_spill] sm:$0xff] }
 0x59d   :  { %5887 = vst.msk [vmem:[%s13223_s4 + $0xd50] sm:$0xff] %vm261_vm0, %v5190_v34  ;;  %5388 = vmatprep.mubr.bf16.mxu1 %v13672_v30  ;;  %v4579_v53 = vpop.f32.mrf.mxu0  ;;  %v13684_v34 = vld [vmem:[#allocation74_spill] sm:$0xff] }
 0x59e   :  { %v5192_v60 = vpop.f32.mrf.mxu1  ;;  %5886 = vst [vmem:[%s13223_s4 + $0xd48] sm:$0xff] %v4579_v53 }
 0x59f   :  { %v4581_v35 = vpop.f32.mrf.mxu0 }
 0x5a0   :  { %v5193_v32 = vpop.f32.mrf.mxu1  ;;  %5892 = vst [vmem:[%s13223_s4 + $0xd78] sm:$0xff] %v4581_v35 }
 0x5a1   :  { %5894 = vst.msk [vmem:[%s13223_s4 + $0xd88] sm:$0xff] %vm261_vm0, %v5193_v32  ;;  %v4583_v52 = vpop.f32.mrf.mxu0 }
 0x5a2   :  { %v5195_v31 = vpop.f32.mrf.mxu1  ;;  %5893 = vst [vmem:[%s13223_s4 + $0xd80] sm:$0xff] %v4583_v52 }
 0x5a3   :  { %v4587_v46 = vpop.f32.mrf.mxu0  ;;  %4826 = vmatmul.mubr.bf16.gmra.mxu0 %v13673_v49 }
 0x5a4   :  { %v5198_v36 = vpop.f32.mrf.mxu1  ;;  %5389 = vmatmul.mubr.bf16.gmra.mxu1 %v13673_v49  ;;  %5899 = vst [vmem:[%s13223_s4 + $0xdb0] sm:$0xff] %v4587_v46  ;;  %4835 = vmatprep.mubr.bf16.mxu0 %v13674_v2  ;;  %v13685_v46 = vld [vmem:[#allocation75_spill] sm:$0xff] }
 0x5a5   :  { %5901 = vst.msk [vmem:[%s13223_s4 + $0xdc0] sm:$0xff] %vm261_vm0, %v5198_v36  ;;  %5396 = vmatprep.mubr.bf16.mxu1 %v13674_v2  ;;  %v4589_v14 = vpop.f32.mrf.mxu0  ;;  %v13686_v36 = vld [vmem:[#allocation76_spill] sm:$0xff] }
 0x5a6   :  { %v5200_v1 = vpop.f32.mrf.mxu1  ;;  %5900 = vst [vmem:[%s13223_s4 + $0xdb8] sm:$0xff] %v4589_v14 }
 0x5a7   :  { %v4591_v20 = vpop.f32.mrf.mxu0 }
 0x5a8   :  { %v5201_v13 = vpop.f32.mrf.mxu1  ;;  %5906 = vst [vmem:[%s13223_s4 + $0xde8] sm:$0xff] %v4591_v20 }
 0x5a9   :  { %5908 = vst.msk [vmem:[%s13223_s4 + $0xdf8] sm:$0xff] %vm261_vm0, %v5201_v13  ;;  %v4593_v3 = vpop.f32.mrf.mxu0 }
 0x5aa   :  { %v5203_v61 = vpop.f32.mrf.mxu1  ;;  %5907 = vst [vmem:[%s13223_s4 + $0xdf0] sm:$0xff] %v4593_v3 }
 0x5ab   :  { %v4597_v5 = vpop.f32.mrf.mxu0  ;;  %4836 = vmatmul.mubr.bf16.gmra.mxu0 %v13675_v41 }
 0x5ac   :  { %v5206_v59 = vpop.f32.mrf.mxu1  ;;  %5397 = vmatmul.mubr.bf16.gmra.mxu1 %v13675_v41  ;;  %5913 = vst [vmem:[%s13223_s4 + $0xe20] sm:$0xff] %v4597_v5  ;;  %4845 = vmatprep.mubr.bf16.mxu0 %v13676_v21 }
 0x5ad   :  { %5915 = vst.msk [vmem:[%s13223_s4 + $0xe30] sm:$0xff] %vm261_vm0, %v5206_v59  ;;  %5404 = vmatprep.mubr.bf16.mxu1 %v13676_v21  ;;  %v4599_v43 = vpop.f32.mrf.mxu0 }
 0x5ae   :  { %v5208_v50 = vpop.f32.mrf.mxu1  ;;  %5914 = vst [vmem:[%s13223_s4 + $0xe28] sm:$0xff] %v4599_v43 }
 0x5af   :  { %v4601_v0 = vpop.f32.mrf.mxu0 }
 0x5b0   :  { %v5209_v25 = vpop.f32.mrf.mxu1  ;;  %5920 = vst [vmem:[%s13223_s4 + $0xe58] sm:$0xff] %v4601_v0 }
 0x5b1   :  { %5922 = vst.msk [vmem:[%s13223_s4 + $0xe68] sm:$0xff] %vm261_vm0, %v5209_v25  ;;  %v4603_v7 = vpop.f32.mrf.mxu0 }
 0x5b2   :  { %v5211_v48 = vpop.f32.mrf.mxu1  ;;  %5921 = vst [vmem:[%s13223_s4 + $0xe60] sm:$0xff] %v4603_v7 }
 0x5b3   :  { %v4607_v55 = vpop.f32.mrf.mxu0  ;;  %4846 = vmatmul.mubr.bf16.gmra.mxu0 %v13677_v15 }
 0x5b4   :  { %v5214_v4 = vpop.f32.mrf.mxu1  ;;  %5405 = vmatmul.mubr.bf16.gmra.mxu1 %v13677_v15  ;;  %5927 = vst [vmem:[%s13223_s4 + $0xe90] sm:$0xff] %v4607_v55  ;;  %4855 = vmatprep.mubr.bf16.mxu0 %v13678_v58 }
 0x5b5   :  { %5929 = vst.msk [vmem:[%s13223_s4 + $0xea0] sm:$0xff] %vm261_vm0, %v5214_v4  ;;  %5412 = vmatprep.mubr.bf16.mxu1 %v13678_v58  ;;  %v4609_v16 = vpop.f32.mrf.mxu0 }
 0x5b6   :  { %v5216_v9 = vpop.f32.mrf.mxu1  ;;  %5928 = vst [vmem:[%s13223_s4 + $0xe98] sm:$0xff] %v4609_v16 }
 0x5b7   :  { %v4611_v40 = vpop.f32.mrf.mxu0 }
 0x5b8   :  { %v5217_v37 = vpop.f32.mrf.mxu1  ;;  %5934 = vst [vmem:[%s13223_s4 + $0xec8] sm:$0xff] %v4611_v40 }
 0x5b9   :  { %5936 = vst.msk [vmem:[%s13223_s4 + $0xed8] sm:$0xff] %vm261_vm0, %v5217_v37  ;;  %v4613_v23 = vpop.f32.mrf.mxu0 }
 0x5ba   :  { %v5219_v6 = vpop.f32.mrf.mxu1  ;;  %5935 = vst [vmem:[%s13223_s4 + $0xed0] sm:$0xff] %v4613_v23 }
 0x5bb   :  { %v4617_v39 = vpop.f32.mrf.mxu0  ;;  %4856 = vmatmul.mubr.bf16.gmra.mxu0 %v13679_v62 }
 0x5bc   :  { %v5222_v19 = vpop.f32.mrf.mxu1  ;;  %5413 = vmatmul.mubr.bf16.gmra.mxu1 %v13679_v62  ;;  %5941 = vst [vmem:[%s13223_s4 + $0xf00] sm:$0xff] %v4617_v39  ;;  %4865 = vmatprep.mubr.bf16.mxu0 %v13680_v47 }
 0x5bd   :  { %5943 = vst.msk [vmem:[%s13223_s4 + $0xf10] sm:$0xff] %vm261_vm0, %v5222_v19  ;;  %5420 = vmatprep.mubr.bf16.mxu1 %v13680_v47  ;;  %v4619_v22 = vpop.f32.mrf.mxu0 }
 0x5be   :  { %v5224_v28 = vpop.f32.mrf.mxu1  ;;  %5942 = vst [vmem:[%s13223_s4 + $0xf08] sm:$0xff] %v4619_v22 }
 0x5bf   :  { %v4621_v42 = vpop.f32.mrf.mxu0 }
 0x5c0   :  { %v5225_v24 = vpop.f32.mrf.mxu1  ;;  %5948 = vst [vmem:[%s13223_s4 + $0xf38] sm:$0xff] %v4621_v42 }
 0x5c1   :  { %5950 = vst.msk [vmem:[%s13223_s4 + $0xf48] sm:$0xff] %vm261_vm0, %v5225_v24  ;;  %v4623_v33 = vpop.f32.mrf.mxu0 }
 0x5c2   :  { %v5227_v44 = vpop.f32.mrf.mxu1  ;;  %5949 = vst [vmem:[%s13223_s4 + $0xf40] sm:$0xff] %v4623_v33 }
 0x5c3   :  { %v4627_v45 = vpop.f32.mrf.mxu0  ;;  %4866 = vmatmul.mubr.bf16.gmra.mxu0 %v13681_v26 }
 0x5c4   :  { %v5230_v29 = vpop.f32.mrf.mxu1  ;;  %5421 = vmatmul.mubr.bf16.gmra.mxu1 %v13681_v26  ;;  %5955 = vst [vmem:[%s13223_s4 + $0xf70] sm:$0xff] %v4627_v45  ;;  %4875 = vmatprep.mubr.bf16.mxu0 %v13682_v11 }
 0x5c5   :  { %5957 = vst.msk [vmem:[%s13223_s4 + $0xf80] sm:$0xff] %vm261_vm0, %v5230_v29  ;;  %5428 = vmatprep.mubr.bf16.mxu1 %v13682_v11  ;;  %v4629_v12 = vpop.f32.mrf.mxu0 }
 0x5c6   :  { %v5232_v57 = vpop.f32.mrf.mxu1  ;;  %5956 = vst [vmem:[%s13223_s4 + $0xf78] sm:$0xff] %v4629_v12 }
 0x5c7   :  { %v4631_v38 = vpop.f32.mrf.mxu0 }
 0x5c8   :  { %v5233_v54 = vpop.f32.mrf.mxu1  ;;  %5962 = vst [vmem:[%s13223_s4 + $0xfa8] sm:$0xff] %v4631_v38 }
 0x5c9   :  { %5964 = vst.msk [vmem:[%s13223_s4 + $0xfb8] sm:$0xff] %vm261_vm0, %v5233_v54  ;;  %v4633_v17 = vpop.f32.mrf.mxu0 }
 0x5ca   :  { %v5235_v63 = vpop.f32.mrf.mxu1  ;;  %5963 = vst [vmem:[%s13223_s4 + $0xfb0] sm:$0xff] %v4633_v17 }
 0x5cb   :  { %v4637_v10 = vpop.f32.mrf.mxu0  ;;  %4876 = vmatmul.mubr.bf16.gmra.mxu0 %v13683_v51 }
 0x5cc   :  { %v5238_v27 = vpop.f32.mrf.mxu1  ;;  %5429 = vmatmul.mubr.bf16.gmra.mxu1 %v13683_v51  ;;  %5969 = vst [vmem:[%s13223_s4 + $0xfe0] sm:$0xff] %v4637_v10  ;;  %4885 = vmatprep.mubr.bf16.mxu0 %v13684_v34 }
 0x5cd   :  { %5971 = vst.msk [vmem:[%s13223_s4 + $0xff0] sm:$0xff] %vm261_vm0, %v5238_v27  ;;  %5436 = vmatprep.mubr.bf16.mxu1 %v13684_v34  ;;  %v4639_v30 = vpop.f32.mrf.mxu0 }
 0x5ce   :  { %v5240_v53 = vpop.f32.mrf.mxu1  ;;  %5970 = vst [vmem:[%s13223_s4 + $0xfe8] sm:$0xff] %v4639_v30 }
 0x5cf   :  { %v4641_v60 = vpop.f32.mrf.mxu0 }
 0x5d0   :  { %v5241_v35 = vpop.f32.mrf.mxu1  ;;  %5976 = vst [vmem:[%s13223_s4 + $0x1018] sm:$0xff] %v4641_v60 }
 0x5d1   :  { %5978 = vst.msk [vmem:[%s13223_s4 + $0x1028] sm:$0xff] %vm261_vm0, %v5241_v35  ;;  %v4643_v32 = vpop.f32.mrf.mxu0 }
 0x5d2   :  { %v5243_v52 = vpop.f32.mrf.mxu1  ;;  %5977 = vst [vmem:[%s13223_s4 + $0x1020] sm:$0xff] %v4643_v32 }
 0x5d3   :  { %v4647_v31 = vpop.f32.mrf.mxu0  ;;  %4886 = vmatmul.mubr.bf16.gmra.mxu0 %v13685_v46 }
 0x5d4   :  { %v5246_v49 = vpop.f32.mrf.mxu1  ;;  %5437 = vmatmul.mubr.bf16.gmra.mxu1 %v13685_v46  ;;  %5983 = vst [vmem:[%s13223_s4 + $0x1050] sm:$0xff] %v4647_v31  ;;  %4895 = vmatprep.mubr.bf16.mxu0 %v13686_v36 }
 0x5d5   :  { %5985 = vst.msk [vmem:[%s13223_s4 + $0x1060] sm:$0xff] %vm261_vm0, %v5246_v49  ;;  %5444 = vmatprep.mubr.bf16.mxu1 %v13686_v36  ;;  %v4649_v2 = vpop.f32.mrf.mxu0 }
 0x5d6   :  { %v5248_v14 = vpop.f32.mrf.mxu1  ;;  %5984 = vst [vmem:[%s13223_s4 + $0x1058] sm:$0xff] %v4649_v2 }
 0x5d7   :  { %v4651_v1 = vpop.f32.mrf.mxu0 }
 0x5d8   :  { %v5249_v20 = vpop.f32.mrf.mxu1  ;;  %5990 = vst [vmem:[%s13223_s4 + $0x1088] sm:$0xff] %v4651_v1 }
 0x5d9   :  { %5992 = vst.msk [vmem:[%s13223_s4 + $0x1098] sm:$0xff] %vm261_vm0, %v5249_v20  ;;  %v4653_v13 = vpop.f32.mrf.mxu0 }
 0x5da   :  { %v5251_v3 = vpop.f32.mrf.mxu1  ;;  %5991 = vst [vmem:[%s13223_s4 + $0x1090] sm:$0xff] %v4653_v13 }
 0x5db   :  { %v4657_v61 = vpop.f32.mrf.mxu0  ;;  %4896 = vmatmul.mubr.bf16.gmra.mxu0 %v11035_v18 }
 0x5dc   :  { %v5254_v5 = vpop.f32.mrf.mxu1  ;;  %5445 = vmatmul.mubr.bf16.gmra.mxu1 %v11035_v18  ;;  %5997 = vst [vmem:[%s13223_s4 + $0x10c0] sm:$0xff] %v4657_v61  ;;  %4905 = vmatprep.mubr.bf16.mxu0 %v11043_v8 }
 0x5dd   :  { %5999 = vst.msk [vmem:[%s13223_s4 + $0x10d0] sm:$0xff] %vm261_vm0, %v5254_v5  ;;  %5452 = vmatprep.mubr.bf16.mxu1 %v11043_v8  ;;  %v4659_v41 = vpop.f32.mrf.mxu0 }
 0x5de   :  { %v5256_v59 = vpop.f32.mrf.mxu1  ;;  %5998 = vst [vmem:[%s13223_s4 + $0x10c8] sm:$0xff] %v4659_v41 }
 0x5df   :  { %v4661_v18 = vpop.f32.mrf.mxu0 }
 0x5e0   :  { %v5257_v21 = vpop.f32.mrf.mxu1  ;;  %6004 = vst [vmem:[%s13223_s4 + $0x10f8] sm:$0xff] %v4661_v18 }
 0x5e1   :  { %6006 = vst.msk [vmem:[%s13223_s4 + $0x1108] sm:$0xff] %vm261_vm0, %v5257_v21  ;;  %v4663_v43 = vpop.f32.mrf.mxu0 }
 0x5e2   :  { %v5259_v50 = vpop.f32.mrf.mxu1  ;;  %6005 = vst [vmem:[%s13223_s4 + $0x1100] sm:$0xff] %v4663_v43 }
 0x5e3   :  { %v4667_v8 = vpop.f32.mrf.mxu0  ;;  %4906 = vmatmul.mubr.bf16.gmra.mxu0 %v11067_v56 }
 0x5e4   :  { %v5262_v0 = vpop.f32.mrf.mxu1  ;;  %5453 = vmatmul.mubr.bf16.gmra.mxu1 %v11067_v56  ;;  %6011 = vst [vmem:[%s13223_s4 + $0x1130] sm:$0xff] %v4667_v8 }
 0x5e5   :  { %6013 = vst.msk [vmem:[%s13223_s4 + $0x1140] sm:$0xff] %vm261_vm0, %v5262_v0  ;;  %v4669_v25 = vpop.f32.mrf.mxu0 }
 0x5e6   :  { %v5264_v7 = vpop.f32.mrf.mxu1  ;;  %6012 = vst [vmem:[%s13223_s4 + $0x1138] sm:$0xff] %v4669_v25 }
 0x5e7   :  { %v4671_v48 = vpop.f32.mrf.mxu0 }
 0x5e8   :  { %v5265_v55 = vpop.f32.mrf.mxu1  ;;  %6018 = vst [vmem:[%s13223_s4 + $0x1168] sm:$0xff] %v4671_v48 }
 0x5e9   :  { %6020 = vst.msk [vmem:[%s13223_s4 + $0x1178] sm:$0xff] %vm261_vm0, %v5265_v55  ;;  %v4673_v56 = vpop.f32.mrf.mxu0 }
 0x5ea   :  { %v5267_v15 = vpop.f32.mrf.mxu1  ;;  %6019 = vst [vmem:[%s13223_s4 + $0x1170] sm:$0xff] %v4673_v56 }
 0x5eb   :  { %v4677_v4 = vpop.f32.mrf.mxu0 }
 0x5ec   :  { %v5270_v58 = vpop.f32.mrf.mxu1  ;;  %6025 = vst [vmem:[%s13223_s4 + $0x11a0] sm:$0xff] %v4677_v4 }
 0x5ed   :  { %6027 = vst.msk [vmem:[%s13223_s4 + $0x11b0] sm:$0xff] %vm261_vm0, %v5270_v58  ;;  %v4679_v16 = vpop.f32.mrf.mxu0 }
 0x5ee   :  { %v5272_v9 = vpop.f32.mrf.mxu1  ;;  %6026 = vst [vmem:[%s13223_s4 + $0x11a8] sm:$0xff] %v4679_v16 }
 0x5ef   :  { %v4681_v40 = vpop.f32.mrf.mxu0 }
 0x5f0   :  { %v5273_v37 = vpop.f32.mrf.mxu1  ;;  %6032 = vst [vmem:[%s13223_s4 + $0x11d8] sm:$0xff] %v4681_v40 }
 0x5f1   :  { %6034 = vst.msk [vmem:[%s13223_s4 + $0x11e8] sm:$0xff] %vm261_vm0, %v5273_v37  ;;  %v4683_v23 = vpop.f32.mrf.mxu0 }
 0x5f2   :  { %v5275_v6 = vpop.f32.mrf.mxu1  ;;  %6033 = vst [vmem:[%s13223_s4 + $0x11e0] sm:$0xff] %v4683_v23 }
 0x5f3   :  { %v4687_v39 = vpop.f32.mrf.mxu0 }
 0x5f4   :  { %v5278_v62 = vpop.f32.mrf.mxu1  ;;  %6039 = vst [vmem:[%s13223_s4 + $0x1210] sm:$0xff] %v4687_v39 }
 0x5f5   :  { %6041 = vst.msk [vmem:[%s13223_s4 + $0x1220] sm:$0xff] %vm261_vm0, %v5278_v62  ;;  %v4689_v19 = vpop.f32.mrf.mxu0 }
 0x5f6   :  { %v5280_v47 = vpop.f32.mrf.mxu1  ;;  %6040 = vst [vmem:[%s13223_s4 + $0x1218] sm:$0xff] %v4689_v19 }
 0x5f7   :  { %v4691_v22 = vpop.f32.mrf.mxu0 }
 0x5f8   :  { %v5281_v28 = vpop.f32.mrf.mxu1  ;;  %6046 = vst [vmem:[%s13223_s4 + $0x1248] sm:$0xff] %v4691_v22 }
 0x5f9   :  { %6048 = vst.msk [vmem:[%s13223_s4 + $0x1258] sm:$0xff] %vm261_vm0, %v5281_v28  ;;  %v4693_v42 = vpop.f32.mrf.mxu0 }
 0x5fa   :  { %v5283_v24 = vpop.f32.mrf.mxu1  ;;  %6047 = vst [vmem:[%s13223_s4 + $0x1250] sm:$0xff] %v4693_v42 }
 0x5fb   :  { %v4697_v33 = vpop.f32.mrf.mxu0 }
 0x5fc   :  { %v5286_v44 = vpop.f32.mrf.mxu1  ;;  %6053 = vst [vmem:[%s13223_s4 + $0x1280] sm:$0xff] %v4697_v33 }
 0x5fd   :  { %6055 = vst.msk [vmem:[%s13223_s4 + $0x1290] sm:$0xff] %vm261_vm0, %v5286_v44  ;;  %v4699_v45 = vpop.f32.mrf.mxu0 }
 0x5fe   :  { %v5288_v26 = vpop.f32.mrf.mxu1  ;;  %6054 = vst [vmem:[%s13223_s4 + $0x1288] sm:$0xff] %v4699_v45 }
 0x5ff   :  { %v4701_v29 = vpop.f32.mrf.mxu0 }
 0x600   :  { %v5289_v11 = vpop.f32.mrf.mxu1  ;;  %6060 = vst [vmem:[%s13223_s4 + $0x12b8] sm:$0xff] %v4701_v29 }
 0x601   :  { %6062 = vst.msk [vmem:[%s13223_s4 + $0x12c8] sm:$0xff] %vm261_vm0, %v5289_v11  ;;  %v4703_v12 = vpop.f32.mrf.mxu0 }
 0x602   :  { %v5291_v57 = vpop.f32.mrf.mxu1  ;;  %6061 = vst [vmem:[%s13223_s4 + $0x12c0] sm:$0xff] %v4703_v12 }
 0x603   :  { %v4707_v38 = vpop.f32.mrf.mxu0 }
 0x604   :  { %v5294_v54 = vpop.f32.mrf.mxu1  ;;  %6067 = vst [vmem:[%s13223_s4 + $0x12f0] sm:$0xff] %v4707_v38 }
 0x605   :  { %6069 = vst.msk [vmem:[%s13223_s4 + $0x1300] sm:$0xff] %vm261_vm0, %v5294_v54  ;;  %v4709_v17 = vpop.f32.mrf.mxu0 }
 0x606   :  { %v5296_v63 = vpop.f32.mrf.mxu1  ;;  %6068 = vst [vmem:[%s13223_s4 + $0x12f8] sm:$0xff] %v4709_v17 }
 0x607   :  { %v4711_v10 = vpop.f32.mrf.mxu0 }
 0x608   :  { %v5297_v51 = vpop.f32.mrf.mxu1  ;;  %6074 = vst [vmem:[%s13223_s4 + $0x1328] sm:$0xff] %v4711_v10 }
 0x609   :  { %6076 = vst.msk [vmem:[%s13223_s4 + $0x1338] sm:$0xff] %vm261_vm0, %v5297_v51  ;;  %v4713_v27 = vpop.f32.mrf.mxu0 }
 0x60a   :  { %v5299_v34 = vpop.f32.mrf.mxu1  ;;  %6075 = vst [vmem:[%s13223_s4 + $0x1330] sm:$0xff] %v4713_v27 }
 0x60b   :  { %v4717_v30 = vpop.f32.mrf.mxu0 }
 0x60c   :  { %v5302_v53 = vpop.f32.mrf.mxu1  ;;  %6081 = vst [vmem:[%s13223_s4 + $0x1360] sm:$0xff] %v4717_v30 }
 0x60d   :  { %6083 = vst.msk [vmem:[%s13223_s4 + $0x1370] sm:$0xff] %vm261_vm0, %v5302_v53  ;;  %v4719_v60 = vpop.f32.mrf.mxu0 }
 0x60e   :  { %v5304_v35 = vpop.f32.mrf.mxu1  ;;  %6082 = vst [vmem:[%s13223_s4 + $0x1368] sm:$0xff] %v4719_v60 }
 0x60f   :  { %v4721_v32 = vpop.f32.mrf.mxu0 }
 0x610   :  { %v5305_v52 = vpop.f32.mrf.mxu1  ;;  %6088 = vst [vmem:[%s13223_s4 + $0x1398] sm:$0xff] %v4721_v32 }
 0x611   :  { %6090 = vst.msk [vmem:[%s13223_s4 + $0x13a8] sm:$0xff] %vm261_vm0, %v5305_v52  ;;  %v4723_v31 = vpop.f32.mrf.mxu0 }
 0x612   :  { %v5307_v46 = vpop.f32.mrf.mxu1  ;;  %6089 = vst [vmem:[%s13223_s4 + $0x13a0] sm:$0xff] %v4723_v31 }
 0x613   :  { %v4727_v49 = vpop.f32.mrf.mxu0 }
 0x614   :  { %v5310_v36 = vpop.f32.mrf.mxu1  ;;  %6095 = vst [vmem:[%s13223_s4 + $0x13d0] sm:$0xff] %v4727_v49 }
 0x615   :  { %6097 = vst.msk [vmem:[%s13223_s4 + $0x13e0] sm:$0xff] %vm261_vm0, %v5310_v36  ;;  %v4729_v2 = vpop.f32.mrf.mxu0 }
 0x616   :  { %v5312_v14 = vpop.f32.mrf.mxu1  ;;  %6096 = vst [vmem:[%s13223_s4 + $0x13d8] sm:$0xff] %v4729_v2 }
 0x617   :  { %v4731_v1 = vpop.f32.mrf.mxu0 }
 0x618   :  { %v5313_v20 = vpop.f32.mrf.mxu1  ;;  %6102 = vst [vmem:[%s13223_s4 + $0x1408] sm:$0xff] %v4731_v1 }
 0x619   :  { %6104 = vst.msk [vmem:[%s13223_s4 + $0x1418] sm:$0xff] %vm261_vm0, %v5313_v20  ;;  %v4733_v13 = vpop.f32.mrf.mxu0 }
 0x61a   :  { %v5315_v3 = vpop.f32.mrf.mxu1  ;;  %6103 = vst [vmem:[%s13223_s4 + $0x1410] sm:$0xff] %v4733_v13 }
 0x61b   :  { %v4737_v61 = vpop.f32.mrf.mxu0 }
 0x61c   :  { %v5318_v5 = vpop.f32.mrf.mxu1  ;;  %6109 = vst [vmem:[%s13223_s4 + $0x1440] sm:$0xff] %v4737_v61 }
 0x61d   :  { %6111 = vst.msk [vmem:[%s13223_s4 + $0x1450] sm:$0xff] %vm261_vm0, %v5318_v5  ;;  %v4739_v41 = vpop.f32.mrf.mxu0 }
 0x61e   :  { %v5320_v59 = vpop.f32.mrf.mxu1  ;;  %6110 = vst [vmem:[%s13223_s4 + $0x1448] sm:$0xff] %v4739_v41 }
 0x61f   :  { %v4741_v18 = vpop.f32.mrf.mxu0 }
 0x620   :  { %v5321_v21 = vpop.f32.mrf.mxu1  ;;  %6116 = vst [vmem:[%s13223_s4 + $0x1478] sm:$0xff] %v4741_v18 }
 0x621   :  { %6118 = vst.msk [vmem:[%s13223_s4 + $0x1488] sm:$0xff] %vm261_vm0, %v5321_v21  ;;  %v4743_v43 = vpop.f32.mrf.mxu0 }
 0x622   :  { %v5323_v50 = vpop.f32.mrf.mxu1  ;;  %6117 = vst [vmem:[%s13223_s4 + $0x1480] sm:$0xff] %v4743_v43 }
 0x623   :  { %v4747_v8 = vpop.f32.mrf.mxu0 }
 0x624   :  { %v5326_v0 = vpop.f32.mrf.mxu1  ;;  %6123 = vst [vmem:[%s13223_s4 + $0x14b0] sm:$0xff] %v4747_v8 }
 0x625   :  { %6125 = vst.msk [vmem:[%s13223_s4 + $0x14c0] sm:$0xff] %vm261_vm0, %v5326_v0  ;;  %v4749_v25 = vpop.f32.mrf.mxu0 }
 0x626   :  { %v5328_v7 = vpop.f32.mrf.mxu1  ;;  %6124 = vst [vmem:[%s13223_s4 + $0x14b8] sm:$0xff] %v4749_v25 }
 0x627   :  { %v4751_v48 = vpop.f32.mrf.mxu0 }
 0x628   :  { %v5329_v55 = vpop.f32.mrf.mxu1  ;;  %6130 = vst [vmem:[%s13223_s4 + $0x14e8] sm:$0xff] %v4751_v48 }
 0x629   :  { %6132 = vst.msk [vmem:[%s13223_s4 + $0x14f8] sm:$0xff] %vm261_vm0, %v5329_v55  ;;  %v4753_v56 = vpop.f32.mrf.mxu0 }
 0x62a   :  { %v5331_v15 = vpop.f32.mrf.mxu1  ;;  %6131 = vst [vmem:[%s13223_s4 + $0x14f0] sm:$0xff] %v4753_v56 }
 0x62b   :  { %v4757_v4 = vpop.f32.mrf.mxu0 }
 0x62c   :  { %v5334_v58 = vpop.f32.mrf.mxu1  ;;  %6137 = vst [vmem:[%s13223_s4 + $0x1520] sm:$0xff] %v4757_v4 }
 0x62d   :  { %6139 = vst.msk [vmem:[%s13223_s4 + $0x1530] sm:$0xff] %vm261_vm0, %v5334_v58  ;;  %v4759_v16 = vpop.f32.mrf.mxu0 }
 0x62e   :  { %v5336_v9 = vpop.f32.mrf.mxu1  ;;  %6138 = vst [vmem:[%s13223_s4 + $0x1528] sm:$0xff] %v4759_v16 }
 0x62f   :  { %v4761_v40 = vpop.f32.mrf.mxu0 }
 0x630   :  { %v5337_v37 = vpop.f32.mrf.mxu1  ;;  %6144 = vst [vmem:[%s13223_s4 + $0x1558] sm:$0xff] %v4761_v40 }
 0x631   :  { %6146 = vst.msk [vmem:[%s13223_s4 + $0x1568] sm:$0xff] %vm261_vm0, %v5337_v37  ;;  %v4763_v23 = vpop.f32.mrf.mxu0 }
 0x632   :  { %v5339_v6 = vpop.f32.mrf.mxu1  ;;  %6145 = vst [vmem:[%s13223_s4 + $0x1560] sm:$0xff] %v4763_v23 }
 0x633   :  { %v4767_v39 = vpop.f32.mrf.mxu0 }
 0x634   :  { %v5342_v62 = vpop.f32.mrf.mxu1  ;;  %6151 = vst [vmem:[%s13223_s4 + $0x1590] sm:$0xff] %v4767_v39 }
 0x635   :  { %6153 = vst.msk [vmem:[%s13223_s4 + $0x15a0] sm:$0xff] %vm261_vm0, %v5342_v62  ;;  %v4769_v19 = vpop.f32.mrf.mxu0 }
 0x636   :  { %v5344_v47 = vpop.f32.mrf.mxu1  ;;  %6152 = vst [vmem:[%s13223_s4 + $0x1598] sm:$0xff] %v4769_v19 }
 0x637   :  { %v4771_v22 = vpop.f32.mrf.mxu0 }
 0x638   :  { %v5345_v28 = vpop.f32.mrf.mxu1  ;;  %6158 = vst [vmem:[%s13223_s4 + $0x15c8] sm:$0xff] %v4771_v22 }
 0x639   :  { %6160 = vst.msk [vmem:[%s13223_s4 + $0x15d8] sm:$0xff] %vm261_vm0, %v5345_v28  ;;  %v4773_v42 = vpop.f32.mrf.mxu0 }
 0x63a   :  { %v5347_v24 = vpop.f32.mrf.mxu1  ;;  %6159 = vst [vmem:[%s13223_s4 + $0x15d0] sm:$0xff] %v4773_v42 }
 0x63b   :  { %v4777_v33 = vpop.f32.mrf.mxu0 }
 0x63c   :  { %v5350_v44 = vpop.f32.mrf.mxu1  ;;  %6165 = vst [vmem:[%s13223_s4 + $0x1600] sm:$0xff] %v4777_v33 }
 0x63d   :  { %6167 = vst.msk [vmem:[%s13223_s4 + $0x1610] sm:$0xff] %vm261_vm0, %v5350_v44  ;;  %v4779_v45 = vpop.f32.mrf.mxu0 }
 0x63e   :  { %v5352_v26 = vpop.f32.mrf.mxu1  ;;  %6166 = vst [vmem:[%s13223_s4 + $0x1608] sm:$0xff] %v4779_v45 }
 0x63f   :  { %v4781_v29 = vpop.f32.mrf.mxu0 }
 0x640   :  { %v5353_v11 = vpop.f32.mrf.mxu1  ;;  %6172 = vst [vmem:[%s13223_s4 + $0x1638] sm:$0xff] %v4781_v29 }
 0x641   :  { %6174 = vst.msk [vmem:[%s13223_s4 + $0x1648] sm:$0xff] %vm261_vm0, %v5353_v11  ;;  %v4783_v12 = vpop.f32.mrf.mxu0 }
 0x642   :  { %v5355_v57 = vpop.f32.mrf.mxu1  ;;  %6173 = vst [vmem:[%s13223_s4 + $0x1640] sm:$0xff] %v4783_v12 }
 0x643   :  { %v4787_v38 = vpop.f32.mrf.mxu0 }
 0x644   :  { %v5358_v54 = vpop.f32.mrf.mxu1  ;;  %6179 = vst [vmem:[%s13223_s4 + $0x1670] sm:$0xff] %v4787_v38 }
 0x645   :  { %6181 = vst.msk [vmem:[%s13223_s4 + $0x1680] sm:$0xff] %vm261_vm0, %v5358_v54  ;;  %v4789_v17 = vpop.f32.mrf.mxu0 }
 0x646   :  { %v5360_v63 = vpop.f32.mrf.mxu1  ;;  %6180 = vst [vmem:[%s13223_s4 + $0x1678] sm:$0xff] %v4789_v17 }
 0x647   :  { %v4791_v10 = vpop.f32.mrf.mxu0 }
 0x648   :  { %v5361_v51 = vpop.f32.mrf.mxu1  ;;  %6186 = vst [vmem:[%s13223_s4 + $0x16a8] sm:$0xff] %v4791_v10 }
 0x649   :  { %6188 = vst.msk [vmem:[%s13223_s4 + $0x16b8] sm:$0xff] %vm261_vm0, %v5361_v51  ;;  %v4793_v27 = vpop.f32.mrf.mxu0 }
 0x64a   :  { %v5363_v34 = vpop.f32.mrf.mxu1  ;;  %6187 = vst [vmem:[%s13223_s4 + $0x16b0] sm:$0xff] %v4793_v27 }
 0x64b   :  { %v4797_v30 = vpop.f32.mrf.mxu0 }
 0x64c   :  { %v5366_v53 = vpop.f32.mrf.mxu1  ;;  %6193 = vst [vmem:[%s13223_s4 + $0x16e0] sm:$0xff] %v4797_v30 }
 0x64d   :  { %6195 = vst.msk [vmem:[%s13223_s4 + $0x16f0] sm:$0xff] %vm261_vm0, %v5366_v53  ;;  %v4799_v60 = vpop.f32.mrf.mxu0 }
 0x64e   :  { %v5368_v35 = vpop.f32.mrf.mxu1  ;;  %6194 = vst [vmem:[%s13223_s4 + $0x16e8] sm:$0xff] %v4799_v60 }
 0x64f   :  { %v4801_v32 = vpop.f32.mrf.mxu0 }
 0x650   :  { %v5369_v52 = vpop.f32.mrf.mxu1  ;;  %6200 = vst [vmem:[%s13223_s4 + $0x1718] sm:$0xff] %v4801_v32 }
 0x651   :  { %6202 = vst.msk [vmem:[%s13223_s4 + $0x1728] sm:$0xff] %vm261_vm0, %v5369_v52  ;;  %v4803_v31 = vpop.f32.mrf.mxu0 }
 0x652   :  { %v5371_v46 = vpop.f32.mrf.mxu1  ;;  %6201 = vst [vmem:[%s13223_s4 + $0x1720] sm:$0xff] %v4803_v31 }
 0x653   :  { %v4807_v49 = vpop.f32.mrf.mxu0 }
 0x654   :  { %v5374_v36 = vpop.f32.mrf.mxu1  ;;  %6207 = vst [vmem:[%s13223_s4 + $0x1750] sm:$0xff] %v4807_v49 }
 0x655   :  { %6209 = vst.msk [vmem:[%s13223_s4 + $0x1760] sm:$0xff] %vm261_vm0, %v5374_v36  ;;  %v4809_v2 = vpop.f32.mrf.mxu0 }
 0x656   :  { %v5376_v14 = vpop.f32.mrf.mxu1  ;;  %6208 = vst [vmem:[%s13223_s4 + $0x1758] sm:$0xff] %v4809_v2 }
 0x657   :  { %v4811_v1 = vpop.f32.mrf.mxu0 }
 0x658   :  { %v5377_v20 = vpop.f32.mrf.mxu1  ;;  %6214 = vst [vmem:[%s13223_s4 + $0x1788] sm:$0xff] %v4811_v1 }
 0x659   :  { %6216 = vst.msk [vmem:[%s13223_s4 + $0x1798] sm:$0xff] %vm261_vm0, %v5377_v20  ;;  %v4813_v13 = vpop.f32.mrf.mxu0 }
 0x65a   :  { %v5379_v3 = vpop.f32.mrf.mxu1  ;;  %6215 = vst [vmem:[%s13223_s4 + $0x1790] sm:$0xff] %v4813_v13 }
 0x65b   :  { %v4817_v61 = vpop.f32.mrf.mxu0 }
 0x65c   :  { %v5382_v5 = vpop.f32.mrf.mxu1  ;;  %6221 = vst [vmem:[%s13223_s4 + $0x17c0] sm:$0xff] %v4817_v61 }
 0x65d   :  { %6223 = vst.msk [vmem:[%s13223_s4 + $0x17d0] sm:$0xff] %vm261_vm0, %v5382_v5  ;;  %v4819_v41 = vpop.f32.mrf.mxu0 }
 0x65e   :  { %v5384_v59 = vpop.f32.mrf.mxu1  ;;  %6222 = vst [vmem:[%s13223_s4 + $0x17c8] sm:$0xff] %v4819_v41 }
 0x65f   :  { %v4821_v18 = vpop.f32.mrf.mxu0 }
 0x660   :  { %v5385_v21 = vpop.f32.mrf.mxu1  ;;  %6228 = vst [vmem:[%s13223_s4 + $0x17f8] sm:$0xff] %v4821_v18 }
 0x661   :  { %6230 = vst.msk [vmem:[%s13223_s4 + $0x1808] sm:$0xff] %vm261_vm0, %v5385_v21  ;;  %v4823_v43 = vpop.f32.mrf.mxu0 }
 0x662   :  { %v5387_v50 = vpop.f32.mrf.mxu1  ;;  %6229 = vst [vmem:[%s13223_s4 + $0x1800] sm:$0xff] %v4823_v43 }
 0x663   :  { %v4827_v8 = vpop.f32.mrf.mxu0 }
 0x664   :  { %v5390_v0 = vpop.f32.mrf.mxu1  ;;  %6235 = vst [vmem:[%s13223_s4 + $0x1830] sm:$0xff] %v4827_v8 }
 0x665   :  { %6237 = vst.msk [vmem:[%s13223_s4 + $0x1840] sm:$0xff] %vm261_vm0, %v5390_v0  ;;  %v4829_v25 = vpop.f32.mrf.mxu0 }
 0x666   :  { %v5392_v7 = vpop.f32.mrf.mxu1  ;;  %6236 = vst [vmem:[%s13223_s4 + $0x1838] sm:$0xff] %v4829_v25 }
 0x667   :  { %v4831_v48 = vpop.f32.mrf.mxu0 }
 0x668   :  { %v5393_v55 = vpop.f32.mrf.mxu1  ;;  %6242 = vst [vmem:[%s13223_s4 + $0x1868] sm:$0xff] %v4831_v48 }
 0x669   :  { %6244 = vst.msk [vmem:[%s13223_s4 + $0x1878] sm:$0xff] %vm261_vm0, %v5393_v55  ;;  %v4833_v56 = vpop.f32.mrf.mxu0 }
 0x66a   :  { %v5395_v15 = vpop.f32.mrf.mxu1  ;;  %6243 = vst [vmem:[%s13223_s4 + $0x1870] sm:$0xff] %v4833_v56 }
 0x66b   :  { %v4837_v4 = vpop.f32.mrf.mxu0 }
 0x66c   :  { %v5398_v58 = vpop.f32.mrf.mxu1  ;;  %6249 = vst [vmem:[%s13223_s4 + $0x18a0] sm:$0xff] %v4837_v4 }
 0x66d   :  { %6251 = vst.msk [vmem:[%s13223_s4 + $0x18b0] sm:$0xff] %vm261_vm0, %v5398_v58  ;;  %v4839_v16 = vpop.f32.mrf.mxu0 }
 0x66e   :  { %v5400_v9 = vpop.f32.mrf.mxu1  ;;  %6250 = vst [vmem:[%s13223_s4 + $0x18a8] sm:$0xff] %v4839_v16 }
 0x66f   :  { %v4841_v40 = vpop.f32.mrf.mxu0 }
 0x670   :  { %v5401_v37 = vpop.f32.mrf.mxu1  ;;  %6256 = vst [vmem:[%s13223_s4 + $0x18d8] sm:$0xff] %v4841_v40 }
 0x671   :  { %6258 = vst.msk [vmem:[%s13223_s4 + $0x18e8] sm:$0xff] %vm261_vm0, %v5401_v37  ;;  %v4843_v23 = vpop.f32.mrf.mxu0 }
 0x672   :  { %v5403_v6 = vpop.f32.mrf.mxu1  ;;  %6257 = vst [vmem:[%s13223_s4 + $0x18e0] sm:$0xff] %v4843_v23 }
 0x673   :  { %v4847_v39 = vpop.f32.mrf.mxu0 }
 0x674   :  { %v5406_v62 = vpop.f32.mrf.mxu1  ;;  %6263 = vst [vmem:[%s13223_s4 + $0x1910] sm:$0xff] %v4847_v39 }
 0x675   :  { %6265 = vst.msk [vmem:[%s13223_s4 + $0x1920] sm:$0xff] %vm261_vm0, %v5406_v62  ;;  %v4849_v19 = vpop.f32.mrf.mxu0 }
 0x676   :  { %v5408_v47 = vpop.f32.mrf.mxu1  ;;  %6264 = vst [vmem:[%s13223_s4 + $0x1918] sm:$0xff] %v4849_v19 }
 0x677   :  { %v4851_v22 = vpop.f32.mrf.mxu0 }
 0x678   :  { %v5409_v28 = vpop.f32.mrf.mxu1  ;;  %6270 = vst [vmem:[%s13223_s4 + $0x1948] sm:$0xff] %v4851_v22 }
 0x679   :  { %6272 = vst.msk [vmem:[%s13223_s4 + $0x1958] sm:$0xff] %vm261_vm0, %v5409_v28  ;;  %v4853_v42 = vpop.f32.mrf.mxu0 }
 0x67a   :  { %v5411_v24 = vpop.f32.mrf.mxu1  ;;  %6271 = vst [vmem:[%s13223_s4 + $0x1950] sm:$0xff] %v4853_v42 }
 0x67b   :  { %v4857_v33 = vpop.f32.mrf.mxu0 }
 0x67c   :  { %v5414_v44 = vpop.f32.mrf.mxu1  ;;  %6277 = vst [vmem:[%s13223_s4 + $0x1980] sm:$0xff] %v4857_v33 }
 0x67d   :  { %6279 = vst.msk [vmem:[%s13223_s4 + $0x1990] sm:$0xff] %vm261_vm0, %v5414_v44  ;;  %v4859_v45 = vpop.f32.mrf.mxu0 }
 0x67e   :  { %v5416_v26 = vpop.f32.mrf.mxu1  ;;  %6278 = vst [vmem:[%s13223_s4 + $0x1988] sm:$0xff] %v4859_v45 }
 0x67f   :  { %v4861_v29 = vpop.f32.mrf.mxu0 }
 0x680   :  { %v5417_v11 = vpop.f32.mrf.mxu1  ;;  %6284 = vst [vmem:[%s13223_s4 + $0x19b8] sm:$0xff] %v4861_v29 }
 0x681   :  { %6286 = vst.msk [vmem:[%s13223_s4 + $0x19c8] sm:$0xff] %vm261_vm0, %v5417_v11  ;;  %v4863_v12 = vpop.f32.mrf.mxu0 }
 0x682   :  { %v5419_v57 = vpop.f32.mrf.mxu1  ;;  %6285 = vst [vmem:[%s13223_s4 + $0x19c0] sm:$0xff] %v4863_v12 }
 0x683   :  { %v4867_v38 = vpop.f32.mrf.mxu0 }
 0x684   :  { %v5422_v54 = vpop.f32.mrf.mxu1  ;;  %6291 = vst [vmem:[%s13223_s4 + $0x19f0] sm:$0xff] %v4867_v38 }
 0x685   :  { %6293 = vst.msk [vmem:[%s13223_s4 + $0x1a00] sm:$0xff] %vm261_vm0, %v5422_v54  ;;  %v4869_v17 = vpop.f32.mrf.mxu0 }
 0x686   :  { %v5424_v63 = vpop.f32.mrf.mxu1  ;;  %6292 = vst [vmem:[%s13223_s4 + $0x19f8] sm:$0xff] %v4869_v17 }
 0x687   :  { %v4871_v10 = vpop.f32.mrf.mxu0 }
 0x688   :  { %v5425_v51 = vpop.f32.mrf.mxu1  ;;  %6298 = vst [vmem:[%s13223_s4 + $0x1a28] sm:$0xff] %v4871_v10 }
 0x689   :  { %6300 = vst.msk [vmem:[%s13223_s4 + $0x1a38] sm:$0xff] %vm261_vm0, %v5425_v51  ;;  %v4873_v27 = vpop.f32.mrf.mxu0 }
 0x68a   :  { %v5427_v34 = vpop.f32.mrf.mxu1  ;;  %6299 = vst [vmem:[%s13223_s4 + $0x1a30] sm:$0xff] %v4873_v27 }
 0x68b   :  { %v4877_v30 = vpop.f32.mrf.mxu0 }
 0x68c   :  { %v5430_v53 = vpop.f32.mrf.mxu1  ;;  %6305 = vst [vmem:[%s13223_s4 + $0x1a60] sm:$0xff] %v4877_v30 }
 0x68d   :  { %6307 = vst.msk [vmem:[%s13223_s4 + $0x1a70] sm:$0xff] %vm261_vm0, %v5430_v53  ;;  %v4879_v60 = vpop.f32.mrf.mxu0 }
 0x68e   :  { %v5432_v35 = vpop.f32.mrf.mxu1  ;;  %6306 = vst [vmem:[%s13223_s4 + $0x1a68] sm:$0xff] %v4879_v60 }
 0x68f   :  { %v4881_v32 = vpop.f32.mrf.mxu0 }
 0x690   :  { %v5433_v52 = vpop.f32.mrf.mxu1  ;;  %6312 = vst [vmem:[%s13223_s4 + $0x1a98] sm:$0xff] %v4881_v32 }
 0x691   :  { %6314 = vst.msk [vmem:[%s13223_s4 + $0x1aa8] sm:$0xff] %vm261_vm0, %v5433_v52  ;;  %v4883_v31 = vpop.f32.mrf.mxu0 }
 0x692   :  { %v5435_v46 = vpop.f32.mrf.mxu1  ;;  %6313 = vst [vmem:[%s13223_s4 + $0x1aa0] sm:$0xff] %v4883_v31 }
 0x693   :  { %v4887_v49 = vpop.f32.mrf.mxu0 }
 0x694   :  { %v5438_v36 = vpop.f32.mrf.mxu1  ;;  %6319 = vst [vmem:[%s13223_s4 + $0x1ad0] sm:$0xff] %v4887_v49 }
 0x695   :  { %6321 = vst.msk [vmem:[%s13223_s4 + $0x1ae0] sm:$0xff] %vm261_vm0, %v5438_v36  ;;  %v4889_v2 = vpop.f32.mrf.mxu0 }
 0x696   :  { %v5440_v14 = vpop.f32.mrf.mxu1  ;;  %6320 = vst [vmem:[%s13223_s4 + $0x1ad8] sm:$0xff] %v4889_v2 }
 0x697   :  { %v4891_v1 = vpop.f32.mrf.mxu0 }
 0x698   :  { %v5441_v20 = vpop.f32.mrf.mxu1  ;;  %6326 = vst [vmem:[%s13223_s4 + $0x1b08] sm:$0xff] %v4891_v1 }
 0x699   :  { %6328 = vst.msk [vmem:[%s13223_s4 + $0x1b18] sm:$0xff] %vm261_vm0, %v5441_v20  ;;  %v4893_v13 = vpop.f32.mrf.mxu0 }
 0x69a   :  { %v5443_v3 = vpop.f32.mrf.mxu1  ;;  %6327 = vst [vmem:[%s13223_s4 + $0x1b10] sm:$0xff] %v4893_v13 }
 0x69b   :  { %v4897_v61 = vpop.f32.mrf.mxu0 }
 0x69c   :  { %v5446_v5 = vpop.f32.mrf.mxu1  ;;  %6333 = vst [vmem:[%s13223_s4 + $0x1b40] sm:$0xff] %v4897_v61 }
 0x69d   :  { %6335 = vst.msk [vmem:[%s13223_s4 + $0x1b50] sm:$0xff] %vm261_vm0, %v5446_v5  ;;  %v4899_v41 = vpop.f32.mrf.mxu0 }
 0x69e   :  { %v5448_v59 = vpop.f32.mrf.mxu1  ;;  %6334 = vst [vmem:[%s13223_s4 + $0x1b48] sm:$0xff] %v4899_v41 }
 0x69f   :  { %v4901_v18 = vpop.f32.mrf.mxu0 }
 0x6a0   :  { %v5449_v21 = vpop.f32.mrf.mxu1  ;;  %6340 = vst [vmem:[%s13223_s4 + $0x1b78] sm:$0xff] %v4901_v18 }
 0x6a1   :  { %6342 = vst.msk [vmem:[%s13223_s4 + $0x1b88] sm:$0xff] %vm261_vm0, %v5449_v21  ;;  %v4903_v43 = vpop.f32.mrf.mxu0 }
 0x6a2   :  { %v5451_v50 = vpop.f32.mrf.mxu1  ;;  %6341 = vst [vmem:[%s13223_s4 + $0x1b80] sm:$0xff] %v4903_v43 }
 0x6a3   :  { %v4907_v8 = vpop.f32.mrf.mxu0 }
 0x6a4   :  { %v5454_v0 = vpop.f32.mrf.mxu1  ;;  %6347 = vst [vmem:[%s13223_s4 + $0x1bb0] sm:$0xff] %v4907_v8 }
 0x6a5   :  { %6349 = vst.msk [vmem:[%s13223_s4 + $0x1bc0] sm:$0xff] %vm261_vm0, %v5454_v0  ;;  %v4909_v25 = vpop.f32.mrf.mxu0 }
 0x6a6   :  { %v5456_v7 = vpop.f32.mrf.mxu1  ;;  %6348 = vst [vmem:[%s13223_s4 + $0x1bb8] sm:$0xff] %v4909_v25 }
 0x6a7   :  { %v4911_v48 = vpop.f32.mrf.mxu0 }
 0x6a8   :  { %v5457_v55 = vpop.f32.mrf.mxu1  ;;  %6354 = vst [vmem:[%s13223_s4 + $0x1be8] sm:$0xff] %v4911_v48 }
 0x6a9   :  { %6356 = vst.msk [vmem:[%s13223_s4 + $0x1bf8] sm:$0xff] %vm261_vm0, %v5457_v55  ;;  %v4913_v56 = vpop.f32.mrf.mxu0 }
 0x6aa   :  { %v5459_v15 = vpop.f32.mrf.mxu1  ;;  %6355 = vst [vmem:[%s13223_s4 + $0x1bf0] sm:$0xff] %v4913_v56 }
 0x6ab   :  { %6361 = vsyncpa [#allocation3], 1 }

</bundles_post_ra>
